<compile_context>
chip_gen: v7x
topology: tpu7x:2x2x1
jax: 0.10.0
libtpu: 0.0.40
codegen_flags: <defaults>
</compile_context>

<pallas_src>
import numpy as np
import jax
import jax.numpy as jnp
from jax.experimental import pallas as pl
from jax.experimental.pallas import tpu as pltpu


def _round_up(x, m):
    return ((x + m - 1) // m) * m


def _vmem_limit(est_bytes):
    # generous headroom over the per-step block budget, capped at v7x's 64 MiB.
    return int(min(64 * 1024 * 1024,
                   max(8 * 1024 * 1024, est_bytes * 1.5 + 2 * 1024 * 1024)))


# ---------------------------------------------------------------------------
# Grouped tiled matmul + bias:   sum_g  x[g] @ w[g]  + b
# Handles every 1x1 conv.  G=2 folds the temporal channel-concat of the fuse
# layers directly into the K reduction (no HBM concatenation).
# ---------------------------------------------------------------------------
def _make_matmul_kernel(small_k):
    def kernel(x_ref, w_ref, b_ref, o_ref, acc_ref):
        g = pl.program_id(2)
        k = pl.program_id(3)

        @pl.when((g == 0) & (k == 0))
        def _init():
            acc_ref[...] = jnp.zeros_like(acc_ref)

        if small_k:
            # tiny contraction (3-channel images): VPU broadcast-FMAs instead
            # of an MXU matmul, and no K padding in HBM.
            x = x_ref[0].astype(jnp.float32)
            wb = w_ref[0].astype(jnp.float32)
            acc = acc_ref[...]
            for kk in range(x.shape[-1]):          # static, tiny
                acc = acc + x[:, kk:kk + 1] * wb[kk:kk + 1, :]
            acc_ref[...] = acc
        else:
            acc_ref[...] += jnp.dot(x_ref[0], w_ref[0],
                                    preferred_element_type=jnp.float32)

        @pl.when((g == pl.num_programs(2) - 1) & (k == pl.num_programs(3) - 1))
        def _finish():
            o_ref[...] = (acc_ref[...] + b_ref[...]).astype(o_ref.dtype)

    return kernel


def _pick_tk(K):
    if K % 128 == 0:
        for t in (1024, 512, 256, 128):
            if K % t == 0:
                return t
    return K                       # small / odd K: full-K block, no padding


def matmul_bias_grouped(x, w, b, out_dtype=jnp.bfloat16, tm_max=512):
    """x: (G, M, K), w: (G, K, C), b: (C,)  ->  sum_g x[g] @ w[g] + b : (M, C)."""
    G, M, K = x.shape
    C = w.shape[-1]
    tk = _pick_tk(K)
    tn = 256 if (C % 256 == 0 and C >= 256) else (128 if C % 128 == 0 else C)
    tm = min(tm_max, _round_up(M, 16))
    Mp = _round_up(M, tm)

    xp = x.astype(jnp.bfloat16)
    if Mp != M:
        xp = jnp.pad(xp, ((0, 0), (0, Mp - M), (0, 0)))
    wp = w.astype(jnp.bfloat16)
    bp = b.astype(jnp.float32).reshape(1, C)

    est = (2 * tm * tk * 2 + 2 * tk * tn * 2 + 2 * tm * tn * 4 + tm * tn * 4)
    out = pl.pallas_call(
        _make_matmul_kernel(tk < 8),
        out_shape=jax.ShapeDtypeStruct((Mp, C), out_dtype),
        grid=(Mp // tm, C // tn, G, K // tk),        # reductions (G, K) last
        in_specs=[pl.BlockSpec((1, tm, tk), lambda i, j, g, k: (g, i, k)),
                  pl.BlockSpec((1, tk, tn), lambda i, j, g, k: (g, k, j)),
                  pl.BlockSpec((1, tn), lambda i, j, g, k: (0, j))],
        out_specs=pl.BlockSpec((tm, tn), lambda i, j, g, k: (i, j)),
        scratch_shapes=[pltpu.VMEM((tm, tn), jnp.float32)],
        compiler_params=pltpu.CompilerParams(
            dimension_semantics=("parallel", "parallel", "arbitrary", "arbitrary"),
            vmem_limit_bytes=_vmem_limit(est)),
    )(xp, wp, bp)
    if Mp != M:
        out = out[:M]
    return out


def conv1x1(x, w, b, out_dtype=jnp.bfloat16):
    """x: (N, H, W, Cin), w: (Cin, Cout)."""
    N, H, W, Cin = x.shape
    Cout = w.shape[-1]
    y = matmul_bias_grouped(x.reshape(1, N * H * W, Cin),
                            w.reshape(1, Cin, Cout), b, out_dtype=out_dtype)
    return y.reshape(N, H, W, Cout)


def fuse_conv1x1(feat, w, b, n_batch, out_dtype=jnp.bfloat16):
    """torch: Conv2d(2C, Cout, 1)(cat([pre, post], ch)).  feat: (2N, H, W, C)
    stacked [pre; post]; the channel-concat is folded into the grouped K
    reduction (no HBM rearrange)."""
    _, H, W, C = feat.shape
    Cout = w.shape[-1]
    xg = feat.reshape(2, n_batch * H * W, C)
    wg = w.reshape(2, C, Cout)
    y = matmul_bias_grouped(xg, wg, b, out_dtype=out_dtype)
    return y.reshape(n_batch, H, W, Cout)


# ---------------------------------------------------------------------------
# 3x3 conv (stride 1, padding 1), row-block tiled, taps packed per dy (K=384),
# optional fused 1x1 projection (classifier) epilogue.
# The padded image is flattened to (rows * w_pad, C); tap (dy, dx) is then the
# contiguous slice starting at dy*w_pad + dx, so the im2col is built tile-by-
# tile in VMEM.  Row stride w_pad is rounded to a multiple of 8 so the dy tap
# offsets stay sublane aligned.  Halo rows (2 per row block) arrive through a
# second BlockSpec on the same flattened array.
# ---------------------------------------------------------------------------
_CONV_POS_BUDGET = 8192        # flattened output positions per row block


def _pick_conv_tr(H, w_pad):
    cap = max(2, min(64, _CONV_POS_BUDGET // w_pad))
    cap -= cap % 2
    cap = max(cap, 2)
    start = min(cap, H if H % 2 == 0 else H - 1)
    for t in range(start, 1, -2):       # prefer an even divisor of H
        if H % t == 0:
            return t
    return min(cap, _round_up(H, 2))


def _make_conv3x3_kernel(TR, w_pad, W, Cin, Cout, proj):
    p_out = TR * w_pad

    def kernel(xm_ref, xh_ref, w_ref, b_ref, *rest):
        if proj:
            pw_ref, pb_ref, o_ref, xbuf_ref, pk_ref, acc_ref = rest
        else:
            o_ref, xbuf_ref, pk_ref, acc_ref = rest

        # assemble the contiguous (TR rows + 2 halo rows) window in VMEM
        xbuf_ref[0:p_out, :] = xm_ref[0]
        xbuf_ref[p_out:p_out + 2 * w_pad, :] = xh_ref[0]
        xbuf_ref[p_out + 2 * w_pad:, :] = jnp.zeros((8, Cin), jnp.bfloat16)

        # 3 packed taps: per dy, pack the 3 dx-shifted slices along channels
        # (K = 3*Cin = 384 -> full 256-wide MXU contraction on v6e/v7x).
        for dy in range(3):
            base = dy * w_pad
            for dx in range(3):
                pk_ref[:, dx * Cin:(dx + 1) * Cin] = \
                    xbuf_ref[base + dx:base + dx + p_out, :]
            contrib = jnp.dot(pk_ref[...], w_ref[dy],
                              preferred_element_type=jnp.float32)
            if dy == 0:
                acc_ref[...] = contrib + b_ref[...]      # fold bias into init
            else:
                acc_ref[...] += contrib

        # drop the junk columns with one strided store (no per-row unroll)
        res = acc_ref[...].reshape(TR, w_pad, Cout)[:, :W, :]
        if proj:
            cproj = pw_ref.shape[-1]
            logits = jnp.dot(res.reshape(TR * W, Cout), pw_ref[...],
                             preferred_element_type=jnp.float32) + pb_ref[...]
            o_ref[0] = logits.reshape(TR, W, cproj).astype(o_ref.dtype)
        else:
            o_ref[0] = res.astype(o_ref.dtype)

    return kernel


def conv3x3(x, w, b, proj_w=None, proj_b=None, out_dtype=jnp.bfloat16):
    """x: (N, H, W, C), w: (3, 3, C, Cout), b: (Cout,).  If proj_w/proj_b are
    given, a fused 1x1 projection (the classifier) is applied to the f32
    accumulator and only the projected map is written to HBM."""
    N, H, W, Cin = x.shape
    Cout = w.shape[-1]
    proj = proj_w is not None

    w_pad = _round_up(W + 2, 8)            # sublane-aligned row stride
    TR = _pick_conv_tr(H, w_pad)
    num_rb = -(-H // TR)
    Hb = num_rb * TR
    rows_total = Hb + TR                   # both block grids tile this exactly
    xpad = jnp.pad(x.astype(jnp.bfloat16),
                   ((0, 0), (1, rows_total - H - 1), (1, w_pad - W - 1), (0, 0)))
    x_flat = xpad.reshape(N, rows_total * w_pad, Cin)
    w9 = w.reshape(3, 3 * Cin, Cout).astype(jnp.bfloat16)
    b2 = b.reshape(1, Cout).astype(jnp.float32)
    p_out = TR * w_pad

    in_specs = [
        pl.BlockSpec((1, p_out, Cin), lambda n, rb: (n, rb, 0)),       # main rows
        pl.BlockSpec((1, 2 * w_pad, Cin),
                     lambda n, rb: (n, (rb + 1) * (TR // 2), 0)),      # 2 halo rows
        pl.BlockSpec((3, 3 * Cin, Cout), lambda n, rb: (0, 0, 0)),
        pl.BlockSpec((1, Cout), lambda n, rb: (0, 0)),
    ]
    args = [x_flat, x_flat, w9, b2]
    if proj:
        cproj = proj_w.shape[-1]
        in_specs += [pl.BlockSpec((Cout, cproj), lambda n, rb: (0, 0)),
                     pl.BlockSpec((1, cproj), lambda n, rb: (0, 0))]
        args += [proj_w.astype(jnp.float32),
                 proj_b.reshape(1, cproj).astype(jnp.float32)]
        out_c, out_dt = cproj, jnp.float32
    else:
        out_c, out_dt = Cout, out_dtype

    # TODO(synk): additionally tile the W axis for extremely wide images.
    est = (2 * p_out * Cin * 2 + 4 * w_pad * Cin * 2 * 2 + 9 * Cin * Cout * 2 * 2
           + (p_out + 2 * w_pad + 8) * Cin * 2      # xbuf scratch
           + p_out * 3 * Cin * 2                    # packed scratch
           + p_out * Cout * 4                       # f32 accumulator
           + 2 * TR * W * out_c * 4)
    out = pl.pallas_call(
        _make_conv3x3_kernel(TR, w_pad, W, Cin, Cout, proj),
        out_shape=jax.ShapeDtypeStruct((N, Hb, W, out_c), out_dt),
        grid=(N, num_rb),
        in_specs=in_specs,
        out_specs=pl.BlockSpec((1, TR, W, out_c), lambda n, rb: (n, rb, 0, 0)),
        scratch_shapes=[pltpu.VMEM((p_out + 2 * w_pad + 8, Cin), jnp.bfloat16),
                        pltpu.VMEM((p_out, 3 * Cin), jnp.bfloat16),
                        pltpu.VMEM((p_out, Cout), jnp.float32)],
        compiler_params=pltpu.CompilerParams(
            dimension_semantics=("parallel", "parallel"),
            vmem_limit_bytes=_vmem_limit(est)),
    )(*args)
    if Hb != H:
        out = out[:, :H]
    return out


# ---------------------------------------------------------------------------
# Bilinear resize (PyTorch align_corners=False), Hout grid-tiled, optional
# fused "+ y" (the residual of _upsample_add).
#   pass 1: H interpolation as one (THo, Hin) @ (Hin, Win*C) matmul
#   pass 2: W interpolation per row via pl.loop (C=128) or a single
#           (THo, Win*C) @ kron(Aw^T, I_C) matmul (tiny-C final resize).
# ---------------------------------------------------------------------------
def _interp_matrix(out_size, in_size):
    A = np.zeros((out_size, in_size), np.float32)
    if in_size == 1:
        A[:, 0] = 1.0
        return A
    scale = in_size / out_size
    for i in range(out_size):
        src = max((i + 0.5) * scale - 0.5, 0.0)
        i0 = min(int(np.floor(src)), in_size - 1)
        i1 = min(i0 + 1, in_size - 1)
        lam = float(src - i0)
        A[i, i0] += 1.0 - lam
        A[i, i1] += lam
    return A


def _pick_tho(Hout, cap):
    if Hout <= cap:
        return Hout
    for t in range(cap - cap % 8, 7, -8):
        if Hout % t == 0:
            return t
    return Hout


def _make_resize_kernel(THo, Hin, Win, C, Wout, with_add, small_c):
    def kernel(*refs):
        if small_c:
            ah_ref, bk_ref, x_ref, o_ref = refs
            x2 = x_ref[0].astype(jnp.float32).reshape(Hin, Win * C)
            t = jnp.dot(ah_ref[...], x2, preferred_element_type=jnp.float32)
            out2 = jnp.dot(t, bk_ref[...], preferred_element_type=jnp.float32)
            o_ref[0] = out2.reshape(THo, Wout, C).astype(o_ref.dtype)
        else:
            if with_add:
                ah_ref, aw_ref, x_ref, y_ref, o_ref, t_ref = refs
            else:
                ah_ref, aw_ref, x_ref, o_ref, t_ref = refs
            x2 = x_ref[0].astype(jnp.float32).reshape(Hin, Win * C)
            t_ref[...] = jnp.dot(ah_ref[...], x2,
                                 preferred_element_type=jnp.float32
                                 ).reshape(THo, Win, C)
            aw = aw_ref[...]

            @pl.loop(0, THo)
            def _(h):
                row = jnp.dot(aw, t_ref[h], preferred_element_type=jnp.float32)
                if with_add:
                    row = row + y_ref[0, h].astype(jnp.float32)
                o_ref[0, h] = row.astype(o_ref.dtype)

    return kernel


def bilinear_resize(x, Hout, Wout, add=None, out_dtype=jnp.bfloat16):
    N, Hin, Win, C = x.shape
    small_c = (C <= 8) and (add is None)
    THo = _pick_tho(Hout, 64 if small_c else 32)
    num_hb = Hout // THo
    in_bytes = 2 if x.dtype == jnp.bfloat16 else 4

    Ah = jnp.asarray(_interp_matrix(Hout, Hin))
    in_specs = [pl.BlockSpec((THo, Hin), lambda n, hb: (hb, 0))]
    args = [Ah]
    if small_c:
        Bk = jnp.asarray(np.kron(_interp_matrix(Wout, Win).T,
                                 np.eye(C, dtype=np.float32)))
        in_specs.append(pl.BlockSpec((Win * C, Wout * C), lambda n, hb: (0, 0)))
        args.append(Bk)
    else:
        Aw = jnp.asarray(_interp_matrix(Wout, Win))
        in_specs.append(pl.BlockSpec((Wout, Win), lambda n, hb: (0, 0)))
        args.append(Aw)
    in_specs.append(pl.BlockSpec((1, Hin, Win, C), lambda n, hb: (n, 0, 0, 0)))
    args.append(x)
    if add is not None:
        in_specs.append(pl.BlockSpec((1, THo, Wout, C), lambda n, hb: (n, hb, 0, 0)))
        args.append(add)

    scratch = [] if small_c else [pltpu.VMEM((THo, Win, C), jnp.float32)]
    # TODO(synk): for extremely large inputs additionally tile Hin (reduction axis).
    est = (2 * Hin * Win * C * in_bytes + 2 * Hin * Win * C * 4
           + (0 if small_c else 2 * THo * Win * C * 4)
           + 4 * THo * Wout * C * 4
           + (2 * THo * Wout * C * 4 if add is not None else 0)
           + ((Win * C) * (Wout * C) * 8 if small_c else Wout * Win * 8)
           + THo * Hin * 8)
    return pl.pallas_call(
        _make_resize_kernel(THo, Hin, Win, C, Wout, add is not None, small_c),
        out_shape=jax.ShapeDtypeStruct((N, Hout, Wout, C), out_dtype),
        grid=(N, num_hb),
        in_specs=in_specs,
        out_specs=pl.BlockSpec((1, THo, Wout, C), lambda n, hb: (n, hb, 0, 0)),
        scratch_shapes=scratch,
        compiler_params=pltpu.CompilerParams(
            dimension_semantics=("parallel", "parallel"),
            vmem_limit_bytes=_vmem_limit(est)),
    )(*args)


def upsample_add(x, y):
    """torch: F.interpolate(x, size=y.shape[-2:], mode='bilinear') + y (fused)."""
    return bilinear_resize(x, y.shape[1], y.shape[2], add=y)


# ------------------------------- parameters --------------------------------
def init_params(key):
    def dense(k, cin, cout, dtype=jnp.bfloat16):
        kw, kb = jax.random.split(k)
        w = (0.02 * jax.random.normal(kw, (cin, cout), jnp.float32)).astype(dtype)
        b = 0.01 * jax.random.normal(kb, (cout,), jnp.float32)
        return w, b

    keys = jax.random.split(key, 11)
    p = {}
    # Encoder-stub projections to ResNet50 feature channel counts.
    p['enc1_w'], p['enc1_b'] = dense(keys[0], 3, 256)
    p['enc2_w'], p['enc2_b'] = dense(keys[1], 3, 512)
    p['enc34_w'], p['enc34_b'] = dense(keys[2], 3, 3072)   # enc3 ++ enc4 fused
    # Decoder layers exactly as in I3PEModel (ResNet50 branch).
    p['fuse4_w'], p['fuse4_b'] = dense(keys[3], 4096, 128)
    p['fuse3_w'], p['fuse3_b'] = dense(keys[4], 2048, 128)
    p['fuse2_w'], p['fuse2_b'] = dense(keys[5], 1024, 128)
    p['fuse1_w'], p['fuse1_b'] = dense(keys[6], 512, 128)
    for i, k in zip((3, 2, 1), keys[7:10]):
        kw, kb = jax.random.split(k)
        p[f'smooth{i}_w'] = (0.02 * jax.random.normal(
            kw, (3, 3, 128, 128), jnp.float32)).astype(jnp.bfloat16)
        p[f'smooth{i}_b'] = 0.01 * jax.random.normal(kb, (128,), jnp.float32)
    p['clf_w'], p['clf_b'] = dense(keys[10], 128, 2, dtype=jnp.float32)
    return p


# -------------------------------- model -------------------------------------
def encoder_stub(img, params):
    """Stand-in for ResNet50(output_stride=16): (f1, f2, f3, f4) with channels
    (256, 512, 1024, 2048) at strides (4, 8, 16, 16).
    # TODO(synk): the real ResNet50 backbone is not defined in the module
    # source; replaced by a stride-pool + 1x1-projection stub (projections run
    # in the grouped Pallas matmul kernel)."""
    def pool(t, s):
        n, h, w, c = t.shape
        return t.reshape(n, h // s, s, w // s, s, c).mean(axis=(2, 4))

    f1 = conv1x1(pool(img, 4), params['enc1_w'], params['enc1_b'])
    f2 = conv1x1(pool(img, 8), params['enc2_w'], params['enc2_b'])
    f34 = conv1x1(pool(img, 16), params['enc34_w'], params['enc34_b'])
    return f1, f2, f34[..., :1024], f34[..., 1024:]


def i3pe_single_forward(img_1, img_2, params):
    """I3PEModel._forward.  img_1/img_2: NCHW (N, 3, H, W) -> NCHW (N, 2, H, W)."""
    N, _, H, W = img_1.shape
    x1 = jnp.transpose(img_1, (0, 2, 3, 1)).astype(jnp.float32)
    x2 = jnp.transpose(img_2, (0, 2, 3, 1)).astype(jnp.float32)
    x12 = jnp.concatenate([x1, x2], axis=0)        # both temporal branches batched
    f1, f2, f3, f4 = encoder_stub(x12, params)

    p4 = fuse_conv1x1(f4, params['fuse4_w'], params['fuse4_b'], N)
    p3 = fuse_conv1x1(f3, params['fuse3_w'], params['fuse3_b'], N)
    p3 = upsample_add(p4, p3)
    p3 = conv3x3(p3, params['smooth3_w'], params['smooth3_b'])

    p2 = fuse_conv1x1(f2, params['fuse2_w'], params['fuse2_b'], N)
    p2 = upsample_add(p3, p2)
    p2 = conv3x3(p2, params['smooth2_w'], params['smooth2_b'])

    p1 = fuse_conv1x1(f1, params['fuse1_w'], params['fuse1_b'], N)
    p1 = upsample_add(p2, p1)
    # smooth_layer_1 + main_clf_1 fused: the classifier 1x1 is applied to the
    # conv's f32 accumulator, so the 128-channel p1 map is never written to
    # HBM (identical op order to the PyTorch model: smooth -> clf -> resize).
    logits = conv3x3(p1, params['smooth1_w'], params['smooth1_b'],
                     proj_w=params['clf_w'], proj_b=params['clf_b'])  # (N,H/4,W/4,2) f32
    out = bilinear_resize(logits, H, W, out_dtype=jnp.float32)        # (N,H,W,2) f32
    return jnp.transpose(out, (0, 3, 1, 2))                           # back to NCHW


def i3pe_model(inputs, params, training=False):
    img_1, img_2 = inputs['img_1'], inputs['img_2']
    if training:
        return {'change_map_12': i3pe_single_forward(img_1, img_2, params),
                'change_map_21': i3pe_single_forward(img_2, img_1, params)}
    return {'change_map_12': i3pe_single_forward(img_1, img_2, params)}


# --------------------------------- main -------------------------------------
if __name__ == "__main__":
    key = jax.random.PRNGKey(0)
    pkey, k1, k2 = jax.random.split(key, 3)
    params = init_params(pkey)

    # Small shapes consistent with the module: batch=2, 3-channel 32x32 images
    # (spatial dims divisible by 16 for the output_stride=16 pyramid).
    img_1 = jax.random.normal(k1, (2, 3, 32, 32), jnp.float32)
    img_2 = jax.random.normal(k2, (2, 3, 32, 32), jnp.float32)

    @jax.jit
    def run(i1, i2, p):
        return i3pe_model({'img_1': i1, 'img_2': i2}, p, training=False)

    out = run(img_1, img_2, params)
    cm = jax.block_until_ready(out['change_map_12'])
    assert cm.shape == (2, 2, 32, 32) and cm.dtype == jnp.float32
    assert bool(jnp.all(jnp.isfinite(cm)))
    print("KERNEL_OK")
</pallas_src>

<mosaic_0001>
module attributes {stable_mosaic.version = 11 : i64} {
  func.func @kernel(%arg0: i32, %arg1: i32, %arg2: i32, %arg3: i32, %arg4: memref<1x16x3xbf16, #tpu.memory_space<vmem>>, %arg5: memref<1x3x256xbf16, #tpu.memory_space<vmem>>, %arg6: memref<1x256xf32, #tpu.memory_space<vmem>>, %arg7: memref<16x256xbf16, #tpu.memory_space<vmem>>, %arg8: memref<16x256xf32, #tpu.memory_space<vmem>>) attributes {dimension_semantics = [#tpu.dimension_semantics<parallel>, #tpu.dimension_semantics<parallel>, #tpu.dimension_semantics<arbitrary>, #tpu.dimension_semantics<arbitrary>], iteration_bounds = array<i64: 1, 12, 1, 1>, scalar_prefetch = 0 : i64, scratch_operands = 1 : i64, tpu.core_type = #tpu.core_type<tc>, window_params = [{transform_indices = @transform_0, window_bounds = array<i64: 1, 16, 3>}, {transform_indices = @transform_1, window_bounds = array<i64: 1, 3, 256>}, {transform_indices = @transform_2, window_bounds = array<i64: 1, 256>}, {transform_indices = @transform_3, window_bounds = array<i64: 16, 256>}]} {
    %c0_i32 = arith.constant 0 : i32
    %0 = arith.cmpi eq, %arg2, %c0_i32 : i32
    %c0_i32_0 = arith.constant 0 : i32
    %1 = arith.cmpi eq, %arg3, %c0_i32_0 : i32
    %2 = arith.andi %0, %1 : i1
    %3 = arith.extui %2 : i1 to i32
    %c0_i32_1 = arith.constant 0 : i32
    %4 = arith.cmpi ne, %3, %c0_i32_1 : i32
    scf.if %4 {
      %cst = arith.constant 0.000000e+00 : f32
      %36 = vector.broadcast %cst : f32 to vector<16x256xf32>
      %c0_14 = arith.constant 0 : index
      %c0_15 = arith.constant 0 : index
      %37 = vector.load %arg8[%c0_14, %c0_15] : memref<16x256xf32, #tpu.memory_space<vmem>>, vector<16x256xf32>
      tpu.vector_store %arg8[%c0_14, %c0_15], %36 {strides = array<i32>} : memref<16x256xf32, #tpu.memory_space<vmem>>, vector<16x256xf32>,
    } else {
    }
    %c0 = arith.constant 0 : index
    %c0_2 = arith.constant 0 : index
    %c0_3 = arith.constant 0 : index
    %5 = vector.load %arg4[%c0, %c0_2, %c0_3] : memref<1x16x3xbf16, #tpu.memory_space<vmem>>, vector<1x16x3xbf16>
    %6 = vector.shape_cast %5 : vector<1x16x3xbf16> to vector<16x3xbf16>
    %7 = arith.extf %6 : vector<16x3xbf16> to vector<16x3xf32>
    %c0_4 = arith.constant 0 : index
    %c0_5 = arith.constant 0 : index
    %c0_6 = arith.constant 0 : index
    %8 = vector.load %arg5[%c0_4, %c0_5, %c0_6] : memref<1x3x256xbf16, #tpu.memory_space<vmem>>, vector<1x3x256xbf16>
    %9 = vector.shape_cast %8 : vector<1x3x256xbf16> to vector<3x256xbf16>
    %10 = arith.extf %9 : vector<3x256xbf16> to vector<3x256xf32>
    %c0_7 = arith.constant 0 : index
    %c0_8 = arith.constant 0 : index
    %11 = vector.load %arg8[%c0_7, %c0_8] : memref<16x256xf32, #tpu.memory_space<vmem>>, vector<16x256xf32>
    %12 = vector.extract_strided_slice %7 {offsets = [0, 0], sizes = [16, 1], strides = [1, 1]} : vector<16x3xf32> to vector<16x1xf32>
    %13 = vector.extract_strided_slice %10 {offsets = [0, 0], sizes = [1, 256], strides = [1, 1]} : vector<3x256xf32> to vector<1x256xf32>
    %14 = vector.broadcast %12 : vector<16x1xf32> to vector<16x256xf32>
    %15 = vector.broadcast %13 : vector<1x256xf32> to vector<16x256xf32>
    %16 = arith.mulf %14, %15 : vector<16x256xf32>
    %17 = arith.addf %11, %16 : vector<16x256xf32>
    %18 = vector.extract_strided_slice %7 {offsets = [0, 1], sizes = [16, 1], strides = [1, 1]} : vector<16x3xf32> to vector<16x1xf32>
    %19 = vector.extract_strided_slice %10 {offsets = [1, 0], sizes = [1, 256], strides = [1, 1]} : vector<3x256xf32> to vector<1x256xf32>
    %20 = vector.broadcast %18 : vector<16x1xf32> to vector<16x256xf32>
    %21 = vector.broadcast %19 : vector<1x256xf32> to vector<16x256xf32>
    %22 = arith.mulf %20, %21 : vector<16x256xf32>
    %23 = arith.addf %17, %22 : vector<16x256xf32>
    %24 = vector.extract_strided_slice %7 {offsets = [0, 2], sizes = [16, 1], strides = [1, 1]} : vector<16x3xf32> to vector<16x1xf32>
    %25 = vector.extract_strided_slice %10 {offsets = [2, 0], sizes = [1, 256], strides = [1, 1]} : vector<3x256xf32> to vector<1x256xf32>
    %26 = vector.broadcast %24 : vector<16x1xf32> to vector<16x256xf32>
    %27 = vector.broadcast %25 : vector<1x256xf32> to vector<16x256xf32>
    %28 = arith.mulf %26, %27 : vector<16x256xf32>
    %29 = arith.addf %23, %28 : vector<16x256xf32>
    %c0_9 = arith.constant 0 : index
    %c0_10 = arith.constant 0 : index
    %30 = vector.load %arg8[%c0_9, %c0_10] : memref<16x256xf32, #tpu.memory_space<vmem>>, vector<16x256xf32>
    tpu.vector_store %arg8[%c0_9, %c0_10], %29 {strides = array<i32>} : memref<16x256xf32, #tpu.memory_space<vmem>>, vector<16x256xf32>,
    %c0_i32_11 = arith.constant 0 : i32
    %31 = arith.cmpi eq, %arg2, %c0_i32_11 : i32
    %c0_i32_12 = arith.constant 0 : i32
    %32 = arith.cmpi eq, %arg3, %c0_i32_12 : i32
    %33 = arith.andi %31, %32 : i1
    %34 = arith.extui %33 : i1 to i32
    %c0_i32_13 = arith.constant 0 : i32
    %35 = arith.cmpi ne, %34, %c0_i32_13 : i32
    scf.if %35 {
      %c0_14 = arith.constant 0 : index
      %c0_15 = arith.constant 0 : index
      %36 = vector.load %arg8[%c0_14, %c0_15] : memref<16x256xf32, #tpu.memory_space<vmem>>, vector<16x256xf32>
      %c0_16 = arith.constant 0 : index
      %c0_17 = arith.constant 0 : index
      %37 = vector.load %arg6[%c0_16, %c0_17] : memref<1x256xf32, #tpu.memory_space<vmem>>, vector<1x256xf32>
      %38 = vector.broadcast %37 : vector<1x256xf32> to vector<16x256xf32>
      %39 = arith.addf %36, %38 : vector<16x256xf32>
      %40 = arith.truncf %39 : vector<16x256xf32> to vector<16x256xbf16>
      %c0_18 = arith.constant 0 : index
      %c0_19 = arith.constant 0 : index
      %41 = vector.load %arg7[%c0_18, %c0_19] : memref<16x256xbf16, #tpu.memory_space<vmem>>, vector<16x256xbf16>
      tpu.vector_store %arg7[%c0_18, %c0_19], %40 {strides = array<i32>} : memref<16x256xbf16, #tpu.memory_space<vmem>>, vector<16x256xbf16>,
    } else {
    }
    return
  }
  func.func @transform_0(%arg0: i32, %arg1: i32, %arg2: i32, %arg3: i32) -> (i32, i32, i32) {
    %c0_i32 = arith.constant 0 : i32
    return %arg2, %arg0, %arg3 : i32, i32, i32
  }
  func.func @transform_1(%arg0: i32, %arg1: i32, %arg2: i32, %arg3: i32) -> (i32, i32, i32) {
    %c0_i32 = arith.constant 0 : i32
    return %arg2, %arg3, %arg1 : i32, i32, i32
  }
  func.func @transform_2(%arg0: i32, %arg1: i32, %arg2: i32, %arg3: i32) -> (i32, i32) {
    %c0_i32 = arith.constant 0 : i32
    %c0_i32_0 = arith.constant 0 : i32
    return %c0_i32, %arg1 : i32, i32
  }
  func.func @transform_3(%arg0: i32, %arg1: i32, %arg2: i32, %arg3: i32) -> (i32, i32) {
    %c0_i32 = arith.constant 0 : i32
    return %arg0, %arg1 : i32, i32
  }
}

module attributes {stable_mosaic.version = 11 : i64} {
  func.func @kernel(%arg0: i32, %arg1: i32, %arg2: i32, %arg3: i32, %arg4: memref<1x16x1024xbf16, #tpu.memory_space<vmem>>, %arg5: memref<1x1024x128xbf16, #tpu.memory_space<vmem>>, %arg6: memref<1x128xf32, #tpu.memory_space<vmem>>, %arg7: memref<16x128xbf16, #tpu.memory_space<vmem>>, %arg8: memref<16x128xf32, #tpu.memory_space<vmem>>) attributes {dimension_semantics = [#tpu.dimension_semantics<parallel>, #tpu.dimension_semantics<parallel>, #tpu.dimension_semantics<arbitrary>, #tpu.dimension_semantics<arbitrary>], iteration_bounds = array<i64: 1, 1, 2, 2>, scalar_prefetch = 0 : i64, scratch_operands = 1 : i64, tpu.core_type = #tpu.core_type<tc>, window_params = [{transform_indices = @transform_0, window_bounds = array<i64: 1, 16, 1024>}, {transform_indices = @transform_1, window_bounds = array<i64: 1, 1024, 128>}, {transform_indices = @transform_2, window_bounds = array<i64: 1, 128>}, {transform_indices = @transform_3, window_bounds = array<i64: 16, 128>}]} {
    %c0_i32 = arith.constant 0 : i32
    %0 = arith.cmpi eq, %arg2, %c0_i32 : i32
    %c0_i32_0 = arith.constant 0 : i32
    %1 = arith.cmpi eq, %arg3, %c0_i32_0 : i32
    %2 = arith.andi %0, %1 : i1
    %3 = arith.extui %2 : i1 to i32
    %c0_i32_1 = arith.constant 0 : i32
    %4 = arith.cmpi ne, %3, %c0_i32_1 : i32
    scf.if %4 {
      %cst_13 = arith.constant 0.000000e+00 : f32
      %18 = vector.broadcast %cst_13 : f32 to vector<16x128xf32>
      %c0_14 = arith.constant 0 : index
      %c0_15 = arith.constant 0 : index
      %19 = vector.load %arg8[%c0_14, %c0_15] : memref<16x128xf32, #tpu.memory_space<vmem>>, vector<16x128xf32>
      tpu.vector_store %arg8[%c0_14, %c0_15], %18 {strides = array<i32>} : memref<16x128xf32, #tpu.memory_space<vmem>>, vector<16x128xf32>,
    } else {
    }
    %c0 = arith.constant 0 : index
    %c0_2 = arith.constant 0 : index
    %5 = vector.load %arg8[%c0, %c0_2] : memref<16x128xf32, #tpu.memory_space<vmem>>, vector<16x128xf32>
    %c0_3 = arith.constant 0 : index
    %c0_4 = arith.constant 0 : index
    %c0_5 = arith.constant 0 : index
    %6 = vector.load %arg4[%c0_3, %c0_4, %c0_5] : memref<1x16x1024xbf16, #tpu.memory_space<vmem>>, vector<1x16x1024xbf16>
    %7 = vector.shape_cast %6 : vector<1x16x1024xbf16> to vector<16x1024xbf16>
    %c0_6 = arith.constant 0 : index
    %c0_7 = arith.constant 0 : index
    %c0_8 = arith.constant 0 : index
    %8 = vector.load %arg5[%c0_6, %c0_7, %c0_8] : memref<1x1024x128xbf16, #tpu.memory_space<vmem>>, vector<1x1024x128xbf16>
    %9 = vector.shape_cast %8 : vector<1x1024x128xbf16> to vector<1024x128xbf16>
    %cst = arith.constant dense<0.000000e+00> : vector<16x128xf32>
    %10 = tpu.matmul %7, %9, %cst {dimension_numbers = #tpu.dot_dimension_numbers<[1], [0], [0], [1], [0, 0, 1, 1], [], []>} : vector<16x1024xbf16>, vector<1024x128xbf16>, vector<16x128xf32> -> vector<16x128xf32>
    %11 = arith.addf %5, %10 : vector<16x128xf32>
    %c0_9 = arith.constant 0 : index
    %c0_10 = arith.constant 0 : index
    %12 = vector.load %arg8[%c0_9, %c0_10] : memref<16x128xf32, #tpu.memory_space<vmem>>, vector<16x128xf32>
    tpu.vector_store %arg8[%c0_9, %c0_10], %11 {strides = array<i32>} : memref<16x128xf32, #tpu.memory_space<vmem>>, vector<16x128xf32>,
    %c1_i32 = arith.constant 1 : i32
    %13 = arith.cmpi eq, %arg2, %c1_i32 : i32
    %c1_i32_11 = arith.constant 1 : i32
    %14 = arith.cmpi eq, %arg3, %c1_i32_11 : i32
    %15 = arith.andi %13, %14 : i1
    %16 = arith.extui %15 : i1 to i32
    %c0_i32_12 = arith.constant 0 : i32
    %17 = arith.cmpi ne, %16, %c0_i32_12 : i32
    scf.if %17 {
      %c0_13 = arith.constant 0 : index
      %c0_14 = arith.constant 0 : index
      %18 = vector.load %arg8[%c0_13, %c0_14] : memref<16x128xf32, #tpu.memory_space<vmem>>, vector<16x128xf32>
      %c0_15 = arith.constant 0 : index
      %c0_16 = arith.constant 0 : index
      %19 = vector.load %arg6[%c0_15, %c0_16] : memref<1x128xf32, #tpu.memory_space<vmem>>, vector<1x128xf32>
      %20 = vector.broadcast %19 : vector<1x128xf32> to vector<16x128xf32>
      %21 = arith.addf %18, %20 : vector<16x128xf32>
      %22 = arith.truncf %21 : vector<16x128xf32> to vector<16x128xbf16>
      %c0_17 = arith.constant 0 : index
      %c0_18 = arith.constant 0 : index
      %23 = vector.load %arg7[%c0_17, %c0_18] : memref<16x128xbf16, #tpu.memory_space<vmem>>, vector<16x128xbf16>
      tpu.vector_store %arg7[%c0_17, %c0_18], %22 {strides = array<i32>} : memref<16x128xbf16, #tpu.memory_space<vmem>>, vector<16x128xbf16>,
    } else {
    }
    return
  }
  func.func @transform_0(%arg0: i32, %arg1: i32, %arg2: i32, %arg3: i32) -> (i32, i32, i32) {
    %c0_i32 = arith.constant 0 : i32
    return %arg2, %arg0, %arg3 : i32, i32, i32
  }
  func.func @transform_1(%arg0: i32, %arg1: i32, %arg2: i32, %arg3: i32) -> (i32, i32, i32) {
    %c0_i32 = arith.constant 0 : i32
    return %arg2, %arg3, %arg1 : i32, i32, i32
  }
  func.func @transform_2(%arg0: i32, %arg1: i32, %arg2: i32, %arg3: i32) -> (i32, i32) {
    %c0_i32 = arith.constant 0 : i32
    %c0_i32_0 = arith.constant 0 : i32
    return %c0_i32, %arg1 : i32, i32
  }
  func.func @transform_3(%arg0: i32, %arg1: i32, %arg2: i32, %arg3: i32) -> (i32, i32) {
    %c0_i32 = arith.constant 0 : i32
    return %arg0, %arg1 : i32, i32
  }
}

module attributes {stable_mosaic.version = 11 : i64} {
  func.func @kernel(%arg0: i32, %arg1: i32, %arg2: i32, %arg3: i32, %arg4: memref<1x16x1024xbf16, #tpu.memory_space<vmem>>, %arg5: memref<1x1024x128xbf16, #tpu.memory_space<vmem>>, %arg6: memref<1x128xf32, #tpu.memory_space<vmem>>, %arg7: memref<16x128xbf16, #tpu.memory_space<vmem>>, %arg8: memref<16x128xf32, #tpu.memory_space<vmem>>) attributes {dimension_semantics = [#tpu.dimension_semantics<parallel>, #tpu.dimension_semantics<parallel>, #tpu.dimension_semantics<arbitrary>, #tpu.dimension_semantics<arbitrary>], iteration_bounds = array<i64: 1, 1, 2, 1>, scalar_prefetch = 0 : i64, scratch_operands = 1 : i64, tpu.core_type = #tpu.core_type<tc>, window_params = [{transform_indices = @transform_0, window_bounds = array<i64: 1, 16, 1024>}, {transform_indices = @transform_1, window_bounds = array<i64: 1, 1024, 128>}, {transform_indices = @transform_2, window_bounds = array<i64: 1, 128>}, {transform_indices = @transform_3, window_bounds = array<i64: 16, 128>}]} {
    %c0_i32 = arith.constant 0 : i32
    %0 = arith.cmpi eq, %arg2, %c0_i32 : i32
    %c0_i32_0 = arith.constant 0 : i32
    %1 = arith.cmpi eq, %arg3, %c0_i32_0 : i32
    %2 = arith.andi %0, %1 : i1
    %3 = arith.extui %2 : i1 to i32
    %c0_i32_1 = arith.constant 0 : i32
    %4 = arith.cmpi ne, %3, %c0_i32_1 : i32
    scf.if %4 {
      %cst_13 = arith.constant 0.000000e+00 : f32
      %18 = vector.broadcast %cst_13 : f32 to vector<16x128xf32>
      %c0_14 = arith.constant 0 : index
      %c0_15 = arith.constant 0 : index
      %19 = vector.load %arg8[%c0_14, %c0_15] : memref<16x128xf32, #tpu.memory_space<vmem>>, vector<16x128xf32>
      tpu.vector_store %arg8[%c0_14, %c0_15], %18 {strides = array<i32>} : memref<16x128xf32, #tpu.memory_space<vmem>>, vector<16x128xf32>,
    } else {
    }
    %c0 = arith.constant 0 : index
    %c0_2 = arith.constant 0 : index
    %5 = vector.load %arg8[%c0, %c0_2] : memref<16x128xf32, #tpu.memory_space<vmem>>, vector<16x128xf32>
    %c0_3 = arith.constant 0 : index
    %c0_4 = arith.constant 0 : index
    %c0_5 = arith.constant 0 : index
    %6 = vector.load %arg4[%c0_3, %c0_4, %c0_5] : memref<1x16x1024xbf16, #tpu.memory_space<vmem>>, vector<1x16x1024xbf16>
    %7 = vector.shape_cast %6 : vector<1x16x1024xbf16> to vector<16x1024xbf16>
    %c0_6 = arith.constant 0 : index
    %c0_7 = arith.constant 0 : index
    %c0_8 = arith.constant 0 : index
    %8 = vector.load %arg5[%c0_6, %c0_7, %c0_8] : memref<1x1024x128xbf16, #tpu.memory_space<vmem>>, vector<1x1024x128xbf16>
    %9 = vector.shape_cast %8 : vector<1x1024x128xbf16> to vector<1024x128xbf16>
    %cst = arith.constant dense<0.000000e+00> : vector<16x128xf32>
    %10 = tpu.matmul %7, %9, %cst {dimension_numbers = #tpu.dot_dimension_numbers<[1], [0], [0], [1], [0, 0, 1, 1], [], []>} : vector<16x1024xbf16>, vector<1024x128xbf16>, vector<16x128xf32> -> vector<16x128xf32>
    %11 = arith.addf %5, %10 : vector<16x128xf32>
    %c0_9 = arith.constant 0 : index
    %c0_10 = arith.constant 0 : index
    %12 = vector.load %arg8[%c0_9, %c0_10] : memref<16x128xf32, #tpu.memory_space<vmem>>, vector<16x128xf32>
    tpu.vector_store %arg8[%c0_9, %c0_10], %11 {strides = array<i32>} : memref<16x128xf32, #tpu.memory_space<vmem>>, vector<16x128xf32>,
    %c1_i32 = arith.constant 1 : i32
    %13 = arith.cmpi eq, %arg2, %c1_i32 : i32
    %c0_i32_11 = arith.constant 0 : i32
    %14 = arith.cmpi eq, %arg3, %c0_i32_11 : i32
    %15 = arith.andi %13, %14 : i1
    %16 = arith.extui %15 : i1 to i32
    %c0_i32_12 = arith.constant 0 : i32
    %17 = arith.cmpi ne, %16, %c0_i32_12 : i32
    scf.if %17 {
      %c0_13 = arith.constant 0 : index
      %c0_14 = arith.constant 0 : index
      %18 = vector.load %arg8[%c0_13, %c0_14] : memref<16x128xf32, #tpu.memory_space<vmem>>, vector<16x128xf32>
      %c0_15 = arith.constant 0 : index
      %c0_16 = arith.constant 0 : index
      %19 = vector.load %arg6[%c0_15, %c0_16] : memref<1x128xf32, #tpu.memory_space<vmem>>, vector<1x128xf32>
      %20 = vector.broadcast %19 : vector<1x128xf32> to vector<16x128xf32>
      %21 = arith.addf %18, %20 : vector<16x128xf32>
      %22 = arith.truncf %21 : vector<16x128xf32> to vector<16x128xbf16>
      %c0_17 = arith.constant 0 : index
      %c0_18 = arith.constant 0 : index
      %23 = vector.load %arg7[%c0_17, %c0_18] : memref<16x128xbf16, #tpu.memory_space<vmem>>, vector<16x128xbf16>
      tpu.vector_store %arg7[%c0_17, %c0_18], %22 {strides = array<i32>} : memref<16x128xbf16, #tpu.memory_space<vmem>>, vector<16x128xbf16>,
    } else {
    }
    return
  }
  func.func @transform_0(%arg0: i32, %arg1: i32, %arg2: i32, %arg3: i32) -> (i32, i32, i32) {
    %c0_i32 = arith.constant 0 : i32
    return %arg2, %arg0, %arg3 : i32, i32, i32
  }
  func.func @transform_1(%arg0: i32, %arg1: i32, %arg2: i32, %arg3: i32) -> (i32, i32, i32) {
    %c0_i32 = arith.constant 0 : i32
    return %arg2, %arg3, %arg1 : i32, i32, i32
  }
  func.func @transform_2(%arg0: i32, %arg1: i32, %arg2: i32, %arg3: i32) -> (i32, i32) {
    %c0_i32 = arith.constant 0 : i32
    %c0_i32_0 = arith.constant 0 : i32
    return %c0_i32, %arg1 : i32, i32
  }
  func.func @transform_3(%arg0: i32, %arg1: i32, %arg2: i32, %arg3: i32) -> (i32, i32) {
    %c0_i32 = arith.constant 0 : i32
    return %arg0, %arg1 : i32, i32
  }
}

module attributes {stable_mosaic.version = 11 : i64} {
  func.func @kernel(%arg0: i32, %arg1: i32, %arg2: memref<2x2xf32, #tpu.memory_space<vmem>>, %arg3: memref<2x2xf32, #tpu.memory_space<vmem>>, %arg4: memref<1x2x2x128xbf16, #tpu.memory_space<vmem>>, %arg5: memref<1x2x2x128xbf16, #tpu.memory_space<vmem>>, %arg6: memref<1x2x2x128xbf16, #tpu.memory_space<vmem>>, %arg7: memref<2x2x128xf32, #tpu.memory_space<vmem>>) attributes {dimension_semantics = [#tpu.dimension_semantics<parallel>, #tpu.dimension_semantics<parallel>], iteration_bounds = array<i64: 2, 1>, scalar_prefetch = 0 : i64, scratch_operands = 1 : i64, tpu.core_type = #tpu.core_type<tc>, window_params = [{transform_indices = @transform_0, window_bounds = array<i64: 2, 2>}, {pipeline_mode = #tpu.pipeline_mode<synchronous>, transform_indices = @transform_1, window_bounds = array<i64: 2, 2>}, {transform_indices = @transform_2, window_bounds = array<i64: 1, 2, 2, 128>}, {transform_indices = @transform_3, window_bounds = array<i64: 1, 2, 2, 128>}, {transform_indices = @transform_4, window_bounds = array<i64: 1, 2, 2, 128>}]} {
    %c0 = arith.constant 0 : index
    %c0_0 = arith.constant 0 : index
    %c0_1 = arith.constant 0 : index
    %c0_2 = arith.constant 0 : index
    %0 = vector.load %arg4[%c0, %c0_0, %c0_1, %c0_2] : memref<1x2x2x128xbf16, #tpu.memory_space<vmem>>, vector<1x2x2x128xbf16>
    %1 = vector.shape_cast %0 : vector<1x2x2x128xbf16> to vector<2x2x128xbf16>
    %2 = arith.extf %1 : vector<2x2x128xbf16> to vector<2x2x128xf32>
    %3 = vector.shape_cast %2 : vector<2x2x128xf32> to vector<2x256xf32>
    %c0_3 = arith.constant 0 : index
    %c0_4 = arith.constant 0 : index
    %4 = vector.load %arg2[%c0_3, %c0_4] : memref<2x2xf32, #tpu.memory_space<vmem>>, vector<2x2xf32>
    %cst = arith.constant dense<0.000000e+00> : vector<2x256xf32>
    %5 = tpu.matmul %4, %3, %cst {dimension_numbers = #tpu.dot_dimension_numbers<[1], [0], [0], [1], [0, 0, 1, 1], [], []>} : vector<2x2xf32>, vector<2x256xf32>, vector<2x256xf32> -> vector<2x256xf32>
    %6 = vector.shape_cast %5 : vector<2x256xf32> to vector<2x2x128xf32>
    %c0_5 = arith.constant 0 : index
    %c0_6 = arith.constant 0 : index
    %c0_7 = arith.constant 0 : index
    %7 = vector.load %arg7[%c0_5, %c0_6, %c0_7] : memref<2x2x128xf32, #tpu.memory_space<vmem>>, vector<2x2x128xf32>
    tpu.vector_store %arg7[%c0_5, %c0_6, %c0_7], %6 {strides = array<i32>} : memref<2x2x128xf32, #tpu.memory_space<vmem>>, vector<2x2x128xf32>,
    %c0_8 = arith.constant 0 : index
    %c0_9 = arith.constant 0 : index
    %8 = vector.load %arg3[%c0_8, %c0_9] : memref<2x2xf32, #tpu.memory_space<vmem>>, vector<2x2xf32>
    %c0_i32 = arith.constant 0 : i32
    %c2_i32 = arith.constant 2 : i32
    %9 = arith.addi %c0_i32, %c2_i32 : i32
    %c1_i32 = arith.constant 1 : i32
    scf.for %arg8 = %c0_i32 to %9 step %c1_i32  : i32 {
      %c1_i32_11 = arith.constant 1 : i32
      %10 = arith.muli %arg8, %c1_i32_11 : i32
      %c0_i32_12 = arith.constant 0 : i32
      %11 = arith.addi %c0_i32_12, %10 : i32
      %12 = arith.index_cast %11 : i32 to index
      %c0_13 = arith.constant 0 : index
      %c0_14 = arith.constant 0 : index
      %13 = vector.load %arg7[%12, %c0_13, %c0_14] : memref<2x2x128xf32, #tpu.memory_space<vmem>>, vector<1x2x128xf32>
      %14 = vector.shape_cast %13 : vector<1x2x128xf32> to vector<2x128xf32>
      %cst_15 = arith.constant dense<0.000000e+00> : vector<2x128xf32>
      %15 = tpu.matmul %8, %14, %cst_15 {dimension_numbers = #tpu.dot_dimension_numbers<[1], [0], [0], [1], [0, 0, 1, 1], [], []>} : vector<2x2xf32>, vector<2x128xf32>, vector<2x128xf32> -> vector<2x128xf32>
      %c0_16 = arith.constant 0 : index
      %16 = arith.index_cast %11 : i32 to index
      %c0_17 = arith.constant 0 : index
      %c0_18 = arith.constant 0 : index
      %17 = vector.load %arg5[%c0_16, %16, %c0_17, %c0_18] : memref<1x2x2x128xbf16, #tpu.memory_space<vmem>>, vector<1x1x2x128xbf16>
      %18 = vector.shape_cast %17 : vector<1x1x2x128xbf16> to vector<2x128xbf16>
      %19 = arith.extf %18 : vector<2x128xbf16> to vector<2x128xf32>
      %20 = arith.addf %15, %19 : vector<2x128xf32>
      %21 = arith.truncf %20 : vector<2x128xf32> to vector<2x128xbf16>
      %c0_19 = arith.constant 0 : index
      %22 = arith.index_cast %11 : i32 to index
      %c0_20 = arith.constant 0 : index
      %c0_21 = arith.constant 0 : index
      %23 = vector.load %arg6[%c0_19, %22, %c0_20, %c0_21] : memref<1x2x2x128xbf16, #tpu.memory_space<vmem>>, vector<1x1x2x128xbf16>
      %24 = vector.shape_cast %23 : vector<1x1x2x128xbf16> to vector<2x128xbf16>
      %25 = vector.shape_cast %21 : vector<2x128xbf16> to vector<1x1x2x128xbf16>
      tpu.vector_store %arg6[%c0_19, %22, %c0_20, %c0_21], %25 {strides = array<i32>} : memref<1x2x2x128xbf16, #tpu.memory_space<vmem>>, vector<1x1x2x128xbf16>,
    }
    %c2_i32_10 = arith.constant 2 : i32
    return
  }
  func.func @transform_0(%arg0: i32, %arg1: i32) -> (i32, i32) {
    %c0_i32 = arith.constant 0 : i32
    %c0_i32_0 = arith.constant 0 : i32
    return %arg1, %c0_i32 : i32, i32
  }
  func.func @transform_1(%arg0: i32, %arg1: i32) -> (i32, i32) {
    %c0_i32 = arith.constant 0 : i32
    %c0_i32_0 = arith.constant 0 : i32
    %c0_i32_1 = arith.constant 0 : i32
    return %c0_i32, %c0_i32_0 : i32, i32
  }
  func.func @transform_2(%arg0: i32, %arg1: i32) -> (i32, i32, i32, i32) {
    %c0_i32 = arith.constant 0 : i32
    %c0_i32_0 = arith.constant 0 : i32
    %c0_i32_1 = arith.constant 0 : i32
    %c0_i32_2 = arith.constant 0 : i32
    return %arg0, %c0_i32, %c0_i32_0, %c0_i32_1 : i32, i32, i32, i32
  }
  func.func @transform_3(%arg0: i32, %arg1: i32) -> (i32, i32, i32, i32) {
    %c0_i32 = arith.constant 0 : i32
    %c0_i32_0 = arith.constant 0 : i32
    %c0_i32_1 = arith.constant 0 : i32
    return %arg0, %arg1, %c0_i32, %c0_i32_0 : i32, i32, i32, i32
  }
  func.func @transform_4(%arg0: i32, %arg1: i32) -> (i32, i32, i32, i32) {
    %c0_i32 = arith.constant 0 : i32
    %c0_i32_0 = arith.constant 0 : i32
    %c0_i32_1 = arith.constant 0 : i32
    return %arg0, %arg1, %c0_i32, %c0_i32_0 : i32, i32, i32, i32
  }
}

module attributes {stable_mosaic.version = 11 : i64} {
  func.func @kernel(%arg0: i32, %arg1: i32, %arg2: memref<1x16x128xbf16, #tpu.memory_space<vmem>>, %arg3: memref<1x16x128xbf16, #tpu.memory_space<vmem>>, %arg4: memref<3x384x128xbf16, #tpu.memory_space<vmem>>, %arg5: memref<1x128xf32, #tpu.memory_space<vmem>>, %arg6: memref<1x2x2x128xbf16, #tpu.memory_space<vmem>>, %arg7: memref<40x128xbf16, #tpu.memory_space<vmem>>, %arg8: memref<16x384xbf16, #tpu.memory_space<vmem>>, %arg9: memref<16x128xf32, #tpu.memory_space<vmem>>) attributes {dimension_semantics = [#tpu.dimension_semantics<parallel>, #tpu.dimension_semantics<parallel>], iteration_bounds = array<i64: 2, 1>, scalar_prefetch = 0 : i64, scratch_operands = 3 : i64, tpu.core_type = #tpu.core_type<tc>, window_params = [{transform_indices = @transform_0, window_bounds = array<i64: 1, 16, 128>}, {transform_indices = @transform_1, window_bounds = array<i64: 1, 16, 128>}, {pipeline_mode = #tpu.pipeline_mode<synchronous>, transform_indices = @transform_2, window_bounds = array<i64: 3, 384, 128>}, {pipeline_mode = #tpu.pipeline_mode<synchronous>, transform_indices = @transform_3, window_bounds = array<i64: 1, 128>}, {transform_indices = @transform_4, window_bounds = array<i64: 1, 2, 2, 128>}]} {
    %c0 = arith.constant 0 : index
    %c0_0 = arith.constant 0 : index
    %c0_1 = arith.constant 0 : index
    %0 = vector.load %arg2[%c0, %c0_0, %c0_1] : memref<1x16x128xbf16, #tpu.memory_space<vmem>>, vector<1x16x128xbf16>
    %1 = vector.shape_cast %0 : vector<1x16x128xbf16> to vector<16x128xbf16>
    %c0_2 = arith.constant 0 : index
    %c0_3 = arith.constant 0 : index
    %2 = vector.load %arg7[%c0_2, %c0_3] : memref<40x128xbf16, #tpu.memory_space<vmem>>, vector<16x128xbf16>
    tpu.vector_store %arg7[%c0_2, %c0_3], %1 {strides = array<i32>} : memref<40x128xbf16, #tpu.memory_space<vmem>>, vector<16x128xbf16>,
    %c0_4 = arith.constant 0 : index
    %c0_5 = arith.constant 0 : index
    %c0_6 = arith.constant 0 : index
    %3 = vector.load %arg3[%c0_4, %c0_5, %c0_6] : memref<1x16x128xbf16, #tpu.memory_space<vmem>>, vector<1x16x128xbf16>
    %4 = vector.shape_cast %3 : vector<1x16x128xbf16> to vector<16x128xbf16>
    %c16 = arith.constant 16 : index
    %c0_7 = arith.constant 0 : index
    %5 = vector.load %arg7[%c16, %c0_7] : memref<40x128xbf16, #tpu.memory_space<vmem>>, vector<16x128xbf16>
    tpu.vector_store %arg7[%c16, %c0_7], %4 {strides = array<i32>} : memref<40x128xbf16, #tpu.memory_space<vmem>>, vector<16x128xbf16>,
    %cst = arith.constant 0.000000e+00 : bf16
    %6 = vector.broadcast %cst : bf16 to vector<8x128xbf16>
    %c32 = arith.constant 32 : index
    %c0_8 = arith.constant 0 : index
    %7 = vector.load %arg7[%c32, %c0_8] : memref<40x128xbf16, #tpu.memory_space<vmem>>, vector<8x128xbf16>
    tpu.vector_store %arg7[%c32, %c0_8], %6 {strides = array<i32>} : memref<40x128xbf16, #tpu.memory_space<vmem>>, vector<8x128xbf16>,
    %c0_9 = arith.constant 0 : index
    %c0_10 = arith.constant 0 : index
    %8 = vector.load %arg7[%c0_9, %c0_10] : memref<40x128xbf16, #tpu.memory_space<vmem>>, vector<16x128xbf16>
    %c0_11 = arith.constant 0 : index
    %c0_12 = arith.constant 0 : index
    %9 = vector.load %arg8[%c0_11, %c0_12] : memref<16x384xbf16, #tpu.memory_space<vmem>>, vector<16x128xbf16>
    tpu.vector_store %arg8[%c0_11, %c0_12], %8 {strides = array<i32>} : memref<16x384xbf16, #tpu.memory_space<vmem>>, vector<16x128xbf16>,
    %c1 = arith.constant 1 : index
    %c0_13 = arith.constant 0 : index
    %10 = vector.load %arg7[%c1, %c0_13] : memref<40x128xbf16, #tpu.memory_space<vmem>>, vector<16x128xbf16>
    %c0_14 = arith.constant 0 : index
    %c128 = arith.constant 128 : index
    %11 = vector.load %arg8[%c0_14, %c128] : memref<16x384xbf16, #tpu.memory_space<vmem>>, vector<16x128xbf16>
    tpu.vector_store %arg8[%c0_14, %c128], %10 {strides = array<i32>} : memref<16x384xbf16, #tpu.memory_space<vmem>>, vector<16x128xbf16>,
    %c2 = arith.constant 2 : index
    %c0_15 = arith.constant 0 : index
    %12 = vector.load %arg7[%c2, %c0_15] : memref<40x128xbf16, #tpu.memory_space<vmem>>, vector<16x128xbf16>
    %c0_16 = arith.constant 0 : index
    %c256 = arith.constant 256 : index
    %13 = vector.load %arg8[%c0_16, %c256] : memref<16x384xbf16, #tpu.memory_space<vmem>>, vector<16x128xbf16>
    tpu.vector_store %arg8[%c0_16, %c256], %12 {strides = array<i32>} : memref<16x384xbf16, #tpu.memory_space<vmem>>, vector<16x128xbf16>,
    %c0_17 = arith.constant 0 : index
    %c0_18 = arith.constant 0 : index
    %14 = vector.load %arg8[%c0_17, %c0_18] : memref<16x384xbf16, #tpu.memory_space<vmem>>, vector<16x384xbf16>
    %c0_19 = arith.constant 0 : index
    %c0_20 = arith.constant 0 : index
    %c0_21 = arith.constant 0 : index
    %15 = vector.load %arg4[%c0_19, %c0_20, %c0_21] : memref<3x384x128xbf16, #tpu.memory_space<vmem>>, vector<1x384x128xbf16>
    %16 = vector.shape_cast %15 : vector<1x384x128xbf16> to vector<384x128xbf16>
    %cst_22 = arith.constant dense<0.000000e+00> : vector<16x128xf32>
    %17 = tpu.matmul %14, %16, %cst_22 {dimension_numbers = #tpu.dot_dimension_numbers<[1], [0], [0], [1], [0, 0, 1, 1], [], []>} : vector<16x384xbf16>, vector<384x128xbf16>, vector<16x128xf32> -> vector<16x128xf32>
    %c0_23 = arith.constant 0 : index
    %c0_24 = arith.constant 0 : index
    %18 = vector.load %arg5[%c0_23, %c0_24] : memref<1x128xf32, #tpu.memory_space<vmem>>, vector<1x128xf32>
    %19 = vector.broadcast %18 : vector<1x128xf32> to vector<16x128xf32>
    %20 = arith.addf %17, %19 : vector<16x128xf32>
    %c0_25 = arith.constant 0 : index
    %c0_26 = arith.constant 0 : index
    %21 = vector.load %arg9[%c0_25, %c0_26] : memref<16x128xf32, #tpu.memory_space<vmem>>, vector<16x128xf32>
    tpu.vector_store %arg9[%c0_25, %c0_26], %20 {strides = array<i32>} : memref<16x128xf32, #tpu.memory_space<vmem>>, vector<16x128xf32>,
    %c8 = arith.constant 8 : index
    %c0_27 = arith.constant 0 : index
    %22 = vector.load %arg7[%c8, %c0_27] : memref<40x128xbf16, #tpu.memory_space<vmem>>, vector<16x128xbf16>
    %c0_28 = arith.constant 0 : index
    %c0_29 = arith.constant 0 : index
    %23 = vector.load %arg8[%c0_28, %c0_29] : memref<16x384xbf16, #tpu.memory_space<vmem>>, vector<16x128xbf16>
    tpu.vector_store %arg8[%c0_28, %c0_29], %22 {strides = array<i32>} : memref<16x384xbf16, #tpu.memory_space<vmem>>, vector<16x128xbf16>,
    %c9 = arith.constant 9 : index
    %c0_30 = arith.constant 0 : index
    %24 = vector.load %arg7[%c9, %c0_30] : memref<40x128xbf16, #tpu.memory_space<vmem>>, vector<16x128xbf16>
    %c0_31 = arith.constant 0 : index
    %c128_32 = arith.constant 128 : index
    %25 = vector.load %arg8[%c0_31, %c128_32] : memref<16x384xbf16, #tpu.memory_space<vmem>>, vector<16x128xbf16>
    tpu.vector_store %arg8[%c0_31, %c128_32], %24 {strides = array<i32>} : memref<16x384xbf16, #tpu.memory_space<vmem>>, vector<16x128xbf16>,
    %c10 = arith.constant 10 : index
    %c0_33 = arith.constant 0 : index
    %26 = vector.load %arg7[%c10, %c0_33] : memref<40x128xbf16, #tpu.memory_space<vmem>>, vector<16x128xbf16>
    %c0_34 = arith.constant 0 : index
    %c256_35 = arith.constant 256 : index
    %27 = vector.load %arg8[%c0_34, %c256_35] : memref<16x384xbf16, #tpu.memory_space<vmem>>, vector<16x128xbf16>
    tpu.vector_store %arg8[%c0_34, %c256_35], %26 {strides = array<i32>} : memref<16x384xbf16, #tpu.memory_space<vmem>>, vector<16x128xbf16>,
    %c0_36 = arith.constant 0 : index
    %c0_37 = arith.constant 0 : index
    %28 = vector.load %arg8[%c0_36, %c0_37] : memref<16x384xbf16, #tpu.memory_space<vmem>>, vector<16x384xbf16>
    %c1_38 = arith.constant 1 : index
    %c0_39 = arith.constant 0 : index
    %c0_40 = arith.constant 0 : index
    %29 = vector.load %arg4[%c1_38, %c0_39, %c0_40] : memref<3x384x128xbf16, #tpu.memory_space<vmem>>, vector<1x384x128xbf16>
    %30 = vector.shape_cast %29 : vector<1x384x128xbf16> to vector<384x128xbf16>
    %cst_41 = arith.constant dense<0.000000e+00> : vector<16x128xf32>
    %31 = tpu.matmul %28, %30, %cst_41 {dimension_numbers = #tpu.dot_dimension_numbers<[1], [0], [0], [1], [0, 0, 1, 1], [], []>} : vector<16x384xbf16>, vector<384x128xbf16>, vector<16x128xf32> -> vector<16x128xf32>
    %c0_42 = arith.constant 0 : index
    %c0_43 = arith.constant 0 : index
    %32 = vector.load %arg9[%c0_42, %c0_43] : memref<16x128xf32, #tpu.memory_space<vmem>>, vector<16x128xf32>
    %33 = arith.addf %32, %31 : vector<16x128xf32>
    %c0_44 = arith.constant 0 : index
    %c0_45 = arith.constant 0 : index
    %34 = vector.load %arg9[%c0_44, %c0_45] : memref<16x128xf32, #tpu.memory_space<vmem>>, vector<16x128xf32>
    tpu.vector_store %arg9[%c0_44, %c0_45], %33 {strides = array<i32>} : memref<16x128xf32, #tpu.memory_space<vmem>>, vector<16x128xf32>,
    %c16_46 = arith.constant 16 : index
    %c0_47 = arith.constant 0 : index
    %35 = vector.load %arg7[%c16_46, %c0_47] : memref<40x128xbf16, #tpu.memory_space<vmem>>, vector<16x128xbf16>
    %c0_48 = arith.constant 0 : index
    %c0_49 = arith.constant 0 : index
    %36 = vector.load %arg8[%c0_48, %c0_49] : memref<16x384xbf16, #tpu.memory_space<vmem>>, vector<16x128xbf16>
    tpu.vector_store %arg8[%c0_48, %c0_49], %35 {strides = array<i32>} : memref<16x384xbf16, #tpu.memory_space<vmem>>, vector<16x128xbf16>,
    %c17 = arith.constant 17 : index
    %c0_50 = arith.constant 0 : index
    %37 = vector.load %arg7[%c17, %c0_50] : memref<40x128xbf16, #tpu.memory_space<vmem>>, vector<16x128xbf16>
    %c0_51 = arith.constant 0 : index
    %c128_52 = arith.constant 128 : index
    %38 = vector.load %arg8[%c0_51, %c128_52] : memref<16x384xbf16, #tpu.memory_space<vmem>>, vector<16x128xbf16>
    tpu.vector_store %arg8[%c0_51, %c128_52], %37 {strides = array<i32>} : memref<16x384xbf16, #tpu.memory_space<vmem>>, vector<16x128xbf16>,
    %c18 = arith.constant 18 : index
    %c0_53 = arith.constant 0 : index
    %39 = vector.load %arg7[%c18, %c0_53] : memref<40x128xbf16, #tpu.memory_space<vmem>>, vector<16x128xbf16>
    %c0_54 = arith.constant 0 : index
    %c256_55 = arith.constant 256 : index
    %40 = vector.load %arg8[%c0_54, %c256_55] : memref<16x384xbf16, #tpu.memory_space<vmem>>, vector<16x128xbf16>
    tpu.vector_store %arg8[%c0_54, %c256_55], %39 {strides = array<i32>} : memref<16x384xbf16, #tpu.memory_space<vmem>>, vector<16x128xbf16>,
    %c0_56 = arith.constant 0 : index
    %c0_57 = arith.constant 0 : index
    %41 = vector.load %arg8[%c0_56, %c0_57] : memref<16x384xbf16, #tpu.memory_space<vmem>>, vector<16x384xbf16>
    %c2_58 = arith.constant 2 : index
    %c0_59 = arith.constant 0 : index
    %c0_60 = arith.constant 0 : index
    %42 = vector.load %arg4[%c2_58, %c0_59, %c0_60] : memref<3x384x128xbf16, #tpu.memory_space<vmem>>, vector<1x384x128xbf16>
    %43 = vector.shape_cast %42 : vector<1x384x128xbf16> to vector<384x128xbf16>
    %cst_61 = arith.constant dense<0.000000e+00> : vector<16x128xf32>
    %44 = tpu.matmul %41, %43, %cst_61 {dimension_numbers = #tpu.dot_dimension_numbers<[1], [0], [0], [1], [0, 0, 1, 1], [], []>} : vector<16x384xbf16>, vector<384x128xbf16>, vector<16x128xf32> -> vector<16x128xf32>
    %c0_62 = arith.constant 0 : index
    %c0_63 = arith.constant 0 : index
    %45 = vector.load %arg9[%c0_62, %c0_63] : memref<16x128xf32, #tpu.memory_space<vmem>>, vector<16x128xf32>
    %46 = arith.addf %45, %44 : vector<16x128xf32>
    %c0_64 = arith.constant 0 : index
    %c0_65 = arith.constant 0 : index
    %47 = vector.load %arg9[%c0_64, %c0_65] : memref<16x128xf32, #tpu.memory_space<vmem>>, vector<16x128xf32>
    tpu.vector_store %arg9[%c0_64, %c0_65], %46 {strides = array<i32>} : memref<16x128xf32, #tpu.memory_space<vmem>>, vector<16x128xf32>,
    %c0_66 = arith.constant 0 : index
    %c0_67 = arith.constant 0 : index
    %48 = vector.load %arg9[%c0_66, %c0_67] : memref<16x128xf32, #tpu.memory_space<vmem>>, vector<16x128xf32>
    %49 = vector.shape_cast %48 : vector<16x128xf32> to vector<2x8x128xf32>
    %50 = vector.extract_strided_slice %49 {offsets = [0, 0, 0], sizes = [2, 2, 128], strides = [1, 1, 1]} : vector<2x8x128xf32> to vector<2x2x128xf32>
    %51 = arith.truncf %50 : vector<2x2x128xf32> to vector<2x2x128xbf16>
    %c0_68 = arith.constant 0 : index
    %c0_69 = arith.constant 0 : index
    %c0_70 = arith.constant 0 : index
    %c0_71 = arith.constant 0 : index
    %52 = vector.load %arg6[%c0_68, %c0_69, %c0_70, %c0_71] : memref<1x2x2x128xbf16, #tpu.memory_space<vmem>>, vector<1x2x2x128xbf16>
    %53 = vector.shape_cast %52 : vector<1x2x2x128xbf16> to vector<2x2x128xbf16>
    %54 = vector.shape_cast %51 : vector<2x2x128xbf16> to vector<1x2x2x128xbf16>
    tpu.vector_store %arg6[%c0_68, %c0_69, %c0_70, %c0_71], %54 {strides = array<i32>} : memref<1x2x2x128xbf16, #tpu.memory_space<vmem>>, vector<1x2x2x128xbf16>,
    return
  }
  func.func @transform_0(%arg0: i32, %arg1: i32) -> (i32, i32, i32) {
    %c0_i32 = arith.constant 0 : i32
    %c0_i32_0 = arith.constant 0 : i32
    return %arg0, %arg1, %c0_i32 : i32, i32, i32
  }
  func.func @transform_1(%arg0: i32, %arg1: i32) -> (i32, i32, i32) {
    %c1_i32 = arith.constant 1 : i32
    %0 = arith.addi %arg1, %c1_i32 : i32
    %c1_i32_0 = arith.constant 1 : i32
    %1 = arith.muli %0, %c1_i32_0 : i32
    %c0_i32 = arith.constant 0 : i32
    %c0_i32_1 = arith.constant 0 : i32
    return %arg0, %1, %c0_i32 : i32, i32, i32
  }
  func.func @transform_2(%arg0: i32, %arg1: i32) -> (i32, i32, i32) {
    %c0_i32 = arith.constant 0 : i32
    %c0_i32_0 = arith.constant 0 : i32
    %c0_i32_1 = arith.constant 0 : i32
    %c0_i32_2 = arith.constant 0 : i32
    return %c0_i32, %c0_i32_0, %c0_i32_1 : i32, i32, i32
  }
  func.func @transform_3(%arg0: i32, %arg1: i32) -> (i32, i32) {
    %c0_i32 = arith.constant 0 : i32
    %c0_i32_0 = arith.constant 0 : i32
    %c0_i32_1 = arith.constant 0 : i32
    return %c0_i32, %c0_i32_0 : i32, i32
  }
  func.func @transform_4(%arg0: i32, %arg1: i32) -> (i32, i32, i32, i32) {
    %c0_i32 = arith.constant 0 : i32
    %c0_i32_0 = arith.constant 0 : i32
    %c0_i32_1 = arith.constant 0 : i32
    return %arg0, %arg1, %c0_i32, %c0_i32_0 : i32, i32, i32, i32
  }
}

module attributes {stable_mosaic.version = 11 : i64} {
  func.func @kernel(%arg0: i32, %arg1: i32, %arg2: i32, %arg3: i32, %arg4: memref<1x64x3xbf16, #tpu.memory_space<vmem>>, %arg5: memref<1x3x256xbf16, #tpu.memory_space<vmem>>, %arg6: memref<1x256xf32, #tpu.memory_space<vmem>>, %arg7: memref<64x256xbf16, #tpu.memory_space<vmem>>, %arg8: memref<64x256xf32, #tpu.memory_space<vmem>>) attributes {dimension_semantics = [#tpu.dimension_semantics<parallel>, #tpu.dimension_semantics<parallel>, #tpu.dimension_semantics<arbitrary>, #tpu.dimension_semantics<arbitrary>], iteration_bounds = array<i64: 1, 2, 1, 1>, scalar_prefetch = 0 : i64, scratch_operands = 1 : i64, tpu.core_type = #tpu.core_type<tc>, window_params = [{transform_indices = @transform_0, window_bounds = array<i64: 1, 64, 3>}, {transform_indices = @transform_1, window_bounds = array<i64: 1, 3, 256>}, {transform_indices = @transform_2, window_bounds = array<i64: 1, 256>}, {transform_indices = @transform_3, window_bounds = array<i64: 64, 256>}]} {
    %c0_i32 = arith.constant 0 : i32
    %0 = arith.cmpi eq, %arg2, %c0_i32 : i32
    %c0_i32_0 = arith.constant 0 : i32
    %1 = arith.cmpi eq, %arg3, %c0_i32_0 : i32
    %2 = arith.andi %0, %1 : i1
    %3 = arith.extui %2 : i1 to i32
    %c0_i32_1 = arith.constant 0 : i32
    %4 = arith.cmpi ne, %3, %c0_i32_1 : i32
    scf.if %4 {
      %cst = arith.constant 0.000000e+00 : f32
      %36 = vector.broadcast %cst : f32 to vector<64x256xf32>
      %c0_14 = arith.constant 0 : index
      %c0_15 = arith.constant 0 : index
      %37 = vector.load %arg8[%c0_14, %c0_15] : memref<64x256xf32, #tpu.memory_space<vmem>>, vector<64x256xf32>
      tpu.vector_store %arg8[%c0_14, %c0_15], %36 {strides = array<i32>} : memref<64x256xf32, #tpu.memory_space<vmem>>, vector<64x256xf32>,
    } else {
    }
    %c0 = arith.constant 0 : index
    %c0_2 = arith.constant 0 : index
    %c0_3 = arith.constant 0 : index
    %5 = vector.load %arg4[%c0, %c0_2, %c0_3] : memref<1x64x3xbf16, #tpu.memory_space<vmem>>, vector<1x64x3xbf16>
    %6 = vector.shape_cast %5 : vector<1x64x3xbf16> to vector<64x3xbf16>
    %7 = arith.extf %6 : vector<64x3xbf16> to vector<64x3xf32>
    %c0_4 = arith.constant 0 : index
    %c0_5 = arith.constant 0 : index
    %c0_6 = arith.constant 0 : index
    %8 = vector.load %arg5[%c0_4, %c0_5, %c0_6] : memref<1x3x256xbf16, #tpu.memory_space<vmem>>, vector<1x3x256xbf16>
    %9 = vector.shape_cast %8 : vector<1x3x256xbf16> to vector<3x256xbf16>
    %10 = arith.extf %9 : vector<3x256xbf16> to vector<3x256xf32>
    %c0_7 = arith.constant 0 : index
    %c0_8 = arith.constant 0 : index
    %11 = vector.load %arg8[%c0_7, %c0_8] : memref<64x256xf32, #tpu.memory_space<vmem>>, vector<64x256xf32>
    %12 = vector.extract_strided_slice %7 {offsets = [0, 0], sizes = [64, 1], strides = [1, 1]} : vector<64x3xf32> to vector<64x1xf32>
    %13 = vector.extract_strided_slice %10 {offsets = [0, 0], sizes = [1, 256], strides = [1, 1]} : vector<3x256xf32> to vector<1x256xf32>
    %14 = vector.broadcast %12 : vector<64x1xf32> to vector<64x256xf32>
    %15 = vector.broadcast %13 : vector<1x256xf32> to vector<64x256xf32>
    %16 = arith.mulf %14, %15 : vector<64x256xf32>
    %17 = arith.addf %11, %16 : vector<64x256xf32>
    %18 = vector.extract_strided_slice %7 {offsets = [0, 1], sizes = [64, 1], strides = [1, 1]} : vector<64x3xf32> to vector<64x1xf32>
    %19 = vector.extract_strided_slice %10 {offsets = [1, 0], sizes = [1, 256], strides = [1, 1]} : vector<3x256xf32> to vector<1x256xf32>
    %20 = vector.broadcast %18 : vector<64x1xf32> to vector<64x256xf32>
    %21 = vector.broadcast %19 : vector<1x256xf32> to vector<64x256xf32>
    %22 = arith.mulf %20, %21 : vector<64x256xf32>
    %23 = arith.addf %17, %22 : vector<64x256xf32>
    %24 = vector.extract_strided_slice %7 {offsets = [0, 2], sizes = [64, 1], strides = [1, 1]} : vector<64x3xf32> to vector<64x1xf32>
    %25 = vector.extract_strided_slice %10 {offsets = [2, 0], sizes = [1, 256], strides = [1, 1]} : vector<3x256xf32> to vector<1x256xf32>
    %26 = vector.broadcast %24 : vector<64x1xf32> to vector<64x256xf32>
    %27 = vector.broadcast %25 : vector<1x256xf32> to vector<64x256xf32>
    %28 = arith.mulf %26, %27 : vector<64x256xf32>
    %29 = arith.addf %23, %28 : vector<64x256xf32>
    %c0_9 = arith.constant 0 : index
    %c0_10 = arith.constant 0 : index
    %30 = vector.load %arg8[%c0_9, %c0_10] : memref<64x256xf32, #tpu.memory_space<vmem>>, vector<64x256xf32>
    tpu.vector_store %arg8[%c0_9, %c0_10], %29 {strides = array<i32>} : memref<64x256xf32, #tpu.memory_space<vmem>>, vector<64x256xf32>,
    %c0_i32_11 = arith.constant 0 : i32
    %31 = arith.cmpi eq, %arg2, %c0_i32_11 : i32
    %c0_i32_12 = arith.constant 0 : i32
    %32 = arith.cmpi eq, %arg3, %c0_i32_12 : i32
    %33 = arith.andi %31, %32 : i1
    %34 = arith.extui %33 : i1 to i32
    %c0_i32_13 = arith.constant 0 : i32
    %35 = arith.cmpi ne, %34, %c0_i32_13 : i32
    scf.if %35 {
      %c0_14 = arith.constant 0 : index
      %c0_15 = arith.constant 0 : index
      %36 = vector.load %arg8[%c0_14, %c0_15] : memref<64x256xf32, #tpu.memory_space<vmem>>, vector<64x256xf32>
      %c0_16 = arith.constant 0 : index
      %c0_17 = arith.constant 0 : index
      %37 = vector.load %arg6[%c0_16, %c0_17] : memref<1x256xf32, #tpu.memory_space<vmem>>, vector<1x256xf32>
      %38 = vector.broadcast %37 : vector<1x256xf32> to vector<64x256xf32>
      %39 = arith.addf %36, %38 : vector<64x256xf32>
      %40 = arith.truncf %39 : vector<64x256xf32> to vector<64x256xbf16>
      %c0_18 = arith.constant 0 : index
      %c0_19 = arith.constant 0 : index
      %41 = vector.load %arg7[%c0_18, %c0_19] : memref<64x256xbf16, #tpu.memory_space<vmem>>, vector<64x256xbf16>
      tpu.vector_store %arg7[%c0_18, %c0_19], %40 {strides = array<i32>} : memref<64x256xbf16, #tpu.memory_space<vmem>>, vector<64x256xbf16>,
    } else {
    }
    return
  }
  func.func @transform_0(%arg0: i32, %arg1: i32, %arg2: i32, %arg3: i32) -> (i32, i32, i32) {
    %c0_i32 = arith.constant 0 : i32
    return %arg2, %arg0, %arg3 : i32, i32, i32
  }
  func.func @transform_1(%arg0: i32, %arg1: i32, %arg2: i32, %arg3: i32) -> (i32, i32, i32) {
    %c0_i32 = arith.constant 0 : i32
    return %arg2, %arg3, %arg1 : i32, i32, i32
  }
  func.func @transform_2(%arg0: i32, %arg1: i32, %arg2: i32, %arg3: i32) -> (i32, i32) {
    %c0_i32 = arith.constant 0 : i32
    %c0_i32_0 = arith.constant 0 : i32
    return %c0_i32, %arg1 : i32, i32
  }
  func.func @transform_3(%arg0: i32, %arg1: i32, %arg2: i32, %arg3: i32) -> (i32, i32) {
    %c0_i32 = arith.constant 0 : i32
    return %arg0, %arg1 : i32, i32
  }
}

module attributes {stable_mosaic.version = 11 : i64} {
  func.func @kernel(%arg0: i32, %arg1: i32, %arg2: i32, %arg3: i32, %arg4: memref<1x32x512xbf16, #tpu.memory_space<vmem>>, %arg5: memref<1x512x128xbf16, #tpu.memory_space<vmem>>, %arg6: memref<1x128xf32, #tpu.memory_space<vmem>>, %arg7: memref<32x128xbf16, #tpu.memory_space<vmem>>, %arg8: memref<32x128xf32, #tpu.memory_space<vmem>>) attributes {dimension_semantics = [#tpu.dimension_semantics<parallel>, #tpu.dimension_semantics<parallel>, #tpu.dimension_semantics<arbitrary>, #tpu.dimension_semantics<arbitrary>], iteration_bounds = array<i64: 1, 1, 2, 1>, scalar_prefetch = 0 : i64, scratch_operands = 1 : i64, tpu.core_type = #tpu.core_type<tc>, window_params = [{transform_indices = @transform_0, window_bounds = array<i64: 1, 32, 512>}, {transform_indices = @transform_1, window_bounds = array<i64: 1, 512, 128>}, {transform_indices = @transform_2, window_bounds = array<i64: 1, 128>}, {transform_indices = @transform_3, window_bounds = array<i64: 32, 128>}]} {
    %c0_i32 = arith.constant 0 : i32
    %0 = arith.cmpi eq, %arg2, %c0_i32 : i32
    %c0_i32_0 = arith.constant 0 : i32
    %1 = arith.cmpi eq, %arg3, %c0_i32_0 : i32
    %2 = arith.andi %0, %1 : i1
    %3 = arith.extui %2 : i1 to i32
    %c0_i32_1 = arith.constant 0 : i32
    %4 = arith.cmpi ne, %3, %c0_i32_1 : i32
    scf.if %4 {
      %cst_13 = arith.constant 0.000000e+00 : f32
      %18 = vector.broadcast %cst_13 : f32 to vector<32x128xf32>
      %c0_14 = arith.constant 0 : index
      %c0_15 = arith.constant 0 : index
      %19 = vector.load %arg8[%c0_14, %c0_15] : memref<32x128xf32, #tpu.memory_space<vmem>>, vector<32x128xf32>
      tpu.vector_store %arg8[%c0_14, %c0_15], %18 {strides = array<i32>} : memref<32x128xf32, #tpu.memory_space<vmem>>, vector<32x128xf32>,
    } else {
    }
    %c0 = arith.constant 0 : index
    %c0_2 = arith.constant 0 : index
    %5 = vector.load %arg8[%c0, %c0_2] : memref<32x128xf32, #tpu.memory_space<vmem>>, vector<32x128xf32>
    %c0_3 = arith.constant 0 : index
    %c0_4 = arith.constant 0 : index
    %c0_5 = arith.constant 0 : index
    %6 = vector.load %arg4[%c0_3, %c0_4, %c0_5] : memref<1x32x512xbf16, #tpu.memory_space<vmem>>, vector<1x32x512xbf16>
    %7 = vector.shape_cast %6 : vector<1x32x512xbf16> to vector<32x512xbf16>
    %c0_6 = arith.constant 0 : index
    %c0_7 = arith.constant 0 : index
    %c0_8 = arith.constant 0 : index
    %8 = vector.load %arg5[%c0_6, %c0_7, %c0_8] : memref<1x512x128xbf16, #tpu.memory_space<vmem>>, vector<1x512x128xbf16>
    %9 = vector.shape_cast %8 : vector<1x512x128xbf16> to vector<512x128xbf16>
    %cst = arith.constant dense<0.000000e+00> : vector<32x128xf32>
    %10 = tpu.matmul %7, %9, %cst {dimension_numbers = #tpu.dot_dimension_numbers<[1], [0], [0], [1], [0, 0, 1, 1], [], []>} : vector<32x512xbf16>, vector<512x128xbf16>, vector<32x128xf32> -> vector<32x128xf32>
    %11 = arith.addf %5, %10 : vector<32x128xf32>
    %c0_9 = arith.constant 0 : index
    %c0_10 = arith.constant 0 : index
    %12 = vector.load %arg8[%c0_9, %c0_10] : memref<32x128xf32, #tpu.memory_space<vmem>>, vector<32x128xf32>
    tpu.vector_store %arg8[%c0_9, %c0_10], %11 {strides = array<i32>} : memref<32x128xf32, #tpu.memory_space<vmem>>, vector<32x128xf32>,
    %c1_i32 = arith.constant 1 : i32
    %13 = arith.cmpi eq, %arg2, %c1_i32 : i32
    %c0_i32_11 = arith.constant 0 : i32
    %14 = arith.cmpi eq, %arg3, %c0_i32_11 : i32
    %15 = arith.andi %13, %14 : i1
    %16 = arith.extui %15 : i1 to i32
    %c0_i32_12 = arith.constant 0 : i32
    %17 = arith.cmpi ne, %16, %c0_i32_12 : i32
    scf.if %17 {
      %c0_13 = arith.constant 0 : index
      %c0_14 = arith.constant 0 : index
      %18 = vector.load %arg8[%c0_13, %c0_14] : memref<32x128xf32, #tpu.memory_space<vmem>>, vector<32x128xf32>
      %c0_15 = arith.constant 0 : index
      %c0_16 = arith.constant 0 : index
      %19 = vector.load %arg6[%c0_15, %c0_16] : memref<1x128xf32, #tpu.memory_space<vmem>>, vector<1x128xf32>
      %20 = vector.broadcast %19 : vector<1x128xf32> to vector<32x128xf32>
      %21 = arith.addf %18, %20 : vector<32x128xf32>
      %22 = arith.truncf %21 : vector<32x128xf32> to vector<32x128xbf16>
      %c0_17 = arith.constant 0 : index
      %c0_18 = arith.constant 0 : index
      %23 = vector.load %arg7[%c0_17, %c0_18] : memref<32x128xbf16, #tpu.memory_space<vmem>>, vector<32x128xbf16>
      tpu.vector_store %arg7[%c0_17, %c0_18], %22 {strides = array<i32>} : memref<32x128xbf16, #tpu.memory_space<vmem>>, vector<32x128xbf16>,
    } else {
    }
    return
  }
  func.func @transform_0(%arg0: i32, %arg1: i32, %arg2: i32, %arg3: i32) -> (i32, i32, i32) {
    %c0_i32 = arith.constant 0 : i32
    return %arg2, %arg0, %arg3 : i32, i32, i32
  }
  func.func @transform_1(%arg0: i32, %arg1: i32, %arg2: i32, %arg3: i32) -> (i32, i32, i32) {
    %c0_i32 = arith.constant 0 : i32
    return %arg2, %arg3, %arg1 : i32, i32, i32
  }
  func.func @transform_2(%arg0: i32, %arg1: i32, %arg2: i32, %arg3: i32) -> (i32, i32) {
    %c0_i32 = arith.constant 0 : i32
    %c0_i32_0 = arith.constant 0 : i32
    return %c0_i32, %arg1 : i32, i32
  }
  func.func @transform_3(%arg0: i32, %arg1: i32, %arg2: i32, %arg3: i32) -> (i32, i32) {
    %c0_i32 = arith.constant 0 : i32
    return %arg0, %arg1 : i32, i32
  }
}

module attributes {stable_mosaic.version = 11 : i64} {
  func.func @kernel(%arg0: i32, %arg1: i32, %arg2: memref<4x2xf32, #tpu.memory_space<vmem>>, %arg3: memref<4x2xf32, #tpu.memory_space<vmem>>, %arg4: memref<1x2x2x128xbf16, #tpu.memory_space<vmem>>, %arg5: memref<1x4x4x128xbf16, #tpu.memory_space<vmem>>, %arg6: memref<1x4x4x128xbf16, #tpu.memory_space<vmem>>, %arg7: memref<4x2x128xf32, #tpu.memory_space<vmem>>) attributes {dimension_semantics = [#tpu.dimension_semantics<parallel>, #tpu.dimension_semantics<parallel>], iteration_bounds = array<i64: 2, 1>, scalar_prefetch = 0 : i64, scratch_operands = 1 : i64, tpu.core_type = #tpu.core_type<tc>, window_params = [{transform_indices = @transform_0, window_bounds = array<i64: 4, 2>}, {pipeline_mode = #tpu.pipeline_mode<synchronous>, transform_indices = @transform_1, window_bounds = array<i64: 4, 2>}, {transform_indices = @transform_2, window_bounds = array<i64: 1, 2, 2, 128>}, {transform_indices = @transform_3, window_bounds = array<i64: 1, 4, 4, 128>}, {transform_indices = @transform_4, window_bounds = array<i64: 1, 4, 4, 128>}]} {
    %c0 = arith.constant 0 : index
    %c0_0 = arith.constant 0 : index
    %c0_1 = arith.constant 0 : index
    %c0_2 = arith.constant 0 : index
    %0 = vector.load %arg4[%c0, %c0_0, %c0_1, %c0_2] : memref<1x2x2x128xbf16, #tpu.memory_space<vmem>>, vector<1x2x2x128xbf16>
    %1 = vector.shape_cast %0 : vector<1x2x2x128xbf16> to vector<2x2x128xbf16>
    %2 = arith.extf %1 : vector<2x2x128xbf16> to vector<2x2x128xf32>
    %3 = vector.shape_cast %2 : vector<2x2x128xf32> to vector<2x256xf32>
    %c0_3 = arith.constant 0 : index
    %c0_4 = arith.constant 0 : index
    %4 = vector.load %arg2[%c0_3, %c0_4] : memref<4x2xf32, #tpu.memory_space<vmem>>, vector<4x2xf32>
    %cst = arith.constant dense<0.000000e+00> : vector<4x256xf32>
    %5 = tpu.matmul %4, %3, %cst {dimension_numbers = #tpu.dot_dimension_numbers<[1], [0], [0], [1], [0, 0, 1, 1], [], []>} : vector<4x2xf32>, vector<2x256xf32>, vector<4x256xf32> -> vector<4x256xf32>
    %6 = vector.shape_cast %5 : vector<4x256xf32> to vector<4x2x128xf32>
    %c0_5 = arith.constant 0 : index
    %c0_6 = arith.constant 0 : index
    %c0_7 = arith.constant 0 : index
    %7 = vector.load %arg7[%c0_5, %c0_6, %c0_7] : memref<4x2x128xf32, #tpu.memory_space<vmem>>, vector<4x2x128xf32>
    tpu.vector_store %arg7[%c0_5, %c0_6, %c0_7], %6 {strides = array<i32>} : memref<4x2x128xf32, #tpu.memory_space<vmem>>, vector<4x2x128xf32>,
    %c0_8 = arith.constant 0 : index
    %c0_9 = arith.constant 0 : index
    %8 = vector.load %arg3[%c0_8, %c0_9] : memref<4x2xf32, #tpu.memory_space<vmem>>, vector<4x2xf32>
    %c0_i32 = arith.constant 0 : i32
    %c4_i32 = arith.constant 4 : i32
    %9 = arith.addi %c0_i32, %c4_i32 : i32
    %c1_i32 = arith.constant 1 : i32
    scf.for %arg8 = %c0_i32 to %9 step %c1_i32  : i32 {
      %c1_i32_11 = arith.constant 1 : i32
      %10 = arith.muli %arg8, %c1_i32_11 : i32
      %c0_i32_12 = arith.constant 0 : i32
      %11 = arith.addi %c0_i32_12, %10 : i32
      %12 = arith.index_cast %11 : i32 to index
      %c0_13 = arith.constant 0 : index
      %c0_14 = arith.constant 0 : index
      %13 = vector.load %arg7[%12, %c0_13, %c0_14] : memref<4x2x128xf32, #tpu.memory_space<vmem>>, vector<1x2x128xf32>
      %14 = vector.shape_cast %13 : vector<1x2x128xf32> to vector<2x128xf32>
      %cst_15 = arith.constant dense<0.000000e+00> : vector<4x128xf32>
      %15 = tpu.matmul %8, %14, %cst_15 {dimension_numbers = #tpu.dot_dimension_numbers<[1], [0], [0], [1], [0, 0, 1, 1], [], []>} : vector<4x2xf32>, vector<2x128xf32>, vector<4x128xf32> -> vector<4x128xf32>
      %c0_16 = arith.constant 0 : index
      %16 = arith.index_cast %11 : i32 to index
      %c0_17 = arith.constant 0 : index
      %c0_18 = arith.constant 0 : index
      %17 = vector.load %arg5[%c0_16, %16, %c0_17, %c0_18] : memref<1x4x4x128xbf16, #tpu.memory_space<vmem>>, vector<1x1x4x128xbf16>
      %18 = vector.shape_cast %17 : vector<1x1x4x128xbf16> to vector<4x128xbf16>
      %19 = arith.extf %18 : vector<4x128xbf16> to vector<4x128xf32>
      %20 = arith.addf %15, %19 : vector<4x128xf32>
      %21 = arith.truncf %20 : vector<4x128xf32> to vector<4x128xbf16>
      %c0_19 = arith.constant 0 : index
      %22 = arith.index_cast %11 : i32 to index
      %c0_20 = arith.constant 0 : index
      %c0_21 = arith.constant 0 : index
      %23 = vector.load %arg6[%c0_19, %22, %c0_20, %c0_21] : memref<1x4x4x128xbf16, #tpu.memory_space<vmem>>, vector<1x1x4x128xbf16>
      %24 = vector.shape_cast %23 : vector<1x1x4x128xbf16> to vector<4x128xbf16>
      %25 = vector.shape_cast %21 : vector<4x128xbf16> to vector<1x1x4x128xbf16>
      tpu.vector_store %arg6[%c0_19, %22, %c0_20, %c0_21], %25 {strides = array<i32>} : memref<1x4x4x128xbf16, #tpu.memory_space<vmem>>, vector<1x1x4x128xbf16>,
    }
    %c4_i32_10 = arith.constant 4 : i32
    return
  }
  func.func @transform_0(%arg0: i32, %arg1: i32) -> (i32, i32) {
    %c0_i32 = arith.constant 0 : i32
    %c0_i32_0 = arith.constant 0 : i32
    return %arg1, %c0_i32 : i32, i32
  }
  func.func @transform_1(%arg0: i32, %arg1: i32) -> (i32, i32) {
    %c0_i32 = arith.constant 0 : i32
    %c0_i32_0 = arith.constant 0 : i32
    %c0_i32_1 = arith.constant 0 : i32
    return %c0_i32, %c0_i32_0 : i32, i32
  }
  func.func @transform_2(%arg0: i32, %arg1: i32) -> (i32, i32, i32, i32) {
    %c0_i32 = arith.constant 0 : i32
    %c0_i32_0 = arith.constant 0 : i32
    %c0_i32_1 = arith.constant 0 : i32
    %c0_i32_2 = arith.constant 0 : i32
    return %arg0, %c0_i32, %c0_i32_0, %c0_i32_1 : i32, i32, i32, i32
  }
  func.func @transform_3(%arg0: i32, %arg1: i32) -> (i32, i32, i32, i32) {
    %c0_i32 = arith.constant 0 : i32
    %c0_i32_0 = arith.constant 0 : i32
    %c0_i32_1 = arith.constant 0 : i32
    return %arg0, %arg1, %c0_i32, %c0_i32_0 : i32, i32, i32, i32
  }
  func.func @transform_4(%arg0: i32, %arg1: i32) -> (i32, i32, i32, i32) {
    %c0_i32 = arith.constant 0 : i32
    %c0_i32_0 = arith.constant 0 : i32
    %c0_i32_1 = arith.constant 0 : i32
    return %arg0, %arg1, %c0_i32, %c0_i32_0 : i32, i32, i32, i32
  }
}

module attributes {stable_mosaic.version = 11 : i64} {
  func.func @kernel(%arg0: i32, %arg1: i32, %arg2: memref<1x32x128xbf16, #tpu.memory_space<vmem>>, %arg3: memref<1x16x128xbf16, #tpu.memory_space<vmem>>, %arg4: memref<3x384x128xbf16, #tpu.memory_space<vmem>>, %arg5: memref<1x128xf32, #tpu.memory_space<vmem>>, %arg6: memref<1x4x4x128xbf16, #tpu.memory_space<vmem>>, %arg7: memref<56x128xbf16, #tpu.memory_space<vmem>>, %arg8: memref<32x384xbf16, #tpu.memory_space<vmem>>, %arg9: memref<32x128xf32, #tpu.memory_space<vmem>>) attributes {dimension_semantics = [#tpu.dimension_semantics<parallel>, #tpu.dimension_semantics<parallel>], iteration_bounds = array<i64: 2, 1>, scalar_prefetch = 0 : i64, scratch_operands = 3 : i64, tpu.core_type = #tpu.core_type<tc>, window_params = [{transform_indices = @transform_0, window_bounds = array<i64: 1, 32, 128>}, {transform_indices = @transform_1, window_bounds = array<i64: 1, 16, 128>}, {pipeline_mode = #tpu.pipeline_mode<synchronous>, transform_indices = @transform_2, window_bounds = array<i64: 3, 384, 128>}, {pipeline_mode = #tpu.pipeline_mode<synchronous>, transform_indices = @transform_3, window_bounds = array<i64: 1, 128>}, {transform_indices = @transform_4, window_bounds = array<i64: 1, 4, 4, 128>}]} {
    %c0 = arith.constant 0 : index
    %c0_0 = arith.constant 0 : index
    %c0_1 = arith.constant 0 : index
    %0 = vector.load %arg2[%c0, %c0_0, %c0_1] : memref<1x32x128xbf16, #tpu.memory_space<vmem>>, vector<1x32x128xbf16>
    %1 = vector.shape_cast %0 : vector<1x32x128xbf16> to vector<32x128xbf16>
    %c0_2 = arith.constant 0 : index
    %c0_3 = arith.constant 0 : index
    %2 = vector.load %arg7[%c0_2, %c0_3] : memref<56x128xbf16, #tpu.memory_space<vmem>>, vector<32x128xbf16>
    tpu.vector_store %arg7[%c0_2, %c0_3], %1 {strides = array<i32>} : memref<56x128xbf16, #tpu.memory_space<vmem>>, vector<32x128xbf16>,
    %c0_4 = arith.constant 0 : index
    %c0_5 = arith.constant 0 : index
    %c0_6 = arith.constant 0 : index
    %3 = vector.load %arg3[%c0_4, %c0_5, %c0_6] : memref<1x16x128xbf16, #tpu.memory_space<vmem>>, vector<1x16x128xbf16>
    %4 = vector.shape_cast %3 : vector<1x16x128xbf16> to vector<16x128xbf16>
    %c32 = arith.constant 32 : index
    %c0_7 = arith.constant 0 : index
    %5 = vector.load %arg7[%c32, %c0_7] : memref<56x128xbf16, #tpu.memory_space<vmem>>, vector<16x128xbf16>
    tpu.vector_store %arg7[%c32, %c0_7], %4 {strides = array<i32>} : memref<56x128xbf16, #tpu.memory_space<vmem>>, vector<16x128xbf16>,
    %cst = arith.constant 0.000000e+00 : bf16
    %6 = vector.broadcast %cst : bf16 to vector<8x128xbf16>
    %c48 = arith.constant 48 : index
    %c0_8 = arith.constant 0 : index
    %7 = vector.load %arg7[%c48, %c0_8] : memref<56x128xbf16, #tpu.memory_space<vmem>>, vector<8x128xbf16>
    tpu.vector_store %arg7[%c48, %c0_8], %6 {strides = array<i32>} : memref<56x128xbf16, #tpu.memory_space<vmem>>, vector<8x128xbf16>,
    %c0_9 = arith.constant 0 : index
    %c0_10 = arith.constant 0 : index
    %8 = vector.load %arg7[%c0_9, %c0_10] : memref<56x128xbf16, #tpu.memory_space<vmem>>, vector<32x128xbf16>
    %c0_11 = arith.constant 0 : index
    %c0_12 = arith.constant 0 : index
    %9 = vector.load %arg8[%c0_11, %c0_12] : memref<32x384xbf16, #tpu.memory_space<vmem>>, vector<32x128xbf16>
    tpu.vector_store %arg8[%c0_11, %c0_12], %8 {strides = array<i32>} : memref<32x384xbf16, #tpu.memory_space<vmem>>, vector<32x128xbf16>,
    %c1 = arith.constant 1 : index
    %c0_13 = arith.constant 0 : index
    %10 = vector.load %arg7[%c1, %c0_13] : memref<56x128xbf16, #tpu.memory_space<vmem>>, vector<32x128xbf16>
    %c0_14 = arith.constant 0 : index
    %c128 = arith.constant 128 : index
    %11 = vector.load %arg8[%c0_14, %c128] : memref<32x384xbf16, #tpu.memory_space<vmem>>, vector<32x128xbf16>
    tpu.vector_store %arg8[%c0_14, %c128], %10 {strides = array<i32>} : memref<32x384xbf16, #tpu.memory_space<vmem>>, vector<32x128xbf16>,
    %c2 = arith.constant 2 : index
    %c0_15 = arith.constant 0 : index
    %12 = vector.load %arg7[%c2, %c0_15] : memref<56x128xbf16, #tpu.memory_space<vmem>>, vector<32x128xbf16>
    %c0_16 = arith.constant 0 : index
    %c256 = arith.constant 256 : index
    %13 = vector.load %arg8[%c0_16, %c256] : memref<32x384xbf16, #tpu.memory_space<vmem>>, vector<32x128xbf16>
    tpu.vector_store %arg8[%c0_16, %c256], %12 {strides = array<i32>} : memref<32x384xbf16, #tpu.memory_space<vmem>>, vector<32x128xbf16>,
    %c0_17 = arith.constant 0 : index
    %c0_18 = arith.constant 0 : index
    %14 = vector.load %arg8[%c0_17, %c0_18] : memref<32x384xbf16, #tpu.memory_space<vmem>>, vector<32x384xbf16>
    %c0_19 = arith.constant 0 : index
    %c0_20 = arith.constant 0 : index
    %c0_21 = arith.constant 0 : index
    %15 = vector.load %arg4[%c0_19, %c0_20, %c0_21] : memref<3x384x128xbf16, #tpu.memory_space<vmem>>, vector<1x384x128xbf16>
    %16 = vector.shape_cast %15 : vector<1x384x128xbf16> to vector<384x128xbf16>
    %cst_22 = arith.constant dense<0.000000e+00> : vector<32x128xf32>
    %17 = tpu.matmul %14, %16, %cst_22 {dimension_numbers = #tpu.dot_dimension_numbers<[1], [0], [0], [1], [0, 0, 1, 1], [], []>} : vector<32x384xbf16>, vector<384x128xbf16>, vector<32x128xf32> -> vector<32x128xf32>
    %c0_23 = arith.constant 0 : index
    %c0_24 = arith.constant 0 : index
    %18 = vector.load %arg5[%c0_23, %c0_24] : memref<1x128xf32, #tpu.memory_space<vmem>>, vector<1x128xf32>
    %19 = vector.broadcast %18 : vector<1x128xf32> to vector<32x128xf32>
    %20 = arith.addf %17, %19 : vector<32x128xf32>
    %c0_25 = arith.constant 0 : index
    %c0_26 = arith.constant 0 : index
    %21 = vector.load %arg9[%c0_25, %c0_26] : memref<32x128xf32, #tpu.memory_space<vmem>>, vector<32x128xf32>
    tpu.vector_store %arg9[%c0_25, %c0_26], %20 {strides = array<i32>} : memref<32x128xf32, #tpu.memory_space<vmem>>, vector<32x128xf32>,
    %c8 = arith.constant 8 : index
    %c0_27 = arith.constant 0 : index
    %22 = vector.load %arg7[%c8, %c0_27] : memref<56x128xbf16, #tpu.memory_space<vmem>>, vector<32x128xbf16>
    %c0_28 = arith.constant 0 : index
    %c0_29 = arith.constant 0 : index
    %23 = vector.load %arg8[%c0_28, %c0_29] : memref<32x384xbf16, #tpu.memory_space<vmem>>, vector<32x128xbf16>
    tpu.vector_store %arg8[%c0_28, %c0_29], %22 {strides = array<i32>} : memref<32x384xbf16, #tpu.memory_space<vmem>>, vector<32x128xbf16>,
    %c9 = arith.constant 9 : index
    %c0_30 = arith.constant 0 : index
    %24 = vector.load %arg7[%c9, %c0_30] : memref<56x128xbf16, #tpu.memory_space<vmem>>, vector<32x128xbf16>
    %c0_31 = arith.constant 0 : index
    %c128_32 = arith.constant 128 : index
    %25 = vector.load %arg8[%c0_31, %c128_32] : memref<32x384xbf16, #tpu.memory_space<vmem>>, vector<32x128xbf16>
    tpu.vector_store %arg8[%c0_31, %c128_32], %24 {strides = array<i32>} : memref<32x384xbf16, #tpu.memory_space<vmem>>, vector<32x128xbf16>,
    %c10 = arith.constant 10 : index
    %c0_33 = arith.constant 0 : index
    %26 = vector.load %arg7[%c10, %c0_33] : memref<56x128xbf16, #tpu.memory_space<vmem>>, vector<32x128xbf16>
    %c0_34 = arith.constant 0 : index
    %c256_35 = arith.constant 256 : index
    %27 = vector.load %arg8[%c0_34, %c256_35] : memref<32x384xbf16, #tpu.memory_space<vmem>>, vector<32x128xbf16>
    tpu.vector_store %arg8[%c0_34, %c256_35], %26 {strides = array<i32>} : memref<32x384xbf16, #tpu.memory_space<vmem>>, vector<32x128xbf16>,
    %c0_36 = arith.constant 0 : index
    %c0_37 = arith.constant 0 : index
    %28 = vector.load %arg8[%c0_36, %c0_37] : memref<32x384xbf16, #tpu.memory_space<vmem>>, vector<32x384xbf16>
    %c1_38 = arith.constant 1 : index
    %c0_39 = arith.constant 0 : index
    %c0_40 = arith.constant 0 : index
    %29 = vector.load %arg4[%c1_38, %c0_39, %c0_40] : memref<3x384x128xbf16, #tpu.memory_space<vmem>>, vector<1x384x128xbf16>
    %30 = vector.shape_cast %29 : vector<1x384x128xbf16> to vector<384x128xbf16>
    %cst_41 = arith.constant dense<0.000000e+00> : vector<32x128xf32>
    %31 = tpu.matmul %28, %30, %cst_41 {dimension_numbers = #tpu.dot_dimension_numbers<[1], [0], [0], [1], [0, 0, 1, 1], [], []>} : vector<32x384xbf16>, vector<384x128xbf16>, vector<32x128xf32> -> vector<32x128xf32>
    %c0_42 = arith.constant 0 : index
    %c0_43 = arith.constant 0 : index
    %32 = vector.load %arg9[%c0_42, %c0_43] : memref<32x128xf32, #tpu.memory_space<vmem>>, vector<32x128xf32>
    %33 = arith.addf %32, %31 : vector<32x128xf32>
    %c0_44 = arith.constant 0 : index
    %c0_45 = arith.constant 0 : index
    %34 = vector.load %arg9[%c0_44, %c0_45] : memref<32x128xf32, #tpu.memory_space<vmem>>, vector<32x128xf32>
    tpu.vector_store %arg9[%c0_44, %c0_45], %33 {strides = array<i32>} : memref<32x128xf32, #tpu.memory_space<vmem>>, vector<32x128xf32>,
    %c16 = arith.constant 16 : index
    %c0_46 = arith.constant 0 : index
    %35 = vector.load %arg7[%c16, %c0_46] : memref<56x128xbf16, #tpu.memory_space<vmem>>, vector<32x128xbf16>
    %c0_47 = arith.constant 0 : index
    %c0_48 = arith.constant 0 : index
    %36 = vector.load %arg8[%c0_47, %c0_48] : memref<32x384xbf16, #tpu.memory_space<vmem>>, vector<32x128xbf16>
    tpu.vector_store %arg8[%c0_47, %c0_48], %35 {strides = array<i32>} : memref<32x384xbf16, #tpu.memory_space<vmem>>, vector<32x128xbf16>,
    %c17 = arith.constant 17 : index
    %c0_49 = arith.constant 0 : index
    %37 = vector.load %arg7[%c17, %c0_49] : memref<56x128xbf16, #tpu.memory_space<vmem>>, vector<32x128xbf16>
    %c0_50 = arith.constant 0 : index
    %c128_51 = arith.constant 128 : index
    %38 = vector.load %arg8[%c0_50, %c128_51] : memref<32x384xbf16, #tpu.memory_space<vmem>>, vector<32x128xbf16>
    tpu.vector_store %arg8[%c0_50, %c128_51], %37 {strides = array<i32>} : memref<32x384xbf16, #tpu.memory_space<vmem>>, vector<32x128xbf16>,
    %c18 = arith.constant 18 : index
    %c0_52 = arith.constant 0 : index
    %39 = vector.load %arg7[%c18, %c0_52] : memref<56x128xbf16, #tpu.memory_space<vmem>>, vector<32x128xbf16>
    %c0_53 = arith.constant 0 : index
    %c256_54 = arith.constant 256 : index
    %40 = vector.load %arg8[%c0_53, %c256_54] : memref<32x384xbf16, #tpu.memory_space<vmem>>, vector<32x128xbf16>
    tpu.vector_store %arg8[%c0_53, %c256_54], %39 {strides = array<i32>} : memref<32x384xbf16, #tpu.memory_space<vmem>>, vector<32x128xbf16>,
    %c0_55 = arith.constant 0 : index
    %c0_56 = arith.constant 0 : index
    %41 = vector.load %arg8[%c0_55, %c0_56] : memref<32x384xbf16, #tpu.memory_space<vmem>>, vector<32x384xbf16>
    %c2_57 = arith.constant 2 : index
    %c0_58 = arith.constant 0 : index
    %c0_59 = arith.constant 0 : index
    %42 = vector.load %arg4[%c2_57, %c0_58, %c0_59] : memref<3x384x128xbf16, #tpu.memory_space<vmem>>, vector<1x384x128xbf16>
    %43 = vector.shape_cast %42 : vector<1x384x128xbf16> to vector<384x128xbf16>
    %cst_60 = arith.constant dense<0.000000e+00> : vector<32x128xf32>
    %44 = tpu.matmul %41, %43, %cst_60 {dimension_numbers = #tpu.dot_dimension_numbers<[1], [0], [0], [1], [0, 0, 1, 1], [], []>} : vector<32x384xbf16>, vector<384x128xbf16>, vector<32x128xf32> -> vector<32x128xf32>
    %c0_61 = arith.constant 0 : index
    %c0_62 = arith.constant 0 : index
    %45 = vector.load %arg9[%c0_61, %c0_62] : memref<32x128xf32, #tpu.memory_space<vmem>>, vector<32x128xf32>
    %46 = arith.addf %45, %44 : vector<32x128xf32>
    %c0_63 = arith.constant 0 : index
    %c0_64 = arith.constant 0 : index
    %47 = vector.load %arg9[%c0_63, %c0_64] : memref<32x128xf32, #tpu.memory_space<vmem>>, vector<32x128xf32>
    tpu.vector_store %arg9[%c0_63, %c0_64], %46 {strides = array<i32>} : memref<32x128xf32, #tpu.memory_space<vmem>>, vector<32x128xf32>,
    %c0_65 = arith.constant 0 : index
    %c0_66 = arith.constant 0 : index
    %48 = vector.load %arg9[%c0_65, %c0_66] : memref<32x128xf32, #tpu.memory_space<vmem>>, vector<32x128xf32>
    %49 = vector.shape_cast %48 : vector<32x128xf32> to vector<4x8x128xf32>
    %50 = vector.extract_strided_slice %49 {offsets = [0, 0, 0], sizes = [4, 4, 128], strides = [1, 1, 1]} : vector<4x8x128xf32> to vector<4x4x128xf32>
    %51 = arith.truncf %50 : vector<4x4x128xf32> to vector<4x4x128xbf16>
    %c0_67 = arith.constant 0 : index
    %c0_68 = arith.constant 0 : index
    %c0_69 = arith.constant 0 : index
    %c0_70 = arith.constant 0 : index
    %52 = vector.load %arg6[%c0_67, %c0_68, %c0_69, %c0_70] : memref<1x4x4x128xbf16, #tpu.memory_space<vmem>>, vector<1x4x4x128xbf16>
    %53 = vector.shape_cast %52 : vector<1x4x4x128xbf16> to vector<4x4x128xbf16>
    %54 = vector.shape_cast %51 : vector<4x4x128xbf16> to vector<1x4x4x128xbf16>
    tpu.vector_store %arg6[%c0_67, %c0_68, %c0_69, %c0_70], %54 {strides = array<i32>} : memref<1x4x4x128xbf16, #tpu.memory_space<vmem>>, vector<1x4x4x128xbf16>,
    return
  }
  func.func @transform_0(%arg0: i32, %arg1: i32) -> (i32, i32, i32) {
    %c0_i32 = arith.constant 0 : i32
    %c0_i32_0 = arith.constant 0 : i32
    return %arg0, %arg1, %c0_i32 : i32, i32, i32
  }
  func.func @transform_1(%arg0: i32, %arg1: i32) -> (i32, i32, i32) {
    %c1_i32 = arith.constant 1 : i32
    %0 = arith.addi %arg1, %c1_i32 : i32
    %c2_i32 = arith.constant 2 : i32
    %1 = arith.muli %0, %c2_i32 : i32
    %c0_i32 = arith.constant 0 : i32
    %c0_i32_0 = arith.constant 0 : i32
    return %arg0, %1, %c0_i32 : i32, i32, i32
  }
  func.func @transform_2(%arg0: i32, %arg1: i32) -> (i32, i32, i32) {
    %c0_i32 = arith.constant 0 : i32
    %c0_i32_0 = arith.constant 0 : i32
    %c0_i32_1 = arith.constant 0 : i32
    %c0_i32_2 = arith.constant 0 : i32
    return %c0_i32, %c0_i32_0, %c0_i32_1 : i32, i32, i32
  }
  func.func @transform_3(%arg0: i32, %arg1: i32) -> (i32, i32) {
    %c0_i32 = arith.constant 0 : i32
    %c0_i32_0 = arith.constant 0 : i32
    %c0_i32_1 = arith.constant 0 : i32
    return %c0_i32, %c0_i32_0 : i32, i32
  }
  func.func @transform_4(%arg0: i32, %arg1: i32) -> (i32, i32, i32, i32) {
    %c0_i32 = arith.constant 0 : i32
    %c0_i32_0 = arith.constant 0 : i32
    %c0_i32_1 = arith.constant 0 : i32
    return %arg0, %arg1, %c0_i32, %c0_i32_0 : i32, i32, i32, i32
  }
}

module attributes {stable_mosaic.version = 11 : i64} {
  func.func @kernel(%arg0: i32, %arg1: i32, %arg2: i32, %arg3: i32, %arg4: memref<1x256x3xbf16, #tpu.memory_space<vmem>>, %arg5: memref<1x3x256xbf16, #tpu.memory_space<vmem>>, %arg6: memref<1x256xf32, #tpu.memory_space<vmem>>, %arg7: memref<256x256xbf16, #tpu.memory_space<vmem>>, %arg8: memref<256x256xf32, #tpu.memory_space<vmem>>) attributes {dimension_semantics = [#tpu.dimension_semantics<parallel>, #tpu.dimension_semantics<parallel>, #tpu.dimension_semantics<arbitrary>, #tpu.dimension_semantics<arbitrary>], iteration_bounds = array<i64: 1, 1, 1, 1>, scalar_prefetch = 0 : i64, scratch_operands = 1 : i64, tpu.core_type = #tpu.core_type<tc>, window_params = [{transform_indices = @transform_0, window_bounds = array<i64: 1, 256, 3>}, {transform_indices = @transform_1, window_bounds = array<i64: 1, 3, 256>}, {transform_indices = @transform_2, window_bounds = array<i64: 1, 256>}, {transform_indices = @transform_3, window_bounds = array<i64: 256, 256>}]} {
    %c0_i32 = arith.constant 0 : i32
    %0 = arith.cmpi eq, %arg2, %c0_i32 : i32
    %c0_i32_0 = arith.constant 0 : i32
    %1 = arith.cmpi eq, %arg3, %c0_i32_0 : i32
    %2 = arith.andi %0, %1 : i1
    %3 = arith.extui %2 : i1 to i32
    %c0_i32_1 = arith.constant 0 : i32
    %4 = arith.cmpi ne, %3, %c0_i32_1 : i32
    scf.if %4 {
      %cst = arith.constant 0.000000e+00 : f32
      %36 = vector.broadcast %cst : f32 to vector<256x256xf32>
      %c0_14 = arith.constant 0 : index
      %c0_15 = arith.constant 0 : index
      %37 = vector.load %arg8[%c0_14, %c0_15] : memref<256x256xf32, #tpu.memory_space<vmem>>, vector<256x256xf32>
      tpu.vector_store %arg8[%c0_14, %c0_15], %36 {strides = array<i32>} : memref<256x256xf32, #tpu.memory_space<vmem>>, vector<256x256xf32>,
    } else {
    }
    %c0 = arith.constant 0 : index
    %c0_2 = arith.constant 0 : index
    %c0_3 = arith.constant 0 : index
    %5 = vector.load %arg4[%c0, %c0_2, %c0_3] : memref<1x256x3xbf16, #tpu.memory_space<vmem>>, vector<1x256x3xbf16>
    %6 = vector.shape_cast %5 : vector<1x256x3xbf16> to vector<256x3xbf16>
    %7 = arith.extf %6 : vector<256x3xbf16> to vector<256x3xf32>
    %c0_4 = arith.constant 0 : index
    %c0_5 = arith.constant 0 : index
    %c0_6 = arith.constant 0 : index
    %8 = vector.load %arg5[%c0_4, %c0_5, %c0_6] : memref<1x3x256xbf16, #tpu.memory_space<vmem>>, vector<1x3x256xbf16>
    %9 = vector.shape_cast %8 : vector<1x3x256xbf16> to vector<3x256xbf16>
    %10 = arith.extf %9 : vector<3x256xbf16> to vector<3x256xf32>
    %c0_7 = arith.constant 0 : index
    %c0_8 = arith.constant 0 : index
    %11 = vector.load %arg8[%c0_7, %c0_8] : memref<256x256xf32, #tpu.memory_space<vmem>>, vector<256x256xf32>
    %12 = vector.extract_strided_slice %7 {offsets = [0, 0], sizes = [256, 1], strides = [1, 1]} : vector<256x3xf32> to vector<256x1xf32>
    %13 = vector.extract_strided_slice %10 {offsets = [0, 0], sizes = [1, 256], strides = [1, 1]} : vector<3x256xf32> to vector<1x256xf32>
    %14 = vector.broadcast %12 : vector<256x1xf32> to vector<256x256xf32>
    %15 = vector.broadcast %13 : vector<1x256xf32> to vector<256x256xf32>
    %16 = arith.mulf %14, %15 : vector<256x256xf32>
    %17 = arith.addf %11, %16 : vector<256x256xf32>
    %18 = vector.extract_strided_slice %7 {offsets = [0, 1], sizes = [256, 1], strides = [1, 1]} : vector<256x3xf32> to vector<256x1xf32>
    %19 = vector.extract_strided_slice %10 {offsets = [1, 0], sizes = [1, 256], strides = [1, 1]} : vector<3x256xf32> to vector<1x256xf32>
    %20 = vector.broadcast %18 : vector<256x1xf32> to vector<256x256xf32>
    %21 = vector.broadcast %19 : vector<1x256xf32> to vector<256x256xf32>
    %22 = arith.mulf %20, %21 : vector<256x256xf32>
    %23 = arith.addf %17, %22 : vector<256x256xf32>
    %24 = vector.extract_strided_slice %7 {offsets = [0, 2], sizes = [256, 1], strides = [1, 1]} : vector<256x3xf32> to vector<256x1xf32>
    %25 = vector.extract_strided_slice %10 {offsets = [2, 0], sizes = [1, 256], strides = [1, 1]} : vector<3x256xf32> to vector<1x256xf32>
    %26 = vector.broadcast %24 : vector<256x1xf32> to vector<256x256xf32>
    %27 = vector.broadcast %25 : vector<1x256xf32> to vector<256x256xf32>
    %28 = arith.mulf %26, %27 : vector<256x256xf32>
    %29 = arith.addf %23, %28 : vector<256x256xf32>
    %c0_9 = arith.constant 0 : index
    %c0_10 = arith.constant 0 : index
    %30 = vector.load %arg8[%c0_9, %c0_10] : memref<256x256xf32, #tpu.memory_space<vmem>>, vector<256x256xf32>
    tpu.vector_store %arg8[%c0_9, %c0_10], %29 {strides = array<i32>} : memref<256x256xf32, #tpu.memory_space<vmem>>, vector<256x256xf32>,
    %c0_i32_11 = arith.constant 0 : i32
    %31 = arith.cmpi eq, %arg2, %c0_i32_11 : i32
    %c0_i32_12 = arith.constant 0 : i32
    %32 = arith.cmpi eq, %arg3, %c0_i32_12 : i32
    %33 = arith.andi %31, %32 : i1
    %34 = arith.extui %33 : i1 to i32
    %c0_i32_13 = arith.constant 0 : i32
    %35 = arith.cmpi ne, %34, %c0_i32_13 : i32
    scf.if %35 {
      %c0_14 = arith.constant 0 : index
      %c0_15 = arith.constant 0 : index
      %36 = vector.load %arg8[%c0_14, %c0_15] : memref<256x256xf32, #tpu.memory_space<vmem>>, vector<256x256xf32>
      %c0_16 = arith.constant 0 : index
      %c0_17 = arith.constant 0 : index
      %37 = vector.load %arg6[%c0_16, %c0_17] : memref<1x256xf32, #tpu.memory_space<vmem>>, vector<1x256xf32>
      %38 = vector.broadcast %37 : vector<1x256xf32> to vector<256x256xf32>
      %39 = arith.addf %36, %38 : vector<256x256xf32>
      %40 = arith.truncf %39 : vector<256x256xf32> to vector<256x256xbf16>
      %c0_18 = arith.constant 0 : index
      %c0_19 = arith.constant 0 : index
      %41 = vector.load %arg7[%c0_18, %c0_19] : memref<256x256xbf16, #tpu.memory_space<vmem>>, vector<256x256xbf16>
      tpu.vector_store %arg7[%c0_18, %c0_19], %40 {strides = array<i32>} : memref<256x256xbf16, #tpu.memory_space<vmem>>, vector<256x256xbf16>,
    } else {
    }
    return
  }
  func.func @transform_0(%arg0: i32, %arg1: i32, %arg2: i32, %arg3: i32) -> (i32, i32, i32) {
    %c0_i32 = arith.constant 0 : i32
    return %arg2, %arg0, %arg3 : i32, i32, i32
  }
  func.func @transform_1(%arg0: i32, %arg1: i32, %arg2: i32, %arg3: i32) -> (i32, i32, i32) {
    %c0_i32 = arith.constant 0 : i32
    return %arg2, %arg3, %arg1 : i32, i32, i32
  }
  func.func @transform_2(%arg0: i32, %arg1: i32, %arg2: i32, %arg3: i32) -> (i32, i32) {
    %c0_i32 = arith.constant 0 : i32
    %c0_i32_0 = arith.constant 0 : i32
    return %c0_i32, %arg1 : i32, i32
  }
  func.func @transform_3(%arg0: i32, %arg1: i32, %arg2: i32, %arg3: i32) -> (i32, i32) {
    %c0_i32 = arith.constant 0 : i32
    return %arg0, %arg1 : i32, i32
  }
}

module attributes {stable_mosaic.version = 11 : i64} {
  func.func @kernel(%arg0: i32, %arg1: i32, %arg2: memref<8x4xf32, #tpu.memory_space<vmem>>, %arg3: memref<8x4xf32, #tpu.memory_space<vmem>>, %arg4: memref<1x4x4x128xbf16, #tpu.memory_space<vmem>>, %arg5: memref<1x8x8x128xbf16, #tpu.memory_space<vmem>>, %arg6: memref<1x8x8x128xbf16, #tpu.memory_space<vmem>>, %arg7: memref<8x4x128xf32, #tpu.memory_space<vmem>>) attributes {dimension_semantics = [#tpu.dimension_semantics<parallel>, #tpu.dimension_semantics<parallel>], iteration_bounds = array<i64: 2, 1>, scalar_prefetch = 0 : i64, scratch_operands = 1 : i64, tpu.core_type = #tpu.core_type<tc>, window_params = [{transform_indices = @transform_0, window_bounds = array<i64: 8, 4>}, {pipeline_mode = #tpu.pipeline_mode<synchronous>, transform_indices = @transform_1, window_bounds = array<i64: 8, 4>}, {transform_indices = @transform_2, window_bounds = array<i64: 1, 4, 4, 128>}, {transform_indices = @transform_3, window_bounds = array<i64: 1, 8, 8, 128>}, {transform_indices = @transform_4, window_bounds = array<i64: 1, 8, 8, 128>}]} {
    %c0 = arith.constant 0 : index
    %c0_0 = arith.constant 0 : index
    %c0_1 = arith.constant 0 : index
    %c0_2 = arith.constant 0 : index
    %0 = vector.load %arg4[%c0, %c0_0, %c0_1, %c0_2] : memref<1x4x4x128xbf16, #tpu.memory_space<vmem>>, vector<1x4x4x128xbf16>
    %1 = vector.shape_cast %0 : vector<1x4x4x128xbf16> to vector<4x4x128xbf16>
    %2 = arith.extf %1 : vector<4x4x128xbf16> to vector<4x4x128xf32>
    %3 = vector.shape_cast %2 : vector<4x4x128xf32> to vector<4x512xf32>
    %c0_3 = arith.constant 0 : index
    %c0_4 = arith.constant 0 : index
    %4 = vector.load %arg2[%c0_3, %c0_4] : memref<8x4xf32, #tpu.memory_space<vmem>>, vector<8x4xf32>
    %cst = arith.constant dense<0.000000e+00> : vector<8x512xf32>
    %5 = tpu.matmul %4, %3, %cst {dimension_numbers = #tpu.dot_dimension_numbers<[1], [0], [0], [1], [0, 0, 1, 1], [], []>} : vector<8x4xf32>, vector<4x512xf32>, vector<8x512xf32> -> vector<8x512xf32>
    %6 = vector.shape_cast %5 : vector<8x512xf32> to vector<8x4x128xf32>
    %c0_5 = arith.constant 0 : index
    %c0_6 = arith.constant 0 : index
    %c0_7 = arith.constant 0 : index
    %7 = vector.load %arg7[%c0_5, %c0_6, %c0_7] : memref<8x4x128xf32, #tpu.memory_space<vmem>>, vector<8x4x128xf32>
    tpu.vector_store %arg7[%c0_5, %c0_6, %c0_7], %6 {strides = array<i32>} : memref<8x4x128xf32, #tpu.memory_space<vmem>>, vector<8x4x128xf32>,
    %c0_8 = arith.constant 0 : index
    %c0_9 = arith.constant 0 : index
    %8 = vector.load %arg3[%c0_8, %c0_9] : memref<8x4xf32, #tpu.memory_space<vmem>>, vector<8x4xf32>
    %c0_i32 = arith.constant 0 : i32
    %c8_i32 = arith.constant 8 : i32
    %9 = arith.addi %c0_i32, %c8_i32 : i32
    %c1_i32 = arith.constant 1 : i32
    scf.for %arg8 = %c0_i32 to %9 step %c1_i32  : i32 {
      %c1_i32_11 = arith.constant 1 : i32
      %10 = arith.muli %arg8, %c1_i32_11 : i32
      %c0_i32_12 = arith.constant 0 : i32
      %11 = arith.addi %c0_i32_12, %10 : i32
      %12 = arith.index_cast %11 : i32 to index
      %c0_13 = arith.constant 0 : index
      %c0_14 = arith.constant 0 : index
      %13 = vector.load %arg7[%12, %c0_13, %c0_14] : memref<8x4x128xf32, #tpu.memory_space<vmem>>, vector<1x4x128xf32>
      %14 = vector.shape_cast %13 : vector<1x4x128xf32> to vector<4x128xf32>
      %cst_15 = arith.constant dense<0.000000e+00> : vector<8x128xf32>
      %15 = tpu.matmul %8, %14, %cst_15 {dimension_numbers = #tpu.dot_dimension_numbers<[1], [0], [0], [1], [0, 0, 1, 1], [], []>} : vector<8x4xf32>, vector<4x128xf32>, vector<8x128xf32> -> vector<8x128xf32>
      %c0_16 = arith.constant 0 : index
      %16 = arith.index_cast %11 : i32 to index
      %c0_17 = arith.constant 0 : index
      %c0_18 = arith.constant 0 : index
      %17 = vector.load %arg5[%c0_16, %16, %c0_17, %c0_18] : memref<1x8x8x128xbf16, #tpu.memory_space<vmem>>, vector<1x1x8x128xbf16>
      %18 = vector.shape_cast %17 : vector<1x1x8x128xbf16> to vector<8x128xbf16>
      %19 = arith.extf %18 : vector<8x128xbf16> to vector<8x128xf32>
      %20 = arith.addf %15, %19 : vector<8x128xf32>
      %21 = arith.truncf %20 : vector<8x128xf32> to vector<8x128xbf16>
      %c0_19 = arith.constant 0 : index
      %22 = arith.index_cast %11 : i32 to index
      %c0_20 = arith.constant 0 : index
      %c0_21 = arith.constant 0 : index
      %23 = vector.load %arg6[%c0_19, %22, %c0_20, %c0_21] : memref<1x8x8x128xbf16, #tpu.memory_space<vmem>>, vector<1x1x8x128xbf16>
      %24 = vector.shape_cast %23 : vector<1x1x8x128xbf16> to vector<8x128xbf16>
      %25 = vector.shape_cast %21 : vector<8x128xbf16> to vector<1x1x8x128xbf16>
      tpu.vector_store %arg6[%c0_19, %22, %c0_20, %c0_21], %25 {strides = array<i32>} : memref<1x8x8x128xbf16, #tpu.memory_space<vmem>>, vector<1x1x8x128xbf16>,
    }
    %c8_i32_10 = arith.constant 8 : i32
    return
  }
  func.func @transform_0(%arg0: i32, %arg1: i32) -> (i32, i32) {
    %c0_i32 = arith.constant 0 : i32
    %c0_i32_0 = arith.constant 0 : i32
    return %arg1, %c0_i32 : i32, i32
  }
  func.func @transform_1(%arg0: i32, %arg1: i32) -> (i32, i32) {
    %c0_i32 = arith.constant 0 : i32
    %c0_i32_0 = arith.constant 0 : i32
    %c0_i32_1 = arith.constant 0 : i32
    return %c0_i32, %c0_i32_0 : i32, i32
  }
  func.func @transform_2(%arg0: i32, %arg1: i32) -> (i32, i32, i32, i32) {
    %c0_i32 = arith.constant 0 : i32
    %c0_i32_0 = arith.constant 0 : i32
    %c0_i32_1 = arith.constant 0 : i32
    %c0_i32_2 = arith.constant 0 : i32
    return %arg0, %c0_i32, %c0_i32_0, %c0_i32_1 : i32, i32, i32, i32
  }
  func.func @transform_3(%arg0: i32, %arg1: i32) -> (i32, i32, i32, i32) {
    %c0_i32 = arith.constant 0 : i32
    %c0_i32_0 = arith.constant 0 : i32
    %c0_i32_1 = arith.constant 0 : i32
    return %arg0, %arg1, %c0_i32, %c0_i32_0 : i32, i32, i32, i32
  }
  func.func @transform_4(%arg0: i32, %arg1: i32) -> (i32, i32, i32, i32) {
    %c0_i32 = arith.constant 0 : i32
    %c0_i32_0 = arith.constant 0 : i32
    %c0_i32_1 = arith.constant 0 : i32
    return %arg0, %arg1, %c0_i32, %c0_i32_0 : i32, i32, i32, i32
  }
}

module attributes {stable_mosaic.version = 11 : i64} {
  func.func @kernel(%arg0: i32, %arg1: i32, %arg2: i32, %arg3: i32, %arg4: memref<1x128x256xbf16, #tpu.memory_space<vmem>>, %arg5: memref<1x256x128xbf16, #tpu.memory_space<vmem>>, %arg6: memref<1x128xf32, #tpu.memory_space<vmem>>, %arg7: memref<128x128xbf16, #tpu.memory_space<vmem>>, %arg8: memref<128x128xf32, #tpu.memory_space<vmem>>) attributes {dimension_semantics = [#tpu.dimension_semantics<parallel>, #tpu.dimension_semantics<parallel>, #tpu.dimension_semantics<arbitrary>, #tpu.dimension_semantics<arbitrary>], iteration_bounds = array<i64: 1, 1, 2, 1>, scalar_prefetch = 0 : i64, scratch_operands = 1 : i64, tpu.core_type = #tpu.core_type<tc>, window_params = [{transform_indices = @transform_0, window_bounds = array<i64: 1, 128, 256>}, {transform_indices = @transform_1, window_bounds = array<i64: 1, 256, 128>}, {transform_indices = @transform_2, window_bounds = array<i64: 1, 128>}, {transform_indices = @transform_3, window_bounds = array<i64: 128, 128>}]} {
    %c0_i32 = arith.constant 0 : i32
    %0 = arith.cmpi eq, %arg2, %c0_i32 : i32
    %c0_i32_0 = arith.constant 0 : i32
    %1 = arith.cmpi eq, %arg3, %c0_i32_0 : i32
    %2 = arith.andi %0, %1 : i1
    %3 = arith.extui %2 : i1 to i32
    %c0_i32_1 = arith.constant 0 : i32
    %4 = arith.cmpi ne, %3, %c0_i32_1 : i32
    scf.if %4 {
      %cst_13 = arith.constant 0.000000e+00 : f32
      %18 = vector.broadcast %cst_13 : f32 to vector<128x128xf32>
      %c0_14 = arith.constant 0 : index
      %c0_15 = arith.constant 0 : index
      %19 = vector.load %arg8[%c0_14, %c0_15] : memref<128x128xf32, #tpu.memory_space<vmem>>, vector<128x128xf32>
      tpu.vector_store %arg8[%c0_14, %c0_15], %18 {strides = array<i32>} : memref<128x128xf32, #tpu.memory_space<vmem>>, vector<128x128xf32>,
    } else {
    }
    %c0 = arith.constant 0 : index
    %c0_2 = arith.constant 0 : index
    %5 = vector.load %arg8[%c0, %c0_2] : memref<128x128xf32, #tpu.memory_space<vmem>>, vector<128x128xf32>
    %c0_3 = arith.constant 0 : index
    %c0_4 = arith.constant 0 : index
    %c0_5 = arith.constant 0 : index
    %6 = vector.load %arg4[%c0_3, %c0_4, %c0_5] : memref<1x128x256xbf16, #tpu.memory_space<vmem>>, vector<1x128x256xbf16>
    %7 = vector.shape_cast %6 : vector<1x128x256xbf16> to vector<128x256xbf16>
    %c0_6 = arith.constant 0 : index
    %c0_7 = arith.constant 0 : index
    %c0_8 = arith.constant 0 : index
    %8 = vector.load %arg5[%c0_6, %c0_7, %c0_8] : memref<1x256x128xbf16, #tpu.memory_space<vmem>>, vector<1x256x128xbf16>
    %9 = vector.shape_cast %8 : vector<1x256x128xbf16> to vector<256x128xbf16>
    %cst = arith.constant dense<0.000000e+00> : vector<128x128xf32>
    %10 = tpu.matmul %7, %9, %cst {dimension_numbers = #tpu.dot_dimension_numbers<[1], [0], [0], [1], [0, 0, 1, 1], [], []>} : vector<128x256xbf16>, vector<256x128xbf16>, vector<128x128xf32> -> vector<128x128xf32>
    %11 = arith.addf %5, %10 : vector<128x128xf32>
    %c0_9 = arith.constant 0 : index
    %c0_10 = arith.constant 0 : index
    %12 = vector.load %arg8[%c0_9, %c0_10] : memref<128x128xf32, #tpu.memory_space<vmem>>, vector<128x128xf32>
    tpu.vector_store %arg8[%c0_9, %c0_10], %11 {strides = array<i32>} : memref<128x128xf32, #tpu.memory_space<vmem>>, vector<128x128xf32>,
    %c1_i32 = arith.constant 1 : i32
    %13 = arith.cmpi eq, %arg2, %c1_i32 : i32
    %c0_i32_11 = arith.constant 0 : i32
    %14 = arith.cmpi eq, %arg3, %c0_i32_11 : i32
    %15 = arith.andi %13, %14 : i1
    %16 = arith.extui %15 : i1 to i32
    %c0_i32_12 = arith.constant 0 : i32
    %17 = arith.cmpi ne, %16, %c0_i32_12 : i32
    scf.if %17 {
      %c0_13 = arith.constant 0 : index
      %c0_14 = arith.constant 0 : index
      %18 = vector.load %arg8[%c0_13, %c0_14] : memref<128x128xf32, #tpu.memory_space<vmem>>, vector<128x128xf32>
      %c0_15 = arith.constant 0 : index
      %c0_16 = arith.constant 0 : index
      %19 = vector.load %arg6[%c0_15, %c0_16] : memref<1x128xf32, #tpu.memory_space<vmem>>, vector<1x128xf32>
      %20 = vector.broadcast %19 : vector<1x128xf32> to vector<128x128xf32>
      %21 = arith.addf %18, %20 : vector<128x128xf32>
      %22 = arith.truncf %21 : vector<128x128xf32> to vector<128x128xbf16>
      %c0_17 = arith.constant 0 : index
      %c0_18 = arith.constant 0 : index
      %23 = vector.load %arg7[%c0_17, %c0_18] : memref<128x128xbf16, #tpu.memory_space<vmem>>, vector<128x128xbf16>
      tpu.vector_store %arg7[%c0_17, %c0_18], %22 {strides = array<i32>} : memref<128x128xbf16, #tpu.memory_space<vmem>>, vector<128x128xbf16>,
    } else {
    }
    return
  }
  func.func @transform_0(%arg0: i32, %arg1: i32, %arg2: i32, %arg3: i32) -> (i32, i32, i32) {
    %c0_i32 = arith.constant 0 : i32
    return %arg2, %arg0, %arg3 : i32, i32, i32
  }
  func.func @transform_1(%arg0: i32, %arg1: i32, %arg2: i32, %arg3: i32) -> (i32, i32, i32) {
    %c0_i32 = arith.constant 0 : i32
    return %arg2, %arg3, %arg1 : i32, i32, i32
  }
  func.func @transform_2(%arg0: i32, %arg1: i32, %arg2: i32, %arg3: i32) -> (i32, i32) {
    %c0_i32 = arith.constant 0 : i32
    %c0_i32_0 = arith.constant 0 : i32
    return %c0_i32, %arg1 : i32, i32
  }
  func.func @transform_3(%arg0: i32, %arg1: i32, %arg2: i32, %arg3: i32) -> (i32, i32) {
    %c0_i32 = arith.constant 0 : i32
    return %arg0, %arg1 : i32, i32
  }
}

module attributes {stable_mosaic.version = 11 : i64} {
  func.func @kernel(%arg0: i32, %arg1: i32, %arg2: memref<1x128x128xbf16, #tpu.memory_space<vmem>>, %arg3: memref<1x32x128xbf16, #tpu.memory_space<vmem>>, %arg4: memref<3x384x128xbf16, #tpu.memory_space<vmem>>, %arg5: memref<1x128xf32, #tpu.memory_space<vmem>>, %arg6: memref<128x2xf32, #tpu.memory_space<vmem>>, %arg7: memref<1x2xf32, #tpu.memory_space<vmem>>, %arg8: memref<1x8x8x2xf32, #tpu.memory_space<vmem>>, %arg9: memref<168x128xbf16, #tpu.memory_space<vmem>>, %arg10: memref<128x384xbf16, #tpu.memory_space<vmem>>, %arg11: memref<128x128xf32, #tpu.memory_space<vmem>>) attributes {dimension_semantics = [#tpu.dimension_semantics<parallel>, #tpu.dimension_semantics<parallel>], iteration_bounds = array<i64: 2, 1>, scalar_prefetch = 0 : i64, scratch_operands = 3 : i64, tpu.core_type = #tpu.core_type<tc>, window_params = [{transform_indices = @transform_0, window_bounds = array<i64: 1, 128, 128>}, {transform_indices = @transform_1, window_bounds = array<i64: 1, 32, 128>}, {pipeline_mode = #tpu.pipeline_mode<synchronous>, transform_indices = @transform_2, window_bounds = array<i64: 3, 384, 128>}, {pipeline_mode = #tpu.pipeline_mode<synchronous>, transform_indices = @transform_3, window_bounds = array<i64: 1, 128>}, {pipeline_mode = #tpu.pipeline_mode<synchronous>, transform_indices = @transform_4, window_bounds = array<i64: 128, 2>}, {pipeline_mode = #tpu.pipeline_mode<synchronous>, transform_indices = @transform_5, window_bounds = array<i64: 1, 2>}, {transform_indices = @transform_6, window_bounds = array<i64: 1, 8, 8, 2>}]} {
    %c0 = arith.constant 0 : index
    %c0_0 = arith.constant 0 : index
    %c0_1 = arith.constant 0 : index
    %0 = vector.load %arg2[%c0, %c0_0, %c0_1] : memref<1x128x128xbf16, #tpu.memory_space<vmem>>, vector<1x128x128xbf16>
    %1 = vector.shape_cast %0 : vector<1x128x128xbf16> to vector<128x128xbf16>
    %c0_2 = arith.constant 0 : index
    %c0_3 = arith.constant 0 : index
    %2 = vector.load %arg9[%c0_2, %c0_3] : memref<168x128xbf16, #tpu.memory_space<vmem>>, vector<128x128xbf16>
    tpu.vector_store %arg9[%c0_2, %c0_3], %1 {strides = array<i32>} : memref<168x128xbf16, #tpu.memory_space<vmem>>, vector<128x128xbf16>,
    %c0_4 = arith.constant 0 : index
    %c0_5 = arith.constant 0 : index
    %c0_6 = arith.constant 0 : index
    %3 = vector.load %arg3[%c0_4, %c0_5, %c0_6] : memref<1x32x128xbf16, #tpu.memory_space<vmem>>, vector<1x32x128xbf16>
    %4 = vector.shape_cast %3 : vector<1x32x128xbf16> to vector<32x128xbf16>
    %c128 = arith.constant 128 : index
    %c0_7 = arith.constant 0 : index
    %5 = vector.load %arg9[%c128, %c0_7] : memref<168x128xbf16, #tpu.memory_space<vmem>>, vector<32x128xbf16>
    tpu.vector_store %arg9[%c128, %c0_7], %4 {strides = array<i32>} : memref<168x128xbf16, #tpu.memory_space<vmem>>, vector<32x128xbf16>,
    %cst = arith.constant 0.000000e+00 : bf16
    %6 = vector.broadcast %cst : bf16 to vector<8x128xbf16>
    %c160 = arith.constant 160 : index
    %c0_8 = arith.constant 0 : index
    %7 = vector.load %arg9[%c160, %c0_8] : memref<168x128xbf16, #tpu.memory_space<vmem>>, vector<8x128xbf16>
    tpu.vector_store %arg9[%c160, %c0_8], %6 {strides = array<i32>} : memref<168x128xbf16, #tpu.memory_space<vmem>>, vector<8x128xbf16>,
    %c0_9 = arith.constant 0 : index
    %c0_10 = arith.constant 0 : index
    %8 = vector.load %arg9[%c0_9, %c0_10] : memref<168x128xbf16, #tpu.memory_space<vmem>>, vector<128x128xbf16>
    %c0_11 = arith.constant 0 : index
    %c0_12 = arith.constant 0 : index
    %9 = vector.load %arg10[%c0_11, %c0_12] : memref<128x384xbf16, #tpu.memory_space<vmem>>, vector<128x128xbf16>
    tpu.vector_store %arg10[%c0_11, %c0_12], %8 {strides = array<i32>} : memref<128x384xbf16, #tpu.memory_space<vmem>>, vector<128x128xbf16>,
    %c1 = arith.constant 1 : index
    %c0_13 = arith.constant 0 : index
    %10 = vector.load %arg9[%c1, %c0_13] : memref<168x128xbf16, #tpu.memory_space<vmem>>, vector<128x128xbf16>
    %c0_14 = arith.constant 0 : index
    %c128_15 = arith.constant 128 : index
    %11 = vector.load %arg10[%c0_14, %c128_15] : memref<128x384xbf16, #tpu.memory_space<vmem>>, vector<128x128xbf16>
    tpu.vector_store %arg10[%c0_14, %c128_15], %10 {strides = array<i32>} : memref<128x384xbf16, #tpu.memory_space<vmem>>, vector<128x128xbf16>,
    %c2 = arith.constant 2 : index
    %c0_16 = arith.constant 0 : index
    %12 = vector.load %arg9[%c2, %c0_16] : memref<168x128xbf16, #tpu.memory_space<vmem>>, vector<128x128xbf16>
    %c0_17 = arith.constant 0 : index
    %c256 = arith.constant 256 : index
    %13 = vector.load %arg10[%c0_17, %c256] : memref<128x384xbf16, #tpu.memory_space<vmem>>, vector<128x128xbf16>
    tpu.vector_store %arg10[%c0_17, %c256], %12 {strides = array<i32>} : memref<128x384xbf16, #tpu.memory_space<vmem>>, vector<128x128xbf16>,
    %c0_18 = arith.constant 0 : index
    %c0_19 = arith.constant 0 : index
    %14 = vector.load %arg10[%c0_18, %c0_19] : memref<128x384xbf16, #tpu.memory_space<vmem>>, vector<128x384xbf16>
    %c0_20 = arith.constant 0 : index
    %c0_21 = arith.constant 0 : index
    %c0_22 = arith.constant 0 : index
    %15 = vector.load %arg4[%c0_20, %c0_21, %c0_22] : memref<3x384x128xbf16, #tpu.memory_space<vmem>>, vector<1x384x128xbf16>
    %16 = vector.shape_cast %15 : vector<1x384x128xbf16> to vector<384x128xbf16>
    %cst_23 = arith.constant dense<0.000000e+00> : vector<128x128xf32>
    %17 = tpu.matmul %14, %16, %cst_23 {dimension_numbers = #tpu.dot_dimension_numbers<[1], [0], [0], [1], [0, 0, 1, 1], [], []>} : vector<128x384xbf16>, vector<384x128xbf16>, vector<128x128xf32> -> vector<128x128xf32>
    %c0_24 = arith.constant 0 : index
    %c0_25 = arith.constant 0 : index
    %18 = vector.load %arg5[%c0_24, %c0_25] : memref<1x128xf32, #tpu.memory_space<vmem>>, vector<1x128xf32>
    %19 = vector.broadcast %18 : vector<1x128xf32> to vector<128x128xf32>
    %20 = arith.addf %17, %19 : vector<128x128xf32>
    %c0_26 = arith.constant 0 : index
    %c0_27 = arith.constant 0 : index
    %21 = vector.load %arg11[%c0_26, %c0_27] : memref<128x128xf32, #tpu.memory_space<vmem>>, vector<128x128xf32>
    tpu.vector_store %arg11[%c0_26, %c0_27], %20 {strides = array<i32>} : memref<128x128xf32, #tpu.memory_space<vmem>>, vector<128x128xf32>,
    %c16 = arith.constant 16 : index
    %c0_28 = arith.constant 0 : index
    %22 = vector.load %arg9[%c16, %c0_28] : memref<168x128xbf16, #tpu.memory_space<vmem>>, vector<128x128xbf16>
    %c0_29 = arith.constant 0 : index
    %c0_30 = arith.constant 0 : index
    %23 = vector.load %arg10[%c0_29, %c0_30] : memref<128x384xbf16, #tpu.memory_space<vmem>>, vector<128x128xbf16>
    tpu.vector_store %arg10[%c0_29, %c0_30], %22 {strides = array<i32>} : memref<128x384xbf16, #tpu.memory_space<vmem>>, vector<128x128xbf16>,
    %c17 = arith.constant 17 : index
    %c0_31 = arith.constant 0 : index
    %24 = vector.load %arg9[%c17, %c0_31] : memref<168x128xbf16, #tpu.memory_space<vmem>>, vector<128x128xbf16>
    %c0_32 = arith.constant 0 : index
    %c128_33 = arith.constant 128 : index
    %25 = vector.load %arg10[%c0_32, %c128_33] : memref<128x384xbf16, #tpu.memory_space<vmem>>, vector<128x128xbf16>
    tpu.vector_store %arg10[%c0_32, %c128_33], %24 {strides = array<i32>} : memref<128x384xbf16, #tpu.memory_space<vmem>>, vector<128x128xbf16>,
    %c18 = arith.constant 18 : index
    %c0_34 = arith.constant 0 : index
    %26 = vector.load %arg9[%c18, %c0_34] : memref<168x128xbf16, #tpu.memory_space<vmem>>, vector<128x128xbf16>
    %c0_35 = arith.constant 0 : index
    %c256_36 = arith.constant 256 : index
    %27 = vector.load %arg10[%c0_35, %c256_36] : memref<128x384xbf16, #tpu.memory_space<vmem>>, vector<128x128xbf16>
    tpu.vector_store %arg10[%c0_35, %c256_36], %26 {strides = array<i32>} : memref<128x384xbf16, #tpu.memory_space<vmem>>, vector<128x128xbf16>,
    %c0_37 = arith.constant 0 : index
    %c0_38 = arith.constant 0 : index
    %28 = vector.load %arg10[%c0_37, %c0_38] : memref<128x384xbf16, #tpu.memory_space<vmem>>, vector<128x384xbf16>
    %c1_39 = arith.constant 1 : index
    %c0_40 = arith.constant 0 : index
    %c0_41 = arith.constant 0 : index
    %29 = vector.load %arg4[%c1_39, %c0_40, %c0_41] : memref<3x384x128xbf16, #tpu.memory_space<vmem>>, vector<1x384x128xbf16>
    %30 = vector.shape_cast %29 : vector<1x384x128xbf16> to vector<384x128xbf16>
    %cst_42 = arith.constant dense<0.000000e+00> : vector<128x128xf32>
    %31 = tpu.matmul %28, %30, %cst_42 {dimension_numbers = #tpu.dot_dimension_numbers<[1], [0], [0], [1], [0, 0, 1, 1], [], []>} : vector<128x384xbf16>, vector<384x128xbf16>, vector<128x128xf32> -> vector<128x128xf32>
    %c0_43 = arith.constant 0 : index
    %c0_44 = arith.constant 0 : index
    %32 = vector.load %arg11[%c0_43, %c0_44] : memref<128x128xf32, #tpu.memory_space<vmem>>, vector<128x128xf32>
    %33 = arith.addf %32, %31 : vector<128x128xf32>
    %c0_45 = arith.constant 0 : index
    %c0_46 = arith.constant 0 : index
    %34 = vector.load %arg11[%c0_45, %c0_46] : memref<128x128xf32, #tpu.memory_space<vmem>>, vector<128x128xf32>
    tpu.vector_store %arg11[%c0_45, %c0_46], %33 {strides = array<i32>} : memref<128x128xf32, #tpu.memory_space<vmem>>, vector<128x128xf32>,
    %c32 = arith.constant 32 : index
    %c0_47 = arith.constant 0 : index
    %35 = vector.load %arg9[%c32, %c0_47] : memref<168x128xbf16, #tpu.memory_space<vmem>>, vector<128x128xbf16>
    %c0_48 = arith.constant 0 : index
    %c0_49 = arith.constant 0 : index
    %36 = vector.load %arg10[%c0_48, %c0_49] : memref<128x384xbf16, #tpu.memory_space<vmem>>, vector<128x128xbf16>
    tpu.vector_store %arg10[%c0_48, %c0_49], %35 {strides = array<i32>} : memref<128x384xbf16, #tpu.memory_space<vmem>>, vector<128x128xbf16>,
    %c33 = arith.constant 33 : index
    %c0_50 = arith.constant 0 : index
    %37 = vector.load %arg9[%c33, %c0_50] : memref<168x128xbf16, #tpu.memory_space<vmem>>, vector<128x128xbf16>
    %c0_51 = arith.constant 0 : index
    %c128_52 = arith.constant 128 : index
    %38 = vector.load %arg10[%c0_51, %c128_52] : memref<128x384xbf16, #tpu.memory_space<vmem>>, vector<128x128xbf16>
    tpu.vector_store %arg10[%c0_51, %c128_52], %37 {strides = array<i32>} : memref<128x384xbf16, #tpu.memory_space<vmem>>, vector<128x128xbf16>,
    %c34 = arith.constant 34 : index
    %c0_53 = arith.constant 0 : index
    %39 = vector.load %arg9[%c34, %c0_53] : memref<168x128xbf16, #tpu.memory_space<vmem>>, vector<128x128xbf16>
    %c0_54 = arith.constant 0 : index
    %c256_55 = arith.constant 256 : index
    %40 = vector.load %arg10[%c0_54, %c256_55] : memref<128x384xbf16, #tpu.memory_space<vmem>>, vector<128x128xbf16>
    tpu.vector_store %arg10[%c0_54, %c256_55], %39 {strides = array<i32>} : memref<128x384xbf16, #tpu.memory_space<vmem>>, vector<128x128xbf16>,
    %c0_56 = arith.constant 0 : index
    %c0_57 = arith.constant 0 : index
    %41 = vector.load %arg10[%c0_56, %c0_57] : memref<128x384xbf16, #tpu.memory_space<vmem>>, vector<128x384xbf16>
    %c2_58 = arith.constant 2 : index
    %c0_59 = arith.constant 0 : index
    %c0_60 = arith.constant 0 : index
    %42 = vector.load %arg4[%c2_58, %c0_59, %c0_60] : memref<3x384x128xbf16, #tpu.memory_space<vmem>>, vector<1x384x128xbf16>
    %43 = vector.shape_cast %42 : vector<1x384x128xbf16> to vector<384x128xbf16>
    %cst_61 = arith.constant dense<0.000000e+00> : vector<128x128xf32>
    %44 = tpu.matmul %41, %43, %cst_61 {dimension_numbers = #tpu.dot_dimension_numbers<[1], [0], [0], [1], [0, 0, 1, 1], [], []>} : vector<128x384xbf16>, vector<384x128xbf16>, vector<128x128xf32> -> vector<128x128xf32>
    %c0_62 = arith.constant 0 : index
    %c0_63 = arith.constant 0 : index
    %45 = vector.load %arg11[%c0_62, %c0_63] : memref<128x128xf32, #tpu.memory_space<vmem>>, vector<128x128xf32>
    %46 = arith.addf %45, %44 : vector<128x128xf32>
    %c0_64 = arith.constant 0 : index
    %c0_65 = arith.constant 0 : index
    %47 = vector.load %arg11[%c0_64, %c0_65] : memref<128x128xf32, #tpu.memory_space<vmem>>, vector<128x128xf32>
    tpu.vector_store %arg11[%c0_64, %c0_65], %46 {strides = array<i32>} : memref<128x128xf32, #tpu.memory_space<vmem>>, vector<128x128xf32>,
    %c0_66 = arith.constant 0 : index
    %c0_67 = arith.constant 0 : index
    %48 = vector.load %arg11[%c0_66, %c0_67] : memref<128x128xf32, #tpu.memory_space<vmem>>, vector<128x128xf32>
    %49 = vector.shape_cast %48 : vector<128x128xf32> to vector<8x16x128xf32>
    %50 = vector.extract_strided_slice %49 {offsets = [0, 0, 0], sizes = [8, 8, 128], strides = [1, 1, 1]} : vector<8x16x128xf32> to vector<8x8x128xf32>
    %51 = vector.shape_cast %50 : vector<8x8x128xf32> to vector<64x128xf32>
    %c0_68 = arith.constant 0 : index
    %c0_69 = arith.constant 0 : index
    %52 = vector.load %arg6[%c0_68, %c0_69] : memref<128x2xf32, #tpu.memory_space<vmem>>, vector<128x2xf32>
    %cst_70 = arith.constant dense<0.000000e+00> : vector<64x2xf32>
    %53 = tpu.matmul %51, %52, %cst_70 {dimension_numbers = #tpu.dot_dimension_numbers<[1], [0], [0], [1], [0, 0, 1, 1], [], []>} : vector<64x128xf32>, vector<128x2xf32>, vector<64x2xf32> -> vector<64x2xf32>
    %c0_71 = arith.constant 0 : index
    %c0_72 = arith.constant 0 : index
    %54 = vector.load %arg7[%c0_71, %c0_72] : memref<1x2xf32, #tpu.memory_space<vmem>>, vector<1x2xf32>
    %55 = vector.broadcast %54 : vector<1x2xf32> to vector<64x2xf32>
    %56 = arith.addf %53, %55 : vector<64x2xf32>
    %57 = vector.shape_cast %56 : vector<64x2xf32> to vector<8x8x2xf32>
    %c0_73 = arith.constant 0 : index
    %c0_74 = arith.constant 0 : index
    %c0_75 = arith.constant 0 : index
    %c0_76 = arith.constant 0 : index
    %58 = vector.load %arg8[%c0_73, %c0_74, %c0_75, %c0_76] : memref<1x8x8x2xf32, #tpu.memory_space<vmem>>, vector<1x8x8x2xf32>
    %59 = vector.shape_cast %58 : vector<1x8x8x2xf32> to vector<8x8x2xf32>
    %60 = vector.shape_cast %57 : vector<8x8x2xf32> to vector<1x8x8x2xf32>
    tpu.vector_store %arg8[%c0_73, %c0_74, %c0_75, %c0_76], %60 {strides = array<i32>} : memref<1x8x8x2xf32, #tpu.memory_space<vmem>>, vector<1x8x8x2xf32>,
    return
  }
  func.func @transform_0(%arg0: i32, %arg1: i32) -> (i32, i32, i32) {
    %c0_i32 = arith.constant 0 : i32
    %c0_i32_0 = arith.constant 0 : i32
    return %arg0, %arg1, %c0_i32 : i32, i32, i32
  }
  func.func @transform_1(%arg0: i32, %arg1: i32) -> (i32, i32, i32) {
    %c1_i32 = arith.constant 1 : i32
    %0 = arith.addi %arg1, %c1_i32 : i32
    %c4_i32 = arith.constant 4 : i32
    %1 = arith.muli %0, %c4_i32 : i32
    %c0_i32 = arith.constant 0 : i32
    %c0_i32_0 = arith.constant 0 : i32
    return %arg0, %1, %c0_i32 : i32, i32, i32
  }
  func.func @transform_2(%arg0: i32, %arg1: i32) -> (i32, i32, i32) {
    %c0_i32 = arith.constant 0 : i32
    %c0_i32_0 = arith.constant 0 : i32
    %c0_i32_1 = arith.constant 0 : i32
    %c0_i32_2 = arith.constant 0 : i32
    return %c0_i32, %c0_i32_0, %c0_i32_1 : i32, i32, i32
  }
  func.func @transform_3(%arg0: i32, %arg1: i32) -> (i32, i32) {
    %c0_i32 = arith.constant 0 : i32
    %c0_i32_0 = arith.constant 0 : i32
    %c0_i32_1 = arith.constant 0 : i32
    return %c0_i32, %c0_i32_0 : i32, i32
  }
  func.func @transform_4(%arg0: i32, %arg1: i32) -> (i32, i32) {
    %c0_i32 = arith.constant 0 : i32
    %c0_i32_0 = arith.constant 0 : i32
    %c0_i32_1 = arith.constant 0 : i32
    return %c0_i32, %c0_i32_0 : i32, i32
  }
  func.func @transform_5(%arg0: i32, %arg1: i32) -> (i32, i32) {
    %c0_i32 = arith.constant 0 : i32
    %c0_i32_0 = arith.constant 0 : i32
    %c0_i32_1 = arith.constant 0 : i32
    return %c0_i32, %c0_i32_0 : i32, i32
  }
  func.func @transform_6(%arg0: i32, %arg1: i32) -> (i32, i32, i32, i32) {
    %c0_i32 = arith.constant 0 : i32
    %c0_i32_0 = arith.constant 0 : i32
    %c0_i32_1 = arith.constant 0 : i32
    return %arg0, %arg1, %c0_i32, %c0_i32_0 : i32, i32, i32, i32
  }
}

module attributes {stable_mosaic.version = 11 : i64} {
  func.func @kernel(%arg0: i32, %arg1: i32, %arg2: memref<32x8xf32, #tpu.memory_space<vmem>>, %arg3: memref<16x64xf32, #tpu.memory_space<vmem>>, %arg4: memref<1x8x8x2xf32, #tpu.memory_space<vmem>>, %arg5: memref<1x32x32x2xf32, #tpu.memory_space<vmem>>) attributes {dimension_semantics = [#tpu.dimension_semantics<parallel>, #tpu.dimension_semantics<parallel>], iteration_bounds = array<i64: 2, 1>, scalar_prefetch = 0 : i64, scratch_operands = 0 : i64, tpu.core_type = #tpu.core_type<tc>, window_params = [{transform_indices = @transform_0, window_bounds = array<i64: 32, 8>}, {pipeline_mode = #tpu.pipeline_mode<synchronous>, transform_indices = @transform_1, window_bounds = array<i64: 16, 64>}, {transform_indices = @transform_2, window_bounds = array<i64: 1, 8, 8, 2>}, {transform_indices = @transform_3, window_bounds = array<i64: 1, 32, 32, 2>}]} {
    %c0 = arith.constant 0 : index
    %c0_0 = arith.constant 0 : index
    %c0_1 = arith.constant 0 : index
    %c0_2 = arith.constant 0 : index
    %0 = vector.load %arg4[%c0, %c0_0, %c0_1, %c0_2] : memref<1x8x8x2xf32, #tpu.memory_space<vmem>>, vector<1x8x8x2xf32>
    %1 = vector.shape_cast %0 : vector<1x8x8x2xf32> to vector<8x8x2xf32>
    %2 = vector.shape_cast %1 : vector<8x8x2xf32> to vector<8x16xf32>
    %c0_3 = arith.constant 0 : index
    %c0_4 = arith.constant 0 : index
    %3 = vector.load %arg2[%c0_3, %c0_4] : memref<32x8xf32, #tpu.memory_space<vmem>>, vector<32x8xf32>
    %cst = arith.constant dense<0.000000e+00> : vector<32x16xf32>
    %4 = tpu.matmul %3, %2, %cst {dimension_numbers = #tpu.dot_dimension_numbers<[1], [0], [0], [1], [0, 0, 1, 1], [], []>} : vector<32x8xf32>, vector<8x16xf32>, vector<32x16xf32> -> vector<32x16xf32>
    %c0_5 = arith.constant 0 : index
    %c0_6 = arith.constant 0 : index
    %5 = vector.load %arg3[%c0_5, %c0_6] : memref<16x64xf32, #tpu.memory_space<vmem>>, vector<16x64xf32>
    %cst_7 = arith.constant dense<0.000000e+00> : vector<32x64xf32>
    %6 = tpu.matmul %4, %5, %cst_7 {dimension_numbers = #tpu.dot_dimension_numbers<[1], [0], [0], [1], [0, 0, 1, 1], [], []>} : vector<32x16xf32>, vector<16x64xf32>, vector<32x64xf32> -> vector<32x64xf32>
    %7 = vector.shape_cast %6 : vector<32x64xf32> to vector<32x32x2xf32>
    %c0_8 = arith.constant 0 : index
    %c0_9 = arith.constant 0 : index
    %c0_10 = arith.constant 0 : index
    %c0_11 = arith.constant 0 : index
    %8 = vector.load %arg5[%c0_8, %c0_9, %c0_10, %c0_11] : memref<1x32x32x2xf32, #tpu.memory_space<vmem>>, vector<1x32x32x2xf32>
    %9 = vector.shape_cast %8 : vector<1x32x32x2xf32> to vector<32x32x2xf32>
    %10 = vector.shape_cast %7 : vector<32x32x2xf32> to vector<1x32x32x2xf32>
    tpu.vector_store %arg5[%c0_8, %c0_9, %c0_10, %c0_11], %10 {strides = array<i32>} : memref<1x32x32x2xf32, #tpu.memory_space<vmem>>, vector<1x32x32x2xf32>,
    return
  }
  func.func @transform_0(%arg0: i32, %arg1: i32) -> (i32, i32) {
    %c0_i32 = arith.constant 0 : i32
    %c0_i32_0 = arith.constant 0 : i32
    return %arg1, %c0_i32 : i32, i32
  }
  func.func @transform_1(%arg0: i32, %arg1: i32) -> (i32, i32) {
    %c0_i32 = arith.constant 0 : i32
    %c0_i32_0 = arith.constant 0 : i32
    %c0_i32_1 = arith.constant 0 : i32
    return %c0_i32, %c0_i32_0 : i32, i32
  }
  func.func @transform_2(%arg0: i32, %arg1: i32) -> (i32, i32, i32, i32) {
    %c0_i32 = arith.constant 0 : i32
    %c0_i32_0 = arith.constant 0 : i32
    %c0_i32_1 = arith.constant 0 : i32
    %c0_i32_2 = arith.constant 0 : i32
    return %arg0, %c0_i32, %c0_i32_0, %c0_i32_1 : i32, i32, i32, i32
  }
  func.func @transform_3(%arg0: i32, %arg1: i32) -> (i32, i32, i32, i32) {
    %c0_i32 = arith.constant 0 : i32
    %c0_i32_0 = arith.constant 0 : i32
    %c0_i32_1 = arith.constant 0 : i32
    return %arg0, %arg1, %c0_i32, %c0_i32_0 : i32, i32, i32, i32
  }
}

</mosaic_0001>

<bundles_post_ra>
// kernel: run.16
= control target key start
LH: loop header
LB: loop body
LE: loop exit
PB: predicated region body
PF: predicated region fallthrough
CT: control target
= control target key end

     0   :  { %8 = vsyncpa [#allocation4], 0  ;;  %s1091_s0 = inlined_call_operand.vmem [shape: bf16[1,16,3], index: 0, kind: input, shape index: {}]   ;;  %s1092_s1 = inlined_call_operand.hbm [shape: bf16[1,3,3072], index: 1, kind: input, shape index: {}]   ;;  %s1093_s2 = inlined_call_operand.hbm [shape: f32[1,3072], index: 2, kind: input, shape index: {}]   ;;  %s1094_s3 = inlined_call_operand.vmem [shape: bf16[16,3072], index: 3, kind: output, shape index: {}]  }
   0x1   :  { %10 = vsyncpa [#allocation4 + $0x1], 0 }
   0x2   :  { %11 = vsyncpa [#allocation6], 0 }
   0x3   :  { %13 = vsyncpa [#allocation6 + $0x1], 0  ;;  %s907_s12 = smov 0   ;;  %s909_s13 = smov 0  }
   0x4   :  { %s911_s14 = smov 0   ;;  %s913_s15 = smov 0  }
   0x5   :  { %s915_s16 = smov 0   ;;  %s917_s17 = smov 0  }
   0x6 LB: > { %s653_s18 = sadd.s32 4294967295, %s880_s17   ;;  %s41_s19 = sadd.s32 1, %s876_s16  ;;  %s880_s17 = sphi %s917_s17, %s19_s17   ;;  %s876_s16 = sphi %s915_s16, %s1110_s16   ;;  %s872_s15 = sphi %s913_s15, %s1109_s15   ;;  %s868_s14 = sphi %s911_s14, %s1108_s14   ;;  %s864_s13 = sphi %s909_s13, %s1107_s13   ;;  %s860_s12 = sphi %s907_s12, %s1106_s12  }
   0x7   : > { %p43_p0 = scmp.ge.s32.totalorder %s41_s19, 12  ;;  %s86_s20 = sadd.s32 1, %s868_s14 }
   0x8   : > { %p93_p1 = scmp.ne.s32.totalorder %s868_s14, %s864_s13  ;;  %p94_p2 = scmp.eq.s32.totalorder %s880_s17, 0 }
   0x9   : > { %s1112_s19 = smov (%p43_p0, %s41_s19), 0  ;;  %p99_p4 = scmp.ne.s32.totalorder %s864_s13, %s860_s12 }
   0xa   : > { %p943_p3 = por %p94_p2, %p93_p1  ;;  %s82_s22 = ssub.s32 %s876_s16, %s1112_s19 }
   0xb   : > { %p100_p5 = scmp.eq.s32.totalorder %s653_s18, 0  ;;  %p84_p6 = scmp.eq.s32.totalorder %s82_s22, 0 }
   0xc   : > { %p151_p7 = scmp.eq.s32.totalorder %s653_s18, 11  ;;  %p695_p10 = scmp.lt.s32.totalorder %s880_s17, 12 }
   0xd   : > { %p950_p8 = por %p100_p5, %p99_p4  ;;  %s963_s26 = sand.u32 1, %s868_s14  }
   0xe   : > { %s955_s24 = scalar_select %p84_p6, %s868_s14, %s86_s20  }
   0xf   : > { %s1097_s23 = scalar_select %p950_p8, 1, 0 }
  0x10   : > { %p957_p9 = por %p151_p7, %p93_p1  ;;  %s675_s27 = sshll.u32 %s876_s16, 6 }
  0x11   : > { %s658_s28 = sshll.u32 %s963_s26, 2  ;;  %s970_s4 = scalar_lea.hbm %s1092_s1, %s675_s27 }
  0x12   : > { %s1098_s25 = scalar_select %p957_p9, 1, 0 }
  0x13   : > { %s197_s5 = scalar_lea.vmem [#allocation3], %s658_s28  ;;  %p974_p11 = pnand %p695_p10, %p943_p3 }
  0x14   : > { %s209_s6 = sshll.u32 %s197_s5, 4  ;;  %s194_s8 = scalar_lea.sflag [#allocation4], %s963_s26  ;;  %s978_s6 = int_to_ptr.vmem [resolvable:$true] %s209_s6 }
  0x15   : > { %s766_s9 = scalar_lea.hbm %s970_s4, 64  ;;  %p768_p1 = pneg %p974_p11 }
  0x16   : > { %p767_p0 = scmp.ne.s32.totalorder %s970_s4, %s766_s9  ;;  %s771_s12 = scalar_lea.hbm %s1092_s1, 768 }
  0x17   : > { %p772_p3 = scmp.lt.u32.totalorder %s970_s4, %s1092_s1  ;;  %p773_p5 = scmp.lt.u32.totalorder %s771_s12, %s766_s9 }
  0x18   : > { %p769_p2 = pnand %p768_p1, %p767_p0  ;;  %p775_p7 = scmp.lt.u32.totalorder %s766_s9, %s970_s4 }
  0x19   : > { %p774_p6 = por %p773_p5, %p772_p3 }
  0x1a   : > { %p770_p4 = pneg %p769_p2 }
  0x1b   : > { %p776_p10 = por %p775_p7, %p774_p6 }
  0x1d   : > { %p777_p12 = pnand %p776_p10, %p770_p4 }
  0x1f   : > { %780 = shalt.err (!%p777_p12)
}
  0x20   : > { %s781_s21 = scalar_lea.vmem %s978_s6, 64  ;;  %s882_s22 = smov [#allocation3]  }
  0x21   : > { %p782_p0 = scmp.ne.s32.totalorder %s978_s6, %s781_s21  ;;  %s786_s27 = sshll.u32 %s882_s22, 4  ;;  %s787_s27 = int_to_ptr.vmem [resolvable:$false] %s786_s27 }
  0x22   : > { %s788_s28 = scalar_lea.vmem %s787_s27, 128  ;;  %p789_p9 = scmp.lt.s32.totalorder %s978_s6, %s787_s27 }
  0x23   : > { %p784_p2 = pnand %p782_p0, %p768_p1  ;;  %p790_p3 = scmp.lt.s32.totalorder %s788_s28, %s781_s21 }
  0x25   : > { %p785_p13 = pneg %p784_p2  ;;  %p791_p5 = por %p790_p3, %p789_p9 }
  0x27   : > { %p792_p6 = pnand %p791_p5, %p785_p13 }
  0x29   : > { %795 = shalt.err (!%p792_p6)
}
  0x2a   : > { %691 = dma.hbm_to_vmem [thread:$0]  (!%p974_p11), %s970_s4, 64, %s978_s6, %s194_s8  }
  0x2b   : > { %p1100_p12 = scmp.lt.s32.totalorder %s880_s17, 13  ;;  %p1101_p4 = scmp.ge.s32.totalorder %s880_s17, 1 }
  0x2c   : > { %s661_s30 = sshll.u32 %s963_s26, 1  ;;  %s676_s5 = sshll.u32 %s876_s16, 5 }
  0x2d   : > { %p1012_p7 = pnand %p1101_p4, %p1100_p12  ;;  %s1021_s11 = scalar_lea.hbm %s1093_s2, %s676_s5 }
  0x2e   : > { %s220_s12 = scalar_lea.vmem [#allocation5], %s661_s30  ;;  %s217_s4 = scalar_lea.sflag [#allocation6], %s963_s26 }
  0x2f   : > { %s1102_s29 = scalar_select %p1012_p7, 1, 0 }
  0x30   : > { %s228_s18 = sshll.u32 %s220_s12, 4  ;;  %s796_s6 = scalar_lea.hbm %s1021_s11, 32  ;;  %s229_s18 = int_to_ptr.vmem [resolvable:$true] %s228_s18 }
  0x31   : > { %p797_p9 = scmp.ne.s32.totalorder %s1021_s11, %s796_s6  ;;  %s801_s21 = scalar_lea.hbm %s1093_s2, 384 }
  0x32   : > { %p802_p0 = scmp.lt.u32.totalorder %s1021_s11, %s1093_s2  ;;  %p803_p2 = scmp.lt.u32.totalorder %s801_s21, %s796_s6 }
  0x33   : > { %p799_p13 = pnand %p797_p9, %p768_p1  ;;  %p805_p5 = scmp.lt.u32.totalorder %s796_s6, %s1021_s11 }
  0x34   : > { %p804_p3 = por %p803_p2, %p802_p0 }
  0x35   : > { %p800_p10 = pneg %p799_p13 }
  0x36   : > { %p806_p6 = por %p805_p5, %p804_p3 }
  0x38   : > { %p807_p12 = pnand %p806_p6, %p800_p10 }
  0x3a   : > { %810 = shalt.err (!%p807_p12)
}
  0x3b   : > { %s811_s26 = scalar_lea.vmem %s229_s18, 32  ;;  %s883_s28 = smov [#allocation5]  }
  0x3c   : > { %p812_p4 = scmp.ne.s32.totalorder %s229_s18, %s811_s26  ;;  %s816_s30 = sshll.u32 %s883_s28, 4  ;;  %s817_s30 = int_to_ptr.vmem [resolvable:$false] %s816_s30 }
  0x3d   : > { %s818_s5 = scalar_lea.vmem %s817_s30, 64  ;;  %p819_p8 = scmp.lt.s32.totalorder %s229_s18, %s817_s30 }
  0x3e   : > { %p814_p9 = pnand %p812_p4, %p768_p1  ;;  %p820_p7 = scmp.lt.s32.totalorder %s818_s5, %s811_s26 }
  0x40   : > { %p815_p13 = pneg %p814_p9  ;;  %p821_p0 = por %p820_p7, %p819_p8 }
  0x42   : > { %p822_p2 = pnand %p821_p0, %p815_p13 }
  0x44   : > { %825 = shalt.err (!%p822_p2)
}
  0x45   : > { %694 = dma.hbm_to_vmem [thread:$0]  (!%p974_p11), %s1021_s11, 32, %s229_s18, %s217_s4  }
  0x46   : > { %p1103_p10 = scmp.ne.s32.totalorder %s1102_s29, 0 }
  0x47   : > { %s1046_s9 = sand.u32 (!%p1103_p10), 1, %s864_s13   ;;  %p1104_p1 = scmp.ne.s32.totalorder (!%p1103_p10), %s1097_s23, 0 }
  0x48   : > { %237 = sbr.rel (%p1103_p10) target bundleno = 242 (0xf2), region = 32  ;;  %s665_s10 = sshll.u32 (!%p1103_p10), %s1046_s9, 2 }
  0x49   : > { %s240_s12 = scalar_lea.sflag (!%p1103_p10), [#allocation4], %s1046_s9  ;;  %s243_s6 = scalar_lea.vmem (!%p1103_p10), [#allocation3], %s665_s10 }
  0x4f   : > { %851 = dma.done.wait (%p1104_p1), %s240_s12, 64  }
  0x50   : > { %853 = vsyncadd (%p1104_p1), %s240_s12, 4294967232  ;;  %s666_s7 = sshll.u32 %s1046_s9, 1  ;;  %s249_s29 = scalar_lea.sflag [#allocation6], %s1046_s9 }
  0x51   : > { %s1056_s11 = scalar_lea.vmem [#allocation5], %s666_s7 }
  0x52   : > { %855 = dma.done.wait (%p1104_p1), %s249_s29, 32  }
  0x53   : > { %857 = vsyncadd (%p1104_p1), %s249_s29, 4294967264  ;;  %v884_v0 = vmov 0   ;;  %v885_v1 = vmov 2   ;;  %v681_v2 = vld [vmem:[%s1091_s0] sm:$0xff]   ;;  %v886_v6 = vmov 1   ;;  %v339_v7 = vlaneseq  ;;  %s667_s23 = sshll.u32 %s1046_s9, 4 }
  0x54   : > { %747 = vset.pattern.permute.xlu0 %v884_v0  ;;  %759 = vset.pattern.permute.xlu1 %v885_v1  ;;  %v682_v3 = vunpack.c.l.bf16 %v681_v2  ;;  %v683_v4 = vunpack.c.h.bf16 %v681_v2  ;;  %v322_v9 = vld [vmem:[%s243_s6] sm:$0xf]  ;;  %v443_v42 = vld [vmem:[%s1056_s11] sm:$0x3]  ;;  %s290_s8 = scalar_lea.vmem [#allocation7], %s667_s23  ;;  %p1105_p8 = scmp.ne.s32.totalorder %s1098_s25, 0 }
  0x55   : > { %v340_v8 = vshrl.u32 %v339_v7, 7  ;;  %v323_v10 = vunpack.c.l.bf16 %v322_v9  ;;  %s679_s20 = sshll.u32 (%p1105_p8), %s872_s15, 3 }
  0x56   : > { %v748_v5 = vpack.i.bf16 %v683_v4, %v682_v3  ;;  %s485_s27 = scalar_lea.vmem (%p1105_p8), %s1094_s3, %s679_s20 }
  0x57   : > { %v341_v11 = vsub.s32 0, %v340_v8  ;;  %v345_v12 = vsub.s32 4, %v340_v8  ;;  %v409_v13 = vsub.s32 2, %v340_v8  ;;  %v413_v14 = vsub.s32 6, %v340_v8 }
  0x58   : > { %749 = vperm.xlu0 %747, %v748_v5   ;;  %761 = vperm.xlu1 %759, %v748_v5   ;;  %v375_v15 = vsub.s32 1, %v340_v8  ;;  %v379_v16 = vsub.s32 5, %v340_v8 }
  0x59   : > { %v342_v17 = vrot.slane %v323_v10, %v341_v11  ;;  %v346_v18 = vrot.slane %v323_v10, %v345_v12  ;;  %v410_v19 = vrot.slane %v323_v10, %v409_v13  ;;  %v414_v20 = vrot.slane %v323_v10, %v413_v14 }
  0x5a   : > { %v376_v22 = vrot.slane %v323_v10, %v375_v15  ;;  %v380_v23 = vrot.slane %v323_v10, %v379_v16  ;;  %v448_v51 = vrot.slane %v443_v42, %v341_v11  ;;  %v452_v52 = vrot.slane %v443_v42, %v375_v15 }
  0x5b   : > { %v352_v25 = vrot.slane %v342_v17, %v341_v11  ;;  %v356_v26 = vrot.slane %v346_v18, %v341_v11  ;;  %v420_v29 = vrot.slane %v410_v19, %v409_v13  ;;  %v424_v30 = vrot.slane %v414_v20, %v409_v13 }
  0x5c   : > { %753 = vset.pattern.permute.xlu0 %v886_v6  ;;  %v386_v33 = vrot.slane %v376_v22, %v375_v15  ;;  %v390_v34 = vrot.slane %v380_v23, %v375_v15 }
  0x5d   : > { %755 = vperm.xlu0 %753, %v748_v5  }
  0x61   : > { %765 = vset.pattern.permute.xlu0 %v885_v1 }
  0xd7   : > { %v750_v21 = vpop.permute.xlu0 %749  ;;  %v762_v24 = vpop.permute.xlu1 %761 }
  0xd8   : > { %v752_v27 = vunpack.i.h.bf16 %v750_v21  ;;  %v751_v28 = vunpack.i.l.bf16 %v750_v21  ;;  %v764_v31 = vunpack.i.h.bf16 %v762_v24  ;;  %v763_v32 = vunpack.i.l.bf16 %v762_v24 }
  0xda   : > { %v359_v35 = vmul.f32 %v752_v27, %v352_v25  ;;  %v360_v36 = vmul.f32 %v752_v27, %v356_v26  ;;  %v357_v38 = vmul.f32 %v751_v28, %v352_v25  ;;  %v358_v39 = vmul.f32 %v751_v28, %v356_v26 }
  0xdb   : > { %v427_v43 = vmul.f32 %v764_v31, %v420_v29  ;;  %v428_v44 = vmul.f32 %v764_v31, %v424_v30  ;;  %v425_v45 = vmul.f32 %v763_v32, %v420_v29  ;;  %v426_v46 = vmul.f32 %v763_v32, %v424_v30 }
  0xdc   : > { %v756_v37 = vpop.permute.xlu0 %755 }
  0xdd   : > { %v758_v40 = vunpack.i.h.bf16 %v756_v37  ;;  %v757_v41 = vunpack.i.l.bf16 %v756_v37 }
  0xdf   : > { %v393_v47 = vmul.f32 %v758_v40, %v386_v33  ;;  %v394_v48 = vmul.f32 %v758_v40, %v390_v34  ;;  %v391_v49 = vmul.f32 %v757_v41, %v386_v33  ;;  %v392_v50 = vmul.f32 %v757_v41, %v390_v34 }
  0xe1   : > { %v395_v53 = vadd.f32 %v391_v49, %v357_v38  ;;  %v396_v54 = vadd.f32 %v392_v50, %v358_v39  ;;  %v397_v55 = vadd.f32 %v393_v47, %v359_v35  ;;  %v398_v56 = vadd.f32 %v394_v48, %v360_v36 }
  0xe3   : > { %v429_v57 = vadd.f32 %v425_v45, %v395_v53  ;;  %v430_v58 = vadd.f32 %v426_v46, %v396_v54  ;;  %v431_v59 = vadd.f32 %v427_v43, %v397_v55  ;;  %v432_v60 = vadd.f32 %v428_v44, %v398_v56  ;;  %479 = sbr.rel (!%p1105_p8) target bundleno = 242 (0xf2), region = 52 }
  0xe5   : > { %v455_v61 = vadd.f32 %v448_v51, %v429_v57  ;;  %v456_v62 = vadd.f32 %v452_v52, %v430_v58  ;;  %v457_v63 = vadd.f32 %v448_v51, %v431_v59  ;;  %v458_v0 = vadd.f32 %v452_v52, %v432_v60 }
  0xe7   : > { %v677_v1 = vpack.c.bf16 %v456_v62, %v455_v61  ;;  %v678_v2 = vpack.c.bf16 %v458_v0, %v457_v63 }
  0xe9   : > { %471 = vst [vmem:[%s290_s8] sm:$0xff] %v677_v1  ;;  %472 = vst [vmem:[%s290_s8 + $0x8] sm:$0xff] %v678_v2 }
  0xf0   : > { %v515_v3 = vld [vmem:[%s290_s8] sm:$0xff]  ;;  %v517_v4 = vld [vmem:[%s290_s8 + $0x8] sm:$0xff] }
  0xf1   : > { %516 = vst [vmem:[%s485_s27] sm:$0xff] %v515_v3  ;;  %518 = vst [vmem:[%s485_s27 + $0x60] sm:$0xff] %v517_v4 }
  0xf2 PF: > { %s19_s17 = sadd.s32 1, %s880_s17   ;;  %s1106_s12 = smov %s864_s13 }
  0xf3   : > { %p16_p11 = scmp.ge.s32.totalorder %s19_s17, 14   ;;  %s1107_s13 = smov %s868_s14 }
  0xf4   : > { %s1108_s14 = smov %s955_s24  ;;  %s1109_s15 = smov %s876_s16 }
  0xf5   : > { %s1110_s16 = smov %s1112_s19  ;;  %18 = sbr.rel (!%p16_p11) target bundleno = 6 (0x6), region = 134 }
  0xfc   :  { %534 = vsyncpa [#allocation4], 1 }
  0xfd   :  { %536 = vsyncpa [#allocation4 + $0x1], 1 }
  0xfe   :  { %537 = vsyncpa [#allocation6], 1 }
  0xff   :  { %539 = vsyncpa [#allocation6 + $0x1], 1 }

// kernel: run.17
= control target key start
LH: loop header
LB: loop body
LE: loop exit
PB: predicated region body
PF: predicated region fallthrough
CT: control target
= control target key end

     0   :  { %s1588_s12 = smov 0   ;;  %s1590_s13 = smov 0   ;;  %s1770_s0 = inlined_call_operand.vmem [shape: bf16[2,16,2048], index: 0, kind: input, shape index: {}]   ;;  %s1771_s1 = inlined_call_operand.vmem [shape: bf16[2,2048,128], index: 1, kind: input, shape index: {}]   ;;  %s1772_s2 = inlined_call_operand.vmem [shape: f32[1,128], index: 2, kind: input, shape index: {}]   ;;  %s1773_s3 = inlined_call_operand.vmem [shape: bf16[16,128], index: 3, kind: output, shape index: {}]  }
   0x1   :  { %s1592_s14 = smov 0   ;;  %s1594_s15 = smov 0  }
   0x2   :  { %s1596_s16 = smov 0   ;;  %s1598_s17 = smov 0  }
   0x3   :  { %s1600_s18 = smov 0  }
   0x4 LB: > { %s28_s19 = sadd.s32 1, %s1557_s16  ;;  %s31_s20 = sadd.s32 1, %s1561_s17  ;;  %s1565_s18 = sphi %s1600_s18, %s13_s18   ;;  %s1561_s17 = sphi %s1598_s17, %s1780_s17   ;;  %s1557_s16 = sphi %s1596_s16, %s1779_s16   ;;  %s1553_s15 = sphi %s1594_s15, %s1778_s15   ;;  %s1549_s14 = sphi %s1592_s14, %s1777_s14   ;;  %s1545_s13 = sphi %s1590_s13, %s1776_s13   ;;  %s1541_s12 = sphi %s1588_s12, %s1775_s12  }
   0x5   : > { %p29_p0 = scmp.ge.s32.totalorder %s28_s19, 2  ;;  %p57_p1 = scmp.ne.s32.totalorder %s1545_s13, %s1541_s12 }
   0x6   : > { %p58_p2 = scmp.eq.s32.totalorder %s1565_s18, 0  ;;  %s50_s24 = sadd.s32 1, %s1545_s13 }
   0x7   : > { %s1782_s19 = smov (%p29_p0, %s28_s19), 0  ;;  %s1784_s20 = smov (!%p29_p0, %s31_s20), %s1561_s17 }
   0x8   : > { %p59_p3 = por %p58_p2, %p57_p1  ;;  %p33_p4 = scmp.ge.s32.totalorder %s1784_s20, 2 }
   0x9   : > { %s46_s21 = ssub.s32 %s1557_s16, %s1782_s19  ;;  %p1206_p6 = scmp.ge.s32.totalorder %s1565_s18, 4 }
   0xa   : > { %s1786_s20 = smov (%p33_p4, %s1784_s20), 0 }
   0xb   : > { %s43_s22 = ssub.s32 %s1561_s17, %s1786_s20  ;;  %173 = sbr.rel (%p1206_p6) target bundleno = 29 (0x1d), region = 20 }
   0xc   : > { %s47_s23 = sor.u32 %s46_s21, %s43_s22 }
   0xd   : > { %p48_p5 = scmp.eq.s32.totalorder %s47_s23, 0 }
   0xf   : > { %s1639_s25 = scalar_select %p48_p5, %s1545_s13, %s50_s24  }
  0x12   : > { %176 = sbr.rel (!%p59_p3) target bundleno = 29 (0x1d), region = 24  ;;  %s178_s26 = sand.u32 (%p59_p3), 1, %s1545_s13  }
  0x13   : > { %s1208_s27 = sshll.u32 (%p59_p3), %s1557_s16, 3  ;;  %s1207_s28 = sshll.u32 (%p59_p3), %s178_s26, 6 }
  0x14   : > { %s1209_s29 = sshll.u32 (%p59_p3), %s1561_s17, 5  ;;  %s180_s8 = scalar_lea.vmem (%p59_p3), [#allocation3], %s1207_s28 }
  0x15   : > { %s186_s30 = sadd.s32 (%p59_p3), %s1209_s29, %s1208_s27 }
  0x16   : > { %s1210_s4 = sshll.u32 (%p59_p3), %s186_s30, 2 }
  0x17   : > { %s188_s7 = scalar_lea.vmem (%p59_p3), %s1770_s0, %s1210_s4 }
  0x18   : > { %v201_v0 = vld [vmem:[%s188_s7] sm:$0xff] (%p59_p3)  ;;  %v203_v1 = vld [vmem:[%s188_s7 + $0x8] sm:$0xff] (%p59_p3)  ;;  %v205_v2 = vld [vmem:[%s188_s7 + $0x10] sm:$0xff] (%p59_p3) }
  0x19   : > { %202 = vst [vmem:[%s180_s8] sm:$0xff] %v201_v0  ;;  %204 = vst [vmem:[%s180_s8 + $0x8] sm:$0xff] %v203_v1  ;;  %v207_v3 = vld [vmem:[%s188_s7 + $0x18] sm:$0xff]  ;;  %v209_v4 = vld [vmem:[%s188_s7 + $0x40] sm:$0xff] }
  0x1a   : > { %206 = vst [vmem:[%s180_s8 + $0x10] sm:$0xff] %v205_v2  ;;  %v211_v5 = vld [vmem:[%s188_s7 + $0x48] sm:$0xff]  ;;  %208 = vst [vmem:[%s180_s8 + $0x18] sm:$0xff] %v207_v3  ;;  %v213_v6 = vld [vmem:[%s188_s7 + $0x50] sm:$0xff] }
  0x1b   : > { %210 = vst [vmem:[%s180_s8 + $0x20] sm:$0xff] %v209_v4  ;;  %212 = vst [vmem:[%s180_s8 + $0x28] sm:$0xff] %v211_v5  ;;  %v215_v7 = vld [vmem:[%s188_s7 + $0x58] sm:$0xff] }
  0x1c   : > { %214 = vst [vmem:[%s180_s8 + $0x30] sm:$0xff] %v213_v6  ;;  %216 = vst [vmem:[%s180_s8 + $0x38] sm:$0xff] %v215_v7 }
  0x1d PF: > { %p1211_p7 = scmp.ge.s32.totalorder %s1565_s18, 1  ;;  %p237_p8 = scmp.lt.s32.totalorder %s1565_s18, 5 }
  0x1f   : > { %p238_p9 = pnand %p1211_p7, %p237_p8 }
  0x20   : > { %s244_s9 = sand.u32 (!%p238_p9), 1, %s1541_s12   ;;  %s1213_s10 = sshll.u32 (!%p238_p9), %s1549_s14, 7 }
  0x21   : > { %241 = sbr.rel (%p238_p9) target bundleno = 350 (0x15e), region = 51  ;;  %s1212_s11 = sshll.u32 (!%p238_p9), %s244_s9, 6 }
  0x22   : > { %p288_p10 = scmp.lt.s32.totalorder (!%p238_p9), %s1553_s15, 1  ;;  %p290_p11 = scmp.lt.s32.totalorder (!%p238_p9), %s1213_s10, 255 }
  0x23   : > { %p313_p12 = scmp.eq.s32.totalorder (!%p238_p9), %s1553_s15, 0  ;;  %p314_p13 = scmp.eq.s32.totalorder (!%p238_p9), %s1549_s14, 0 }
  0x24   : > { %s1661_s29 = scalar_lea.vmem (!%p238_p9), [#allocation3], %s1212_s11 }
  0x25   : > { %p315_p0 = pnand (!%p238_p9), %p314_p13, %p313_p12 }
  0x28   : > { %s289_s21 = scalar_select %p288_p10, %s1553_s15, 1 }
  0x29   : > { %s1788_s10 = smov (!%p290_p11, %s1213_s10), 255  ;;  %318 = sbr.rel (%p315_p0) target bundleno = 48 (0x30), region = 59 }
  0x2a   : > { %s1214_s22 = sshll.u32 %s289_s21, 8  ;;  %v1567_v8 = vmov (!%p315_p0), 0.0  }
  0x2b   : > { %s296_s23 = sadd.s32 %s1214_s22, %s1788_s10  ;;  %319 = vst [vmem:[#allocation2] sm:$0xff] (!%p315_p0), %v1567_v8  ;;  %320 = vst [vmem:[#allocation2 + $0x8] sm:$0xff] (!%p315_p0), %v1567_v8 }
  0x2c   : > { %s1215_s24 = sshll.u32 %s296_s23, 2 }
  0x2d   : > { %s1659_s28 = scalar_lea.vmem %s1771_s1, %s1215_s24 }
  0x30 PF: > { %v1447_v9 = vld [vmem:[%s1659_s28 + $0x40] sm:$0xff]   ;;  %v1451_v13 = vld [vmem:[%s1659_s28 + $0x48] sm:$0xff]   ;;  %v1455_v17 = vld [vmem:[%s1659_s28 + $0x50] sm:$0xff]   ;;  %p1051_p1 = scmp.eq.s32.totalorder %s1553_s15, 1  ;;  %p1052_p2 = scmp.eq.s32.totalorder %s1549_s14, 1 }
  0x31   : > { %v1448_v10 = vld [vmem:[%s1659_s28 + $0xc0] sm:$0xff]   ;;  %1302 = vmatprep.subr.bf16.mxu0 %v1447_v9  ;;  %v1452_v14 = vld [vmem:[%s1659_s28 + $0xc8] sm:$0xff]   ;;  %v1456_v18 = vld [vmem:[%s1659_s28 + $0xd0] sm:$0xff]  }
  0x32   : > { %v1449_v11 = vld [vmem:[%s1659_s28] sm:$0xff]   ;;  %1324 = vmatprep.subr.bf16.mxu1 %v1448_v10  ;;  %v1453_v15 = vld [vmem:[%s1659_s28 + $0x8] sm:$0xff]   ;;  %v1457_v19 = vld [vmem:[%s1659_s28 + $0x10] sm:$0xff]   ;;  %p1737_p3 = pnand %p1052_p2, %p1051_p1 }
  0x33   : > { %v1450_v12 = vld [vmem:[%s1659_s28 + $0x80] sm:$0xff]   ;;  %1303 = vmatpush3.bf16.msra.mxu0 %v1449_v11  ;;  %v1454_v16 = vld [vmem:[%s1659_s28 + $0x88] sm:$0xff]   ;;  %v1458_v20 = vld [vmem:[%s1659_s28 + $0x90] sm:$0xff]  }
  0x34   : > { %1325 = vmatpush3.bf16.msra.mxu1 %v1450_v12  ;;  %1304 = vmatprep.subr.bf16.mxu0 %v1451_v13  ;;  %v1459_v21 = vld [vmem:[%s1659_s28 + $0x58] sm:$0xff]   ;;  %v1463_v25 = vld [vmem:[%s1659_s28 + $0x60] sm:$0xff]   ;;  %v1467_v29 = vld [vmem:[%s1659_s28 + $0x68] sm:$0xff]  }
  0x35   : > { %1326 = vmatprep.subr.bf16.mxu1 %v1452_v14  ;;  %v1460_v22 = vld [vmem:[%s1659_s28 + $0xd8] sm:$0xff]   ;;  %v1464_v26 = vld [vmem:[%s1659_s28 + $0xe0] sm:$0xff]   ;;  %v1468_v30 = vld [vmem:[%s1659_s28 + $0xe8] sm:$0xff]  }
  0x36   : > { %v1461_v23 = vld [vmem:[%s1659_s28 + $0x18] sm:$0xff]   ;;  %v1465_v27 = vld [vmem:[%s1659_s28 + $0x20] sm:$0xff]   ;;  %v1469_v31 = vld [vmem:[%s1659_s28 + $0x28] sm:$0xff]  }
  0x37   : > { %1305 = vmatpush3.bf16.msra.mxu0 %v1453_v15  ;;  %v1462_v24 = vld [vmem:[%s1659_s28 + $0x98] sm:$0xff]   ;;  %v1466_v28 = vld [vmem:[%s1659_s28 + $0xa0] sm:$0xff]   ;;  %v1470_v32 = vld [vmem:[%s1659_s28 + $0xa8] sm:$0xff]  }
  0x38   : > { %1327 = vmatpush3.bf16.msra.mxu1 %v1454_v16  ;;  %1306 = vmatprep.subr.bf16.mxu0 %v1455_v17  ;;  %v1471_v33 = vld [vmem:[%s1659_s28 + $0x70] sm:$0xff]   ;;  %v1475_v37 = vld [vmem:[%s1659_s28 + $0x78] sm:$0xff]   ;;  %v1479_v49 = vld [vmem:[%s1659_s28 + $0x140] sm:$0xff]  }
  0x39   : > { %1328 = vmatprep.subr.bf16.mxu1 %v1456_v18  ;;  %v1472_v34 = vld [vmem:[%s1659_s28 + $0xf0] sm:$0xff]   ;;  %v1476_v38 = vld [vmem:[%s1659_s28 + $0xf8] sm:$0xff]   ;;  %v1480_v50 = vld [vmem:[%s1659_s28 + $0x1c0] sm:$0xff]  }
  0x3a   : > { %v1473_v35 = vld [vmem:[%s1659_s28 + $0x30] sm:$0xff]   ;;  %v1477_v39 = vld [vmem:[%s1659_s28 + $0x38] sm:$0xff]   ;;  %v1481_v51 = vld [vmem:[%s1659_s28 + $0x100] sm:$0xff]  }
  0x3b   : > { %1307 = vmatpush3.bf16.msra.mxu0 %v1457_v19  ;;  %v1474_v36 = vld [vmem:[%s1659_s28 + $0xb0] sm:$0xff]   ;;  %v1478_v40 = vld [vmem:[%s1659_s28 + $0xb8] sm:$0xff]   ;;  %v1482_v52 = vld [vmem:[%s1659_s28 + $0x180] sm:$0xff]  }
  0x3c   : > { %1329 = vmatpush3.bf16.msra.mxu1 %v1458_v20  ;;  %1308 = vmatprep.subr.bf16.mxu0 %v1459_v21  ;;  %v323_v41 = vld [vmem:[%s1661_s29] sm:$0xff]  ;;  %v324_v43 = vld [vmem:[%s1661_s29 + $0x8] sm:$0xff]  ;;  %v1483_v53 = vld [vmem:[%s1659_s28 + $0x148] sm:$0xff]  }
  0x3d   : > { %1330 = vmatprep.subr.bf16.mxu1 %v1460_v22  ;;  %v327_v42 = vld [vmem:[%s1661_s29 + $0x20] sm:$0xff]  ;;  %v328_v46 = vld [vmem:[%s1661_s29 + $0x28] sm:$0xff]  ;;  %v1484_v54 = vld [vmem:[%s1659_s28 + $0x1c8] sm:$0xff]  }
  0x3e   : > { %v1216_v44 = vcombine.low %v323_v41, %v327_v42  ;;  %v1217_v45 = vcombine.high %v323_v41, %v327_v42  ;;  %v1218_v47 = vcombine.low %v324_v43, %v328_v46  ;;  %v1219_v48 = vcombine.high %v324_v43, %v328_v46  ;;  %v1485_v55 = vld [vmem:[%s1659_s28 + $0x108] sm:$0xff]   ;;  %v1487_v57 = vld [vmem:[%s1659_s28 + $0x150] sm:$0xff]   ;;  %v1491_v61 = vld [vmem:[%s1659_s28 + $0x158] sm:$0xff]  }
  0x3f   : > { %1309 = vmatpush3.bf16.msra.mxu0 %v1461_v23  ;;  %v1486_v56 = vld [vmem:[%s1659_s28 + $0x188] sm:$0xff]   ;;  %v1488_v58 = vld [vmem:[%s1659_s28 + $0x1d0] sm:$0xff]   ;;  %v1492_v62 = vld [vmem:[%s1659_s28 + $0x1d8] sm:$0xff]  }
  0x40   : > { %1331 = vmatpush3.bf16.msra.mxu1 %v1462_v24  ;;  %1310 = vmatprep.subr.bf16.mxu0 %v1463_v25  ;;  %v1489_v59 = vld [vmem:[%s1659_s28 + $0x110] sm:$0xff]   ;;  %v1493_v63 = vld [vmem:[%s1659_s28 + $0x118] sm:$0xff]   ;;  %v1495_v1 = vld [vmem:[%s1659_s28 + $0x160] sm:$0xff]  }
  0x41   : > { %1332 = vmatprep.subr.bf16.mxu1 %v1464_v26  ;;  %915 = vmatprep.mubr.bf16.mxu0 %v1217_v45  ;;  %v1490_v60 = vld [vmem:[%s1659_s28 + $0x190] sm:$0xff]   ;;  %v1494_v0 = vld [vmem:[%s1659_s28 + $0x198] sm:$0xff]   ;;  %v1496_v2 = vld [vmem:[%s1659_s28 + $0x1e0] sm:$0xff]  }
  0x42   : > { %956 = vmatprep.mubr.bf16.mxu1 %v1219_v48  ;;  %v1497_v3 = vld [vmem:[%s1659_s28 + $0x120] sm:$0xff]   ;;  %v1499_v5 = vld [vmem:[%s1659_s28 + $0x168] sm:$0xff]   ;;  %v1503_v9 = vld [vmem:[%s1659_s28 + $0x170] sm:$0xff]  }
  0x43   : > { %1311 = vmatpush3.bf16.msra.mxu0 %v1465_v27  ;;  %v1498_v4 = vld [vmem:[%s1659_s28 + $0x1a0] sm:$0xff]   ;;  %v1500_v6 = vld [vmem:[%s1659_s28 + $0x1e8] sm:$0xff]   ;;  %v1504_v10 = vld [vmem:[%s1659_s28 + $0x1f0] sm:$0xff]  }
  0x44   : > { %1333 = vmatpush3.bf16.msra.mxu1 %v1466_v28  ;;  %1312 = vmatprep.subr.bf16.mxu0 %v1467_v29  ;;  %v1501_v7 = vld [vmem:[%s1659_s28 + $0x128] sm:$0xff]   ;;  %v1505_v11 = vld [vmem:[%s1659_s28 + $0x130] sm:$0xff]   ;;  %v1507_v13 = vld [vmem:[%s1659_s28 + $0x178] sm:$0xff]  }
  0x45   : > { %1334 = vmatprep.subr.bf16.mxu1 %v1468_v30  ;;  %v1502_v8 = vld [vmem:[%s1659_s28 + $0x1a8] sm:$0xff]   ;;  %v1506_v12 = vld [vmem:[%s1659_s28 + $0x1b0] sm:$0xff]   ;;  %v1508_v14 = vld [vmem:[%s1659_s28 + $0x1f8] sm:$0xff]  }
  0x46   : > { %v1509_v15 = vld [vmem:[%s1659_s28 + $0x138] sm:$0xff]   ;;  %v325_v17 = vld [vmem:[%s1661_s29 + $0x10] sm:$0xff]  ;;  %v326_v21 = vld [vmem:[%s1661_s29 + $0x18] sm:$0xff] }
  0x47   : > { %1313 = vmatpush3.bf16.msra.mxu0 %v1469_v31  ;;  %v1510_v16 = vld [vmem:[%s1659_s28 + $0x1b8] sm:$0xff]   ;;  %v329_v18 = vld [vmem:[%s1661_s29 + $0x30] sm:$0xff]  ;;  %v330_v22 = vld [vmem:[%s1661_s29 + $0x38] sm:$0xff] }
  0x48   : > { %1335 = vmatpush3.bf16.msra.mxu1 %v1470_v32  ;;  %1314 = vmatprep.subr.bf16.mxu0 %v1471_v33  ;;  %v1220_v19 = vcombine.low %v325_v17, %v329_v18  ;;  %v1221_v20 = vcombine.high %v325_v17, %v329_v18  ;;  %v1222_v23 = vcombine.low %v326_v21, %v330_v22 }
  0x49   : > { %1336 = vmatprep.subr.bf16.mxu1 %v1472_v34  ;;  %v1223_v24 = vcombine.high %v326_v21, %v330_v22 }
  0x4b   : > { %1315 = vmatpush3.bf16.msra.mxu0 %v1473_v35 }
  0x4c   : > { %1337 = vmatpush3.bf16.msra.mxu1 %v1474_v36  ;;  %1316 = vmatprep.subr.bf16.mxu0 %v1475_v37 }
  0x4d   : > { %1338 = vmatprep.subr.bf16.mxu1 %v1476_v38 }
  0x4f   : > { %1317 = vmatpush3.bf16.msra.mxu0 %v1477_v39 }
  0x50   : > { %1339 = vmatpush3.bf16.msra.mxu1 %v1478_v40  ;;  %1346 = vmatprep.subr.bf16.mxu0 %v1479_v49 }
  0x51   : > { %1368 = vmatprep.subr.bf16.mxu1 %v1480_v50 }
  0x52   : > { %916 = vmatmul.mubr.bf16.vlgmr.msra.gmra.mrb[0].mxu0 %v1216_v44 }
  0x53   : > { %957 = vmatmul.mubr.bf16.vlgmr.msra.gmra.mrb[0].mxu1 %v1218_v47  ;;  %1347 = vmatpush3.bf16.msra.mxu0 %v1481_v51  ;;  %v321_v51 = vld [vmem:[#allocation2] sm:$0xff] }
  0x54   : > { %1369 = vmatpush3.bf16.msra.mxu1 %v1482_v52  ;;  %1348 = vmatprep.subr.bf16.mxu0 %v1483_v53 }
  0x55   : > { %1370 = vmatprep.subr.bf16.mxu1 %v1484_v54  ;;  %997 = vmatprep.mubr.bf16.mxu0 %v1221_v20 }
  0x56   : > { %1038 = vmatprep.mubr.bf16.mxu1 %v1223_v24 }
  0x57   : > { %1349 = vmatpush3.bf16.msra.mxu0 %v1485_v55  ;;  %v322_v55 = vld [vmem:[#allocation2 + $0x8] sm:$0xff] }
  0x58   : > { %1371 = vmatpush3.bf16.msra.mxu1 %v1486_v56  ;;  %1350 = vmatprep.subr.bf16.mxu0 %v1487_v57 }
  0x59   : > { %1372 = vmatprep.subr.bf16.mxu1 %v1488_v58 }
  0x5b   : > { %1351 = vmatpush3.bf16.msra.mxu0 %v1489_v59 }
  0x5c   : > { %1373 = vmatpush3.bf16.msra.mxu1 %v1490_v60  ;;  %1352 = vmatprep.subr.bf16.mxu0 %v1491_v61  ;;  %v1288_v61 = vld [vmem:[%s1772_s2] ss:$0 sm:$0xff] (!%p1737_p3) }
  0x5d   : > { %1374 = vmatprep.subr.bf16.mxu1 %v1492_v62 }
  0x5f   : > { %1353 = vmatpush3.bf16.msra.mxu0 %v1493_v63 }
  0x60   : > { %1375 = vmatpush3.bf16.msra.mxu1 %v1494_v0  ;;  %1354 = vmatprep.subr.bf16.mxu0 %v1495_v1 }
  0x61   : > { %1376 = vmatprep.subr.bf16.mxu1 %v1496_v2 }
  0x63   : > { %1355 = vmatpush3.bf16.msra.mxu0 %v1497_v3 }
  0x64   : > { %1377 = vmatpush3.bf16.msra.mxu1 %v1498_v4  ;;  %1356 = vmatprep.subr.bf16.mxu0 %v1499_v5 }
  0x65   : > { %1378 = vmatprep.subr.bf16.mxu1 %v1500_v6 }
  0x67   : > { %1357 = vmatpush3.bf16.msra.mxu0 %v1501_v7 }
  0x68   : > { %1379 = vmatpush3.bf16.msra.mxu1 %v1502_v8  ;;  %1358 = vmatprep.subr.bf16.mxu0 %v1503_v9 }
  0x69   : > { %1380 = vmatprep.subr.bf16.mxu1 %v1504_v10 }
  0x6b   : > { %1359 = vmatpush3.bf16.msra.mxu0 %v1505_v11 }
  0x6c   : > { %1381 = vmatpush3.bf16.msra.mxu1 %v1506_v12  ;;  %1360 = vmatprep.subr.bf16.mxu0 %v1507_v13 }
  0x6d   : > { %1382 = vmatprep.subr.bf16.mxu1 %v1508_v14 }
  0x6f   : > { %1361 = vmatpush3.bf16.msra.mxu0 %v1509_v15 }
  0x70   : > { %1383 = vmatpush3.bf16.msra.mxu1 %v1510_v16 }
  0x72   : > { %998 = vmatmul.mubr.bf16.vlgmr.msra.gmra.mrb[4].mxu0 %v1220_v19 }
  0x73   : > { %1039 = vmatmul.mubr.bf16.vlgmr.msra.gmra.mrb[4].mxu1 %v1222_v23 }
 0x125   : > { %v1318_v25 = vpop.f32.mrb[0].mxu0 }
 0x126   : > { %v1340_v26 = vpop.f32.mrb[0].mxu1  ;;  %v1319_v27 = vpop.f32.mrb[1].mxu0 }
 0x127   : > { %v1320_v28 = vadd.f32 %v1319_v27, %v1318_v25  ;;  %v1341_v29 = vpop.f32.mrb[1].mxu1  ;;  %v1321_v30 = vpop.f32.mrb[2].mxu0 }
 0x128   : > { %v1342_v31 = vadd.f32 %v1341_v29, %v1340_v26  ;;  %v1343_v32 = vpop.f32.mrb[2].mxu1  ;;  %v1322_v33 = vpop.f32.mrb[3].mxu0 }
 0x129   : > { %v1323_v34 = vadd.f32 %v1322_v33, %v1321_v30  ;;  %v1344_v35 = vpop.f32.mrb[3].mxu1 }
 0x12a   : > { %v959_v36 = vadd.f32 %v1342_v31, %v1320_v28  ;;  %v1345_v37 = vadd.f32 %v1344_v35, %v1343_v32 }
 0x12c   : > { %v962_v38 = vadd.f32 %v1345_v37, %v1323_v34 }
 0x145   : > { %v1362_v39 = vpop.f32.mrb[4].mxu0 }
 0x146   : > { %v1384_v40 = vpop.f32.mrb[4].mxu1  ;;  %v1363_v41 = vpop.f32.mrb[5].mxu0 }
 0x147   : > { %v1364_v42 = vadd.f32 %v1363_v41, %v1362_v39  ;;  %v1385_v43 = vpop.f32.mrb[5].mxu1  ;;  %v1365_v44 = vpop.f32.mrb[6].mxu0 }
 0x148   : > { %v1386_v45 = vadd.f32 %v1385_v43, %v1384_v40  ;;  %v1387_v46 = vpop.f32.mrb[6].mxu1  ;;  %v1366_v47 = vpop.f32.mrb[7].mxu0 }
 0x149   : > { %v1000_v48 = vadd.f32 %v1364_v42, %v959_v36  ;;  %v1367_v49 = vadd.f32 %v1366_v47, %v1365_v44  ;;  %v1388_v50 = vpop.f32.mrb[7].mxu1 }
 0x14a   : > { %v1389_v52 = vadd.f32 %v1388_v50, %v1387_v46 }
 0x14b   : > { %v1041_v53 = vadd.f32 %v1386_v45, %v1000_v48  ;;  %v1003_v54 = vadd.f32 %v1367_v49, %v962_v38  ;;  %1056 = sbr.rel (%p1737_p3) target bundleno = 350 (0x15e), region = 63 }
 0x14d   : > { %v1047_v56 = vadd.f32 %v1041_v53, %v321_v51  ;;  %v1044_v57 = vadd.f32 %v1389_v52, %v1003_v54 }
 0x14f   : > { %1049 = vst [vmem:[#allocation2] sm:$0xff] %v1047_v56  ;;  %v1048_v58 = vadd.f32 %v1044_v57, %v322_v55 }
 0x151   : > { %1050 = vst [vmem:[#allocation2 + $0x8] sm:$0xff] %v1048_v58 }
 0x156   : > { %v1057_v59 = vld [vmem:[#allocation2] sm:$0xff] }
 0x157   : > { %v1066_v62 = vadd.f32 %v1288_v61, %v1057_v59 }
 0x158   : > { %v1058_v60 = vld [vmem:[#allocation2 + $0x8] sm:$0xff] }
 0x159   : > { %v1067_v63 = vadd.f32 %v1288_v61, %v1058_v60 }
 0x15b   : > { %v1300_v0 = vpack.c.bf16 %v1067_v63, %v1066_v62 }
 0x15d   : > { %1301 = vst [vmem:[%s1773_s3] sm:$0xff] %v1300_v0  }
 0x15e PF: > { %s13_s18 = sadd.s32 1, %s1565_s18   ;;  %s1775_s12 = smov %s1545_s13 }
 0x15f   : > { %p10_p4 = scmp.ge.s32.totalorder %s13_s18, 6   ;;  %s1776_s13 = smov %s1639_s25 }
 0x160   : > { %s1777_s14 = smov %s1557_s16  ;;  %s1778_s15 = smov %s1561_s17 }
 0x161   : > { %s1779_s16 = smov %s1782_s19  ;;  %s1780_s17 = smov %s1786_s20 }
 0x162   :  { %12 = sbr.rel (!%p10_p4) target bundleno = 4 (0x4), region = 104 }

// kernel: run.19
= control target key start
LH: loop header
LB: loop body
LE: loop exit
PB: predicated region body
PF: predicated region fallthrough
CT: control target
= control target key end

     0   :  { %s694_s15 = smov 0   ;;  %s696_s16 = smov 0   ;;  %s756_s0 = inlined_call_operand.vmem [shape: f32[2,2], index: 0, kind: input, shape index: {}, may-alias: {0,1}]   ;;  %s757_s1 = inlined_call_operand.vmem [shape: f32[2,2], index: 1, kind: input, shape index: {}, may-alias: {0,1}]   ;;  %s758_s2 = inlined_call_operand.vmem [shape: bf16[2,2,2,128], index: 2, kind: input, shape index: {}]   ;;  %s759_s3 = inlined_call_operand.vmem [shape: bf16[2,2,2,128], index: 3, kind: input, shape index: {}]   ;;  %s760_s4 = inlined_call_operand.vmem [shape: bf16[2,2,2,128], index: 4, kind: output, shape index: {}]  }
   0x1   :  { %s698_s17 = smov 0  }
   0x2 LB: > { %s26_s18 = sadd.s32 1, %s655_s16  ;;  %p578_p0 = scmp.ge.s32.totalorder %s659_s17, 1  ;;  %s659_s17 = sphi %s698_s17, %s14_s17   ;;  %s655_s16 = sphi %s696_s16, %s762_s16   ;;  %s651_s15 = sphi %s694_s15, %s761_s15  }
   0x3   : > { %p28_p1 = scmp.ge.s32.totalorder %s26_s18, 2  ;;  %p200_p2 = scmp.lt.s32.totalorder %s659_s17, 3 }
   0x5   : > { %s764_s18 = smov (%p28_p1, %s26_s18), 0  ;;  %p201_p3 = pnand %p578_p0, %p200_p2 }
   0x6   : > { %p244_p4 = scmp.lt.s32.totalorder (!%p201_p3), %s651_s15, 1  ;;  %v274_v0 = vlaneseq (!%p201_p3)  ;;  %v665_v1 = vmov (!%p201_p3), 1934713408   ;;  %v666_v3 = vmov (!%p201_p3), 0.0   ;;  %vm284_vm0 = vcmask (!%p201_p3), 1041408   ;;  %s661_s7 = smov (!%p201_p3), 0  }
   0x7   : > { %204 = sbr.rel (%p201_p3) target bundleno = 467 (0x1d3), region = 36  ;;  %v272_v2 = vunpack.c.l.s4 (!%p201_p3), %v665_v1  ;;  %355 = vmatprep.mubr.f32.mxu0 (!%p201_p3), %v666_v3  ;;  %v279_v14 = vld [vmem:[%s756_s0] sm:$0x3] (!%p201_p3)  ;;  %vm280_vm1 = vcmask (!%p201_p3), 15360  }
   0x8   : > { %v275_v5 = vshrl.u32 (!%p201_p3), %v274_v0, 7  ;;  %v367_v15 = vld [vmem:[%s757_s1] sm:$0x3] (!%p201_p3) }
   0x9   : > { %v273_v4 = vunpack.c.0.s8 (!%p201_p3), %v272_v2 }
   0xb   : > { %v276_v10 = vsub.s32 (!%p201_p3), %v273_v4, %v275_v5 }
   0xe   : > { %s766_s15 = smov (!%p244_p4, %s651_s15), 1 }
   0xf   : > { %s712_s19 = sshll.u32 %s766_s15, 1 }
  0x10   : > { %s247_s22 = scalar_lea.vmem %s758_s2, %s712_s19  ;;  %s255_s25 = scalar_lea.vmem %s759_s3, %s712_s19 }
  0x11   : > { %s264_s28 = scalar_lea.vmem %s760_s4, %s712_s19  ;;  %v266_v6 = vld [vmem:[%s247_s22] sm:$0x1]  ;;  %v267_v7 = vld [vmem:[%s247_s22 + $0x1] sm:$0x1] }
  0x12   : > { %v268_v8 = vunpack.c.l.bf16 %v266_v6  ;;  %v269_v9 = vunpack.c.l.bf16 %v267_v7 }
  0x14   : > { %v270_v11 = vcombine.low %v268_v8, %v269_v9 }
  0x16   : > { %v277_v12 = vrot.slane %v270_v11, %v276_v10 }
  0x18   : > { %v278_v13 = vcombine.high %v277_v12, %v666_v3 }
  0x1a   : > { %582 = vmatprep.subr.msk.mxu0 %vm284_vm0, %v278_v13 }
  0x1b   : > { %583 = vmatpush1.msk.msra.mxu0 %vm284_vm0, %v277_v12 }
  0x1c   : > { %584 = vmatmul.mubr.msk.f32.vlgmr.msra.gmra.mrb[0].mxu0 %vm280_vm1, %v279_v14 }
  0xef   : > { %v357_v16 = vpop.f32.mrb[0].mxu0 }
  0xf0   : > { %363 = vst [vmem:[#allocation2] ss:$2 sm:$0x3] %v357_v16  ;;  %v359_v17 = vpop.f32.mrb[1].mxu0 }
  0xf1   : > { %366 = vst [vmem:[#allocation2 + $0x1] ss:$2 sm:$0x3] %v359_v17 }
  0xf2 LB: >> { %v667_v18 = vmov 0.0   ;;  %vm668_vm2 = vmmov 0   ;;  %s585_s8 = sshll.u32 %s663_s7, 1  ;;  %s377_s12 = scalar_lea.vmem %s255_s25, %s663_s7  ;;  %s663_s7 = sphi %s661_s7, %s373_s7  }
  0xf3   : >> { %592 = vmatprep.subr.mxu0 %v667_v18  ;;  %594 = vmatprep.mubr.msk.f32.mxu0 %vm668_vm2, %v667_v18  ;;  %s375_s9 = scalar_lea.vmem [#allocation2], %s585_s8  ;;  %v378_v20 = vld [vmem:[%s377_s12] sm:$0x1]  ;;  %s457_s15 = scalar_lea.vmem %s264_s28, %s663_s7 }
  0xf4   : >> { %v379_v21 = vunpack.c.l.bf16 %v378_v20  ;;  %s373_s7 = sadd.s32 1, %s663_s7  }
  0xf5   : >> { %p370_p5 = scmp.ge.s32.totalorder %s373_s7, 2  }
  0xf8   : >> { %v376_v19 = vld [vmem:[%s375_s9] sm:$0x3] }
  0xf9   : >> { %593 = vmatpush3.msk.msra.mxu0 %vm284_vm0, %v376_v19 }
  0xfa   : >> { %595 = vmatmul.mubr.msk.f32.vlgmr.msra.gmra.mrb[0].mxu0 %vm280_vm1, %v367_v15 }
 0x1cc   : > { %372 = sbr.rel (!%p370_p5) target bundleno = 242 (0xf2), region = 83 }
 0x1cd   : >> { %v452_v22 = vpop.f32.mrb[0].mxu0 }
 0x1ce   : >> { %v453_v23 = vadd.f32 %v452_v22, %v379_v21  ;;  %v596_v24 = vpop.f32.mrb[1].mxu0 }
 0x1d0   : >> { %v456_v25 = vpack.c.bf16 %v453_v23, %v453_v23 }
 0x1d2   : >> { %458 = vst [vmem:[%s457_s15] sm:$0x1] %v456_v25 }
 0x1d3 PF: > { %s14_s17 = sadd.s32 1, %s659_s17   ;;  %s761_s15 = smov %s655_s16 }
 0x1d4   : > { %p11_p6 = scmp.ge.s32.totalorder %s14_s17, 4   ;;  %s762_s16 = smov %s764_s18 }
 0x1d6   :  { %13 = sbr.rel (!%p11_p6) target bundleno = 2 (0x2), region = 94 }

// kernel: run.18
= control target key start
LH: loop header
LB: loop body
LE: loop exit
PB: predicated region body
PF: predicated region fallthrough
CT: control target
= control target key end

     0   :  { %s1513_s12 = smov 0   ;;  %s1515_s13 = smov 0   ;;  %s1636_s0 = inlined_call_operand.vmem [shape: bf16[2,16,1024], index: 0, kind: input, shape index: {}]   ;;  %s1637_s1 = inlined_call_operand.vmem [shape: bf16[2,1024,128], index: 1, kind: input, shape index: {}]   ;;  %s1638_s2 = inlined_call_operand.vmem [shape: f32[1,128], index: 2, kind: input, shape index: {}]   ;;  %s1639_s3 = inlined_call_operand.vmem [shape: bf16[16,128], index: 3, kind: output, shape index: {}]  }
   0x1   :  { %s1517_s14 = smov 0  }
   0x2 LB: > { %s31_s15 = sadd.s32 1, %s1486_s13  ;;  %p1194_p0 = scmp.ge.s32.totalorder %s1490_s14, 1  ;;  %s1490_s14 = sphi %s1517_s14, %s13_s14   ;;  %s1486_s13 = sphi %s1515_s13, %s1641_s13   ;;  %s1482_s12 = sphi %s1513_s12, %s1640_s12  }
   0x3   : > { %p33_p1 = scmp.ge.s32.totalorder %s31_s15, 2  ;;  %p210_p2 = scmp.lt.s32.totalorder %s1490_s14, 3 }
   0x5   : > { %s1643_s15 = smov (%p33_p1, %s31_s15), 0  ;;  %p211_p3 = pnand %p1194_p0, %p210_p2 }
   0x6   : > { %p263_p4 = scmp.lt.s32.totalorder (!%p211_p3), %s1482_s12, 1  ;;  %p303_p5 = scmp.eq.s32.totalorder (!%p211_p3), %s1482_s12, 0 }
   0x7   : > { %214 = sbr.rel (%p211_p3) target bundleno = 324 (0x144), region = 32 }
   0xe   : > { %s264_s16 = scalar_select %p263_p4, %s1482_s12, 1 }
   0xf   : > { %308 = sbr.rel (!%p303_p5) target bundleno = 22 (0x16), region = 36  ;;  %v1492_v0 = vmov (%p303_p5), 0.0  }
  0x10   : > { %s1280_s17 = sshll.u32 %s264_s16, 6  ;;  %s1281_s18 = sshll.u32 %s264_s16, 9  ;;  %309 = vst [vmem:[#allocation2] sm:$0xff] (%p303_p5), %v1492_v0  ;;  %310 = vst [vmem:[#allocation2 + $0x8] sm:$0xff] (%p303_p5), %v1492_v0 }
  0x11   : > { %s1539_s21 = scalar_lea.vmem %s1636_s0, %s1280_s17  ;;  %s1544_s24 = scalar_lea.vmem %s1637_s1, %s1281_s18 }
  0x16 PF: > { %v1404_v1 = vld [vmem:[%s1544_s24 + $0x40] sm:$0xff]   ;;  %v1408_v5 = vld [vmem:[%s1544_s24 + $0x48] sm:$0xff]   ;;  %v1412_v9 = vld [vmem:[%s1544_s24 + $0x50] sm:$0xff]   ;;  %p1041_p6 = scmp.eq.s32.totalorder %s1482_s12, 1 }
  0x17   : > { %v1405_v2 = vld [vmem:[%s1544_s24 + $0xc0] sm:$0xff]   ;;  %1291 = vmatprep.subr.bf16.mxu0 %v1404_v1  ;;  %v1409_v6 = vld [vmem:[%s1544_s24 + $0xc8] sm:$0xff]   ;;  %v1413_v10 = vld [vmem:[%s1544_s24 + $0xd0] sm:$0xff]  }
  0x18   : > { %v1406_v3 = vld [vmem:[%s1544_s24] sm:$0xff]   ;;  %1313 = vmatprep.subr.bf16.mxu1 %v1405_v2  ;;  %v1410_v7 = vld [vmem:[%s1544_s24 + $0x8] sm:$0xff]   ;;  %v1414_v11 = vld [vmem:[%s1544_s24 + $0x10] sm:$0xff]  }
  0x19   : > { %v1407_v4 = vld [vmem:[%s1544_s24 + $0x80] sm:$0xff]   ;;  %1292 = vmatpush3.bf16.msra.mxu0 %v1406_v3  ;;  %v1411_v8 = vld [vmem:[%s1544_s24 + $0x88] sm:$0xff]   ;;  %v1415_v12 = vld [vmem:[%s1544_s24 + $0x90] sm:$0xff]  }
  0x1a   : > { %1314 = vmatpush3.bf16.msra.mxu1 %v1407_v4  ;;  %1293 = vmatprep.subr.bf16.mxu0 %v1408_v5  ;;  %v1416_v13 = vld [vmem:[%s1544_s24 + $0x58] sm:$0xff]   ;;  %v1420_v17 = vld [vmem:[%s1544_s24 + $0x60] sm:$0xff]   ;;  %v1424_v21 = vld [vmem:[%s1544_s24 + $0x68] sm:$0xff]  }
  0x1b   : > { %1315 = vmatprep.subr.bf16.mxu1 %v1409_v6  ;;  %v1417_v14 = vld [vmem:[%s1544_s24 + $0xd8] sm:$0xff]   ;;  %v1421_v18 = vld [vmem:[%s1544_s24 + $0xe0] sm:$0xff]   ;;  %v1425_v22 = vld [vmem:[%s1544_s24 + $0xe8] sm:$0xff]  }
  0x1c   : > { %v1418_v15 = vld [vmem:[%s1544_s24 + $0x18] sm:$0xff]   ;;  %v1422_v19 = vld [vmem:[%s1544_s24 + $0x20] sm:$0xff]   ;;  %v1426_v23 = vld [vmem:[%s1544_s24 + $0x28] sm:$0xff]  }
  0x1d   : > { %1294 = vmatpush3.bf16.msra.mxu0 %v1410_v7  ;;  %v1419_v16 = vld [vmem:[%s1544_s24 + $0x98] sm:$0xff]   ;;  %v1423_v20 = vld [vmem:[%s1544_s24 + $0xa0] sm:$0xff]   ;;  %v1427_v24 = vld [vmem:[%s1544_s24 + $0xa8] sm:$0xff]  }
  0x1e   : > { %1316 = vmatpush3.bf16.msra.mxu1 %v1411_v8  ;;  %1295 = vmatprep.subr.bf16.mxu0 %v1412_v9  ;;  %v1428_v25 = vld [vmem:[%s1544_s24 + $0x70] sm:$0xff]   ;;  %v1432_v29 = vld [vmem:[%s1544_s24 + $0x78] sm:$0xff]   ;;  %v313_v33 = vld [vmem:[%s1539_s21] sm:$0xff] }
  0x1f   : > { %1317 = vmatprep.subr.bf16.mxu1 %v1413_v10  ;;  %v1429_v26 = vld [vmem:[%s1544_s24 + $0xf0] sm:$0xff]   ;;  %v1433_v30 = vld [vmem:[%s1544_s24 + $0xf8] sm:$0xff]   ;;  %v317_v34 = vld [vmem:[%s1539_s21 + $0x20] sm:$0xff] }
  0x20   : > { %v1430_v27 = vld [vmem:[%s1544_s24 + $0x30] sm:$0xff]   ;;  %v1434_v31 = vld [vmem:[%s1544_s24 + $0x38] sm:$0xff]   ;;  %v314_v35 = vld [vmem:[%s1539_s21 + $0x8] sm:$0xff]  ;;  %v1200_v36 = vcombine.low %v313_v33, %v317_v34  ;;  %v1201_v37 = vcombine.high %v313_v33, %v317_v34 }
  0x21   : > { %1296 = vmatpush3.bf16.msra.mxu0 %v1414_v11  ;;  %v1431_v28 = vld [vmem:[%s1544_s24 + $0xb0] sm:$0xff]   ;;  %v1435_v32 = vld [vmem:[%s1544_s24 + $0xb8] sm:$0xff]   ;;  %v318_v38 = vld [vmem:[%s1539_s21 + $0x28] sm:$0xff] }
  0x22   : > { %1318 = vmatpush3.bf16.msra.mxu1 %v1415_v12  ;;  %1297 = vmatprep.subr.bf16.mxu0 %v1416_v13  ;;  %v1202_v39 = vcombine.low %v314_v35, %v318_v38  ;;  %v1203_v40 = vcombine.high %v314_v35, %v318_v38  ;;  %v1436_v41 = vld [vmem:[%s1544_s24 + $0x140] sm:$0xff]   ;;  %v1440_v45 = vld [vmem:[%s1544_s24 + $0x148] sm:$0xff]   ;;  %v1444_v49 = vld [vmem:[%s1544_s24 + $0x150] sm:$0xff]  }
  0x23   : > { %1319 = vmatprep.subr.bf16.mxu1 %v1417_v14  ;;  %905 = vmatprep.mubr.bf16.mxu0 %v1201_v37  ;;  %v1437_v42 = vld [vmem:[%s1544_s24 + $0x1c0] sm:$0xff]   ;;  %v1441_v46 = vld [vmem:[%s1544_s24 + $0x1c8] sm:$0xff]   ;;  %v1445_v50 = vld [vmem:[%s1544_s24 + $0x1d0] sm:$0xff]  }
  0x24   : > { %946 = vmatprep.mubr.bf16.mxu1 %v1203_v40  ;;  %v1438_v43 = vld [vmem:[%s1544_s24 + $0x100] sm:$0xff]   ;;  %v1442_v47 = vld [vmem:[%s1544_s24 + $0x108] sm:$0xff]   ;;  %v1446_v51 = vld [vmem:[%s1544_s24 + $0x110] sm:$0xff]  }
  0x25   : > { %1298 = vmatpush3.bf16.msra.mxu0 %v1418_v15  ;;  %v1439_v44 = vld [vmem:[%s1544_s24 + $0x180] sm:$0xff]   ;;  %v1443_v48 = vld [vmem:[%s1544_s24 + $0x188] sm:$0xff]   ;;  %v1447_v52 = vld [vmem:[%s1544_s24 + $0x190] sm:$0xff]  }
  0x26   : > { %1320 = vmatpush3.bf16.msra.mxu1 %v1419_v16  ;;  %1299 = vmatprep.subr.bf16.mxu0 %v1420_v17  ;;  %v1448_v53 = vld [vmem:[%s1544_s24 + $0x158] sm:$0xff]   ;;  %v1452_v57 = vld [vmem:[%s1544_s24 + $0x160] sm:$0xff]   ;;  %v1456_v61 = vld [vmem:[%s1544_s24 + $0x168] sm:$0xff]  }
  0x27   : > { %1321 = vmatprep.subr.bf16.mxu1 %v1421_v18  ;;  %v1449_v54 = vld [vmem:[%s1544_s24 + $0x1d8] sm:$0xff]   ;;  %v1453_v58 = vld [vmem:[%s1544_s24 + $0x1e0] sm:$0xff]   ;;  %v1457_v62 = vld [vmem:[%s1544_s24 + $0x1e8] sm:$0xff]  }
  0x28   : > { %v1450_v55 = vld [vmem:[%s1544_s24 + $0x118] sm:$0xff]   ;;  %v1454_v59 = vld [vmem:[%s1544_s24 + $0x120] sm:$0xff]   ;;  %v1458_v63 = vld [vmem:[%s1544_s24 + $0x128] sm:$0xff]  }
  0x29   : > { %1300 = vmatpush3.bf16.msra.mxu0 %v1422_v19  ;;  %v1451_v56 = vld [vmem:[%s1544_s24 + $0x198] sm:$0xff]   ;;  %v1455_v60 = vld [vmem:[%s1544_s24 + $0x1a0] sm:$0xff]   ;;  %v1459_v0 = vld [vmem:[%s1544_s24 + $0x1a8] sm:$0xff]  }
  0x2a   : > { %1322 = vmatpush3.bf16.msra.mxu1 %v1423_v20  ;;  %1301 = vmatprep.subr.bf16.mxu0 %v1424_v21  ;;  %v1460_v1 = vld [vmem:[%s1544_s24 + $0x170] sm:$0xff]   ;;  %v1464_v5 = vld [vmem:[%s1544_s24 + $0x178] sm:$0xff]  }
  0x2b   : > { %1323 = vmatprep.subr.bf16.mxu1 %v1425_v22  ;;  %v1461_v2 = vld [vmem:[%s1544_s24 + $0x1f0] sm:$0xff]   ;;  %v1465_v6 = vld [vmem:[%s1544_s24 + $0x1f8] sm:$0xff]  }
  0x2c   : > { %v1462_v3 = vld [vmem:[%s1544_s24 + $0x130] sm:$0xff]   ;;  %v1466_v7 = vld [vmem:[%s1544_s24 + $0x138] sm:$0xff]  }
  0x2d   : > { %1302 = vmatpush3.bf16.msra.mxu0 %v1426_v23  ;;  %v1463_v4 = vld [vmem:[%s1544_s24 + $0x1b0] sm:$0xff]   ;;  %v1467_v8 = vld [vmem:[%s1544_s24 + $0x1b8] sm:$0xff]  }
  0x2e   : > { %1324 = vmatpush3.bf16.msra.mxu1 %v1427_v24  ;;  %1303 = vmatprep.subr.bf16.mxu0 %v1428_v25  ;;  %v315_v9 = vld [vmem:[%s1539_s21 + $0x10] sm:$0xff]  ;;  %v316_v13 = vld [vmem:[%s1539_s21 + $0x18] sm:$0xff] }
  0x2f   : > { %1325 = vmatprep.subr.bf16.mxu1 %v1429_v26  ;;  %v319_v10 = vld [vmem:[%s1539_s21 + $0x30] sm:$0xff]  ;;  %v320_v14 = vld [vmem:[%s1539_s21 + $0x38] sm:$0xff] }
  0x30   : > { %v1204_v11 = vcombine.low %v315_v9, %v319_v10  ;;  %v1205_v12 = vcombine.high %v315_v9, %v319_v10  ;;  %v1206_v15 = vcombine.low %v316_v13, %v320_v14  ;;  %v1207_v16 = vcombine.high %v316_v13, %v320_v14 }
  0x31   : > { %1304 = vmatpush3.bf16.msra.mxu0 %v1430_v27 }
  0x32   : > { %1326 = vmatpush3.bf16.msra.mxu1 %v1431_v28  ;;  %1305 = vmatprep.subr.bf16.mxu0 %v1432_v29 }
  0x33   : > { %1327 = vmatprep.subr.bf16.mxu1 %v1433_v30 }
  0x35   : > { %1306 = vmatpush3.bf16.msra.mxu0 %v1434_v31 }
  0x36   : > { %1328 = vmatpush3.bf16.msra.mxu1 %v1435_v32  ;;  %1335 = vmatprep.subr.bf16.mxu0 %v1436_v41 }
  0x37   : > { %1357 = vmatprep.subr.bf16.mxu1 %v1437_v42 }
  0x38   : > { %906 = vmatmul.mubr.bf16.vlgmr.msra.gmra.mrb[0].mxu0 %v1200_v36 }
  0x39   : > { %947 = vmatmul.mubr.bf16.vlgmr.msra.gmra.mrb[0].mxu1 %v1202_v39  ;;  %1336 = vmatpush3.bf16.msra.mxu0 %v1438_v43  ;;  %v311_v43 = vld [vmem:[#allocation2] sm:$0xff] }
  0x3a   : > { %1358 = vmatpush3.bf16.msra.mxu1 %v1439_v44  ;;  %1337 = vmatprep.subr.bf16.mxu0 %v1440_v45 }
  0x3b   : > { %1359 = vmatprep.subr.bf16.mxu1 %v1441_v46  ;;  %987 = vmatprep.mubr.bf16.mxu0 %v1205_v12 }
  0x3c   : > { %1028 = vmatprep.mubr.bf16.mxu1 %v1207_v16 }
  0x3d   : > { %1338 = vmatpush3.bf16.msra.mxu0 %v1442_v47  ;;  %v312_v47 = vld [vmem:[#allocation2 + $0x8] sm:$0xff] }
  0x3e   : > { %1360 = vmatpush3.bf16.msra.mxu1 %v1443_v48  ;;  %1339 = vmatprep.subr.bf16.mxu0 %v1444_v49 }
  0x3f   : > { %1361 = vmatprep.subr.bf16.mxu1 %v1445_v50 }
  0x41   : > { %1340 = vmatpush3.bf16.msra.mxu0 %v1446_v51 }
  0x42   : > { %1362 = vmatpush3.bf16.msra.mxu1 %v1447_v52  ;;  %1341 = vmatprep.subr.bf16.mxu0 %v1448_v53  ;;  %v1273_v53 = vld [vmem:[%s1638_s2] ss:$0 sm:$0xff] (%p1041_p6) }
  0x43   : > { %1363 = vmatprep.subr.bf16.mxu1 %v1449_v54 }
  0x45   : > { %1342 = vmatpush3.bf16.msra.mxu0 %v1450_v55 }
  0x46   : > { %1364 = vmatpush3.bf16.msra.mxu1 %v1451_v56  ;;  %1343 = vmatprep.subr.bf16.mxu0 %v1452_v57 }
  0x47   : > { %1365 = vmatprep.subr.bf16.mxu1 %v1453_v58 }
  0x49   : > { %1344 = vmatpush3.bf16.msra.mxu0 %v1454_v59 }
  0x4a   : > { %1366 = vmatpush3.bf16.msra.mxu1 %v1455_v60  ;;  %1345 = vmatprep.subr.bf16.mxu0 %v1456_v61 }
  0x4b   : > { %1367 = vmatprep.subr.bf16.mxu1 %v1457_v62 }
  0x4d   : > { %1346 = vmatpush3.bf16.msra.mxu0 %v1458_v63 }
  0x4e   : > { %1368 = vmatpush3.bf16.msra.mxu1 %v1459_v0  ;;  %1347 = vmatprep.subr.bf16.mxu0 %v1460_v1 }
  0x4f   : > { %1369 = vmatprep.subr.bf16.mxu1 %v1461_v2 }
  0x51   : > { %1348 = vmatpush3.bf16.msra.mxu0 %v1462_v3 }
  0x52   : > { %1370 = vmatpush3.bf16.msra.mxu1 %v1463_v4  ;;  %1349 = vmatprep.subr.bf16.mxu0 %v1464_v5 }
  0x53   : > { %1371 = vmatprep.subr.bf16.mxu1 %v1465_v6 }
  0x55   : > { %1350 = vmatpush3.bf16.msra.mxu0 %v1466_v7 }
  0x56   : > { %1372 = vmatpush3.bf16.msra.mxu1 %v1467_v8 }
  0x58   : > { %988 = vmatmul.mubr.bf16.vlgmr.msra.gmra.mrb[4].mxu0 %v1204_v11 }
  0x59   : > { %1029 = vmatmul.mubr.bf16.vlgmr.msra.gmra.mrb[4].mxu1 %v1206_v15 }
 0x10b   : > { %v1307_v17 = vpop.f32.mrb[0].mxu0 }
 0x10c   : > { %v1329_v18 = vpop.f32.mrb[0].mxu1  ;;  %v1308_v19 = vpop.f32.mrb[1].mxu0 }
 0x10d   : > { %v1309_v20 = vadd.f32 %v1308_v19, %v1307_v17  ;;  %v1330_v21 = vpop.f32.mrb[1].mxu1  ;;  %v1310_v22 = vpop.f32.mrb[2].mxu0 }
 0x10e   : > { %v1331_v23 = vadd.f32 %v1330_v21, %v1329_v18  ;;  %v1332_v24 = vpop.f32.mrb[2].mxu1  ;;  %v1311_v25 = vpop.f32.mrb[3].mxu0 }
 0x10f   : > { %v1312_v26 = vadd.f32 %v1311_v25, %v1310_v22  ;;  %v1333_v27 = vpop.f32.mrb[3].mxu1 }
 0x110   : > { %v949_v28 = vadd.f32 %v1331_v23, %v1309_v20  ;;  %v1334_v29 = vadd.f32 %v1333_v27, %v1332_v24 }
 0x112   : > { %v952_v30 = vadd.f32 %v1334_v29, %v1312_v26 }
 0x12b   : > { %v1351_v31 = vpop.f32.mrb[4].mxu0 }
 0x12c   : > { %v1373_v32 = vpop.f32.mrb[4].mxu1  ;;  %v1352_v33 = vpop.f32.mrb[5].mxu0 }
 0x12d   : > { %v1353_v34 = vadd.f32 %v1352_v33, %v1351_v31  ;;  %v1374_v35 = vpop.f32.mrb[5].mxu1  ;;  %v1354_v36 = vpop.f32.mrb[6].mxu0 }
 0x12e   : > { %v1375_v37 = vadd.f32 %v1374_v35, %v1373_v32  ;;  %v1376_v38 = vpop.f32.mrb[6].mxu1  ;;  %v1355_v39 = vpop.f32.mrb[7].mxu0 }
 0x12f   : > { %v990_v40 = vadd.f32 %v1353_v34, %v949_v28  ;;  %v1356_v41 = vadd.f32 %v1355_v39, %v1354_v36  ;;  %v1377_v42 = vpop.f32.mrb[7].mxu1 }
 0x130   : > { %v1378_v44 = vadd.f32 %v1377_v42, %v1376_v38 }
 0x131   : > { %v1031_v45 = vadd.f32 %v1375_v37, %v990_v40  ;;  %v993_v46 = vadd.f32 %v1356_v41, %v952_v30  ;;  %1045 = sbr.rel (!%p1041_p6) target bundleno = 324 (0x144), region = 40 }
 0x133   : > { %v1037_v48 = vadd.f32 %v1031_v45, %v311_v43  ;;  %v1034_v49 = vadd.f32 %v1378_v44, %v993_v46 }
 0x135   : > { %1039 = vst [vmem:[#allocation2] sm:$0xff] %v1037_v48  ;;  %v1038_v50 = vadd.f32 %v1034_v49, %v312_v47 }
 0x137   : > { %1040 = vst [vmem:[#allocation2 + $0x8] sm:$0xff] %v1038_v50 }
 0x13c   : > { %v1046_v51 = vld [vmem:[#allocation2] sm:$0xff] }
 0x13d   : > { %v1055_v54 = vadd.f32 %v1273_v53, %v1046_v51 }
 0x13e   : > { %v1047_v52 = vld [vmem:[#allocation2 + $0x8] sm:$0xff] }
 0x13f   : > { %v1056_v55 = vadd.f32 %v1273_v53, %v1047_v52 }
 0x141   : > { %v1289_v56 = vpack.c.bf16 %v1056_v55, %v1055_v54 }
 0x143   : > { %1290 = vst [vmem:[%s1639_s3] sm:$0xff] %v1289_v56  }
 0x144 PF: > { %s13_s14 = sadd.s32 1, %s1490_s14   ;;  %s1640_s12 = smov %s1486_s13 }
 0x145   : > { %p10_p7 = scmp.ge.s32.totalorder %s13_s14, 4   ;;  %s1641_s13 = smov %s1643_s15 }
 0x147   :  { %12 = sbr.rel (!%p10_p7) target bundleno = 2 (0x2), region = 76 }

// kernel: run.20
= control target key start
LH: loop header
LB: loop body
LE: loop exit
PB: predicated region body
PF: predicated region fallthrough
CT: control target
= control target key end

     0   :  { %s1932_s15 = smov 0   ;;  %s1934_s16 = smov 0   ;;  %s2231_s0 = inlined_call_operand.vmem [shape: bf16[2,32,128], index: 0, kind: input, shape index: {}, may-alias: {0,1}]   ;;  %s2232_s1 = inlined_call_operand.vmem [shape: bf16[2,32,128], index: 1, kind: input, shape index: {}, may-alias: {0,1}]   ;;  %s2233_s2 = inlined_call_operand.vmem [shape: bf16[3,384,128], index: 2, kind: input, shape index: {}]   ;;  %s2234_s3 = inlined_call_operand.vmem [shape: f32[1,128], index: 3, kind: input, shape index: {}]   ;;  %s2235_s4 = inlined_call_operand.vmem [shape: bf16[2,2,2,128], index: 4, kind: output, shape index: {}]  }
   0x1   :  { %s1936_s17 = smov 0  }
   0x2 LB: > { %s26_s18 = sadd.s32 1, %s1898_s16  ;;  %p1403_p0 = scmp.ge.s32.totalorder %s1902_s17, 1  ;;  %s1902_s17 = sphi %s1936_s17, %s14_s17   ;;  %s1898_s16 = sphi %s1934_s16, %s2237_s16   ;;  %s1894_s15 = sphi %s1932_s15, %s2236_s15  }
   0x3   : > { %p28_p1 = scmp.ge.s32.totalorder %s26_s18, 2  ;;  %p204_p2 = scmp.lt.s32.totalorder %s1902_s17, 3 }
   0x5   : > { %s2239_s18 = smov (%p28_p1, %s26_s18), 0  ;;  %p205_p3 = pnand %p1403_p0, %p204_p2 }
   0x6   : > { %v1793_v0 = vld [vmem:[%s2233_s2 + $0x40] sm:$0xff] (!%p205_p3)   ;;  %v1904_v1 = vmov (!%p205_p3), 0.0   ;;  %v1796_v4 = vld [vmem:[%s2233_s2 + $0x48] sm:$0xff] (!%p205_p3)   ;;  %vm1905_vm0 = vmmov (!%p205_p3), 0   ;;  %v1799_v7 = vld [vmem:[%s2233_s2 + $0x50] sm:$0xff] (!%p205_p3)   ;;  %p248_p4 = scmp.lt.s32.totalorder (!%p205_p3), %s1894_s15, 1 }
   0x7   : > { %208 = sbr.rel (%p205_p3) target bundleno = 328 (0x148), region = 36  ;;  %1692 = vmatprep.subr.bf16.mxu1 (!%p205_p3), %v1904_v1  ;;  %v1794_v2 = vld [vmem:[%s2233_s2 + $0x80] sm:$0xff] (!%p205_p3)   ;;  %1599 = vmatprep.subr.bf16.mxu0 (!%p205_p3), %v1793_v0  ;;  %v1797_v5 = vld [vmem:[%s2233_s2 + $0x88] sm:$0xff] (!%p205_p3)   ;;  %v1800_v8 = vld [vmem:[%s2233_s2 + $0x90] sm:$0xff] (!%p205_p3)   ;;  %v1906_v10 = vmov (!%p205_p3), 0   ;;  %vm334_vm2 = vcmask (!%p205_p3), 1046528  }
   0x8   : > { %v1795_v3 = vld [vmem:[%s2233_s2] sm:$0xff] (!%p205_p3)   ;;  %1693 = vmatpush3.bf16.msra.mxu1 (!%p205_p3), %v1794_v2  ;;  %1708 = vmatprep.mubr.msk.bf16.mxu1 (!%p205_p3), %vm1905_vm0, %v1904_v1  ;;  %v1798_v6 = vld [vmem:[%s2233_s2 + $0x8] sm:$0xff] (!%p205_p3)   ;;  %v1801_v9 = vld [vmem:[%s2233_s2 + $0x10] sm:$0xff] (!%p205_p3)   ;;  %287 = vst [vmem:[#allocation2 + $0x10] sm:$0xf] (!%p205_p3), %v1906_v10 }
   0x9   : > { %1600 = vmatpush3.bf16.msra.mxu0 (!%p205_p3), %v1795_v3  ;;  %1694 = vmatprep.subr.bf16.mxu1 (!%p205_p3), %v1904_v1  ;;  %v1802_v11 = vld [vmem:[%s2233_s2 + $0x58] sm:$0xff] (!%p205_p3)   ;;  %v1805_v14 = vld [vmem:[%s2233_s2 + $0x60] sm:$0xff] (!%p205_p3)   ;;  %v1808_v17 = vld [vmem:[%s2233_s2 + $0x68] sm:$0xff] (!%p205_p3)   ;;  %vm308_vm1 = vsmask.f32 (!%p205_p3), 7424 }
   0xa   : > { %1601 = vmatprep.subr.bf16.mxu0 (!%p205_p3), %v1796_v4  ;;  %v1803_v12 = vld [vmem:[%s2233_s2 + $0x98] sm:$0xff] (!%p205_p3)   ;;  %v1806_v15 = vld [vmem:[%s2233_s2 + $0xa0] sm:$0xff] (!%p205_p3)   ;;  %v1809_v18 = vld [vmem:[%s2233_s2 + $0xa8] sm:$0xff] (!%p205_p3)  }
   0xb   : > { %v1804_v13 = vld [vmem:[%s2233_s2 + $0x18] sm:$0xff] (!%p205_p3)   ;;  %v1807_v16 = vld [vmem:[%s2233_s2 + $0x20] sm:$0xff] (!%p205_p3)   ;;  %v1810_v19 = vld [vmem:[%s2233_s2 + $0x28] sm:$0xff] (!%p205_p3)  }
   0xc   : > { %1695 = vmatpush3.bf16.msra.mxu1 (!%p205_p3), %v1797_v5  ;;  %v1811_v20 = vld [vmem:[%s2233_s2 + $0x70] sm:$0xff] (!%p205_p3)   ;;  %v1814_v25 = vld [vmem:[%s2233_s2 + $0x78] sm:$0xff] (!%p205_p3)   ;;  %v1822_v28 = vld [vmem:[%s2233_s2 + $0x100] sm:$0xff] (!%p205_p3)  }
   0xd   : > { %1602 = vmatpush3.bf16.msra.mxu0 (!%p205_p3), %v1798_v6  ;;  %1696 = vmatprep.subr.bf16.mxu1 (!%p205_p3), %v1904_v1  ;;  %v1812_v21 = vld [vmem:[%s2233_s2 + $0xb0] sm:$0xff] (!%p205_p3)   ;;  %v1815_v26 = vld [vmem:[%s2233_s2 + $0xb8] sm:$0xff] (!%p205_p3)   ;;  %v1823_v38 = vld [vmem:[%s2233_s2 + $0x140] sm:$0xff] (!%p205_p3)  }
   0xe   : > { %1603 = vmatprep.subr.bf16.mxu0 %v1799_v7  ;;  %s2241_s15 = smov (!%p248_p4, %s1894_s15), 1  ;;  %v1813_v22 = vld [vmem:[%s2233_s2 + $0x30] sm:$0xff]   ;;  %v1816_v27 = vld [vmem:[%s2233_s2 + $0x38] sm:$0xff]   ;;  %v1824_v40 = vld [vmem:[%s2233_s2 + $0xc0] sm:$0xff]  }
   0xf   : > { %s1595_s25 = sshll.u32 %s2241_s15, 4  ;;  %v1825_v46 = vld [vmem:[%s2233_s2 + $0x108] sm:$0xff]   ;;  %v1828_v49 = vld [vmem:[%s2233_s2 + $0x110] sm:$0xff]   ;;  %v1831_v52 = vld [vmem:[%s2233_s2 + $0x118] sm:$0xff]   ;;  %s1408_s19 = sshll.u32 %s2241_s15, 1 }
  0x10   : > { %1697 = vmatpush3.bf16.msra.mxu1 %v1800_v8  ;;  %s1597_s30 = sadd.s32 8, %s1595_s25  ;;  %s255_s13 = scalar_lea.vmem %s2231_s0, %s1595_s25  ;;  %v1826_v47 = vld [vmem:[%s2233_s2 + $0x148] sm:$0xff]   ;;  %v1829_v50 = vld [vmem:[%s2233_s2 + $0x150] sm:$0xff]   ;;  %v1832_v53 = vld [vmem:[%s2233_s2 + $0x158] sm:$0xff]  }
  0x11   : > { %1604 = vmatpush3.bf16.msra.mxu0 %v1801_v9  ;;  %1698 = vmatprep.subr.bf16.mxu1 %v1904_v1  ;;  %s266_s20 = scalar_lea.vmem %s2232_s1, %s1597_s30  ;;  %v279_v23 = vld [vmem:[%s255_s13] sm:$0xff]   ;;  %v1827_v48 = vld [vmem:[%s2233_s2 + $0xc8] sm:$0xff]   ;;  %v1830_v51 = vld [vmem:[%s2233_s2 + $0xd0] sm:$0xff]   ;;  %s276_s22 = scalar_lea.vmem %s2235_s4, %s1408_s19 }
  0x12   : > { %1605 = vmatprep.subr.bf16.mxu0 %v1802_v11  ;;  %v283_v24 = vld [vmem:[%s266_s20] sm:$0xff]   ;;  %281 = vst [vmem:[#allocation2] sm:$0xff] %v279_v23   ;;  %v1833_v54 = vld [vmem:[%s2233_s2 + $0xd8] sm:$0xff]   ;;  %v1837_v62 = vld [vmem:[%s2233_s2 + $0x128] sm:$0xff]  }
  0x13   : > { %285 = vst [vmem:[#allocation2 + $0x8] sm:$0xff] %v283_v24   ;;  %v1834_v55 = vld [vmem:[%s2233_s2 + $0x120] sm:$0xff]   ;;  %v1838_v2 = vld [vmem:[%s2233_s2 + $0x168] sm:$0xff]   ;;  %v1840_v6 = vld [vmem:[%s2233_s2 + $0x130] sm:$0xff]  }
  0x14   : > { %1699 = vmatpush3.bf16.msra.mxu1 %v1803_v12  ;;  %v1835_v56 = vld [vmem:[%s2233_s2 + $0x160] sm:$0xff]   ;;  %v1839_v4 = vld [vmem:[%s2233_s2 + $0xe8] sm:$0xff]   ;;  %v1841_v8 = vld [vmem:[%s2233_s2 + $0x170] sm:$0xff]  }
  0x15   : > { %1606 = vmatpush3.bf16.msra.mxu0 %v1804_v13  ;;  %1700 = vmatprep.subr.bf16.mxu1 %v1904_v1  ;;  %v1836_v58 = vld [vmem:[%s2233_s2 + $0xe0] sm:$0xff]   ;;  %v1842_v11 = vld [vmem:[%s2233_s2 + $0xf0] sm:$0xff]   ;;  %v1843_v12 = vld [vmem:[%s2233_s2 + $0x138] sm:$0xff]  }
  0x16   : > { %1607 = vmatprep.subr.bf16.mxu0 %v1805_v14  ;;  %v1844_v13 = vld [vmem:[%s2233_s2 + $0x178] sm:$0xff]   ;;  %v1855_v23 = vld [vmem:[%s2233_s2 + $0x208] sm:$0xff]  }
  0x17   : > { %v1856_v24 = vld [vmem:[%s2233_s2 + $0x188] sm:$0xff]  }
  0x18   : > { %1701 = vmatpush3.bf16.msra.mxu1 %v1806_v15 }
  0x19   : > { %1608 = vmatpush3.bf16.msra.mxu0 %v1807_v16  ;;  %1702 = vmatprep.subr.bf16.mxu1 %v1904_v1  ;;  %v1817_v29 = vld [vmem:[#allocation2] sm:$0xff]   ;;  %v1845_v16 = vld [vmem:[%s2233_s2 + $0xf8] sm:$0xff]  }
  0x1a   : > { %1609 = vmatprep.subr.bf16.mxu0 %v1808_v17  ;;  %v1818_v30 = vld [vmem:[#allocation2 + $0x8] ss:$0 sps:$4 sm:$0x11]   ;;  %v310_v31 = vshrl.u32 %v1817_v29, 16  ;;  %v312_v32 = vshll.u32 %v1817_v29, 16  ;;  %v1819_v42 = vld [vmem:[#allocation2] sm:$0xff]  }
  0x1b   : > { %v317_v33 = vshll.u32 %v1818_v30, 16  ;;  %v1820_v34 = vld [vmem:[#allocation2] sm:$0xfe]   ;;  %v1821_v37 = vld [vmem:[#allocation2 + $0x8] ss:$0 sps:$4 sm:$0x11]  }
  0x1c   : > { %1703 = vmatpush3.bf16.msra.mxu1 %v1809_v18  ;;  %v314_v35 = vrot.slane %v312_v32, 1  ;;  %v335_v39 = vrot.slane %v1820_v34, 1  ;;  %v336_v43 = vrot.slane %v1821_v37, 1  ;;  %v1846_v57 = vld [vmem:[#allocation2 + $0x4] sm:$0xff]   ;;  %v1861_v29 = vld [vmem:[%s2233_s2 + $0x218] sm:$0xff]  }
  0x1d   : > { %1610 = vmatpush3.bf16.msra.mxu0 %v1810_v19  ;;  %1704 = vmatprep.subr.bf16.mxu1 %v1904_v1  ;;  %v319_v36 = vrot.slane %v317_v33, 1  ;;  %v1847_v59 = vld [vmem:[#allocation2 + $0xc] ss:$0 sps:$4 sm:$0x11]   ;;  %v647_v60 = vshrl.u32 %v1846_v57, 16  ;;  %v649_v61 = vshll.u32 %v1846_v57, 16 }
  0x1e   : > { %1611 = vmatprep.subr.bf16.mxu0 %v1811_v20  ;;  %v315_v41 = vor.u32 %v314_v35, %v310_v31  ;;  %v337_v45 = vsel %vm334_vm2, %v335_v39, %v336_v43  ;;  %v654_v63 = vshll.u32 %v1847_v59, 16  ;;  %v1850_v7 = vld [vmem:[#allocation2 + $0xc] ss:$0 sps:$4 sm:$0x11]   ;;  %v1849_v10 = vld [vmem:[#allocation2 + $0x4] sm:$0xfe]  }
  0x1f   : > { %v651_v0 = vrot.slane %v649_v61, 1  ;;  %v671_v14 = vrot.slane %v1849_v10, 1  ;;  %v672_v15 = vrot.slane %v1850_v7, 1  ;;  %v1851_v17 = vld [vmem:[%s2233_s2 + $0x1c0] sm:$0xff]   ;;  %v1862_v30 = vld [vmem:[%s2233_s2 + $0x198] sm:$0xff]   ;;  %v1875_v31 = vld [vmem:[#allocation2 + $0x8] sm:$0xff]  }
  0x20   : > { %1705 = vmatpush3.bf16.msra.mxu1 %v1812_v21  ;;  %v320_v44 = vsel %vm308_vm1, %v315_v41, %v319_v36  ;;  %v656_v3 = vrot.slane %v654_v63, 1  ;;  %v1848_v18 = vld [vmem:[#allocation2 + $0x4] sm:$0xff]   ;;  %v1876_v32 = vld [vmem:[#allocation2 + $0x10] ss:$0 sps:$4 sm:$0x11]   ;;  %v981_v34 = vshrl.u32 %v1875_v31, 16 }
  0x21   : > { %1612 = vmatpush3.bf16.msra.mxu0 %v1813_v22  ;;  %1706 = vmatprep.subr.bf16.mxu1 %v1904_v1  ;;  %v652_v5 = vor.u32 %v651_v0, %v647_v60  ;;  %v673_v19 = vsel %vm334_vm2, %v671_v14, %v672_v15  ;;  %v1852_v20 = vld [vmem:[%s2233_s2 + $0x200] sm:$0xff]   ;;  %v1854_v22 = vld [vmem:[%s2233_s2 + $0x1c8] sm:$0xff]   ;;  %v983_v35 = vshll.u32 %v1875_v31, 16  ;;  %v988_v36 = vshll.u32 %v1876_v32, 16 }
  0x22   : > { %1613 = vmatprep.subr.bf16.mxu0 %v1814_v25  ;;  %574 = vmatprep.mubr.bf16.mxu0 %v320_v44  ;;  %v1853_v21 = vld [vmem:[%s2233_s2 + $0x180] sm:$0xff]   ;;  %v1857_v25 = vld [vmem:[%s2233_s2 + $0x1d0] sm:$0xff]   ;;  %v1866_v41 = vld [vmem:[%s2233_s2 + $0x1e8] sm:$0xff]  }
  0x23   : > { %v657_v9 = vsel %vm308_vm1, %v652_v5, %v656_v3  ;;  %v1863_v33 = vld [vmem:[%s2233_s2 + $0x1e0] sm:$0xff]   ;;  %v985_v39 = vrot.slane %v983_v35, 1  ;;  %v1867_v43 = vld [vmem:[%s2233_s2 + $0x228] sm:$0xff]  }
  0x24   : > { %1707 = vmatpush3.bf16.msra.mxu1 %v1815_v26  ;;  %v1858_v26 = vld [vmem:[%s2233_s2 + $0x210] sm:$0xff]   ;;  %v1864_v37 = vld [vmem:[%s2233_s2 + $0x220] sm:$0xff]   ;;  %v1868_v44 = vld [vmem:[%s2233_s2 + $0x1a8] sm:$0xff]  }
  0x25   : > { %1614 = vmatpush3.bf16.msra.mxu0 %v1816_v27  ;;  %1712 = vmatprep.subr.bf16.mxu1 %v1904_v1  ;;  %v1859_v27 = vld [vmem:[%s2233_s2 + $0x190] sm:$0xff]   ;;  %v1879_v57 = vld [vmem:[#allocation2 + $0x8] sm:$0xff]  }
  0x26   : > { %1630 = vmatprep.subr.bf16.mxu0 %v1822_v28  ;;  %v1860_v28 = vld [vmem:[%s2233_s2 + $0x1d8] sm:$0xff]  }
  0x27   : > { %1709 = vmatmul.mubr.bf16.vlgmr.msra.gmra.mrb[0].mxu1 %v337_v45 }
  0x28   : > { %575 = vmatmul.mubr.bf16.vlgmr.msra.gmra.mrb[0].mxu0 %v1819_v42  ;;  %1713 = vmatpush3.bf16.msra.mxu1 %v1823_v38  ;;  %v1865_v38 = vld [vmem:[%s2233_s2 + $0x1a0] sm:$0xff]   ;;  %v986_v42 = vor.u32 %v985_v39, %v981_v34 }
  0x29   : > { %1631 = vmatpush3.bf16.msra.mxu0 %v1824_v40  ;;  %1714 = vmatprep.subr.bf16.mxu1 %v1904_v1  ;;  %v990_v40 = vrot.slane %v988_v36, 1 }
  0x2a   : > { %1632 = vmatprep.subr.bf16.mxu0 %v1825_v46  ;;  %1728 = vmatprep.mubr.msk.bf16.mxu1 %vm1905_vm0, %v1904_v1  ;;  %v1869_v46 = vld [vmem:[%s2233_s2 + $0x1f0] sm:$0xff]  }
  0x2b   : > { %904 = vmatprep.mubr.bf16.mxu0 %v657_v9  ;;  %v991_v45 = vsel %vm308_vm1, %v986_v42, %v990_v40 }
  0x2c   : > { %1715 = vmatpush3.bf16.msra.mxu1 %v1826_v47  ;;  %v1870_v47 = vld [vmem:[%s2233_s2 + $0x230] sm:$0xff]  }
  0x2d   : > { %1633 = vmatpush3.bf16.msra.mxu0 %v1827_v48  ;;  %1716 = vmatprep.subr.bf16.mxu1 %v1904_v1  ;;  %v1877_v48 = vld [vmem:[#allocation2 + $0x8] sm:$0xfe]  }
  0x2e   : > { %1634 = vmatprep.subr.bf16.mxu0 %v1828_v49  ;;  %v1878_v49 = vld [vmem:[#allocation2 + $0x10] ss:$0 sps:$4 sm:$0x11]  }
  0x30   : > { %1717 = vmatpush3.bf16.msra.mxu1 %v1829_v50  ;;  %v1871_v50 = vld [vmem:[%s2233_s2 + $0x1b0] sm:$0xff]  }
  0x31   : > { %1635 = vmatpush3.bf16.msra.mxu0 %v1830_v51  ;;  %1718 = vmatprep.subr.bf16.mxu1 %v1904_v1  ;;  %v1872_v51 = vld [vmem:[%s2233_s2 + $0x1f8] sm:$0xff]  }
  0x32   : > { %1636 = vmatprep.subr.bf16.mxu0 %v1831_v52  ;;  %v1873_v52 = vld [vmem:[%s2233_s2 + $0x238] sm:$0xff]  }
  0x34   : > { %1719 = vmatpush3.bf16.msra.mxu1 %v1832_v53  ;;  %v1005_v53 = vrot.slane %v1877_v48, 1 }
  0x35   : > { %1637 = vmatpush3.bf16.msra.mxu0 %v1833_v54  ;;  %1720 = vmatprep.subr.bf16.mxu1 %v1904_v1  ;;  %v1006_v54 = vrot.slane %v1878_v49, 1 }
  0x36   : > { %1638 = vmatprep.subr.bf16.mxu0 %v1834_v55  ;;  %v1874_v55 = vld [vmem:[%s2233_s2 + $0x1b8] sm:$0xff]  }
  0x38   : > { %1721 = vmatpush3.bf16.msra.mxu1 %v1835_v56  ;;  %v1007_v56 = vsel %vm334_vm2, %v1005_v53, %v1006_v54 }
  0x39   : > { %1639 = vmatpush3.bf16.msra.mxu0 %v1836_v58  ;;  %1722 = vmatprep.subr.bf16.mxu1 %v1904_v1 }
  0x3a   : > { %1640 = vmatprep.subr.bf16.mxu0 %v1837_v62 }
  0x3c   : > { %1723 = vmatpush3.bf16.msra.mxu1 %v1838_v2 }
  0x3d   : > { %1641 = vmatpush3.bf16.msra.mxu0 %v1839_v4  ;;  %1724 = vmatprep.subr.bf16.mxu1 %v1904_v1 }
  0x3e   : > { %1642 = vmatprep.subr.bf16.mxu0 %v1840_v6 }
  0x40   : > { %1725 = vmatpush3.bf16.msra.mxu1 %v1841_v8 }
  0x41   : > { %1643 = vmatpush3.bf16.msra.mxu0 %v1842_v11  ;;  %1726 = vmatprep.subr.bf16.mxu1 %v1904_v1 }
  0x42   : > { %1644 = vmatprep.subr.bf16.mxu0 %v1843_v12 }
  0x44   : > { %1727 = vmatpush3.bf16.msra.mxu1 %v1844_v13 }
  0x45   : > { %1645 = vmatpush3.bf16.msra.mxu0 %v1845_v16  ;;  %1732 = vmatprep.subr.bf16.mxu1 %v1904_v1 }
  0x46   : > { %1661 = vmatprep.subr.bf16.mxu0 %v1851_v17 }
  0x47   : > { %1729 = vmatmul.mubr.bf16.vlgmr.msra.gmra.mrb[0].mxu1 %v673_v19 }
  0x48   : > { %905 = vmatmul.mubr.bf16.vlgmr.msra.gmra.mrb[4].mxu0 %v1848_v18  ;;  %1733 = vmatpush3.bf16.msra.mxu1 %v1852_v20 }
  0x49   : > { %1662 = vmatpush3.bf16.msra.mxu0 %v1853_v21  ;;  %1734 = vmatprep.subr.bf16.mxu1 %v1904_v1 }
  0x4a   : > { %1663 = vmatprep.subr.bf16.mxu0 %v1854_v22  ;;  %1748 = vmatprep.mubr.msk.bf16.mxu1 %vm1905_vm0, %v1904_v1 }
  0x4b   : > { %1238 = vmatprep.mubr.bf16.mxu0 %v991_v45 }
  0x4c   : > { %1735 = vmatpush3.bf16.msra.mxu1 %v1855_v23 }
  0x4d   : > { %1664 = vmatpush3.bf16.msra.mxu0 %v1856_v24  ;;  %1736 = vmatprep.subr.bf16.mxu1 %v1904_v1 }
  0x4e   : > { %1665 = vmatprep.subr.bf16.mxu0 %v1857_v25 }
  0x50   : > { %1737 = vmatpush3.bf16.msra.mxu1 %v1858_v26 }
  0x51   : > { %1666 = vmatpush3.bf16.msra.mxu0 %v1859_v27  ;;  %1738 = vmatprep.subr.bf16.mxu1 %v1904_v1 }
  0x52   : > { %1667 = vmatprep.subr.bf16.mxu0 %v1860_v28 }
  0x54   : > { %1739 = vmatpush3.bf16.msra.mxu1 %v1861_v29 }
  0x55   : > { %1668 = vmatpush3.bf16.msra.mxu0 %v1862_v30  ;;  %1740 = vmatprep.subr.bf16.mxu1 %v1904_v1 }
  0x56   : > { %1669 = vmatprep.subr.bf16.mxu0 %v1863_v33 }
  0x58   : > { %1741 = vmatpush3.bf16.msra.mxu1 %v1864_v37 }
  0x59   : > { %1670 = vmatpush3.bf16.msra.mxu0 %v1865_v38  ;;  %1742 = vmatprep.subr.bf16.mxu1 %v1904_v1 }
  0x5a   : > { %1671 = vmatprep.subr.bf16.mxu0 %v1866_v41 }
  0x5c   : > { %1743 = vmatpush3.bf16.msra.mxu1 %v1867_v43 }
  0x5d   : > { %1672 = vmatpush3.bf16.msra.mxu0 %v1868_v44  ;;  %1744 = vmatprep.subr.bf16.mxu1 %v1904_v1 }
  0x5e   : > { %1673 = vmatprep.subr.bf16.mxu0 %v1869_v46 }
  0x60   : > { %1745 = vmatpush3.bf16.msra.mxu1 %v1870_v47 }
  0x61   : > { %1674 = vmatpush3.bf16.msra.mxu0 %v1871_v50  ;;  %1746 = vmatprep.subr.bf16.mxu1 %v1904_v1  ;;  %v1414_v1 = vld [vmem:[%s2234_s3] ss:$0 sm:$0xff] }
  0x62   : > { %1675 = vmatprep.subr.bf16.mxu0 %v1872_v51 }
  0x64   : > { %1747 = vmatpush3.bf16.msra.mxu1 %v1873_v52 }
  0x65   : > { %1676 = vmatpush3.bf16.msra.mxu0 %v1874_v55 }
  0x67   : > { %1749 = vmatmul.mubr.bf16.vlgmr.msra.gmra.mrb[0].mxu1 %v1007_v56 }
  0x68   : > { %1239 = vmatmul.mubr.bf16.vlgmr.msra.gmra.mrb[8].mxu0 %v1879_v57 }
  0xfb   : > { %v1615_v58 = vpop.f32.mrb[0].mxu0 }
  0xfc   : > { %v1616_v59 = vpop.f32.mrb[1].mxu0 }
  0xfd   : > { %v1617_v60 = vadd.f32 %v1616_v59, %v1615_v58  ;;  %v1618_v61 = vpop.f32.mrb[2].mxu0 }
  0xfe   : > { %v1619_v62 = vpop.f32.mrb[3].mxu0 }
  0xff   : > { %v1620_v63 = vadd.f32 %v1619_v62, %v1618_v61  ;;  %v577_v3 = vadd.f32 %v1617_v60, %v1414_v1 }
 0x101   : > { %v580_v7 = vadd.f32 %v1620_v63, %v1414_v1 }
 0x11b   : > { %v1646_v0 = vpop.f32.mrb[4].mxu0 }
 0x11c   : > { %v1647_v2 = vpop.f32.mrb[5].mxu0 }
 0x11d   : > { %v1648_v4 = vadd.f32 %v1647_v2, %v1646_v0  ;;  %v1649_v5 = vpop.f32.mrb[6].mxu0 }
 0x11e   : > { %v1650_v6 = vpop.f32.mrb[7].mxu0 }
 0x11f   : > { %v1752_v8 = vadd.f32 %v1648_v4, %v577_v3  ;;  %v1651_v9 = vadd.f32 %v1650_v6, %v1649_v5 }
 0x121   : > { %v1755_v10 = vadd.f32 %v1651_v9, %v580_v7 }
 0x13a   : > { %v1281_v11 = vpop.f32.mrb[0].mxu1 }
 0x13b   : > { %v1677_v12 = vpop.f32.mrb[8].mxu0  ;;  %v1750_v13 = vpop.f32.mrb[1].mxu1 }
 0x13c   : > { %v1678_v14 = vpop.f32.mrb[9].mxu0  ;;  %v1284_v15 = vpop.f32.mrb[2].mxu1 }
 0x13d   : > { %v1679_v16 = vadd.f32 %v1678_v14, %v1677_v12  ;;  %v1680_v17 = vpop.f32.mrb[10].mxu0  ;;  %v1751_v18 = vpop.f32.mrb[3].mxu1 }
 0x13e   : > { %v1681_v19 = vpop.f32.mrb[11].mxu0 }
 0x13f   : > { %v1753_v20 = vadd.f32 %v1752_v8, %v1679_v16  ;;  %v1682_v21 = vadd.f32 %v1681_v19, %v1680_v17 }
 0x141   : > { %v1754_v22 = vadd.f32 %v1753_v20, %v1281_v11  ;;  %v1756_v23 = vadd.f32 %v1755_v10, %v1682_v21 }
 0x143   : > { %v1296_v24 = vpack.c.bf16 %v1754_v22, %v1754_v22  ;;  %v1757_v25 = vadd.f32 %v1756_v23, %v1284_v15 }
 0x145   : > { %1298 = vst [vmem:[%s276_s22] sm:$0x1] %v1296_v24  ;;  %v1297_v26 = vpack.c.bf16 %v1757_v25, %v1757_v25 }
 0x147   : > { %1299 = vst [vmem:[%s276_s22 + $0x1] sm:$0x1] %v1297_v26 }
 0x148 PF: > { %s14_s17 = sadd.s32 1, %s1902_s17   ;;  %s2236_s15 = smov %s1898_s16 }
 0x149   : > { %p11_p5 = scmp.ge.s32.totalorder %s14_s17, 4   ;;  %s2237_s16 = smov %s2239_s18 }
 0x14b   :  { %13 = sbr.rel (!%p11_p5) target bundleno = 2 (0x2), region = 71 }

// kernel: run.15
= control target key start
LH: loop header
LB: loop body
LE: loop exit
PB: predicated region body
PF: predicated region fallthrough
CT: control target
= control target key end

     0   :  { %s1129_s12 = smov 0   ;;  %s1131_s13 = smov 0   ;;  %s1297_s0 = inlined_call_operand.vmem [shape: bf16[1,64,3], index: 0, kind: input, shape index: {}]   ;;  %s1298_s1 = inlined_call_operand.vmem [shape: bf16[1,3,512], index: 1, kind: input, shape index: {}]   ;;  %s1299_s2 = inlined_call_operand.vmem [shape: f32[1,512], index: 2, kind: input, shape index: {}]   ;;  %s1300_s3 = inlined_call_operand.vmem [shape: bf16[64,512], index: 3, kind: output, shape index: {}]  }
   0x1   :  { %s1133_s14 = smov 0   ;;  %s1135_s15 = smov 0  }
   0x2   :  { %s1137_s16 = smov 0  }
   0x3 LB: > { %s906_s17 = sadd.s32 4294967295, %s1104_s16   ;;  %s35_s18 = sadd.s32 1, %s1100_s15  ;;  %s1104_s16 = sphi %s1137_s16, %s13_s16   ;;  %s1100_s15 = sphi %s1135_s15, %s1305_s15   ;;  %s1096_s14 = sphi %s1133_s14, %s1304_s14   ;;  %s1092_s13 = sphi %s1131_s13, %s1303_s13   ;;  %s1088_s12 = sphi %s1129_s12, %s1302_s12  }
   0x4   : > { %p37_p0 = scmp.ge.s32.totalorder %s35_s18, 2  ;;  %s134_s19 = sadd.s32 1, %s1092_s13 }
   0x5   : > { %p144_p1 = scmp.ne.s32.totalorder %s1092_s13, %s1088_s12  ;;  %p145_p2 = scmp.eq.s32.totalorder %s906_s17, 1 }
   0x6   : > { %s1307_s18 = smov (%p37_p0, %s35_s18), 0  ;;  %p911_p4 = scmp.ge.s32.totalorder %s1104_s16, 1 }
   0x7   : > { %p1161_p3 = por %p145_p2, %p144_p1  ;;  %s130_s21 = ssub.s32 %s1100_s15, %s1307_s18 }
   0x8   : > { %p210_p5 = scmp.lt.s32.totalorder %s1104_s16, 3  ;;  %p132_p6 = scmp.eq.s32.totalorder %s130_s21, 0 }
   0xa   : > { %p211_p7 = pnand %p911_p4, %p210_p5 }
   0xb   : > { %s1170_s22 = scalar_select %p132_p6, %s1092_s13, %s134_s19  }
   0xc   : > { %214 = sbr.rel (%p211_p7) target bundleno = 194 (0xc2), region = 32  ;;  %v955_v0 = vld [vmem:[%s1297_s0 + $0x10] sm:$0xff] (!%p211_p7)   ;;  %v939_v1 = vld [vmem:[%s1297_s0] sm:$0xff] (!%p211_p7)   ;;  %v956_v2 = vld [vmem:[%s1297_s0 + $0x18] sm:$0xff] (!%p211_p7)   ;;  %v1106_v3 = vmov (!%p211_p7), 0   ;;  %v1107_v17 = vmov (!%p211_p7), 1   ;;  %v388_v19 = vlaneseq (!%p211_p7) }
   0xd   : > { %1011 = vset.pattern.permute.xlu1 (!%p211_p7), %v1106_v3  ;;  %1000 = vset.pattern.permute.xlu0 (!%p211_p7), %v1106_v3  ;;  %v948_v4 = vunpack.c.l.bf16 (!%p211_p7), %v955_v0  ;;  %v949_v5 = vunpack.c.h.bf16 (!%p211_p7), %v955_v0  ;;  %v940_v6 = vunpack.c.l.bf16 (!%p211_p7), %v939_v1  ;;  %v941_v7 = vunpack.c.h.bf16 (!%p211_p7), %v939_v1  ;;  %v954_v8 = vld [vmem:[%s1297_s0 + $0x8] sm:$0xff] (!%p211_p7)   ;;  %s913_s4 = sshll.u32 (!%p211_p7), %s1096_s14, 1  ;;  %s254_s17 = sand.u32 (!%p211_p7), 1, %s1088_s12  }
   0xe   : > { %v952_v9 = vunpack.c.l.bf16 (!%p211_p7), %v956_v2  ;;  %v953_v10 = vunpack.c.h.bf16 (!%p211_p7), %v956_v2  ;;  %v944_v11 = vunpack.c.l.bf16 (!%p211_p7), %v954_v8  ;;  %v945_v12 = vunpack.c.h.bf16 (!%p211_p7), %v954_v8  ;;  %p275_p8 = scmp.lt.s32.totalorder (!%p211_p7), %s913_s4, 3  ;;  %s912_s19 = sshll.u32 (!%p211_p7), %s254_s17, 6 }
   0xf   : > { %v1012_v13 = vpack.i.bf16 (!%p211_p7), %v949_v5, %v948_v4  ;;  %v1001_v14 = vpack.i.bf16 (!%p211_p7), %v941_v7, %v940_v6  ;;  %v1108_v18 = vmov (!%p211_p7), 2   ;;  %v389_v20 = vshrl.u32 (!%p211_p7), %v388_v19, 7  ;;  %s1244_s12 = scalar_lea.vmem (!%p211_p7), [#allocation3], %s912_s19 }
  0x10   : > { %v1017_v15 = vpack.i.bf16 (!%p211_p7), %v953_v10, %v952_v9  ;;  %v1006_v16 = vpack.i.bf16 (!%p211_p7), %v945_v12, %v944_v11 }
  0x11   : > { %1013 = vperm.xlu1 (!%p211_p7), %1011, %v1012_v13   ;;  %1002 = vperm.xlu0 (!%p211_p7), %1000, %v1001_v14   ;;  %v390_v22 = vsub.s32 (!%p211_p7), 0, %v389_v20  ;;  %v394_v23 = vsub.s32 (!%p211_p7), 4, %v389_v20  ;;  %v472_v25 = vsub.s32 (!%p211_p7), 1, %v389_v20  ;;  %v476_v26 = vsub.s32 (!%p211_p7), 5, %v389_v20 }
  0x12   : > { %v554_v27 = vsub.s32 (!%p211_p7), 2, %v389_v20  ;;  %v558_v28 = vsub.s32 (!%p211_p7), 6, %v389_v20 }
  0x13   : > { %s1309_s4 = smov (!%p275_p8, %s913_s4), 3  ;;  %s937_s21 = sshll.u32 (%p1161_p3), %s1096_s14, 3 }
  0x14   : > { %s914_s5 = sshll.u32 %s1309_s4, 1  ;;  %s287_s11 = scalar_lea.vmem %s1299_s2, %s1309_s4 }
  0x15   : > { %1018 = vperm.xlu1 %1011, %v1017_v15   ;;  %1007 = vperm.xlu0 %1000, %v1006_v16   ;;  %s282_s8 = scalar_lea.vmem %s1298_s1, %s914_s5  ;;  %v636_v42 = vld [vmem:[%s287_s11] sm:$0x3]  ;;  %s732_s25 = scalar_lea.vmem (%p1161_p3), %s1300_s3, %s937_s21 }
  0x16   : > { %v329_v21 = vld [vmem:[%s282_s8] sm:$0xf]  ;;  %v1199_v50 = vrot.slane %v636_v42, %v390_v22  ;;  %v1201_v51 = vrot.slane %v636_v42, %v472_v25 }
  0x17   : > { %v330_v24 = vunpack.c.l.bf16 %v329_v21 }
  0x19   : > { %1028 = vset.pattern.permute.xlu1 %v1107_v17  ;;  %1022 = vset.pattern.permute.xlu0 %v1107_v17  ;;  %v391_v30 = vrot.slane %v330_v24, %v390_v22  ;;  %v395_v31 = vrot.slane %v330_v24, %v394_v23  ;;  %v473_v33 = vrot.slane %v330_v24, %v472_v25 }
  0x1a   : > { %1030 = vperm.xlu1 %1028, %v1006_v16   ;;  %1024 = vperm.xlu0 %1022, %v1001_v14   ;;  %v477_v34 = vrot.slane %v330_v24, %v476_v26  ;;  %v555_v35 = vrot.slane %v330_v24, %v554_v27  ;;  %v559_v36 = vrot.slane %v330_v24, %v558_v28 }
  0x1b   : > { %v401_v38 = vrot.slane %v391_v30, %v390_v22  ;;  %v405_v39 = vrot.slane %v395_v31, %v390_v22  ;;  %v1191_v45 = vrot.slane %v473_v33, %v472_v25 }
  0x1c   : > { %v1193_v46 = vrot.slane %v477_v34, %v472_v25  ;;  %v1195_v47 = vrot.slane %v555_v35, %v554_v27  ;;  %v1197_v49 = vrot.slane %v559_v36, %v554_v27 }
  0x1e   : > { %1035 = vperm.xlu1 %1028, %v1012_v13   ;;  %1040 = vperm.xlu0 %1022, %v1017_v15  }
  0x22   : > { %1044 = vset.pattern.permute.xlu1 %v1108_v18  ;;  %1050 = vset.pattern.permute.xlu0 %v1108_v18 }
  0x23   : > { %1046 = vperm.xlu1 %1044, %v1001_v14   ;;  %1052 = vperm.xlu0 %1050, %v1006_v16  }
  0x27   : > { %1057 = vperm.xlu1 %1044, %v1012_v13  }
  0x2b   : > { %1062 = vperm.xlu1 %1044, %v1017_v15  }
  0x90   : > { %v1014_v29 = vpop.permute.xlu1 %1013  ;;  %v1003_v32 = vpop.permute.xlu0 %1002 }
  0x91   : > { %v1015_v37 = vunpack.i.l.bf16 %v1014_v29  ;;  %v1016_v43 = vunpack.i.h.bf16 %v1014_v29  ;;  %v1004_v44 = vunpack.i.l.bf16 %v1003_v32  ;;  %v1005_v48 = vunpack.i.h.bf16 %v1003_v32 }
  0x93   : > { %v414_v52 = vmul.f32 %v1015_v37, %v401_v38  ;;  %v415_v53 = vmul.f32 %v1015_v37, %v405_v39  ;;  %v416_v56 = vmul.f32 %v1016_v43, %v401_v38  ;;  %v417_v57 = vmul.f32 %v1016_v43, %v405_v39 }
  0x94   : > { %v1019_v40 = vpop.permute.xlu1 %1018  ;;  %v1008_v41 = vpop.permute.xlu0 %1007  ;;  %v406_v58 = vmul.f32 %v1004_v44, %v401_v38  ;;  %v407_v59 = vmul.f32 %v1004_v44, %v405_v39  ;;  %v408_v2 = vmul.f32 %v1005_v48, %v401_v38  ;;  %v409_v3 = vmul.f32 %v1005_v48, %v405_v39 }
  0x95   : > { %v1010_v54 = vunpack.i.h.bf16 %v1008_v41  ;;  %v1009_v55 = vunpack.i.l.bf16 %v1008_v41  ;;  %v1021_v62 = vunpack.i.h.bf16 %v1019_v40  ;;  %v1020_v63 = vunpack.i.l.bf16 %v1019_v40 }
  0x97   : > { %v410_v6 = vmul.f32 %v1009_v55, %v401_v38  ;;  %v411_v7 = vmul.f32 %v1009_v55, %v405_v39  ;;  %v412_v8 = vmul.f32 %v1010_v54, %v401_v38  ;;  %v413_v9 = vmul.f32 %v1010_v54, %v405_v39 }
  0x98   : > { %v418_v16 = vmul.f32 %v1020_v63, %v401_v38  ;;  %v419_v17 = vmul.f32 %v1020_v63, %v405_v39  ;;  %v1207_v18 = vmul.f32 %v1021_v62, %v401_v38  ;;  %v1209_v19 = vmul.f32 %v1021_v62, %v405_v39 }
  0x99   : > { %v1031_v60 = vpop.permute.xlu1 %1030  ;;  %v1025_v61 = vpop.permute.xlu0 %1024 }
  0x9a   : > { %v1033_v0 = vunpack.i.h.bf16 %v1031_v60  ;;  %v1032_v1 = vunpack.i.l.bf16 %v1031_v60  ;;  %v1027_v4 = vunpack.i.h.bf16 %v1025_v61  ;;  %v1026_v5 = vunpack.i.l.bf16 %v1025_v61 }
  0x9c   : > { %v492_v10 = vmul.f32 %v1032_v1, %v1191_v45  ;;  %v493_v11 = vmul.f32 %v1032_v1, %v1193_v46  ;;  %v494_v12 = vmul.f32 %v1033_v0, %v1191_v45  ;;  %v495_v13 = vmul.f32 %v1033_v0, %v1193_v46 }
  0x9d   : > { %v1036_v14 = vpop.permute.xlu1 %1035  ;;  %v1041_v15 = vpop.permute.xlu0 %1040  ;;  %v488_v20 = vmul.f32 %v1026_v5, %v1191_v45  ;;  %v489_v21 = vmul.f32 %v1026_v5, %v1193_v46  ;;  %v490_v22 = vmul.f32 %v1027_v4, %v1191_v45  ;;  %v491_v23 = vmul.f32 %v1027_v4, %v1193_v46 }
  0x9e   : > { %v1038_v24 = vunpack.i.h.bf16 %v1036_v14  ;;  %v1037_v25 = vunpack.i.l.bf16 %v1036_v14  ;;  %v1043_v26 = vunpack.i.h.bf16 %v1041_v15  ;;  %v1042_v27 = vunpack.i.l.bf16 %v1041_v15 }
  0x9f   : > { %v508_v28 = vadd.f32 %v492_v10, %v410_v6  ;;  %v509_v29 = vadd.f32 %v493_v11, %v411_v7  ;;  %v510_v30 = vadd.f32 %v494_v12, %v412_v8  ;;  %v511_v31 = vadd.f32 %v495_v13, %v413_v9 }
  0xa0   : > { %v496_v32 = vmul.f32 %v1037_v25, %v1191_v45  ;;  %v497_v33 = vmul.f32 %v1037_v25, %v1193_v46  ;;  %v498_v34 = vmul.f32 %v1038_v24, %v1191_v45  ;;  %v499_v35 = vmul.f32 %v1038_v24, %v1193_v46 }
  0xa1   : > { %v504_v37 = vadd.f32 %v488_v20, %v406_v58  ;;  %v505_v38 = vadd.f32 %v489_v21, %v407_v59  ;;  %v500_v39 = vmul.f32 %v1042_v27, %v1191_v45  ;;  %v501_v40 = vmul.f32 %v1042_v27, %v1193_v46 }
  0xa2   : > { %v1047_v36 = vpop.permute.xlu1 %1046  ;;  %v1053_v41 = vpop.permute.xlu0 %1052  ;;  %v506_v42 = vadd.f32 %v490_v22, %v408_v2  ;;  %v507_v43 = vadd.f32 %v491_v23, %v409_v3  ;;  %v502_v44 = vmul.f32 %v1043_v26, %v1191_v45  ;;  %v503_v48 = vmul.f32 %v1043_v26, %v1193_v46 }
  0xa3   : > { %v512_v54 = vadd.f32 %v496_v32, %v414_v52  ;;  %v513_v55 = vadd.f32 %v497_v33, %v415_v53  ;;  %v514_v60 = vadd.f32 %v498_v34, %v416_v56  ;;  %v515_v61 = vadd.f32 %v499_v35, %v417_v57 }
  0xa4   : > { %v1049_v62 = vunpack.i.h.bf16 %v1047_v36  ;;  %v1048_v63 = vunpack.i.l.bf16 %v1047_v36  ;;  %v1055_v58 = vunpack.i.h.bf16 %v1053_v41  ;;  %v1054_v59 = vunpack.i.l.bf16 %v1053_v41 }
  0xa5   : > { %v516_v1 = vadd.f32 %v500_v39, %v418_v16  ;;  %v517_v4 = vadd.f32 %v501_v40, %v419_v17  ;;  %v519_v39 = vadd.f32 %v503_v48, %v1209_v19 }
  0xa6   : > { %v1058_v0 = vpop.permute.xlu1 %1057  ;;  %v570_v2 = vmul.f32 %v1048_v63, %v1195_v47  ;;  %v571_v45 = vmul.f32 %v1048_v63, %v1197_v49  ;;  %v572_v46 = vmul.f32 %v1049_v62, %v1195_v47  ;;  %v573_v52 = vmul.f32 %v1049_v62, %v1197_v49 }
  0xa7   : > { %v1060_v5 = vunpack.i.h.bf16 %v1058_v0  ;;  %v1059_v6 = vunpack.i.l.bf16 %v1058_v0  ;;  %v574_v53 = vmul.f32 %v1054_v59, %v1195_v47  ;;  %v575_v56 = vmul.f32 %v1054_v59, %v1197_v49 }
  0xa8   : > { %v576_v57 = vmul.f32 %v1055_v58, %v1195_v47  ;;  %v577_v3 = vmul.f32 %v1055_v58, %v1197_v49  ;;  %v586_v7 = vadd.f32 %v570_v2, %v504_v37  ;;  %v587_v8 = vadd.f32 %v571_v45, %v505_v38 }
  0xa9   : > { %v588_v9 = vadd.f32 %v572_v46, %v506_v42  ;;  %v589_v10 = vadd.f32 %v573_v52, %v507_v43  ;;  %v590_v11 = vadd.f32 %v574_v53, %v508_v28  ;;  %v591_v12 = vadd.f32 %v575_v56, %v509_v29 }
  0xaa   : > { %v592_v13 = vadd.f32 %v576_v57, %v510_v30  ;;  %v593_v14 = vadd.f32 %v577_v3, %v511_v31  ;;  %v648_v15 = vadd.f32 %v1199_v50, %v586_v7  ;;  %v649_v16 = vadd.f32 %v1201_v51, %v587_v8  ;;  %v1063_v25 = vpop.permute.xlu1 %1062 }
  0xab   : > { %v650_v17 = vadd.f32 %v1199_v50, %v588_v9  ;;  %v651_v20 = vadd.f32 %v1201_v51, %v589_v10  ;;  %v652_v21 = vadd.f32 %v1199_v50, %v590_v11  ;;  %v653_v22 = vadd.f32 %v1201_v51, %v591_v12 }
  0xac   : > { %v654_v23 = vadd.f32 %v1199_v50, %v592_v13  ;;  %v655_v24 = vadd.f32 %v1201_v51, %v593_v14  ;;  %v929_v26 = vpack.c.bf16 %v649_v16, %v648_v15  ;;  %v578_v28 = vmul.f32 %v1059_v6, %v1195_v47 }
  0xad   : > { %v930_v27 = vpack.c.bf16 %v651_v20, %v650_v17  ;;  %v579_v29 = vmul.f32 %v1059_v6, %v1197_v49  ;;  %v931_v30 = vpack.c.bf16 %v653_v22, %v652_v21  ;;  %v580_v32 = vmul.f32 %v1060_v5, %v1195_v47 }
  0xae   : > { %v932_v31 = vpack.c.bf16 %v655_v24, %v654_v23  ;;  %v581_v33 = vmul.f32 %v1060_v5, %v1197_v49  ;;  %712 = vst [vmem:[%s1244_s12] sm:$0xff] %v929_v26  ;;  %v594_v34 = vadd.f32 %v578_v28, %v512_v54  ;;  %v1065_v36 = vunpack.i.h.bf16 %v1063_v25 }
  0xaf   : > { %713 = vst [vmem:[%s1244_s12 + $0x8] sm:$0xff] %v930_v27  ;;  %v595_v35 = vadd.f32 %v579_v29, %v513_v55  ;;  %v1064_v37 = vunpack.i.l.bf16 %v1063_v25  ;;  %v518_v38 = vadd.f32 %v502_v44, %v1207_v18  ;;  %714 = vst [vmem:[%s1244_s12 + $0x10] sm:$0xff] %v931_v30  ;;  %v596_v40 = vadd.f32 %v580_v32, %v514_v60 }
  0xb0   : > { %715 = vst [vmem:[%s1244_s12 + $0x18] sm:$0xff] %v932_v31  ;;  %v597_v41 = vadd.f32 %v581_v33, %v515_v61  ;;  %v656_v42 = vadd.f32 %v1199_v50, %v594_v34  ;;  %v584_v19 = vmul.f32 %v1065_v36, %v1195_v47  ;;  %v585_v44 = vmul.f32 %v1065_v36, %v1197_v49 }
  0xb1   : > { %v657_v43 = vadd.f32 %v1201_v51, %v595_v35  ;;  %v582_v62 = vmul.f32 %v1064_v37, %v1195_v47  ;;  %v583_v54 = vmul.f32 %v1064_v37, %v1197_v49  ;;  %v658_v55 = vadd.f32 %v1199_v50, %v596_v40 }
  0xb2   : > { %v659_v18 = vadd.f32 %v1201_v51, %v597_v41  ;;  %v600_v58 = vadd.f32 %v584_v19, %v518_v38  ;;  %v601_v59 = vadd.f32 %v585_v44, %v519_v39 }
  0xb3   : > { %v933_v48 = vpack.c.bf16 %v657_v43, %v656_v42  ;;  %v598_v60 = vadd.f32 %v582_v62, %v516_v1  ;;  %v599_v61 = vadd.f32 %v583_v54, %v517_v4  ;;  %726 = sbr.rel (!%p1161_p3) target bundleno = 194 (0xc2), region = 44 }
  0xb4   : > { %v934_v63 = vpack.c.bf16 %v659_v18, %v658_v55  ;;  %v662_v6 = vadd.f32 %v1199_v50, %v600_v58  ;;  %v663_v47 = vadd.f32 %v1201_v51, %v601_v59 }
  0xb5   : > { %716 = vst [vmem:[%s1244_s12 + $0x20] sm:$0xff] %v933_v48  ;;  %v660_v0 = vadd.f32 %v1199_v50, %v598_v60  ;;  %v661_v5 = vadd.f32 %v1201_v51, %v599_v61  ;;  %v774_v49 = vld [vmem:[%s1244_s12] sm:$0xff] (%p1161_p3) }
  0xb6   : > { %717 = vst [vmem:[%s1244_s12 + $0x28] sm:$0xff] %v934_v63  ;;  %v936_v45 = vpack.c.bf16 %v663_v47, %v662_v6  ;;  %v776_v50 = vld [vmem:[%s1244_s12 + $0x8] sm:$0xff] (%p1161_p3)  ;;  %v778_v51 = vld [vmem:[%s1244_s12 + $0x10] sm:$0xff] (%p1161_p3)  ;;  %775 = vst [vmem:[%s732_s25] sm:$0xff] (%p1161_p3), %v774_v49 }
  0xb7   : > { %v935_v2 = vpack.c.bf16 %v661_v5, %v660_v0  ;;  %v780_v1 = vld [vmem:[%s1244_s12 + $0x18] sm:$0xff] (%p1161_p3)  ;;  %777 = vst [vmem:[%s732_s25 + $0x10] sm:$0xff] (%p1161_p3), %v776_v50  ;;  %779 = vst [vmem:[%s732_s25 + $0x20] sm:$0xff] (%p1161_p3), %v778_v51 }
  0xb8   : > { %719 = vst [vmem:[%s1244_s12 + $0x38] sm:$0xff] %v936_v45  ;;  %781 = vst [vmem:[%s732_s25 + $0x30] sm:$0xff] (%p1161_p3), %v780_v1 }
  0xb9   : > { %718 = vst [vmem:[%s1244_s12 + $0x30] sm:$0xff] %v935_v2 }
  0xbc   : > { %v782_v4 = vld [vmem:[%s1244_s12 + $0x20] sm:$0xff] }
  0xbd   : > { %v784_v46 = vld [vmem:[%s1244_s12 + $0x28] sm:$0xff]  ;;  %783 = vst [vmem:[%s732_s25 + $0x40] sm:$0xff] %v782_v4 }
  0xbe   : > { %785 = vst [vmem:[%s732_s25 + $0x50] sm:$0xff] %v784_v46 }
  0xbf   : > { %v788_v53 = vld [vmem:[%s1244_s12 + $0x38] sm:$0xff] }
  0xc0   : > { %v786_v52 = vld [vmem:[%s1244_s12 + $0x30] sm:$0xff]  ;;  %789 = vst [vmem:[%s732_s25 + $0x70] sm:$0xff] %v788_v53 }
  0xc1   : > { %787 = vst [vmem:[%s732_s25 + $0x60] sm:$0xff] %v786_v52 }
  0xc2 PF: > { %s13_s16 = sadd.s32 1, %s1104_s16   ;;  %s1302_s12 = smov %s1092_s13 }
  0xc3   : > { %p10_p9 = scmp.ge.s32.totalorder %s13_s16, 4   ;;  %s1303_s13 = smov %s1170_s22 }
  0xc4   : > { %s1304_s14 = smov %s1100_s15  ;;  %s1305_s15 = smov %s1307_s18 }
  0xc5   :  { %12 = sbr.rel (!%p10_p9) target bundleno = 3 (0x3), region = 114 }

// kernel: run.21
= control target key start
LH: loop header
LB: loop body
LE: loop exit
PB: predicated region body
PF: predicated region fallthrough
CT: control target
= control target key end

     0   :  { %s1139_s12 = smov 0   ;;  %s1141_s13 = smov 0   ;;  %s1233_s0 = inlined_call_operand.vmem [shape: bf16[2,32,512], index: 0, kind: input, shape index: {}]   ;;  %s1234_s1 = inlined_call_operand.vmem [shape: bf16[2,512,128], index: 1, kind: input, shape index: {}]   ;;  %s1235_s2 = inlined_call_operand.vmem [shape: f32[1,128], index: 2, kind: input, shape index: {}]   ;;  %s1236_s3 = inlined_call_operand.vmem [shape: bf16[32,128], index: 3, kind: output, shape index: {}]  }
   0x1   :  { %s1143_s14 = smov 0  }
   0x2 LB: > { %s31_s15 = sadd.s32 1, %s1112_s13  ;;  %p894_p0 = scmp.ge.s32.totalorder %s1116_s14, 1  ;;  %s1116_s14 = sphi %s1143_s14, %s13_s14   ;;  %s1112_s13 = sphi %s1141_s13, %s1238_s13   ;;  %s1108_s12 = sphi %s1139_s12, %s1237_s12  }
   0x3   : > { %p33_p1 = scmp.ge.s32.totalorder %s31_s15, 2  ;;  %p210_p2 = scmp.lt.s32.totalorder %s1116_s14, 3 }
   0x5   : > { %s1240_s15 = smov (%p33_p1, %s31_s15), 0  ;;  %p211_p3 = pnand %p894_p0, %p210_p2 }
   0x6   : > { %p263_p4 = scmp.lt.s32.totalorder (!%p211_p3), %s1108_s12, 1  ;;  %p303_p5 = scmp.eq.s32.totalorder (!%p211_p3), %s1108_s12, 0 }
   0x7   : > { %214 = sbr.rel (%p211_p3) target bundleno = 299 (0x12b), region = 32 }
   0xe   : > { %s264_s16 = scalar_select %p263_p4, %s1108_s12, 1 }
   0xf   : > { %308 = sbr.rel (!%p303_p5) target bundleno = 22 (0x16), region = 36  ;;  %v1118_v0 = vmov (%p303_p5), 0.0  }
  0x10   : > { %s950_s17 = sshll.u32 %s264_s16, 6  ;;  %s951_s18 = sshll.u32 %s264_s16, 8  ;;  %309 = vst [vmem:[#allocation2] sm:$0xff] (%p303_p5), %v1118_v0  ;;  %310 = vst [vmem:[#allocation2 + $0x8] sm:$0xff] (%p303_p5), %v1118_v0 }
  0x11   : > { %s1165_s21 = scalar_lea.vmem %s1233_s0, %s950_s17  ;;  %s1170_s24 = scalar_lea.vmem %s1234_s1, %s951_s18  ;;  %311 = vst [vmem:[#allocation2 + $0x10] sm:$0xff] (%p303_p5), %v1118_v0  ;;  %312 = vst [vmem:[#allocation2 + $0x18] sm:$0xff] (%p303_p5), %v1118_v0 }
  0x16 PF: > { %v1050_v1 = vld [vmem:[%s1170_s24 + $0x40] sm:$0xff]   ;;  %v1054_v5 = vld [vmem:[%s1170_s24 + $0x48] sm:$0xff]   ;;  %v1058_v9 = vld [vmem:[%s1170_s24 + $0x50] sm:$0xff]   ;;  %p727_p6 = scmp.eq.s32.totalorder %s1108_s12, 1 }
  0x17   : > { %v1051_v2 = vld [vmem:[%s1170_s24 + $0xc0] sm:$0xff]   ;;  %969 = vmatprep.subr.bf16.mxu0 %v1050_v1  ;;  %v1055_v6 = vld [vmem:[%s1170_s24 + $0xc8] sm:$0xff]   ;;  %v1059_v10 = vld [vmem:[%s1170_s24 + $0xd0] sm:$0xff]  }
  0x18   : > { %v1052_v3 = vld [vmem:[%s1170_s24] sm:$0xff]   ;;  %997 = vmatprep.subr.bf16.mxu1 %v1051_v2  ;;  %v1056_v7 = vld [vmem:[%s1170_s24 + $0x8] sm:$0xff]   ;;  %v1060_v11 = vld [vmem:[%s1170_s24 + $0x10] sm:$0xff]  }
  0x19   : > { %v1053_v4 = vld [vmem:[%s1170_s24 + $0x80] sm:$0xff]   ;;  %970 = vmatpush3.bf16.msra.mxu0 %v1052_v3  ;;  %v1057_v8 = vld [vmem:[%s1170_s24 + $0x88] sm:$0xff]   ;;  %v1061_v12 = vld [vmem:[%s1170_s24 + $0x90] sm:$0xff]  }
  0x1a   : > { %998 = vmatpush3.bf16.msra.mxu1 %v1053_v4  ;;  %971 = vmatprep.subr.bf16.mxu0 %v1054_v5  ;;  %v1062_v13 = vld [vmem:[%s1170_s24 + $0x58] sm:$0xff]   ;;  %v1066_v17 = vld [vmem:[%s1170_s24 + $0x60] sm:$0xff]   ;;  %v1070_v21 = vld [vmem:[%s1170_s24 + $0x68] sm:$0xff]  }
  0x1b   : > { %999 = vmatprep.subr.bf16.mxu1 %v1055_v6  ;;  %v1063_v14 = vld [vmem:[%s1170_s24 + $0xd8] sm:$0xff]   ;;  %v1067_v18 = vld [vmem:[%s1170_s24 + $0xe0] sm:$0xff]   ;;  %v1071_v22 = vld [vmem:[%s1170_s24 + $0xe8] sm:$0xff]  }
  0x1c   : > { %v1064_v15 = vld [vmem:[%s1170_s24 + $0x18] sm:$0xff]   ;;  %v1068_v19 = vld [vmem:[%s1170_s24 + $0x20] sm:$0xff]   ;;  %v1072_v23 = vld [vmem:[%s1170_s24 + $0x28] sm:$0xff]  }
  0x1d   : > { %972 = vmatpush3.bf16.msra.mxu0 %v1056_v7  ;;  %v1065_v16 = vld [vmem:[%s1170_s24 + $0x98] sm:$0xff]   ;;  %v1069_v20 = vld [vmem:[%s1170_s24 + $0xa0] sm:$0xff]   ;;  %v1073_v24 = vld [vmem:[%s1170_s24 + $0xa8] sm:$0xff]  }
  0x1e   : > { %1000 = vmatpush3.bf16.msra.mxu1 %v1057_v8  ;;  %973 = vmatprep.subr.bf16.mxu0 %v1058_v9  ;;  %v1074_v25 = vld [vmem:[%s1170_s24 + $0x70] sm:$0xff]   ;;  %v1078_v29 = vld [vmem:[%s1170_s24 + $0x78] sm:$0xff]   ;;  %v313_v50 = vld [vmem:[#allocation2] sm:$0xff] }
  0x1f   : > { %1001 = vmatprep.subr.bf16.mxu1 %v1059_v10  ;;  %v1075_v26 = vld [vmem:[%s1170_s24 + $0xf0] sm:$0xff]   ;;  %v1079_v30 = vld [vmem:[%s1170_s24 + $0xf8] sm:$0xff]   ;;  %v314_v55 = vld [vmem:[#allocation2 + $0x8] sm:$0xff] }
  0x20   : > { %v1076_v27 = vld [vmem:[%s1170_s24 + $0x30] sm:$0xff]   ;;  %v1080_v31 = vld [vmem:[%s1170_s24 + $0x38] sm:$0xff]  }
  0x21   : > { %974 = vmatpush3.bf16.msra.mxu0 %v1060_v11  ;;  %v1077_v28 = vld [vmem:[%s1170_s24 + $0xb0] sm:$0xff]   ;;  %v1081_v32 = vld [vmem:[%s1170_s24 + $0xb8] sm:$0xff]  }
  0x22   : > { %1002 = vmatpush3.bf16.msra.mxu1 %v1061_v12  ;;  %975 = vmatprep.subr.bf16.mxu0 %v1062_v13  ;;  %v1082_v33 = vld [vmem:[%s1165_s21] ss:$16 sps:$4 sm:$0xff]   ;;  %v1084_v34 = vld [vmem:[%s1165_s21 + $0x4] ss:$16 sps:$4 sm:$0xff]   ;;  %v1085_v35 = vld [vmem:[%s1165_s21 + $0x8] ss:$16 sps:$4 sm:$0xff]  }
  0x23   : > { %1003 = vmatprep.subr.bf16.mxu1 %v1063_v14  ;;  %v1087_v36 = vld [vmem:[%s1165_s21 + $0xc] ss:$16 sps:$4 sm:$0xff]   ;;  %653 = vmatprep.mubr.bf16.mxu0 %v1084_v34  ;;  %v1088_v37 = vld [vmem:[%s1165_s21 + $0x24] ss:$16 sps:$4 sm:$0xff]   ;;  %v1092_v39 = vld [vmem:[%s1165_s21 + $0x20] ss:$16 sps:$4 sm:$0xff]  }
  0x24   : > { %702 = vmatprep.mubr.bf16.mxu1 %v1087_v36  ;;  %v1090_v38 = vld [vmem:[%s1165_s21 + $0x2c] ss:$16 sps:$4 sm:$0xff]   ;;  %v1093_v40 = vld [vmem:[%s1165_s21 + $0x28] ss:$16 sps:$4 sm:$0xff]   ;;  %v315_v4 = vld [vmem:[#allocation2 + $0x10] sm:$0xff] }
  0x25   : > { %976 = vmatpush3.bf16.msra.mxu0 %v1064_v15  ;;  %v316_v9 = vld [vmem:[#allocation2 + $0x18] sm:$0xff]  ;;  %v941_v15 = vld [vmem:[%s1235_s2] ss:$0 sm:$0xff] (%p727_p6) }
  0x26   : > { %1004 = vmatpush3.bf16.msra.mxu1 %v1065_v16  ;;  %977 = vmatprep.subr.bf16.mxu0 %v1066_v17 }
  0x27   : > { %1005 = vmatprep.subr.bf16.mxu1 %v1067_v18 }
  0x29   : > { %978 = vmatpush3.bf16.msra.mxu0 %v1068_v19 }
  0x2a   : > { %1006 = vmatpush3.bf16.msra.mxu1 %v1069_v20  ;;  %979 = vmatprep.subr.bf16.mxu0 %v1070_v21 }
  0x2b   : > { %1007 = vmatprep.subr.bf16.mxu1 %v1071_v22 }
  0x2d   : > { %980 = vmatpush3.bf16.msra.mxu0 %v1072_v23 }
  0x2e   : > { %1008 = vmatpush3.bf16.msra.mxu1 %v1073_v24  ;;  %981 = vmatprep.subr.bf16.mxu0 %v1074_v25 }
  0x2f   : > { %1009 = vmatprep.subr.bf16.mxu1 %v1075_v26 }
  0x31   : > { %982 = vmatpush3.bf16.msra.mxu0 %v1076_v27 }
  0x32   : > { %1010 = vmatpush3.bf16.msra.mxu1 %v1077_v28  ;;  %983 = vmatprep.subr.bf16.mxu0 %v1078_v29 }
  0x33   : > { %1011 = vmatprep.subr.bf16.mxu1 %v1079_v30 }
  0x35   : > { %984 = vmatpush3.bf16.msra.mxu0 %v1080_v31 }
  0x36   : > { %1012 = vmatpush3.bf16.msra.mxu1 %v1081_v32 }
  0x38   : > { %654 = vmatmul.mubr.bf16.vlgmr.msra.gmra.mrb[0].mxu0 %v1082_v33 }
  0x39   : > { %703 = vmatmul.mubr.bf16.vlgmr.msra.gmra.mrb[0].mxu1 %v1085_v35  ;;  %661 = vmatprep.mubr.bf16.mxu0 %v1088_v37 }
  0x3a   : > { %710 = vmatprep.mubr.bf16.mxu1 %v1090_v38 }
  0x40   : > { %662 = vmatmul.mubr.bf16.gmra.mrb[4].mxu0 %v1092_v39 }
  0x41   : > { %711 = vmatmul.mubr.bf16.gmra.mrb[4].mxu1 %v1093_v40 }
 0x10b   : > { %v985_v41 = vpop.f32.mrb[0].mxu0 }
 0x10c   : > { %v1013_v42 = vpop.f32.mrb[0].mxu1  ;;  %v986_v43 = vpop.f32.mrb[1].mxu0 }
 0x10d   : > { %v987_v44 = vadd.f32 %v986_v43, %v985_v41  ;;  %v1014_v45 = vpop.f32.mrb[1].mxu1  ;;  %v988_v46 = vpop.f32.mrb[2].mxu0 }
 0x10e   : > { %v1015_v47 = vadd.f32 %v1014_v45, %v1013_v42  ;;  %v1016_v48 = vpop.f32.mrb[2].mxu1  ;;  %v989_v49 = vpop.f32.mrb[3].mxu0 }
 0x10f   : > { %v990_v51 = vadd.f32 %v989_v49, %v988_v46  ;;  %v1017_v52 = vpop.f32.mrb[3].mxu1 }
 0x110   : > { %v705_v53 = vadd.f32 %v1015_v47, %v987_v44  ;;  %v1018_v54 = vadd.f32 %v1017_v52, %v1016_v48 }
 0x112   : > { %v719_v56 = vadd.f32 %v705_v53, %v313_v50  ;;  %v708_v57 = vadd.f32 %v1018_v54, %v990_v51 }
 0x113   : > { %v991_v58 = vpop.f32.mrb[4].mxu0 }
 0x114   : > { %723 = vst [vmem:[#allocation2] sm:$0xff] %v719_v56  ;;  %v720_v59 = vadd.f32 %v708_v57, %v314_v55  ;;  %v1019_v60 = vpop.f32.mrb[4].mxu1  ;;  %v992_v61 = vpop.f32.mrb[5].mxu0 }
 0x115   : > { %v993_v62 = vadd.f32 %v992_v61, %v991_v58  ;;  %v1020_v63 = vpop.f32.mrb[5].mxu1  ;;  %v994_v0 = vpop.f32.mrb[6].mxu0 }
 0x116   : > { %724 = vst [vmem:[#allocation2 + $0x8] sm:$0xff] %v720_v59  ;;  %v1021_v1 = vadd.f32 %v1020_v63, %v1019_v60  ;;  %v1022_v2 = vpop.f32.mrb[6].mxu1  ;;  %v995_v3 = vpop.f32.mrb[7].mxu0 }
 0x117   : > { %v996_v5 = vadd.f32 %v995_v3, %v994_v0  ;;  %v1023_v6 = vpop.f32.mrb[7].mxu1 }
 0x118   : > { %v713_v7 = vadd.f32 %v1021_v1, %v993_v62  ;;  %v1024_v8 = vadd.f32 %v1023_v6, %v1022_v2  ;;  %731 = sbr.rel (!%p727_p6) target bundleno = 299 (0x12b), region = 40 }
 0x11a   : > { %v721_v10 = vadd.f32 %v713_v7, %v315_v4  ;;  %v716_v11 = vadd.f32 %v1024_v8, %v996_v5 }
 0x11b   : > { %v732_v13 = vld [vmem:[#allocation2] sm:$0xff] (%p727_p6) }
 0x11c   : > { %725 = vst [vmem:[#allocation2 + $0x10] sm:$0xff] %v721_v10  ;;  %v722_v12 = vadd.f32 %v716_v11, %v316_v9  ;;  %v743_v16 = vadd.f32 (%p727_p6), %v941_v15, %v732_v13 }
 0x11d   : > { %v733_v14 = vld [vmem:[#allocation2 + $0x8] sm:$0xff] (%p727_p6) }
 0x11e   : > { %726 = vst [vmem:[#allocation2 + $0x18] sm:$0xff] %v722_v12  ;;  %v744_v17 = vadd.f32 (%p727_p6), %v941_v15, %v733_v14 }
 0x120   : > { %v961_v22 = vpack.c.bf16 %v744_v17, %v743_v16 }
 0x122   : > { %962 = vst [vmem:[%s1236_s3] sm:$0xff] %v961_v22  }
 0x123   : > { %v734_v18 = vld [vmem:[#allocation2 + $0x10] sm:$0xff] }
 0x124   : > { %v745_v20 = vadd.f32 %v941_v15, %v734_v18 }
 0x125   : > { %v735_v19 = vld [vmem:[#allocation2 + $0x18] sm:$0xff] }
 0x126   : > { %v746_v21 = vadd.f32 %v941_v15, %v735_v19 }
 0x128   : > { %v966_v23 = vpack.c.bf16 %v746_v21, %v745_v20 }
 0x12a   : > { %968 = vst [vmem:[%s1236_s3 + $0x8] sm:$0xff] %v966_v23  }
 0x12b PF: > { %s13_s14 = sadd.s32 1, %s1116_s14   ;;  %s1237_s12 = smov %s1112_s13 }
 0x12c   : > { %p10_p7 = scmp.ge.s32.totalorder %s13_s14, 4   ;;  %s1238_s13 = smov %s1240_s15 }
 0x12e   :  { %12 = sbr.rel (!%p10_p7) target bundleno = 2 (0x2), region = 76 }

// kernel: run.22
= control target key start
LH: loop header
LB: loop body
LE: loop exit
PB: predicated region body
PF: predicated region fallthrough
CT: control target
= control target key end

     0   :  { %s718_s15 = smov 0   ;;  %s720_s16 = smov 0   ;;  %s771_s0 = inlined_call_operand.vmem [shape: f32[4,2], index: 0, kind: input, shape index: {}, may-alias: {0,1}]   ;;  %s772_s1 = inlined_call_operand.vmem [shape: f32[4,2], index: 1, kind: input, shape index: {}, may-alias: {0,1}]   ;;  %s773_s2 = inlined_call_operand.vmem [shape: bf16[2,2,2,128], index: 2, kind: input, shape index: {}]   ;;  %s774_s3 = inlined_call_operand.vmem [shape: bf16[2,4,4,128], index: 3, kind: input, shape index: {}]   ;;  %s775_s4 = inlined_call_operand.vmem [shape: bf16[2,4,4,128], index: 4, kind: output, shape index: {}]  }
   0x1   :  { %s722_s17 = smov 0  }
   0x2 LB: > { %s26_s18 = sadd.s32 1, %s679_s16  ;;  %p596_p0 = scmp.ge.s32.totalorder %s683_s17, 1  ;;  %s683_s17 = sphi %s722_s17, %s14_s17   ;;  %s679_s16 = sphi %s720_s16, %s777_s16   ;;  %s675_s15 = sphi %s718_s15, %s776_s15  }
   0x3   : > { %p28_p1 = scmp.ge.s32.totalorder %s26_s18, 2  ;;  %p201_p2 = scmp.lt.s32.totalorder %s683_s17, 3 }
   0x5   : > { %s779_s18 = smov (%p28_p1, %s26_s18), 0  ;;  %p202_p3 = pnand %p596_p0, %p201_p2 }
   0x6   : > { %p247_p4 = scmp.lt.s32.totalorder (!%p202_p3), %s675_s15, 1  ;;  %v279_v0 = vlaneseq (!%p202_p3)  ;;  %v689_v1 = vmov (!%p202_p3), 1934713408   ;;  %v690_v3 = vmov (!%p202_p3), 0.0   ;;  %vm289_vm0 = vcmask (!%p202_p3), 1041408   ;;  %s685_s8 = smov (!%p202_p3), 0  }
   0x7   : > { %205 = sbr.rel (%p202_p3) target bundleno = 467 (0x1d3), region = 36  ;;  %v277_v2 = vunpack.c.l.s4 (!%p202_p3), %v689_v1  ;;  %360 = vmatprep.mubr.f32.mxu0 (!%p202_p3), %v690_v3  ;;  %v284_v14 = vld [vmem:[%s771_s0] sm:$0xf] (!%p202_p3)  ;;  %vm285_vm1 = vcmask (!%p202_p3), 15360  }
   0x8   : > { %v280_v5 = vshrl.u32 (!%p202_p3), %v279_v0, 7  ;;  %v372_v15 = vld [vmem:[%s772_s1] sm:$0xf] (!%p202_p3) }
   0x9   : > { %v278_v4 = vunpack.c.0.s8 (!%p202_p3), %v277_v2 }
   0xb   : > { %v281_v10 = vsub.s32 (!%p202_p3), %v278_v4, %v280_v5 }
   0xe   : > { %s781_s15 = smov (!%p247_p4, %s675_s15), 1 }
   0xf   : > { %s597_s19 = sshll.u32 %s781_s15, 1  ;;  %s612_s20 = sshll.u32 %s781_s15, 3 }
  0x10   : > { %s250_s23 = scalar_lea.vmem %s773_s2, %s597_s19  ;;  %s742_s26 = scalar_lea.vmem %s774_s3, %s612_s20 }
  0x11   : > { %s747_s29 = scalar_lea.vmem %s775_s4, %s612_s20  ;;  %v271_v6 = vld [vmem:[%s250_s23] sm:$0x1]  ;;  %v272_v7 = vld [vmem:[%s250_s23 + $0x1] sm:$0x1] }
  0x12   : > { %v273_v8 = vunpack.c.l.bf16 %v271_v6  ;;  %v274_v9 = vunpack.c.l.bf16 %v272_v7 }
  0x14   : > { %v275_v11 = vcombine.low %v273_v8, %v274_v9 }
  0x16   : > { %v282_v12 = vrot.slane %v275_v11, %v281_v10 }
  0x18   : > { %v283_v13 = vcombine.high %v282_v12, %v690_v3 }
  0x1a   : > { %602 = vmatprep.subr.msk.mxu0 %vm289_vm0, %v283_v13 }
  0x1b   : > { %603 = vmatpush1.msk.msra.mxu0 %vm289_vm0, %v282_v12 }
  0x1c   : > { %604 = vmatmul.mubr.msk.f32.vlgmr.msra.gmra.mrb[0].mxu0 %vm285_vm1, %v284_v14 }
  0xef   : > { %v362_v16 = vpop.f32.mrb[0].mxu0 }
  0xf0   : > { %368 = vst [vmem:[#allocation2] ss:$2 sm:$0xf] %v362_v16  ;;  %v364_v17 = vpop.f32.mrb[1].mxu0 }
  0xf1   : > { %371 = vst [vmem:[#allocation2 + $0x1] ss:$2 sm:$0xf] %v364_v17 }
  0xf2 LB: >> { %v691_v18 = vmov 0.0   ;;  %vm692_vm2 = vmmov 0   ;;  %s605_s9 = sshll.u32 %s687_s8, 1  ;;  %s378_s8 = sadd.s32 1, %s687_s8   ;;  %s687_s8 = sphi %s685_s8, %s378_s8  }
  0xf3   : >> { %616 = vmatprep.subr.mxu0 %v691_v18  ;;  %618 = vmatprep.mubr.msk.f32.mxu0 %vm692_vm2, %v691_v18  ;;  %s380_s10 = scalar_lea.vmem [#allocation2], %s605_s9  ;;  %s383_s11 = scalar_lea.vmem %s742_s26, %s605_s9 }
  0xf4   : >> { %v384_v20 = vld [vmem:[%s383_s11] sm:$0x3]  ;;  %s464_s12 = scalar_lea.vmem %s747_s29, %s605_s9  ;;  %p375_p5 = scmp.ge.s32.totalorder %s378_s8, 4  }
  0xf5   : >> { %v385_v21 = vunpack.c.l.bf16 %v384_v20 }
  0xf8   : >> { %v381_v19 = vld [vmem:[%s380_s10] sm:$0x3] }
  0xf9   : >> { %617 = vmatpush3.msk.msra.mxu0 %vm289_vm0, %v381_v19 }
  0xfa   : >> { %619 = vmatmul.mubr.msk.f32.vlgmr.msra.gmra.mrb[0].mxu0 %vm285_vm1, %v372_v15 }
 0x1cc   : > { %377 = sbr.rel (!%p375_p5) target bundleno = 242 (0xf2), region = 83 }
 0x1cd   : >> { %v458_v22 = vpop.f32.mrb[0].mxu0 }
 0x1ce   : >> { %v459_v23 = vadd.f32 %v458_v22, %v385_v21  ;;  %v620_v24 = vpop.f32.mrb[1].mxu0 }
 0x1d0   : >> { %v462_v25 = vpack.c.bf16 %v459_v23, %v459_v23 }
 0x1d2   : >> { %465 = vst [vmem:[%s464_s12] sm:$0x3] %v462_v25 }
 0x1d3 PF: > { %s14_s17 = sadd.s32 1, %s683_s17   ;;  %s776_s15 = smov %s679_s16 }
 0x1d4   : > { %p11_p6 = scmp.ge.s32.totalorder %s14_s17, 4   ;;  %s777_s16 = smov %s779_s18 }
 0x1d6   :  { %13 = sbr.rel (!%p11_p6) target bundleno = 2 (0x2), region = 94 }

// kernel: run.23
= control target key start
LH: loop header
LB: loop body
LE: loop exit
PB: predicated region body
PF: predicated region fallthrough
CT: control target
= control target key end

     0   :  { %s2182_s15 = smov 0   ;;  %s2184_s16 = smov 0   ;;  %s2457_s0 = inlined_call_operand.vmem [shape: bf16[2,64,128], index: 0, kind: input, shape index: {}, may-alias: {0,1}]   ;;  %s2458_s1 = inlined_call_operand.vmem [shape: bf16[2,64,128], index: 1, kind: input, shape index: {}, may-alias: {0,1}]   ;;  %s2459_s2 = inlined_call_operand.vmem [shape: bf16[3,384,128], index: 2, kind: input, shape index: {}]   ;;  %s2460_s3 = inlined_call_operand.vmem [shape: f32[1,128], index: 3, kind: input, shape index: {}]   ;;  %s2461_s4 = inlined_call_operand.vmem [shape: bf16[2,4,4,128], index: 4, kind: output, shape index: {}]  }
   0x1   :  { %s2186_s17 = smov 0  }
   0x2 LB: > { %s26_s18 = sadd.s32 1, %s2150_s16  ;;  %p1610_p0 = scmp.ge.s32.totalorder %s2154_s17, 1  ;;  %s2154_s17 = sphi %s2186_s17, %s14_s17   ;;  %s2150_s16 = sphi %s2184_s16, %s2463_s16   ;;  %s2146_s15 = sphi %s2182_s15, %s2462_s15  }
   0x3   : > { %p28_p1 = scmp.ge.s32.totalorder %s26_s18, 2  ;;  %p208_p2 = scmp.lt.s32.totalorder %s2154_s17, 3 }
   0x5   : > { %s2465_s18 = smov (%p28_p1, %s26_s18), 0  ;;  %p209_p3 = pnand %p1610_p0, %p208_p2 }
   0x6   : > { %v2036_v0 = vld [vmem:[%s2459_s2 + $0x40] sm:$0xff] (!%p209_p3)   ;;  %v2039_v3 = vld [vmem:[%s2459_s2 + $0x48] sm:$0xff] (!%p209_p3)   ;;  %v2156_v5 = vmov (!%p209_p3), 0   ;;  %v2042_v7 = vld [vmem:[%s2459_s2 + $0x50] sm:$0xff] (!%p209_p3)   ;;  %p254_p4 = scmp.lt.s32.totalorder (!%p209_p3), %s2146_s15, 1  ;;  %vm380_vm1 = vcmask (!%p209_p3), 1046528  }
   0x7   : > { %212 = sbr.rel (%p209_p3) target bundleno = 336 (0x150), region = 36  ;;  %v2037_v1 = vld [vmem:[%s2459_s2 + $0x80] sm:$0xff] (!%p209_p3)   ;;  %1817 = vmatprep.subr.bf16.mxu0 (!%p209_p3), %v2036_v0  ;;  %v2040_v4 = vld [vmem:[%s2459_s2 + $0x88] sm:$0xff] (!%p209_p3)   ;;  %300 = vst [vmem:[#allocation2 + $0x18] sm:$0xf] (!%p209_p3), %v2156_v5  ;;  %v2043_v8 = vld [vmem:[%s2459_s2 + $0x90] sm:$0xff] (!%p209_p3)  }
   0x8   : > { %v2038_v2 = vld [vmem:[%s2459_s2] sm:$0xff] (!%p209_p3)   ;;  %1931 = vmatprep.subr.bf16.mxu1 (!%p209_p3), %v2037_v1  ;;  %v2041_v6 = vld [vmem:[%s2459_s2 + $0x8] sm:$0xff] (!%p209_p3)   ;;  %v2044_v9 = vld [vmem:[%s2459_s2 + $0x10] sm:$0xff] (!%p209_p3)   ;;  %vm337_vm0 = vsmask.f32 (!%p209_p3), 7424 }
   0x9   : > { %1818 = vmatpush3.bf16.msra.mxu0 (!%p209_p3), %v2038_v2  ;;  %1932 = vmatpush3.bf16.msra.mxu1 (!%p209_p3), %v2037_v1  ;;  %v2045_v10 = vld [vmem:[%s2459_s2 + $0x58] sm:$0xff] (!%p209_p3)   ;;  %v2048_v13 = vld [vmem:[%s2459_s2 + $0x60] sm:$0xff] (!%p209_p3)   ;;  %v2051_v16 = vld [vmem:[%s2459_s2 + $0x68] sm:$0xff] (!%p209_p3)  }
   0xa   : > { %1819 = vmatprep.subr.bf16.mxu0 (!%p209_p3), %v2039_v3  ;;  %1933 = vmatprep.subr.bf16.mxu1 (!%p209_p3), %v2040_v4  ;;  %v2046_v11 = vld [vmem:[%s2459_s2 + $0x98] sm:$0xff] (!%p209_p3)   ;;  %v2049_v14 = vld [vmem:[%s2459_s2 + $0xa0] sm:$0xff] (!%p209_p3)   ;;  %v2052_v17 = vld [vmem:[%s2459_s2 + $0xa8] sm:$0xff] (!%p209_p3)  }
   0xb   : > { %v2047_v12 = vld [vmem:[%s2459_s2 + $0x18] sm:$0xff] (!%p209_p3)   ;;  %v2050_v15 = vld [vmem:[%s2459_s2 + $0x20] sm:$0xff] (!%p209_p3)   ;;  %v2053_v18 = vld [vmem:[%s2459_s2 + $0x28] sm:$0xff] (!%p209_p3)  }
   0xc   : > { %v2054_v19 = vld [vmem:[%s2459_s2 + $0x70] sm:$0xff] (!%p209_p3)   ;;  %v2057_v22 = vld [vmem:[%s2459_s2 + $0x78] sm:$0xff] (!%p209_p3)   ;;  %v2065_v28 = vld [vmem:[%s2459_s2 + $0x100] sm:$0xff] (!%p209_p3)  }
   0xd   : > { %1820 = vmatpush3.bf16.msra.mxu0 (!%p209_p3), %v2041_v6  ;;  %1934 = vmatpush3.bf16.msra.mxu1 (!%p209_p3), %v2040_v4  ;;  %v2055_v20 = vld [vmem:[%s2459_s2 + $0xb0] sm:$0xff] (!%p209_p3)   ;;  %v2058_v25 = vld [vmem:[%s2459_s2 + $0xb8] sm:$0xff] (!%p209_p3)   ;;  %v2066_v29 = vld [vmem:[%s2459_s2 + $0x140] sm:$0xff] (!%p209_p3)  }
   0xe   : > { %1821 = vmatprep.subr.bf16.mxu0 %v2042_v7  ;;  %1935 = vmatprep.subr.bf16.mxu1 %v2043_v8  ;;  %s2467_s15 = smov (!%p254_p4, %s2146_s15), 1  ;;  %v2056_v21 = vld [vmem:[%s2459_s2 + $0x30] sm:$0xff]   ;;  %v2059_v27 = vld [vmem:[%s2459_s2 + $0x38] sm:$0xff]   ;;  %v2068_v41 = vld [vmem:[%s2459_s2 + $0xc0] sm:$0xff]  }
   0xf   : > { %s1812_s5 = sshll.u32 %s2467_s15, 5  ;;  %v2069_v45 = vld [vmem:[%s2459_s2 + $0x108] sm:$0xff]   ;;  %v2072_v52 = vld [vmem:[%s2459_s2 + $0x110] sm:$0xff]   ;;  %v2075_v56 = vld [vmem:[%s2459_s2 + $0x118] sm:$0xff]  }
  0x10   : > { %s1814_s10 = sadd.s32 16, %s1812_s5  ;;  %s261_s19 = scalar_lea.vmem %s2457_s0, %s1812_s5  ;;  %v2070_v47 = vld [vmem:[%s2459_s2 + $0x148] sm:$0xff]   ;;  %v2073_v53 = vld [vmem:[%s2459_s2 + $0x150] sm:$0xff]   ;;  %v2076_v58 = vld [vmem:[%s2459_s2 + $0x158] sm:$0xff]  }
  0x11   : > { %1822 = vmatpush3.bf16.msra.mxu0 %v2044_v9  ;;  %1936 = vmatpush3.bf16.msra.mxu1 %v2043_v8  ;;  %s273_s26 = scalar_lea.vmem %s2458_s1, %s1814_s10  ;;  %v288_v23 = vld [vmem:[%s261_s19] sm:$0xff]   ;;  %v290_v24 = vld [vmem:[%s261_s19 + $0x8] sm:$0xff]   ;;  %v2074_v55 = vld [vmem:[%s2459_s2 + $0xd0] sm:$0xff]   ;;  %s1815_s19 = sshll.u32 %s2467_s15, 3 }
  0x12   : > { %1823 = vmatprep.subr.bf16.mxu0 %v2045_v10  ;;  %1937 = vmatprep.subr.bf16.mxu1 %v2046_v11  ;;  %292 = vst [vmem:[#allocation2] sm:$0xff] %v288_v23   ;;  %294 = vst [vmem:[#allocation2 + $0x8] sm:$0xff] %v290_v24   ;;  %v296_v26 = vld [vmem:[%s273_s26] sm:$0xff]   ;;  %v2071_v51 = vld [vmem:[%s2459_s2 + $0xc8] sm:$0xff]   ;;  %s285_s22 = scalar_lea.vmem %s2461_s4, %s1815_s19 }
  0x13   : > { %298 = vst [vmem:[#allocation2 + $0x10] sm:$0xff] %v296_v26   ;;  %v2077_v61 = vld [vmem:[%s2459_s2 + $0xd8] sm:$0xff]   ;;  %v2078_v62 = vld [vmem:[%s2459_s2 + $0x120] sm:$0xff]   ;;  %v2081_v4 = vld [vmem:[%s2459_s2 + $0x128] sm:$0xff]  }
  0x14   : > { %v2079_v0 = vld [vmem:[%s2459_s2 + $0x160] sm:$0xff]   ;;  %v2082_v5 = vld [vmem:[%s2459_s2 + $0x168] sm:$0xff]   ;;  %v2086_v9 = vld [vmem:[%s2459_s2 + $0x130] sm:$0xff]  }
  0x15   : > { %1824 = vmatpush3.bf16.msra.mxu0 %v2047_v12  ;;  %1938 = vmatpush3.bf16.msra.mxu1 %v2046_v11  ;;  %v2080_v1 = vld [vmem:[%s2459_s2 + $0xe0] sm:$0xff]   ;;  %v2084_v6 = vld [vmem:[%s2459_s2 + $0xe8] sm:$0xff]   ;;  %v2087_v10 = vld [vmem:[%s2459_s2 + $0x170] sm:$0xff]  }
  0x16   : > { %1825 = vmatprep.subr.bf16.mxu0 %v2048_v13  ;;  %1939 = vmatprep.subr.bf16.mxu1 %v2049_v14  ;;  %v2090_v23 = vld [vmem:[%s2459_s2 + $0x178] sm:$0xff]  }
  0x19   : > { %1826 = vmatpush3.bf16.msra.mxu0 %v2050_v15  ;;  %1940 = vmatpush3.bf16.msra.mxu1 %v2049_v14  ;;  %v2060_v30 = vld [vmem:[#allocation2] sm:$0xff]   ;;  %v2061_v31 = vld [vmem:[#allocation2 + $0x8] sm:$0xff]   ;;  %v2088_v15 = vld [vmem:[%s2459_s2 + $0xf0] sm:$0xff]  }
  0x1a   : > { %1827 = vmatprep.subr.bf16.mxu0 %v2051_v16  ;;  %1941 = vmatprep.subr.bf16.mxu1 %v2052_v17  ;;  %v339_v32 = vshrl.u32 %v2060_v30, 16  ;;  %v341_v33 = vshll.u32 %v2060_v30, 16  ;;  %v346_v34 = vshll.u32 %v2061_v31, 16  ;;  %v2064_v35 = vld [vmem:[#allocation2 + $0x8] sm:$0xff]   ;;  %v2063_v38 = vld [vmem:[#allocation2] sm:$0xfe]  }
  0x1b   : > { %v382_v39 = vrot.slane %v2064_v35, 1  ;;  %v2067_v40 = vld [vmem:[#allocation2 + $0x10] ss:$0 sps:$4 sm:$0x11]   ;;  %v2062_v43 = vld [vmem:[#allocation2] sm:$0xff]   ;;  %v381_v44 = vrot.slane %v2063_v38, 1 }
  0x1c   : > { %v343_v36 = vrot.slane %v341_v33, 1  ;;  %v348_v37 = vrot.slane %v346_v34, 1  ;;  %v384_v46 = vrot.slane %v2067_v40, 1  ;;  %v350_v54 = vshrl.u32 %v2061_v31, 16  ;;  %v2085_v3 = vld [vmem:[#allocation2 + $0x8] sm:$0xff]   ;;  %v2098_v31 = vld [vmem:[%s2459_s2 + $0x200] sm:$0xff]  }
  0x1d   : > { %1828 = vmatpush3.bf16.msra.mxu0 %v2053_v18  ;;  %1942 = vmatpush3.bf16.msra.mxu1 %v2052_v17  ;;  %v383_v49 = vsel %vm380_vm1, %v381_v44, %v382_v39  ;;  %v2083_v57 = vld [vmem:[#allocation2 + $0x10] ss:$0 sps:$4 sm:$0x11]   ;;  %v2092_v7 = vld [vmem:[#allocation2 + $0x4] sm:$0xff]  }
  0x1e   : > { %1829 = vmatprep.subr.bf16.mxu0 %v2054_v19  ;;  %1943 = vmatprep.subr.bf16.mxu1 %v2055_v20  ;;  %v344_v42 = vor.u32 %v343_v36, %v339_v32  ;;  %v385_v50 = vsel %vm380_vm1, %v382_v39, %v384_v46  ;;  %v352_v59 = vor.u32 %v350_v54, %v348_v37  ;;  %v354_v60 = vshll.u32 %v2083_v57, 16  ;;  %v2093_v8 = vld [vmem:[#allocation2 + $0xc] sm:$0xff]   ;;  %v2095_v18 = vld [vmem:[#allocation2 + $0x4] sm:$0xfe]  }
  0x1f   : > { %1947 = vmatprep.mubr.bf16.mxu1 %v383_v49  ;;  %v734_v11 = vshrl.u32 %v2092_v7, 16  ;;  %v736_v12 = vshll.u32 %v2092_v7, 16  ;;  %v741_v13 = vshll.u32 %v2093_v8, 16  ;;  %v2096_v14 = vld [vmem:[#allocation2 + $0xc] sm:$0xff]   ;;  %v745_v30 = vshrl.u32 %v2093_v8, 16  ;;  %v2094_v33 = vld [vmem:[#allocation2 + $0x4] sm:$0xff]  }
  0x20   : > { %v349_v48 = vsel %vm337_vm0, %v344_v42, %v348_v37  ;;  %v356_v63 = vrot.slane %v354_v60, 1  ;;  %v776_v19 = vrot.slane %v2096_v14, 1  ;;  %v2099_v24 = vld [vmem:[#allocation2 + $0x14] ss:$0 sps:$4 sm:$0x11]   ;;  %v2100_v34 = vld [vmem:[%s2459_s2 + $0x180] sm:$0xff]  }
  0x21   : > { %1830 = vmatpush3.bf16.msra.mxu0 %v2056_v21  ;;  %1944 = vmatpush3.bf16.msra.mxu1 %v2055_v20  ;;  %v738_v16 = vrot.slane %v736_v12, 1  ;;  %v743_v17 = vrot.slane %v741_v13, 1  ;;  %v2089_v20 = vld [vmem:[%s2459_s2 + $0x138] sm:$0xff]   ;;  %v2104_v32 = vld [vmem:[#allocation2 + $0x14] ss:$0 sps:$4 sm:$0x11]  }
  0x22   : > { %1831 = vmatprep.subr.bf16.mxu0 %v2057_v22  ;;  %1945 = vmatprep.subr.bf16.mxu1 %v2058_v25  ;;  %v357_v2 = vsel %vm337_vm0, %v352_v59, %v356_v63  ;;  %v775_v22 = vrot.slane %v2095_v18, 1  ;;  %v749_v36 = vshll.u32 %v2104_v32, 16  ;;  %v2101_v38 = vld [vmem:[%s2459_s2 + $0x1c8] sm:$0xff]   ;;  %v2107_v44 = vld [vmem:[%s2459_s2 + $0x210] sm:$0xff]   ;;  %v2111_v49 = vld [vmem:[%s2459_s2 + $0x198] sm:$0xff]  }
  0x23   : > { %627 = vmatprep.mubr.bf16.mxu0 %v349_v48  ;;  %v739_v21 = vor.u32 %v738_v16, %v734_v11  ;;  %v747_v35 = vor.u32 %v745_v30, %v743_v17  ;;  %v2102_v39 = vld [vmem:[%s2459_s2 + $0x208] sm:$0xff]   ;;  %v2108_v46 = vld [vmem:[%s2459_s2 + $0x190] sm:$0xff]   ;;  %v2110_v48 = vld [vmem:[%s2459_s2 + $0x218] sm:$0xff]  }
  0x24   : > { %v751_v40 = vrot.slane %v749_v36, 1  ;;  %v2116_v54 = vld [vmem:[%s2459_s2 + $0x228] sm:$0xff]   ;;  %v2125_v57 = vld [vmem:[#allocation2 + $0x10] sm:$0xff]   ;;  %v2130_v8 = vld [vmem:[#allocation2 + $0x18] ss:$0 sps:$4 sm:$0x11]  }
  0x25   : > { %1832 = vmatpush3.bf16.msra.mxu0 %v2059_v27  ;;  %1946 = vmatpush3.bf16.msra.mxu1 %v2058_v25  ;;  %v2091_v25 = vld [vmem:[%s2459_s2 + $0xf8] sm:$0xff]   ;;  %v744_v26 = vsel %vm337_vm0, %v739_v21, %v743_v17  ;;  %v777_v27 = vsel %vm380_vm1, %v775_v22, %v776_v19  ;;  %v2119_v59 = vld [vmem:[%s2459_s2 + $0x230] sm:$0xff]   ;;  %v1141_v12 = vshrl.u32 %v2125_v57, 16  ;;  %v1145_v14 = vshll.u32 %v2130_v8, 16 }
  0x26   : > { %1855 = vmatprep.subr.bf16.mxu0 %v2065_v28  ;;  %1951 = vmatprep.subr.bf16.mxu1 %v2066_v29  ;;  %v2097_v28 = vld [vmem:[%s2459_s2 + $0x1c0] sm:$0xff]   ;;  %v752_v42 = vsel %vm337_vm0, %v747_v35, %v751_v40  ;;  %v2127_v63 = vld [vmem:[#allocation2 + $0x10] sm:$0xff]  }
  0x27   : > { %v1147_v18 = vrot.slane %v1145_v14, 1  ;;  %v2131_v22 = vld [vmem:[#allocation2 + $0x10] sm:$0xff]   ;;  %v1625_v35 = vld [vmem:[%s2460_s3] ss:$0 sm:$0xff] }
  0x28   : > { %628 = vmatmul.mubr.bf16.vlgmr.msra.gmra.mrb[0].mxu0 %v2062_v43  ;;  %1948 = vmatmul.mubr.bf16.vlgmr.msra.gmra.mrb[0].mxu1 %v385_v50  ;;  %v2106_v43 = vld [vmem:[%s2459_s2 + $0x1d0] sm:$0xff]   ;;  %v2112_v50 = vld [vmem:[%s2459_s2 + $0x1e0] sm:$0xff]  }
  0x29   : > { %1856 = vmatpush3.bf16.msra.mxu0 %v2068_v41  ;;  %1952 = vmatpush3.bf16.msra.mxu1 %v2066_v29  ;;  %v778_v29 = vrot.slane %v2099_v24, 1  ;;  %v2103_v41 = vld [vmem:[%s2459_s2 + $0x188] sm:$0xff]  }
  0x2a   : > { %1857 = vmatprep.subr.bf16.mxu0 %v2069_v45  ;;  %1953 = vmatprep.subr.bf16.mxu1 %v2070_v47  ;;  %v2105_v45 = vld [vmem:[#allocation2 + $0xc] sm:$0xff]  }
  0x2b   : > { %635 = vmatprep.mubr.bf16.mxu0 %v357_v2  ;;  %1967 = vmatprep.mubr.bf16.mxu1 %v777_v27  ;;  %v779_v37 = vsel %vm380_vm1, %v776_v19, %v778_v29  ;;  %v2128_v19 = vld [vmem:[#allocation2 + $0x8] sm:$0xff]  }
  0x2d   : > { %1858 = vmatpush3.bf16.msra.mxu0 %v2071_v51  ;;  %1954 = vmatpush3.bf16.msra.mxu1 %v2070_v47  ;;  %v2109_v47 = vld [vmem:[%s2459_s2 + $0x1d8] sm:$0xff]   ;;  %v2113_v51 = vld [vmem:[%s2459_s2 + $0x220] sm:$0xff]  }
  0x2e   : > { %1859 = vmatprep.subr.bf16.mxu0 %v2072_v52  ;;  %1955 = vmatprep.subr.bf16.mxu1 %v2073_v53  ;;  %v2114_v52 = vld [vmem:[%s2459_s2 + $0x1a0] sm:$0xff]  }
  0x30   : > { %636 = vmatmul.mubr.bf16.gmra.mrb[4].mxu0 %v2085_v3  ;;  %v1172_v3 = vrot.slane %v2127_v63, 1 }
  0x31   : > { %1860 = vmatpush3.bf16.msra.mxu0 %v2074_v55  ;;  %1956 = vmatpush3.bf16.msra.mxu1 %v2073_v53  ;;  %v2115_v53 = vld [vmem:[%s2459_s2 + $0x1e8] sm:$0xff]  }
  0x32   : > { %1861 = vmatprep.subr.bf16.mxu0 %v2075_v56  ;;  %1957 = vmatprep.subr.bf16.mxu1 %v2076_v58  ;;  %v2117_v55 = vld [vmem:[%s2459_s2 + $0x1a8] sm:$0xff]  }
  0x33   : > { %1015 = vmatprep.mubr.bf16.mxu0 %v744_v26  ;;  %v2124_v56 = vld [vmem:[#allocation2 + $0x8] sm:$0xff]  }
  0x34   : > { %v1130_v60 = vshrl.u32 %v2124_v56, 16 }
  0x35   : > { %1862 = vmatpush3.bf16.msra.mxu0 %v2077_v61  ;;  %1958 = vmatpush3.bf16.msra.mxu1 %v2076_v58  ;;  %v2118_v58 = vld [vmem:[%s2459_s2 + $0x1f0] sm:$0xff]   ;;  %v1132_v61 = vshll.u32 %v2124_v56, 16 }
  0x36   : > { %1863 = vmatprep.subr.bf16.mxu0 %v2078_v62  ;;  %1959 = vmatprep.subr.bf16.mxu1 %v2079_v0  ;;  %v1137_v62 = vshll.u32 %v2125_v57, 16 }
  0x38   : > { %v1139_v2 = vrot.slane %v1137_v62, 1 }
  0x39   : > { %1864 = vmatpush3.bf16.msra.mxu0 %v2080_v1  ;;  %1960 = vmatpush3.bf16.msra.mxu1 %v2079_v0  ;;  %v2126_v0 = vld [vmem:[#allocation2 + $0x8] sm:$0xfe]   ;;  %v1134_v1 = vrot.slane %v1132_v61, 1 }
  0x3a   : > { %1865 = vmatprep.subr.bf16.mxu0 %v2081_v4  ;;  %1961 = vmatprep.subr.bf16.mxu1 %v2082_v5  ;;  %v1171_v4 = vrot.slane %v2126_v0, 1  ;;  %v1143_v17 = vor.u32 %v1141_v12, %v1139_v2 }
  0x3b   : > { %v1135_v7 = vor.u32 %v1134_v1, %v1130_v60 }
  0x3c   : > { %v1173_v11 = vsel %vm380_vm1, %v1171_v4, %v1172_v3  ;;  %v1148_v21 = vsel %vm337_vm0, %v1143_v17, %v1147_v18 }
  0x3d   : > { %1866 = vmatpush3.bf16.msra.mxu0 %v2084_v6  ;;  %1962 = vmatpush3.bf16.msra.mxu1 %v2082_v5  ;;  %v2129_v5 = vld [vmem:[#allocation2 + $0x18] ss:$0 sps:$4 sm:$0x11]   ;;  %v2120_v6 = vld [vmem:[%s2459_s2 + $0x1b0] sm:$0xff]   ;;  %v1140_v13 = vsel %vm337_vm0, %v1135_v7, %v1139_v2 }
  0x3e   : > { %1867 = vmatprep.subr.bf16.mxu0 %v2086_v9  ;;  %1963 = vmatprep.subr.bf16.mxu1 %v2087_v10  ;;  %v2121_v9 = vld [vmem:[%s2459_s2 + $0x1f8] sm:$0xff]   ;;  %v1174_v16 = vrot.slane %v2129_v5, 1 }
  0x41   : > { %1868 = vmatpush3.bf16.msra.mxu0 %v2088_v15  ;;  %1964 = vmatpush3.bf16.msra.mxu1 %v2087_v10  ;;  %v2122_v10 = vld [vmem:[%s2459_s2 + $0x238] sm:$0xff]  }
  0x42   : > { %1869 = vmatprep.subr.bf16.mxu0 %v2089_v20  ;;  %1965 = vmatprep.subr.bf16.mxu1 %v2090_v23  ;;  %v2123_v15 = vld [vmem:[%s2459_s2 + $0x1b8] sm:$0xff]   ;;  %v1175_v20 = vsel %vm380_vm1, %v1172_v3, %v1174_v16 }
  0x45   : > { %1870 = vmatpush3.bf16.msra.mxu0 %v2091_v25  ;;  %1966 = vmatpush3.bf16.msra.mxu1 %v2090_v23 }
  0x46   : > { %1893 = vmatprep.subr.bf16.mxu0 %v2097_v28  ;;  %1971 = vmatprep.subr.bf16.mxu1 %v2098_v31 }
  0x48   : > { %1016 = vmatmul.mubr.bf16.vlgmr.msra.gmra.mrb[8].mxu0 %v2094_v33  ;;  %1968 = vmatmul.mubr.bf16.vlgmr.msra.gmra.mrb[0].mxu1 %v779_v37 }
  0x49   : > { %1894 = vmatpush3.bf16.msra.mxu0 %v2100_v34  ;;  %1972 = vmatpush3.bf16.msra.mxu1 %v2098_v31 }
  0x4a   : > { %1895 = vmatprep.subr.bf16.mxu0 %v2101_v38  ;;  %1973 = vmatprep.subr.bf16.mxu1 %v2102_v39 }
  0x4b   : > { %1023 = vmatprep.mubr.bf16.mxu0 %v752_v42  ;;  %1987 = vmatprep.mubr.bf16.mxu1 %v1173_v11 }
  0x4d   : > { %1896 = vmatpush3.bf16.msra.mxu0 %v2103_v41  ;;  %1974 = vmatpush3.bf16.msra.mxu1 %v2102_v39 }
  0x4e   : > { %1897 = vmatprep.subr.bf16.mxu0 %v2106_v43  ;;  %1975 = vmatprep.subr.bf16.mxu1 %v2107_v44 }
  0x50   : > { %1024 = vmatmul.mubr.bf16.gmra.mrb[12].mxu0 %v2105_v45 }
  0x51   : > { %1898 = vmatpush3.bf16.msra.mxu0 %v2108_v46  ;;  %1976 = vmatpush3.bf16.msra.mxu1 %v2107_v44 }
  0x52   : > { %1899 = vmatprep.subr.bf16.mxu0 %v2109_v47  ;;  %1977 = vmatprep.subr.bf16.mxu1 %v2110_v48 }
  0x53   : > { %1411 = vmatprep.mubr.bf16.mxu0 %v1140_v13 }
  0x55   : > { %1900 = vmatpush3.bf16.msra.mxu0 %v2111_v49  ;;  %1978 = vmatpush3.bf16.msra.mxu1 %v2110_v48 }
  0x56   : > { %1901 = vmatprep.subr.bf16.mxu0 %v2112_v50  ;;  %1979 = vmatprep.subr.bf16.mxu1 %v2113_v51 }
  0x59   : > { %1902 = vmatpush3.bf16.msra.mxu0 %v2114_v52  ;;  %1980 = vmatpush3.bf16.msra.mxu1 %v2113_v51 }
  0x5a   : > { %1903 = vmatprep.subr.bf16.mxu0 %v2115_v53  ;;  %1981 = vmatprep.subr.bf16.mxu1 %v2116_v54 }
  0x5d   : > { %1904 = vmatpush3.bf16.msra.mxu0 %v2117_v55  ;;  %1982 = vmatpush3.bf16.msra.mxu1 %v2116_v54 }
  0x5e   : > { %1905 = vmatprep.subr.bf16.mxu0 %v2118_v58  ;;  %1983 = vmatprep.subr.bf16.mxu1 %v2119_v59 }
  0x61   : > { %1906 = vmatpush3.bf16.msra.mxu0 %v2120_v6  ;;  %1984 = vmatpush3.bf16.msra.mxu1 %v2119_v59 }
  0x62   : > { %1907 = vmatprep.subr.bf16.mxu0 %v2121_v9  ;;  %1985 = vmatprep.subr.bf16.mxu1 %v2122_v10 }
  0x65   : > { %1908 = vmatpush3.bf16.msra.mxu0 %v2123_v15  ;;  %1986 = vmatpush3.bf16.msra.mxu1 %v2122_v10 }
  0x68   : > { %1412 = vmatmul.mubr.bf16.vlgmr.msra.gmra.mrb[16].mxu0 %v2128_v19  ;;  %1988 = vmatmul.mubr.bf16.vlgmr.msra.gmra.mrb[0].mxu1 %v1175_v20 }
  0x69   : > { %1419 = vmatprep.mubr.bf16.mxu0 %v1148_v21 }
  0x70   : > { %1420 = vmatmul.mubr.bf16.gmra.mrb[20].mxu0 %v2131_v22 }
  0xfb   : > { %v1833_v23 = vpop.f32.mrb[0].mxu0 }
  0xfc   : > { %v1834_v24 = vpop.f32.mrb[1].mxu0 }
  0xfd   : > { %v1835_v25 = vadd.f32 %v1834_v24, %v1833_v23  ;;  %v1836_v26 = vpop.f32.mrb[2].mxu0 }
  0xfe   : > { %v1837_v27 = vpop.f32.mrb[3].mxu0 }
  0xff   : > { %v1838_v28 = vadd.f32 %v1837_v27, %v1836_v26  ;;  %v630_v38 = vadd.f32 %v1835_v25, %v1625_v35 }
 0x101   : > { %v633_v42 = vadd.f32 %v1838_v28, %v1625_v35 }
 0x103   : > { %v1839_v29 = vpop.f32.mrb[4].mxu0 }
 0x104   : > { %v1840_v30 = vpop.f32.mrb[5].mxu0 }
 0x105   : > { %v1841_v31 = vadd.f32 %v1840_v30, %v1839_v29  ;;  %v1842_v32 = vpop.f32.mrb[6].mxu0 }
 0x106   : > { %v1843_v33 = vpop.f32.mrb[7].mxu0 }
 0x107   : > { %v1844_v34 = vadd.f32 %v1843_v33, %v1842_v32  ;;  %v638_v48 = vadd.f32 %v1841_v31, %v1625_v35 }
 0x109   : > { %v641_v52 = vadd.f32 %v1844_v34, %v1625_v35 }
 0x11b   : > { %v1871_v36 = vpop.f32.mrb[8].mxu0 }
 0x11c   : > { %v1872_v37 = vpop.f32.mrb[9].mxu0 }
 0x11d   : > { %v1873_v39 = vadd.f32 %v1872_v37, %v1871_v36  ;;  %v1874_v40 = vpop.f32.mrb[10].mxu0 }
 0x11e   : > { %v1875_v41 = vpop.f32.mrb[11].mxu0 }
 0x11f   : > { %v1994_v43 = vadd.f32 %v1873_v39, %v630_v38  ;;  %v1876_v44 = vadd.f32 %v1875_v41, %v1874_v40 }
 0x121   : > { %v2000_v45 = vadd.f32 %v1876_v44, %v633_v42 }
 0x123   : > { %v1877_v46 = vpop.f32.mrb[12].mxu0 }
 0x124   : > { %v1878_v47 = vpop.f32.mrb[13].mxu0 }
 0x125   : > { %v1879_v49 = vadd.f32 %v1878_v47, %v1877_v46  ;;  %v1880_v50 = vpop.f32.mrb[14].mxu0 }
 0x126   : > { %v1881_v51 = vpop.f32.mrb[15].mxu0 }
 0x127   : > { %v1991_v53 = vadd.f32 %v1879_v49, %v638_v48  ;;  %v1882_v54 = vadd.f32 %v1881_v51, %v1880_v50 }
 0x129   : > { %v1997_v55 = vadd.f32 %v1882_v54, %v641_v52 }
 0x13b   : > { %v1909_v56 = vpop.f32.mrb[16].mxu0  ;;  %v1989_v57 = vpop.f32.mrb[0].mxu1 }
 0x13c   : > { %v1910_v58 = vpop.f32.mrb[17].mxu0  ;;  %v1462_v59 = vpop.f32.mrb[1].mxu1 }
 0x13d   : > { %v1911_v60 = vadd.f32 %v1910_v58, %v1909_v56  ;;  %v1912_v61 = vpop.f32.mrb[18].mxu0  ;;  %v1990_v62 = vpop.f32.mrb[2].mxu1 }
 0x13e   : > { %v1913_v63 = vpop.f32.mrb[19].mxu0  ;;  %v1465_v0 = vpop.f32.mrb[3].mxu1 }
 0x13f   : > { %v1995_v1 = vadd.f32 %v1994_v43, %v1911_v60  ;;  %v1914_v2 = vadd.f32 %v1913_v63, %v1912_v61 }
 0x141   : > { %v1996_v3 = vadd.f32 %v1995_v1, %v1462_v59  ;;  %v2001_v4 = vadd.f32 %v2000_v45, %v1914_v2 }
 0x143   : > { %v1493_v5 = vpack.c.bf16 %v1996_v3, %v1996_v3  ;;  %v2002_v6 = vadd.f32 %v2001_v4, %v1465_v0  ;;  %v1915_v7 = vpop.f32.mrb[20].mxu0 }
 0x144   : > { %v1916_v8 = vpop.f32.mrb[21].mxu0 }
 0x145   : > { %1497 = vst [vmem:[%s285_s22] sm:$0x3] %v1493_v5  ;;  %v1494_v9 = vpack.c.bf16 %v2002_v6, %v2002_v6  ;;  %v1917_v10 = vadd.f32 %v1916_v8, %v1915_v7  ;;  %v1918_v11 = vpop.f32.mrb[22].mxu0 }
 0x146   : > { %v1919_v12 = vpop.f32.mrb[23].mxu0 }
 0x147   : > { %1498 = vst [vmem:[%s285_s22 + $0x2] sm:$0x3] %v1494_v9  ;;  %v1992_v13 = vadd.f32 %v1991_v53, %v1917_v10  ;;  %v1920_v14 = vadd.f32 %v1919_v12, %v1918_v11 }
 0x149   : > { %v1993_v15 = vadd.f32 %v1992_v13, %v1989_v57  ;;  %v1998_v16 = vadd.f32 %v1997_v55, %v1920_v14 }
 0x14b   : > { %v1495_v17 = vpack.c.bf16 %v1993_v15, %v1993_v15  ;;  %v1999_v18 = vadd.f32 %v1998_v16, %v1990_v62 }
 0x14d   : > { %1499 = vst [vmem:[%s285_s22 + $0x4] sm:$0x3] %v1495_v17  ;;  %v1496_v19 = vpack.c.bf16 %v1999_v18, %v1999_v18 }
 0x14f   : > { %1500 = vst [vmem:[%s285_s22 + $0x6] sm:$0x3] %v1496_v19 }
 0x150 PF: > { %s14_s17 = sadd.s32 1, %s2154_s17   ;;  %s2462_s15 = smov %s2150_s16 }
 0x151   : > { %p11_p5 = scmp.ge.s32.totalorder %s14_s17, 4   ;;  %s2463_s16 = smov %s2465_s18 }
 0x153   :  { %13 = sbr.rel (!%p11_p5) target bundleno = 2 (0x2), region = 71 }

// kernel: run.14
= control target key start
LH: loop header
LB: loop body
LE: loop exit
PB: predicated region body
PF: predicated region fallthrough
CT: control target
= control target key end

     0   :  { %v1895_v0 = vmov 0   ;;  %s2769_s0 = inlined_call_operand.vmem [shape: bf16[1,256,3], index: 0, kind: input, shape index: {}]   ;;  %s2770_s1 = inlined_call_operand.vmem [shape: bf16[1,3,256], index: 1, kind: input, shape index: {}]   ;;  %s2771_s2 = inlined_call_operand.vmem [shape: f32[1,256], index: 2, kind: input, shape index: {}]   ;;  %s2772_s3 = inlined_call_operand.vmem [shape: bf16[256,256], index: 3, kind: output, shape index: {}]  }
   0x1   :  { %1660 = vset.pattern.permute.xlu1 %v1895_v0  ;;  %1649 = vset.pattern.permute.xlu0 %v1895_v0  ;;  %v1632_v1 = vld [vmem:[%s2769_s0 + $0x10] sm:$0xff]   ;;  %v1568_v2 = vld [vmem:[%s2769_s0] sm:$0xff]   ;;  %v1633_v3 = vld [vmem:[%s2769_s0 + $0x18] sm:$0xff]  }
   0x2   :  { %v1577_v4 = vunpack.c.l.bf16 %v1632_v1  ;;  %v1578_v5 = vunpack.c.h.bf16 %v1632_v1  ;;  %v1569_v6 = vunpack.c.l.bf16 %v1568_v2  ;;  %v1570_v7 = vunpack.c.h.bf16 %v1568_v2  ;;  %v1631_v8 = vld [vmem:[%s2769_s0 + $0x8] sm:$0xff]   ;;  %v1634_v14 = vld [vmem:[%s2769_s0 + $0x20] sm:$0xff]   ;;  %v1637_v23 = vld [vmem:[%s2769_s0 + $0x38] sm:$0xff]  }
   0x3   :  { %v1635_v9 = vld [vmem:[%s2769_s0 + $0x28] sm:$0xff]   ;;  %v1581_v10 = vunpack.c.l.bf16 %v1633_v3  ;;  %v1582_v11 = vunpack.c.h.bf16 %v1633_v3  ;;  %v1573_v12 = vunpack.c.l.bf16 %v1631_v8  ;;  %v1574_v13 = vunpack.c.h.bf16 %v1631_v8  ;;  %v1636_v24 = vld [vmem:[%s2769_s0 + $0x30] sm:$0xff]   ;;  %v1638_v32 = vld [vmem:[%s2769_s0 + $0x40] sm:$0xff]  }
   0x4   :  { %v1936_v15 = vpack.i.bf16 %v1578_v5, %v1577_v4  ;;  %v1938_v16 = vpack.i.bf16 %v1570_v7, %v1569_v6  ;;  %v1589_v17 = vunpack.c.l.bf16 %v1635_v9  ;;  %v1590_v18 = vunpack.c.h.bf16 %v1635_v9  ;;  %v1639_v31 = vld [vmem:[%s2769_s0 + $0x48] sm:$0xff]   ;;  %v1641_v39 = vld [vmem:[%s2769_s0 + $0x58] sm:$0xff]   ;;  %v1640_v40 = vld [vmem:[%s2769_s0 + $0x50] sm:$0xff]  }
   0x5   :  { %v1942_v19 = vpack.i.bf16 %v1582_v11, %v1581_v10  ;;  %v1944_v20 = vpack.i.bf16 %v1574_v13, %v1573_v12  ;;  %v1585_v21 = vunpack.c.l.bf16 %v1634_v14  ;;  %v1586_v22 = vunpack.c.h.bf16 %v1634_v14  ;;  %v1643_v41 = vld [vmem:[%s2769_s0 + $0x68] sm:$0xff]   ;;  %v1645_v45 = vld [vmem:[%s2769_s0 + $0x78] sm:$0xff]   ;;  %v1642_v49 = vld [vmem:[%s2769_s0 + $0x60] sm:$0xff]  }
   0x6   :  { %1662 = vperm.xlu1 %1660, %v1936_v15   ;;  %1651 = vperm.xlu0 %1649, %v1938_v16   ;;  %v1952_v25 = vpack.i.bf16 %v1590_v18, %v1589_v17  ;;  %v1597_v26 = vunpack.c.l.bf16 %v1637_v23  ;;  %v1598_v28 = vunpack.c.h.bf16 %v1637_v23  ;;  %v1593_v29 = vunpack.c.l.bf16 %v1636_v24  ;;  %v1644_v60 = vld [vmem:[%s2769_s0 + $0x70] sm:$0xff]   ;;  %v148_v5 = vld [vmem:[%s2770_s1] sm:$0xf] }
   0x7   :  { %v1956_v27 = vpack.i.bf16 %v1586_v22, %v1585_v21  ;;  %v1594_v30 = vunpack.c.h.bf16 %v1636_v24  ;;  %v1605_v33 = vunpack.c.l.bf16 %v1639_v31  ;;  %v1606_v34 = vunpack.c.h.bf16 %v1639_v31 }
   0x8   :  { %v1966_v35 = vpack.i.bf16 %v1598_v28, %v1597_v26  ;;  %v1601_v37 = vunpack.c.l.bf16 %v1638_v32  ;;  %v1602_v38 = vunpack.c.h.bf16 %v1638_v32  ;;  %v1613_v43 = vunpack.c.l.bf16 %v1641_v39  ;;  %v1199_v28 = vld [vmem:[%s2771_s2] sm:$0x3] }
   0x9   :  { %v1968_v36 = vpack.i.bf16 %v1594_v30, %v1593_v29  ;;  %v1979_v42 = vpack.i.bf16 %v1606_v34, %v1605_v33  ;;  %v1614_v44 = vunpack.c.h.bf16 %v1641_v39  ;;  %v1609_v47 = vunpack.c.l.bf16 %v1640_v40 }
   0xa   :  { %1667 = vperm.xlu1 %1660, %v1942_v19   ;;  %1656 = vperm.xlu0 %1649, %v1944_v20   ;;  %v1691_v46 = vpack.i.bf16 %v1602_v38, %v1601_v37  ;;  %v1610_v48 = vunpack.c.h.bf16 %v1640_v40  ;;  %v1621_v50 = vunpack.c.l.bf16 %v1643_v41  ;;  %v1622_v51 = vunpack.c.h.bf16 %v1643_v41 }
   0xb   :  { %v1629_v52 = vunpack.c.l.bf16 %v1645_v45  ;;  %v1630_v53 = vunpack.c.h.bf16 %v1645_v45  ;;  %v1706_v54 = vpack.i.bf16 %v1614_v44, %v1613_v43  ;;  %v1617_v55 = vunpack.c.l.bf16 %v1642_v49 }
   0xc   :  { %v1701_v56 = vpack.i.bf16 %v1610_v48, %v1609_v47  ;;  %v1618_v57 = vunpack.c.h.bf16 %v1642_v49  ;;  %v1880_v58 = vpack.i.bf16 %v1622_v51, %v1621_v50  ;;  %v1625_v62 = vunpack.c.l.bf16 %v1644_v60 }
   0xd   :  { %v1890_v59 = vpack.i.bf16 %v1630_v53, %v1629_v52  ;;  %v1626_v63 = vunpack.c.h.bf16 %v1644_v60  ;;  %v1896_v1 = vmov 1   ;;  %v1897_v2 = vmov 2  }
   0xe   :  { %1677 = vperm.xlu1 %1660, %v1952_v25   ;;  %1672 = vperm.xlu0 %1649, %v1956_v27   ;;  %v1711_v61 = vpack.i.bf16 %v1618_v57, %v1617_v55  ;;  %v375_v3 = vlaneseq  ;;  %v149_v8 = vunpack.c.l.bf16 %v148_v5 }
   0xf   :  { %v1721_v0 = vpack.i.bf16 %v1626_v63, %v1625_v62 }
  0x10   :  { %v376_v4 = vshrl.u32 %v375_v3, 7 }
  0x12   :  { %1687 = vperm.xlu1 %1660, %v1966_v35   ;;  %1682 = vperm.xlu0 %1649, %v1968_v36   ;;  %v377_v9 = vsub.s32 0, %v376_v4  ;;  %v381_v10 = vsub.s32 4, %v376_v4  ;;  %v651_v11 = vsub.s32 1, %v376_v4  ;;  %v655_v12 = vsub.s32 5, %v376_v4 }
  0x14   :  { %v378_v17 = vrot.slane %v149_v8, %v377_v9  ;;  %v382_v18 = vrot.slane %v149_v8, %v381_v10  ;;  %v2029_v39 = vrot.slane %v1199_v28, %v377_v9  ;;  %v2037_v43 = vrot.slane %v1199_v28, %v651_v11 }
  0x16   :  { %1697 = vperm.xlu1 %1660, %v1979_v42   ;;  %1692 = vperm.xlu0 %1649, %v1691_v46   ;;  %v2016_v26 = vrot.slane %v382_v18, %v377_v9  ;;  %2779 = vst [vmem:[#allocation5_spill] sm:$0xff] %v2029_v39  ;;  %2780 = vst [vmem:[#allocation6_spill] sm:$0xff] %v2037_v43 }
  0x1a   :  { %1707 = vperm.xlu1 %1660, %v1706_v54   ;;  %1702 = vperm.xlu0 %1649, %v1701_v56  }
  0x1e   :  { %1717 = vperm.xlu1 %1660, %v1880_v58   ;;  %1712 = vperm.xlu0 %1649, %v1711_v61  }
  0x22   :  { %1727 = vperm.xlu1 %1660, %v1890_v59   ;;  %1722 = vperm.xlu0 %1649, %v1721_v0  }
  0x26   :  { %1737 = vset.pattern.permute.xlu1 %v1896_v1  ;;  %1731 = vset.pattern.permute.xlu0 %v1896_v1 }
  0x27   :  { %1739 = vperm.xlu1 %1737, %v1944_v20   ;;  %1733 = vperm.xlu0 %1731, %v1938_v16  }
  0x2b   :  { %1744 = vperm.xlu1 %1737, %v1936_v15   ;;  %1749 = vperm.xlu0 %1731, %v1942_v19  }
  0x2f   :  { %1754 = vperm.xlu1 %1737, %v1956_v27   ;;  %1759 = vperm.xlu0 %1731, %v1952_v25  }
  0x33   :  { %1764 = vperm.xlu1 %1737, %v1968_v36   ;;  %1769 = vperm.xlu0 %1731, %v1966_v35  }
  0x37   :  { %1774 = vperm.xlu1 %1737, %v1691_v46   ;;  %1779 = vperm.xlu0 %1731, %v1979_v42  }
  0x3b   :  { %1784 = vperm.xlu1 %1737, %v1701_v56   ;;  %1789 = vperm.xlu0 %1731, %v1706_v54  }
  0x3f   :  { %1794 = vperm.xlu1 %1737, %v1711_v61   ;;  %1799 = vperm.xlu0 %1731, %v1880_v58  }
  0x43   :  { %1804 = vperm.xlu1 %1737, %v1721_v0   ;;  %1809 = vperm.xlu0 %1731, %v1890_v59  }
  0x47   :  { %1813 = vset.pattern.permute.xlu1 %v1897_v2  ;;  %1819 = vset.pattern.permute.xlu0 %v1897_v2 }
  0x48   :  { %1815 = vperm.xlu1 %1813, %v1938_v16   ;;  %1821 = vperm.xlu0 %1819, %v1944_v20   ;;  %v929_v16 = vsub.s32 6, %v376_v4  ;;  %v656_v20 = vrot.slane %v149_v8, %v655_v12 }
  0x4a   :  { %v930_v24 = vrot.slane %v149_v8, %v929_v16  ;;  %v2023_v33 = vrot.slane %v656_v20, %v651_v11 }
  0x4c   :  { %1826 = vperm.xlu1 %1813, %v1936_v15   ;;  %1836 = vperm.xlu0 %1819, %v1956_v27   ;;  %v925_v15 = vsub.s32 2, %v376_v4 }
  0x4e   :  { %v926_v23 = vrot.slane %v149_v8, %v925_v15  ;;  %v2027_v38 = vrot.slane %v930_v24, %v925_v15 }
  0x50   :  { %1831 = vperm.xlu1 %1813, %v1942_v19   ;;  %1846 = vperm.xlu0 %1819, %v1968_v36   ;;  %v652_v19 = vrot.slane %v149_v8, %v651_v11  ;;  %v2025_v37 = vrot.slane %v926_v23, %v925_v15  ;;  %2778 = vst [vmem:[#allocation4_spill] sm:$0xff] %v2027_v38 }
  0x52   :  { %v2021_v32 = vrot.slane %v652_v19, %v651_v11  ;;  %2777 = vst [vmem:[#allocation3_spill] sm:$0xff] %v2025_v37 }
  0x54   :  { %1841 = vperm.xlu1 %1813, %v1952_v25   ;;  %1856 = vperm.xlu0 %1819, %v1691_v46   ;;  %v2014_v25 = vrot.slane %v378_v17, %v377_v9 }
  0x58   :  { %1851 = vperm.xlu1 %1813, %v1966_v35   ;;  %1866 = vperm.xlu0 %1819, %v1701_v56  }
  0x5c   :  { %1861 = vperm.xlu1 %1813, %v1979_v42   ;;  %1876 = vperm.xlu0 %1819, %v1711_v61  }
  0x60   :  { %1871 = vperm.xlu1 %1813, %v1706_v54   ;;  %1886 = vperm.xlu0 %1819, %v1721_v0  }
  0x64   :  { %1881 = vperm.xlu1 %1813, %v1880_v58  }
  0x68   :  { %1891 = vperm.xlu1 %1813, %v1890_v59  }
  0x85   :  { %v1663_v6 = vpop.permute.xlu1 %1662  ;;  %v1652_v7 = vpop.permute.xlu0 %1651 }
  0x86   :  { %v1665_v27 = vunpack.i.h.bf16 %v1663_v6  ;;  %v1664_v29 = vunpack.i.l.bf16 %v1663_v6  ;;  %v1654_v30 = vunpack.i.h.bf16 %v1652_v7  ;;  %v1653_v31 = vunpack.i.l.bf16 %v1652_v7 }
  0x88   :  { %v2032_v40 = vmul.f32 %v1665_v27, %v2014_v25  ;;  %v2035_v41 = vmul.f32 %v1665_v27, %v2016_v26  ;;  %v2040_v44 = vmul.f32 %v1664_v29, %v2014_v25  ;;  %v2043_v45 = vmul.f32 %v1664_v29, %v2016_v26 }
  0x89   :  { %v1668_v13 = vpop.permute.xlu1 %1667  ;;  %v1657_v14 = vpop.permute.xlu0 %1656  ;;  %v2046_v48 = vmul.f32 %v1654_v30, %v2014_v25  ;;  %v2049_v49 = vmul.f32 %v1654_v30, %v2016_v26  ;;  %v2052_v50 = vmul.f32 %v1653_v31, %v2014_v25  ;;  %v2055_v52 = vmul.f32 %v1653_v31, %v2016_v26 }
  0x8a   :  { %v1670_v34 = vunpack.i.h.bf16 %v1668_v13  ;;  %v1669_v42 = vunpack.i.l.bf16 %v1668_v13  ;;  %v1659_v46 = vunpack.i.h.bf16 %v1657_v14  ;;  %v1658_v47 = vunpack.i.l.bf16 %v1657_v14 }
  0x8c   :  { %v2058_v53 = vmul.f32 %v1670_v34, %v2014_v25  ;;  %v2061_v54 = vmul.f32 %v1670_v34, %v2016_v26  ;;  %v2064_v58 = vmul.f32 %v1669_v42, %v2014_v25  ;;  %v2067_v59 = vmul.f32 %v1669_v42, %v2016_v26 }
  0x8d   :  { %v1678_v21 = vpop.permute.xlu1 %1677  ;;  %v1673_v22 = vpop.permute.xlu0 %1672  ;;  %v2070_v62 = vmul.f32 %v1659_v46, %v2014_v25  ;;  %v2073_v63 = vmul.f32 %v1659_v46, %v2016_v26  ;;  %v2076_v0 = vmul.f32 %v1658_v47, %v2014_v25  ;;  %v2079_v2 = vmul.f32 %v1658_v47, %v2016_v26 }
  0x8e   :  { %v1680_v51 = vunpack.i.h.bf16 %v1678_v21  ;;  %v1679_v55 = vunpack.i.l.bf16 %v1678_v21  ;;  %v1675_v60 = vunpack.i.h.bf16 %v1673_v22  ;;  %v1674_v61 = vunpack.i.l.bf16 %v1673_v22 }
  0x90   :  { %v2082_v3 = vmul.f32 %v1680_v51, %v2014_v25  ;;  %v2085_v4 = vmul.f32 %v1680_v51, %v2016_v26  ;;  %v2088_v6 = vmul.f32 %v1679_v55, %v2014_v25  ;;  %v2091_v7 = vmul.f32 %v1679_v55, %v2016_v26 }
  0x91   :  { %v1688_v35 = vpop.permute.xlu1 %1687  ;;  %v1683_v36 = vpop.permute.xlu0 %1682  ;;  %v2094_v12 = vmul.f32 %v1675_v60, %v2014_v25  ;;  %v2097_v13 = vmul.f32 %v1675_v60, %v2016_v26  ;;  %v2100_v14 = vmul.f32 %v1674_v61, %v2014_v25  ;;  %v2103_v16 = vmul.f32 %v1674_v61, %v2016_v26 }
  0x92   :  { %v1690_v1 = vunpack.i.h.bf16 %v1688_v35  ;;  %v1689_v5 = vunpack.i.l.bf16 %v1688_v35  ;;  %v1685_v8 = vunpack.i.h.bf16 %v1683_v36  ;;  %v1684_v9 = vunpack.i.l.bf16 %v1683_v36 }
  0x94   :  { %v2106_v17 = vmul.f32 %v1690_v1, %v2014_v25  ;;  %v2109_v18 = vmul.f32 %v1690_v1, %v2016_v26  ;;  %v2112_v20 = vmul.f32 %v1689_v5, %v2014_v25  ;;  %v2115_v21 = vmul.f32 %v1689_v5, %v2016_v26 }
  0x95   :  { %v1698_v56 = vpop.permute.xlu1 %1697  ;;  %v1693_v57 = vpop.permute.xlu0 %1692  ;;  %v2118_v24 = vmul.f32 %v1685_v8, %v2014_v25  ;;  %v2121_v27 = vmul.f32 %v1685_v8, %v2016_v26  ;;  %v2124_v28 = vmul.f32 %v1684_v9, %v2014_v25  ;;  %v2127_v34 = vmul.f32 %v1684_v9, %v2016_v26 }
  0x96   :  { %v1700_v15 = vunpack.i.h.bf16 %v1698_v56  ;;  %v1699_v19 = vunpack.i.l.bf16 %v1698_v56  ;;  %v1695_v22 = vunpack.i.h.bf16 %v1693_v57  ;;  %v1694_v23 = vunpack.i.l.bf16 %v1693_v57 }
  0x98   :  { %v2130_v35 = vmul.f32 %v1700_v15, %v2014_v25  ;;  %v2133_v36 = vmul.f32 %v1700_v15, %v2016_v26  ;;  %v2136_v46 = vmul.f32 %v1699_v19, %v2014_v25  ;;  %v2139_v47 = vmul.f32 %v1699_v19, %v2016_v26 }
  0x99   :  { %v1708_v10 = vpop.permute.xlu1 %1707  ;;  %v1703_v11 = vpop.permute.xlu0 %1702  ;;  %v2142_v56 = vmul.f32 %v1695_v22, %v2014_v25  ;;  %v2145_v57 = vmul.f32 %v1695_v22, %v2016_v26  ;;  %v2148_v60 = vmul.f32 %v1694_v23, %v2014_v25  ;;  %v2151_v1 = vmul.f32 %v1694_v23, %v2016_v26 }
  0x9a   :  { %v1710_v29 = vunpack.i.h.bf16 %v1708_v10  ;;  %v1709_v42 = vunpack.i.l.bf16 %v1708_v10  ;;  %v1705_v51 = vunpack.i.h.bf16 %v1703_v11  ;;  %v1704_v55 = vunpack.i.l.bf16 %v1703_v11 }
  0x9c   :  { %v2154_v5 = vmul.f32 %v1710_v29, %v2014_v25  ;;  %v2157_v15 = vmul.f32 %v1710_v29, %v2016_v26  ;;  %v2160_v19 = vmul.f32 %v1709_v42, %v2014_v25  ;;  %v2163_v22 = vmul.f32 %v1709_v42, %v2016_v26 }
  0x9d   :  { %v1718_v30 = vpop.permute.xlu1 %1717  ;;  %v1713_v31 = vpop.permute.xlu0 %1712  ;;  %v2166_v23 = vmul.f32 %v1705_v51, %v2014_v25  ;;  %v2169_v39 = vmul.f32 %v1705_v51, %v2016_v26  ;;  %v2175_v38 = vmul.f32 %v1704_v55, %v2016_v26 }
  0x9e   :  { %v1720_v61 = vunpack.i.h.bf16 %v1718_v30  ;;  %2781 = vst [vmem:[#allocation7_spill] sm:$0xff] %v2154_v5  ;;  %v1719_v8 = vunpack.i.l.bf16 %v1718_v30  ;;  %v1715_v9 = vunpack.i.h.bf16 %v1713_v31  ;;  %2782 = vst [vmem:[#allocation8_spill] sm:$0xff] %v2157_v15  ;;  %v1714_v43 = vunpack.i.l.bf16 %v1713_v31 }
  0x9f   :  { %2783 = vst [vmem:[#allocation9_spill] sm:$0xff] %v2160_v19  ;;  %2784 = vst [vmem:[#allocation10_spill] sm:$0xff] %v2163_v22  ;;  %v2172_v30 = vmul.f32 %v1704_v55, %v2014_v25 }
  0xa0   :  { %2785 = vst [vmem:[#allocation11_spill] sm:$0xff] %v2166_v23  ;;  %2786 = vst [vmem:[#allocation12_spill] sm:$0xff] %v2169_v39  ;;  %v2178_v29 = vmul.f32 %v1720_v61, %v2014_v25  ;;  %v2181_v37 = vmul.f32 %v1720_v61, %v2016_v26  ;;  %v2184_v22 = vmul.f32 %v1719_v8, %v2014_v25 }
  0xa1   :  { %v1728_v10 = vpop.permute.xlu1 %1727  ;;  %v1723_v11 = vpop.permute.xlu0 %1722  ;;  %2787 = vst [vmem:[#allocation13_spill] sm:$0xff] %v2172_v30  ;;  %2788 = vst [vmem:[#allocation14_spill] sm:$0xff] %v2175_v38  ;;  %v2187_v51 = vmul.f32 %v1719_v8, %v2016_v26  ;;  %v2190_v19 = vmul.f32 %v1715_v9, %v2014_v25  ;;  %v2193_v55 = vmul.f32 %v1715_v9, %v2016_v26 }
  0xa2   :  { %2789 = vst [vmem:[#allocation15_spill] sm:$0xff] %v2178_v29  ;;  %2790 = vst [vmem:[#allocation16_spill] sm:$0xff] %v2181_v37  ;;  %v1730_v42 = vunpack.i.h.bf16 %v1728_v10  ;;  %v1729_v31 = vunpack.i.l.bf16 %v1728_v10  ;;  %v2196_v15 = vmul.f32 %v1714_v43, %v2014_v25  ;;  %v2199_v61 = vmul.f32 %v1714_v43, %v2016_v26 }
  0xa3   :  { %2791 = vst [vmem:[#allocation17_spill] sm:$0xff] %v2184_v22  ;;  %2792 = vst [vmem:[#allocation18_spill] sm:$0xff] %v2187_v51  ;;  %v1725_v37 = vunpack.i.h.bf16 %v1723_v11  ;;  %v1724_v10 = vunpack.i.l.bf16 %v1723_v11 }
  0xa4   :  { %2793 = vst [vmem:[#allocation19_spill] sm:$0xff] %v2190_v19  ;;  %2794 = vst [vmem:[#allocation20_spill] sm:$0xff] %v2193_v55  ;;  %v2202_v23 = vmul.f32 %v1730_v42, %v2014_v25  ;;  %v2205_v9 = vmul.f32 %v1730_v42, %v2016_v26  ;;  %v2208_v55 = vmul.f32 %v1729_v31, %v2014_v25 }
  0xa5   :  { %2795 = vst [vmem:[#allocation21_spill] sm:$0xff] %v2196_v15  ;;  %2796 = vst [vmem:[#allocation22_spill] sm:$0xff] %v2199_v61  ;;  %v2211_v43 = vmul.f32 %v1729_v31, %v2016_v26  ;;  %v2222_v31 = vmul.f32 %v1725_v37, %v2014_v25 }
  0xa6   :  { %v1740_v29 = vpop.permute.xlu1 %1739  ;;  %v1734_v5 = vpop.permute.xlu0 %1733  ;;  %2797 = vst [vmem:[#allocation23_spill] sm:$0xff] %v2202_v23  ;;  %2798 = vst [vmem:[#allocation24_spill] sm:$0xff] %v2205_v9 }
  0xa7   :  { %v1742_v22 = vunpack.i.h.bf16 %v1740_v29  ;;  %v1741_v39 = vunpack.i.l.bf16 %v1740_v29  ;;  %v1736_v8 = vunpack.i.h.bf16 %v1734_v5  ;;  %v1735_v51 = vunpack.i.l.bf16 %v1734_v5  ;;  %2799 = vst [vmem:[#allocation25_spill] sm:$0xff] %v2208_v55  ;;  %2800 = vst [vmem:[#allocation26_spill] sm:$0xff] %v2211_v43 }
  0xa8   :  { %2801 = vst [vmem:[#allocation27_spill] sm:$0xff] %v2222_v31  ;;  %v2225_v43 = vmul.f32 %v1725_v37, %v2016_v26 }
  0xa9   :  { %v673_v11 = vmul.f32 %v1742_v22, %v2021_v32  ;;  %v674_v19 = vmul.f32 %v1742_v22, %v2023_v33  ;;  %v671_v29 = vmul.f32 %v1741_v39, %v2021_v32  ;;  %v672_v5 = vmul.f32 %v1741_v39, %v2023_v33 }
  0xaa   :  { %v669_v61 = vmul.f32 %v1736_v8, %v2021_v32  ;;  %v670_v23 = vmul.f32 %v1736_v8, %v2023_v33  ;;  %v667_v42 = vmul.f32 %v1735_v51, %v2021_v32  ;;  %v668_v9 = vmul.f32 %v1735_v51, %v2023_v33  ;;  %v1745_v55 = vpop.permute.xlu1 %1744  ;;  %v1750_v15 = vpop.permute.xlu0 %1749  ;;  %2802 = vst [vmem:[#allocation28_spill] sm:$0xff] %v2225_v43 }
  0xab   :  { %v2228_v22 = vmul.f32 %v1724_v10, %v2014_v25  ;;  %v2231_v39 = vmul.f32 %v1724_v10, %v2016_v26  ;;  %v2234_v8 = vadd.f32 %v671_v29, %v2076_v0  ;;  %v2237_v38 = vadd.f32 %v672_v5, %v2079_v2 }
  0xac   :  { %v2240_v51 = vadd.f32 %v673_v11, %v2070_v62  ;;  %v2243_v31 = vadd.f32 %v674_v19, %v2073_v63  ;;  %v1747_v37 = vunpack.i.h.bf16 %v1745_v55  ;;  %v1746_v43 = vunpack.i.l.bf16 %v1745_v55 }
  0xad   :  { %2803 = vst [vmem:[#allocation29_spill] sm:$0xff] %v2228_v22  ;;  %v1752_v30 = vunpack.i.h.bf16 %v1750_v15  ;;  %v1751_v25 = vunpack.i.l.bf16 %v1750_v15  ;;  %v2246_v22 = vadd.f32 %v667_v42, %v2052_v50  ;;  %v2249_v26 = vadd.f32 %v668_v9, %v2055_v52 }
  0xae   :  { %v2252_v0 = vadd.f32 %v669_v61, %v2046_v48  ;;  %v2255_v2 = vadd.f32 %v670_v23, %v2049_v49  ;;  %v1755_v62 = vpop.permute.xlu1 %1754  ;;  %v1760_v10 = vpop.permute.xlu0 %1759  ;;  %v677_v63 = vmul.f32 %v1747_v37, %v2021_v32  ;;  %v678_v19 = vmul.f32 %v1747_v37, %v2023_v33 }
  0xaf   :  { %v675_v15 = vmul.f32 %v1746_v43, %v2021_v32  ;;  %v676_v50 = vmul.f32 %v1746_v43, %v2023_v33  ;;  %v681_v55 = vmul.f32 %v1752_v30, %v2021_v32  ;;  %v682_v52 = vmul.f32 %v1752_v30, %v2023_v33 }
  0xb0   :  { %v679_v48 = vmul.f32 %v1751_v25, %v2021_v32  ;;  %v680_v61 = vmul.f32 %v1751_v25, %v2023_v33  ;;  %v2266_v49 = vadd.f32 %v677_v63, %v2032_v40  ;;  %v2269_v23 = vadd.f32 %v678_v19, %v2035_v41 }
  0xb1   :  { %v2272_v9 = vadd.f32 %v675_v15, %v2040_v44  ;;  %v2275_v11 = vadd.f32 %v676_v50, %v2043_v45  ;;  %v2278_v43 = vadd.f32 %v681_v55, %v2058_v53  ;;  %v2281_v30 = vadd.f32 %v682_v52, %v2061_v54 }
  0xb2   :  { %v2284_v29 = vadd.f32 %v679_v48, %v2064_v58  ;;  %v2287_v40 = vadd.f32 %v680_v61, %v2067_v59  ;;  %v1765_v41 = vpop.permute.xlu1 %1764  ;;  %v1770_v5 = vpop.permute.xlu0 %1769  ;;  %v1757_v42 = vunpack.i.h.bf16 %v1755_v62  ;;  %v1756_v44 = vunpack.i.l.bf16 %v1755_v62 }
  0xb3   :  { %v1762_v37 = vunpack.i.h.bf16 %v1760_v10  ;;  %v1761_v25 = vunpack.i.l.bf16 %v1760_v10  ;;  %v1767_v45 = vunpack.i.h.bf16 %v1765_v41  ;;  %v1766_v63 = vunpack.i.l.bf16 %v1765_v41 }
  0xb4   :  { %v1772_v19 = vunpack.i.h.bf16 %v1770_v5  ;;  %v1771_v53 = vunpack.i.l.bf16 %v1770_v5  ;;  %v685_v15 = vmul.f32 %v1757_v42, %v2021_v32  ;;  %v686_v54 = vmul.f32 %v1757_v42, %v2023_v33 }
  0xb5   :  { %v683_v58 = vmul.f32 %v1756_v44, %v2021_v32  ;;  %v684_v50 = vmul.f32 %v1756_v44, %v2023_v33  ;;  %v689_v59 = vmul.f32 %v1762_v37, %v2021_v32  ;;  %v690_v55 = vmul.f32 %v1762_v37, %v2023_v33 }
  0xb6   :  { %v687_v62 = vmul.f32 %v1761_v25, %v2021_v32  ;;  %v688_v10 = vmul.f32 %v1761_v25, %v2023_v33  ;;  %v1775_v52 = vpop.permute.xlu1 %1774  ;;  %v1780_v48 = vpop.permute.xlu0 %1779  ;;  %v2304_v5 = vadd.f32 %v685_v15, %v2094_v12  ;;  %v2307_v42 = vadd.f32 %v686_v54, %v2097_v13 }
  0xb7   :  { %v2298_v61 = vadd.f32 %v683_v58, %v2100_v14  ;;  %v2301_v41 = vadd.f32 %v684_v50, %v2103_v16  ;;  %v2310_v44 = vadd.f32 %v689_v59, %v2082_v3  ;;  %v2313_v37 = vadd.f32 %v690_v55, %v2085_v4 }
  0xb8   :  { %v2316_v25 = vadd.f32 %v687_v62, %v2088_v6  ;;  %v2319_v14 = vadd.f32 %v688_v10, %v2091_v7  ;;  %v693_v16 = vmul.f32 %v1767_v45, %v2021_v32  ;;  %v694_v12 = vmul.f32 %v1767_v45, %v2023_v33 }
  0xb9   :  { %v691_v15 = vmul.f32 %v1766_v63, %v2021_v32  ;;  %v692_v13 = vmul.f32 %v1766_v63, %v2023_v33  ;;  %v697_v3 = vmul.f32 %v1772_v19, %v2021_v32  ;;  %v698_v54 = vmul.f32 %v1772_v19, %v2023_v33 }
  0xba   :  { %v695_v4 = vmul.f32 %v1771_v53, %v2021_v32  ;;  %v696_v6 = vmul.f32 %v1771_v53, %v2023_v33  ;;  %v1785_v58 = vpop.permute.xlu1 %1784  ;;  %v1790_v50 = vpop.permute.xlu0 %1789  ;;  %v2336_v45 = vadd.f32 %v693_v16, %v2118_v24  ;;  %v2339_v63 = vadd.f32 %v694_v12, %v2121_v27 }
  0xbb   :  { %v2330_v7 = vadd.f32 %v691_v15, %v2124_v28  ;;  %v2333_v59 = vadd.f32 %v692_v13, %v2127_v34  ;;  %v2342_v19 = vadd.f32 %v697_v3, %v2106_v17  ;;  %v2345_v55 = vadd.f32 %v698_v54, %v2109_v18 }
  0xbc   :  { %v2348_v53 = vadd.f32 %v695_v4, %v2112_v20  ;;  %v2351_v28 = vadd.f32 %v696_v6, %v2115_v21  ;;  %v1777_v34 = vunpack.i.h.bf16 %v1775_v52  ;;  %v1776_v62 = vunpack.i.l.bf16 %v1775_v52 }
  0xbd   :  { %2804 = vst [vmem:[#allocation30_spill] sm:$0xff] %v2345_v55  ;;  %v1782_v10 = vunpack.i.h.bf16 %v1780_v48  ;;  %v1781_v24 = vunpack.i.l.bf16 %v1780_v48  ;;  %v1787_v16 = vunpack.i.h.bf16 %v1785_v58  ;;  %v1786_v15 = vunpack.i.l.bf16 %v1785_v58  ;;  %v2835_v55 = vld [vmem:[#allocation17_spill] sm:$0xff] }
  0xbe   :  { %2805 = vst [vmem:[#allocation31_spill] sm:$0xff] %v2348_v53  ;;  %2806 = vst [vmem:[#allocation32_spill] sm:$0xff] %v2351_v28  ;;  %v1792_v27 = vunpack.i.h.bf16 %v1790_v50  ;;  %v1791_v12 = vunpack.i.l.bf16 %v1790_v50  ;;  %v1795_v13 = vpop.permute.xlu1 %1794  ;;  %v1800_v17 = vpop.permute.xlu0 %1799  ;;  %v701_v3 = vmul.f32 %v1777_v34, %v2021_v32  ;;  %v702_v18 = vmul.f32 %v1777_v34, %v2023_v33  ;;  %v2823_v28 = vld [vmem:[#allocation9_spill] sm:$0xff] }
  0xbf   :  { %v699_v20 = vmul.f32 %v1776_v62, %v2021_v32  ;;  %v700_v54 = vmul.f32 %v1776_v62, %v2023_v33  ;;  %v705_v21 = vmul.f32 %v1782_v10, %v2021_v32  ;;  %v706_v52 = vmul.f32 %v1782_v10, %v2023_v33 }
  0xc0   :  { %v703_v48 = vmul.f32 %v1781_v24, %v2021_v32  ;;  %v704_v4 = vmul.f32 %v1781_v24, %v2023_v33  ;;  %v2368_v50 = vadd.f32 %v701_v3, %v2142_v56  ;;  %v2371_v34 = vadd.f32 %v702_v18, %v2145_v57 }
  0xc1   :  { %v2362_v6 = vadd.f32 %v699_v20, %v2148_v60  ;;  %v2365_v58 = vadd.f32 %v700_v54, %v2151_v1  ;;  %v2374_v62 = vadd.f32 %v705_v21, %v2130_v35  ;;  %v2377_v10 = vadd.f32 %v706_v52, %v2133_v36  ;;  %v2813_v52 = vld [vmem:[#allocation14_spill] sm:$0xff] }
  0xc2   :  { %v2380_v24 = vadd.f32 %v703_v48, %v2136_v46  ;;  %v2383_v60 = vadd.f32 %v704_v4, %v2139_v47  ;;  %v709_v1 = vmul.f32 %v1787_v16, %v2021_v32  ;;  %v710_v56 = vmul.f32 %v1787_v16, %v2023_v33  ;;  %v1805_v18 = vpop.permute.xlu1 %1804  ;;  %v1810_v35 = vpop.permute.xlu0 %1809  ;;  %v2811_v47 = vld [vmem:[#allocation13_spill] sm:$0xff]  ;;  %v2815_v16 = vld [vmem:[#allocation11_spill] sm:$0xff] }
  0xc3   :  { %2807 = vst [vmem:[#allocation33_spill] sm:$0xff] %v2374_v62  ;;  %2808 = vst [vmem:[#allocation34_spill] sm:$0xff] %v2377_v10  ;;  %v707_v3 = vmul.f32 %v1786_v15, %v2021_v32  ;;  %v708_v57 = vmul.f32 %v1786_v15, %v2023_v33  ;;  %v713_v20 = vmul.f32 %v1792_v27, %v2021_v32  ;;  %v2817_v15 = vld [vmem:[#allocation12_spill] sm:$0xff] }
  0xc4   :  { %2809 = vst [vmem:[#allocation35_spill] sm:$0xff] %v2380_v24  ;;  %2810 = vst [vmem:[#allocation36_spill] sm:$0xff] %v2383_v60  ;;  %v714_v36 = vmul.f32 %v1792_v27, %v2023_v33  ;;  %v711_v46 = vmul.f32 %v1791_v12, %v2021_v32  ;;  %v712_v54 = vmul.f32 %v1791_v12, %v2023_v33  ;;  %v2819_v24 = vld [vmem:[#allocation7_spill] sm:$0xff]  ;;  %v2821_v27 = vld [vmem:[#allocation8_spill] sm:$0xff] }
  0xc5   :  { %v2394_v21 = vadd.f32 %v707_v3, %v2811_v47  ;;  %v2397_v48 = vadd.f32 %v708_v57, %v2813_v52  ;;  %v2400_v4 = vadd.f32 %v709_v1, %v2815_v16  ;;  %v2403_v60 = vadd.f32 %v710_v56, %v2817_v15  ;;  %v2825_v3 = vld [vmem:[#allocation10_spill] sm:$0xff] }
  0xc6   :  { %v2406_v10 = vadd.f32 %v713_v20, %v2819_v24  ;;  %v2409_v62 = vadd.f32 %v714_v36, %v2821_v27  ;;  %v2412_v12 = vadd.f32 %v711_v46, %v2823_v28  ;;  %v2415_v47 = vadd.f32 %v712_v54, %v2825_v3  ;;  %v2827_v3 = vld [vmem:[#allocation21_spill] sm:$0xff] }
  0xc7   :  { %2812 = vst [vmem:[#allocation13_spill] sm:$0xff] %v2394_v21  ;;  %2814 = vst [vmem:[#allocation14_spill] sm:$0xff] %v2397_v48  ;;  %v1797_v57 = vunpack.i.h.bf16 %v1795_v13  ;;  %v1796_v52 = vunpack.i.l.bf16 %v1795_v13  ;;  %v1802_v48 = vunpack.i.h.bf16 %v1800_v17  ;;  %v1801_v1 = vunpack.i.l.bf16 %v1800_v17  ;;  %v1816_v46 = vpop.permute.xlu1 %1815  ;;  %v1822_v27 = vpop.permute.xlu0 %1821 }
  0xc8   :  { %2816 = vst [vmem:[#allocation11_spill] sm:$0xff] %v2400_v4  ;;  %2818 = vst [vmem:[#allocation12_spill] sm:$0xff] %v2403_v60  ;;  %v1807_v16 = vunpack.i.h.bf16 %v1805_v18  ;;  %v1806_v21 = vunpack.i.l.bf16 %v1805_v18  ;;  %v1812_v56 = vunpack.i.h.bf16 %v1810_v35  ;;  %v1811_v15 = vunpack.i.l.bf16 %v1810_v35  ;;  %v2831_v60 = vld [vmem:[#allocation15_spill] sm:$0xff] }
  0xc9   :  { %2820 = vst [vmem:[#allocation7_spill] sm:$0xff] %v2406_v10  ;;  %2822 = vst [vmem:[#allocation8_spill] sm:$0xff] %v2409_v62  ;;  %v717_v24 = vmul.f32 %v1797_v57, %v2021_v32  ;;  %v718_v20 = vmul.f32 %v1797_v57, %v2023_v33  ;;  %v715_v36 = vmul.f32 %v1796_v52, %v2021_v32  ;;  %v2829_v57 = vld [vmem:[#allocation19_spill] sm:$0xff] }
  0xca   :  { %2824 = vst [vmem:[#allocation9_spill] sm:$0xff] %v2412_v12  ;;  %2826 = vst [vmem:[#allocation10_spill] sm:$0xff] %v2415_v47  ;;  %v716_v28 = vmul.f32 %v1796_v52, %v2023_v33  ;;  %v721_v54 = vmul.f32 %v1802_v48, %v2021_v32  ;;  %v722_v13 = vmul.f32 %v1802_v48, %v2023_v33  ;;  %v2828_v47 = vld [vmem:[#allocation22_spill] sm:$0xff]  ;;  %v2830_v52 = vld [vmem:[#allocation20_spill] sm:$0xff] }
  0xcb   :  { %v719_v17 = vmul.f32 %v1801_v1, %v2021_v32  ;;  %v720_v18 = vmul.f32 %v1801_v1, %v2023_v33  ;;  %v2426_v35 = vadd.f32 %v715_v36, %v2827_v3  ;;  %v2432_v62 = vadd.f32 %v717_v24, %v2829_v57  ;;  %v2833_v48 = vld [vmem:[#allocation16_spill] sm:$0xff]  ;;  %v2837_v36 = vld [vmem:[#allocation18_spill] sm:$0xff] }
  0xcc   :  { %v2429_v12 = vadd.f32 %v716_v28, %v2828_v47  ;;  %v2435_v10 = vadd.f32 %v718_v20, %v2830_v52  ;;  %v2438_v4 = vadd.f32 %v721_v54, %v2831_v60  ;;  %v2441_v53 = vadd.f32 %v722_v13, %v2833_v48  ;;  %v2842_v52 = vld [vmem:[#allocation27_spill] sm:$0xff]  ;;  %v2843_v48 = vld [vmem:[#allocation28_spill] sm:$0xff] }
  0xcd   :  { %v2444_v1 = vadd.f32 %v719_v17, %v2835_v55  ;;  %v2447_v3 = vadd.f32 %v720_v18, %v2837_v36  ;;  %v725_v47 = vmul.f32 %v1807_v16, %v2021_v32  ;;  %v726_v24 = vmul.f32 %v1807_v16, %v2023_v33  ;;  %v2839_v17 = vld [vmem:[#allocation29_spill] sm:$0xff] }
  0xce   :  { %2832 = vst [vmem:[#allocation21_spill] sm:$0xff] %v2438_v4  ;;  %2834 = vst [vmem:[#allocation22_spill] sm:$0xff] %v2441_v53  ;;  %v723_v28 = vmul.f32 %v1806_v21, %v2021_v32  ;;  %v724_v20 = vmul.f32 %v1806_v21, %v2023_v33  ;;  %v729_v60 = vmul.f32 %v1812_v56, %v2021_v32  ;;  %v1827_v21 = vpop.permute.xlu1 %1826 }
  0xcf   :  { %2836 = vst [vmem:[#allocation19_spill] sm:$0xff] %v2444_v1  ;;  %2838 = vst [vmem:[#allocation20_spill] sm:$0xff] %v2447_v3  ;;  %v730_v54 = vmul.f32 %v1812_v56, %v2023_v33  ;;  %v727_v13 = vmul.f32 %v1811_v15, %v2021_v32  ;;  %v728_v55 = vmul.f32 %v1811_v15, %v2023_v33  ;;  %v1837_v3 = vpop.permute.xlu0 %1836  ;;  %v2845_v1 = vld [vmem:[#allocation23_spill] sm:$0xff]  ;;  %v2847_v32 = vld [vmem:[#allocation24_spill] sm:$0xff] }
  0xd0   :  { %v2458_v57 = vadd.f32 %v723_v28, %v2839_v17  ;;  %v2461_v18 = vadd.f32 %v724_v20, %v2231_v39  ;;  %v2464_v16 = vadd.f32 %v725_v47, %v2842_v52  ;;  %v2467_v36 = vadd.f32 %v726_v24, %v2843_v48  ;;  %v2849_v33 = vld [vmem:[#allocation25_spill] sm:$0xff]  ;;  %v2851_v28 = vld [vmem:[#allocation26_spill] sm:$0xff] }
  0xd1   :  { %v2470_v56 = vadd.f32 %v729_v60, %v2845_v1  ;;  %v2473_v53 = vadd.f32 %v730_v54, %v2847_v32  ;;  %v2476_v15 = vadd.f32 %v727_v13, %v2849_v33  ;;  %v2479_v39 = vadd.f32 %v728_v55, %v2851_v28  ;;  %v2854_v60 = vld [vmem:[#allocation4_spill] sm:$0xff] }
  0xd2   :  { %2840 = vst [vmem:[#allocation15_spill] sm:$0xff] %v2458_v57  ;;  %2841 = vst [vmem:[#allocation16_spill] sm:$0xff] %v2461_v18  ;;  %v1818_v20 = vunpack.i.h.bf16 %v1816_v46  ;;  %v1817_v47 = vunpack.i.l.bf16 %v1816_v46  ;;  %v1824_v17 = vunpack.i.h.bf16 %v1822_v27  ;;  %v1823_v52 = vunpack.i.l.bf16 %v1822_v27  ;;  %v2853_v57 = vld [vmem:[#allocation3_spill] sm:$0xff] }
  0xd3   :  { %2844 = vst [vmem:[#allocation17_spill] sm:$0xff] %v2467_v36  ;;  %2846 = vst [vmem:[#allocation18_spill] sm:$0xff] %v2470_v56  ;;  %v1829_v24 = vunpack.i.h.bf16 %v1827_v21  ;;  %v1828_v48 = vunpack.i.l.bf16 %v1827_v21  ;;  %v1839_v4 = vunpack.i.h.bf16 %v1837_v3  ;;  %v1838_v18 = vunpack.i.l.bf16 %v1837_v3  ;;  %v2856_v36 = vld [vmem:[#allocation6_spill] sm:$0xff] }
  0xd4   :  { %2848 = vst [vmem:[#allocation29_spill] sm:$0xff] %v2473_v53  ;;  %2850 = vst [vmem:[#allocation27_spill] sm:$0xff] %v2476_v15  ;;  %v943_v1 = vmul.f32 %v1818_v20, %v2853_v57  ;;  %v944_v56 = vmul.f32 %v1818_v20, %v2854_v60  ;;  %v941_v54 = vmul.f32 %v1817_v47, %v2853_v57  ;;  %v2855_v15 = vld [vmem:[#allocation5_spill] sm:$0xff] }
  0xd5   :  { %2852 = vst [vmem:[#allocation28_spill] sm:$0xff] %v2479_v39  ;;  %v942_v13 = vmul.f32 %v1817_v47, %v2854_v60  ;;  %v947_v32 = vmul.f32 %v1824_v17, %v2853_v57  ;;  %v948_v55 = vmul.f32 %v1824_v17, %v2854_v60  ;;  %v945_v46 = vmul.f32 %v1823_v52, %v2853_v57 }
  0xd6   :  { %v946_v27 = vmul.f32 %v1823_v52, %v2854_v60  ;;  %v1005_v21 = vadd.f32 %v941_v54, %v2246_v22  ;;  %v1007_v33 = vadd.f32 %v943_v1, %v2252_v0  ;;  %v1008_v28 = vadd.f32 %v944_v56, %v2255_v2 }
  0xd7   :  { %v1006_v3 = vadd.f32 %v942_v13, %v2249_v26  ;;  %v1009_v20 = vadd.f32 %v945_v46, %v2234_v8  ;;  %v1011_v39 = vadd.f32 %v947_v32, %v2240_v51  ;;  %v1012_v17 = vadd.f32 %v948_v55, %v2243_v31 }
  0xd8   :  { %v1010_v47 = vadd.f32 %v946_v27, %v2237_v38  ;;  %v1211_v53 = vadd.f32 %v2855_v15, %v1005_v21  ;;  %v1213_v22 = vadd.f32 %v2855_v15, %v1007_v33  ;;  %v1214_v26 = vadd.f32 %v2856_v36, %v1008_v28  ;;  %v1832_v21 = vpop.permute.xlu1 %1831 }
  0xd9   :  { %v1212_v52 = vadd.f32 %v2856_v36, %v1006_v3  ;;  %v1215_v0 = vadd.f32 %v2855_v15, %v1009_v20  ;;  %v1217_v8 = vadd.f32 %v2855_v15, %v1011_v39  ;;  %v1218_v38 = vadd.f32 %v2856_v36, %v1012_v17  ;;  %v1847_v17 = vpop.permute.xlu0 %1846 }
  0xda   :  { %v1216_v2 = vadd.f32 %v2856_v36, %v1010_v47  ;;  %v1536_v51 = vpack.c.bf16 %v1214_v26, %v1213_v22  ;;  %v951_v31 = vmul.f32 %v1829_v24, %v2853_v57  ;;  %v952_v1 = vmul.f32 %v1829_v24, %v2854_v60 }
  0xdb   :  { %v1535_v56 = vpack.c.bf16 %v1212_v52, %v1211_v53  ;;  %v1538_v13 = vpack.c.bf16 %v1218_v38, %v1217_v8  ;;  %v949_v32 = vmul.f32 %v1828_v48, %v2853_v57  ;;  %v950_v55 = vmul.f32 %v1828_v48, %v2854_v60 }
  0xdc   :  { %v1537_v54 = vpack.c.bf16 %v1216_v2, %v1215_v0  ;;  %1468 = vst [vmem:[%s2772_s3 + $0x8] sm:$0xff] %v1536_v51  ;;  %v1015_v53 = vadd.f32 %v951_v31, %v2266_v49  ;;  %v1016_v39 = vadd.f32 %v952_v1, %v2269_v23  ;;  %v959_v24 = vmul.f32 %v1839_v4, %v2853_v57 }
  0xdd   :  { %1467 = vst [vmem:[%s2772_s3] sm:$0xff] %v1535_v56  ;;  %v960_v46 = vmul.f32 %v1839_v4, %v2854_v60  ;;  %1470 = vst [vmem:[%s2772_s3 + $0x18] sm:$0xff] %v1538_v13  ;;  %v1013_v48 = vadd.f32 %v949_v32, %v2272_v9  ;;  %v1014_v27 = vadd.f32 %v950_v55, %v2275_v11  ;;  %v1834_v26 = vunpack.i.h.bf16 %v1832_v21 }
  0xde   :  { %1469 = vst [vmem:[%s2772_s3 + $0x10] sm:$0xff] %v1537_v54  ;;  %v957_v49 = vmul.f32 %v1838_v18, %v2853_v57  ;;  %v958_v23 = vmul.f32 %v1838_v18, %v2854_v60  ;;  %v1221_v3 = vadd.f32 %v2855_v15, %v1015_v53  ;;  %v1222_v4 = vadd.f32 %v2856_v36, %v1016_v39 }
  0xdf   :  { %v1023_v33 = vadd.f32 %v959_v24, %v2304_v5  ;;  %v1024_v28 = vadd.f32 %v960_v46, %v2307_v42  ;;  %v1219_v20 = vadd.f32 %v2855_v15, %v1013_v48  ;;  %v1220_v47 = vadd.f32 %v2856_v36, %v1014_v27  ;;  %v1842_v48 = vpop.permute.xlu1 %1841 }
  0xe0   :  { %v1021_v9 = vadd.f32 %v957_v49, %v2298_v61  ;;  %v1022_v11 = vadd.f32 %v958_v23, %v2301_v41  ;;  %v1540_v52 = vpack.c.bf16 %v1222_v4, %v1221_v3  ;;  %v1833_v2 = vunpack.i.l.bf16 %v1832_v21  ;;  %v1857_v3 = vpop.permute.xlu0 %1856 }
  0xe1   :  { %v1229_v18 = vadd.f32 %v2855_v15, %v1023_v33  ;;  %v1230_v22 = vadd.f32 %v2856_v36, %v1024_v28  ;;  %v1539_v0 = vpack.c.bf16 %v1220_v47, %v1219_v20  ;;  %v955_v41 = vmul.f32 %v1834_v26, %v2853_v57 }
  0xe2   :  { %v1227_v5 = vadd.f32 %v2855_v15, %v1021_v9  ;;  %v1228_v42 = vadd.f32 %v2856_v36, %v1022_v11  ;;  %1472 = vst [vmem:[%s2772_s3 + $0x28] sm:$0xff] %v1540_v52  ;;  %v956_v8 = vmul.f32 %v1834_v26, %v2854_v60  ;;  %v1849_v38 = vunpack.i.h.bf16 %v1847_v17 }
  0xe3   :  { %v1544_v61 = vpack.c.bf16 %v1230_v22, %v1229_v18  ;;  %1471 = vst [vmem:[%s2772_s3 + $0x20] sm:$0xff] %v1539_v0  ;;  %v953_v51 = vmul.f32 %v1833_v2, %v2853_v57  ;;  %v954_v31 = vmul.f32 %v1833_v2, %v2854_v60  ;;  %v1848_v1 = vunpack.i.l.bf16 %v1847_v17 }
  0xe4   :  { %v1543_v56 = vpack.c.bf16 %v1228_v42, %v1227_v5  ;;  %v1019_v54 = vadd.f32 %v955_v41, %v2278_v43  ;;  %v1020_v13 = vadd.f32 %v956_v8, %v2281_v30  ;;  %v967_v32 = vmul.f32 %v1849_v38, %v2853_v57 }
  0xe5   :  { %1476 = vst [vmem:[%s2772_s3 + $0x48] sm:$0xff] %v1544_v61  ;;  %v968_v55 = vmul.f32 %v1849_v38, %v2854_v60  ;;  %v1017_v53 = vadd.f32 %v953_v51, %v2284_v29  ;;  %v1018_v39 = vadd.f32 %v954_v31, %v2287_v40  ;;  %v965_v24 = vmul.f32 %v1848_v1, %v2853_v57 }
  0xe6   :  { %1475 = vst [vmem:[%s2772_s3 + $0x40] sm:$0xff] %v1543_v56  ;;  %v966_v46 = vmul.f32 %v1848_v1, %v2854_v60  ;;  %v1225_v43 = vadd.f32 %v2855_v15, %v1019_v54  ;;  %v1226_v30 = vadd.f32 %v2856_v36, %v1020_v13  ;;  %v1031_v27 = vadd.f32 %v967_v32, %v2336_v45  ;;  %v1852_v56 = vpop.permute.xlu1 %1851  ;;  %v1867_v13 = vpop.permute.xlu0 %1866 }
  0xe7   :  { %v1032_v49 = vadd.f32 %v968_v55, %v2339_v63  ;;  %v1223_v23 = vadd.f32 %v2855_v15, %v1017_v53  ;;  %v1224_v21 = vadd.f32 %v2856_v36, %v1018_v39  ;;  %v1029_v29 = vadd.f32 %v965_v24, %v2330_v7 }
  0xe8   :  { %v1030_v40 = vadd.f32 %v966_v46, %v2333_v59  ;;  %v1542_v4 = vpack.c.bf16 %v1226_v30, %v1225_v43  ;;  %v1237_v33 = vadd.f32 %v2855_v15, %v1031_v27  ;;  %v1844_v20 = vunpack.i.h.bf16 %v1842_v48 }
  0xe9   :  { %v1238_v28 = vadd.f32 %v2856_v36, %v1032_v49  ;;  %v1541_v47 = vpack.c.bf16 %v1224_v21, %v1223_v23  ;;  %v1235_v45 = vadd.f32 %v2855_v15, %v1029_v29  ;;  %v1843_v9 = vunpack.i.l.bf16 %v1842_v48  ;;  %v2857_v29 = vld [vmem:[#allocation30_spill] sm:$0xff] }
  0xea   :  { %v1236_v63 = vadd.f32 %v2856_v36, %v1030_v40  ;;  %1474 = vst [vmem:[%s2772_s3 + $0x38] sm:$0xff] %v1542_v4  ;;  %v963_v59 = vmul.f32 %v1844_v20, %v2853_v57  ;;  %v964_v11 = vmul.f32 %v1844_v20, %v2854_v60  ;;  %v1859_v17 = vunpack.i.h.bf16 %v1857_v3  ;;  %v2859_v20 = vld [vmem:[#allocation32_spill] sm:$0xff] }
  0xeb   :  { %v1548_v7 = vpack.c.bf16 %v1238_v28, %v1237_v33  ;;  %1473 = vst [vmem:[%s2772_s3 + $0x30] sm:$0xff] %v1541_v47  ;;  %v961_v18 = vmul.f32 %v1843_v9, %v2853_v57  ;;  %v962_v22 = vmul.f32 %v1843_v9, %v2854_v60  ;;  %v1858_v26 = vunpack.i.l.bf16 %v1857_v3  ;;  %v2858_v33 = vld [vmem:[#allocation31_spill] sm:$0xff]  ;;  %v1862_v9 = vpop.permute.xlu1 %1861 }
  0xec   :  { %v1547_v52 = vpack.c.bf16 %v1236_v63, %v1235_v45  ;;  %v1027_v0 = vadd.f32 %v963_v59, %v2310_v44  ;;  %v1028_v5 = vadd.f32 %v964_v11, %v2313_v37  ;;  %v975_v42 = vmul.f32 %v1859_v17, %v2853_v57  ;;  %v2860_v59 = vld [vmem:[#allocation11_spill] sm:$0xff] }
  0xed   :  { %1480 = vst [vmem:[%s2772_s3 + $0x68] sm:$0xff] %v1548_v7  ;;  %v976_v2 = vmul.f32 %v1859_v17, %v2854_v60  ;;  %v1025_v61 = vadd.f32 %v961_v18, %v2316_v25  ;;  %v1026_v41 = vadd.f32 %v962_v22, %v2319_v14  ;;  %v973_v8 = vmul.f32 %v1858_v26, %v2853_v57  ;;  %v2861_v17 = vld [vmem:[#allocation12_spill] sm:$0xff] }
  0xee   :  { %1479 = vst [vmem:[%s2772_s3 + $0x60] sm:$0xff] %v1547_v52  ;;  %v974_v38 = vmul.f32 %v1858_v26, %v2854_v60  ;;  %v1233_v44 = vadd.f32 %v2855_v15, %v1027_v0  ;;  %v1234_v37 = vadd.f32 %v2856_v36, %v1028_v5  ;;  %v1039_v51 = vadd.f32 %v975_v42, %v2368_v50  ;;  %v2862_v26 = vld [vmem:[#allocation13_spill] sm:$0xff]  ;;  %v2863_v5 = vld [vmem:[#allocation14_spill] sm:$0xff] }
  0xef   :  { %v1040_v31 = vadd.f32 %v976_v2, %v2371_v34  ;;  %v1231_v1 = vadd.f32 %v2855_v15, %v1025_v61  ;;  %v1232_v54 = vadd.f32 %v2856_v36, %v1026_v41  ;;  %v1037_v25 = vadd.f32 %v973_v8, %v2362_v6  ;;  %v1877_v2 = vpop.permute.xlu0 %1876 }
  0xf0   :  { %v1038_v14 = vadd.f32 %v974_v38, %v2365_v58  ;;  %v1546_v32 = vpack.c.bf16 %v1234_v37, %v1233_v44  ;;  %v1245_v55 = vadd.f32 %v2855_v15, %v1039_v51  ;;  %v1854_v39 = vunpack.i.h.bf16 %v1852_v56 }
  0xf1   :  { %v1246_v53 = vadd.f32 %v2856_v36, %v1040_v31  ;;  %v1545_v24 = vpack.c.bf16 %v1232_v54, %v1231_v1  ;;  %v1243_v50 = vadd.f32 %v2855_v15, %v1037_v25  ;;  %v1853_v46 = vunpack.i.l.bf16 %v1852_v56 }
  0xf2   :  { %v1244_v34 = vadd.f32 %v2856_v36, %v1038_v14  ;;  %1478 = vst [vmem:[%s2772_s3 + $0x58] sm:$0xff] %v1546_v32  ;;  %v971_v58 = vmul.f32 %v1854_v39, %v2853_v57  ;;  %v972_v48 = vmul.f32 %v1854_v39, %v2854_v60  ;;  %v1869_v43 = vunpack.i.h.bf16 %v1867_v13  ;;  %v2864_v39 = vld [vmem:[#allocation33_spill] sm:$0xff] }
  0xf3   :  { %v1552_v6 = vpack.c.bf16 %v1246_v53, %v1245_v55  ;;  %1477 = vst [vmem:[%s2772_s3 + $0x50] sm:$0xff] %v1545_v24  ;;  %v969_v27 = vmul.f32 %v1853_v46, %v2853_v57  ;;  %v970_v49 = vmul.f32 %v1853_v46, %v2854_v60  ;;  %v1868_v23 = vunpack.i.l.bf16 %v1867_v13  ;;  %v1872_v53 = vpop.permute.xlu1 %1871 }
  0xf4   :  { %v1551_v30 = vpack.c.bf16 %v1244_v34, %v1243_v50  ;;  %v1035_v21 = vadd.f32 %v971_v58, %v2342_v19  ;;  %v1036_v40 = vadd.f32 %v972_v48, %v2857_v29  ;;  %v983_v3 = vmul.f32 %v1869_v43, %v2853_v57  ;;  %v2865_v50 = vld [vmem:[#allocation34_spill] sm:$0xff]  ;;  %v2866_v58 = vld [vmem:[#allocation35_spill] sm:$0xff] }
  0xf5   :  { %1484 = vst [vmem:[%s2772_s3 + $0x88] sm:$0xff] %v1552_v6  ;;  %v984_v4 = vmul.f32 %v1869_v43, %v2854_v60  ;;  %v1033_v28 = vadd.f32 %v969_v27, %v2858_v33  ;;  %v1034_v47 = vadd.f32 %v970_v49, %v2859_v20  ;;  %v981_v45 = vmul.f32 %v1868_v23, %v2853_v57  ;;  %v2867_v43 = vld [vmem:[#allocation36_spill] sm:$0xff]  ;;  %v1887_v20 = vpop.permute.xlu0 %1886 }
  0xf6   :  { %1483 = vst [vmem:[%s2772_s3 + $0x80] sm:$0xff] %v1551_v30  ;;  %v982_v63 = vmul.f32 %v1868_v23, %v2854_v60  ;;  %v1241_v19 = vadd.f32 %v2855_v15, %v1035_v21  ;;  %v1242_v7 = vadd.f32 %v2856_v36, %v1036_v40  ;;  %v1047_v11 = vadd.f32 %v983_v3, %v2860_v59 }
  0xf7   :  { %v1048_v52 = vadd.f32 %v984_v4, %v2861_v17  ;;  %v1239_v18 = vadd.f32 %v2855_v15, %v1033_v28  ;;  %v1240_v22 = vadd.f32 %v2856_v36, %v1034_v47  ;;  %v1045_v0 = vadd.f32 %v981_v45, %v2862_v26  ;;  %v1882_v59 = vpop.permute.xlu1 %1881 }
  0xf8   :  { %v1046_v42 = vadd.f32 %v982_v63, %v2863_v5  ;;  %v1550_v61 = vpack.c.bf16 %v1242_v7, %v1241_v19  ;;  %v1253_v41 = vadd.f32 %v2855_v15, %v1047_v11  ;;  %v1864_v38 = vunpack.i.h.bf16 %v1862_v9 }
  0xf9   :  { %v1254_v8 = vadd.f32 %v2856_v36, %v1048_v52  ;;  %v1549_v56 = vpack.c.bf16 %v1240_v22, %v1239_v18  ;;  %v1251_v44 = vadd.f32 %v2855_v15, %v1045_v0  ;;  %v1863_v51 = vunpack.i.l.bf16 %v1862_v9  ;;  %v2868_v0 = vld [vmem:[#allocation7_spill] sm:$0xff] }
  0xfa   :  { %v1252_v37 = vadd.f32 %v2856_v36, %v1046_v42  ;;  %1482 = vst [vmem:[%s2772_s3 + $0x78] sm:$0xff] %v1550_v61  ;;  %v979_v1 = vmul.f32 %v1864_v38, %v2853_v57  ;;  %v980_v54 = vmul.f32 %v1864_v38, %v2854_v60  ;;  %v1879_v25 = vunpack.i.h.bf16 %v1877_v2  ;;  %v2869_v42 = vld [vmem:[#allocation8_spill] sm:$0xff] }
  0xfb   :  { %v1556_v31 = vpack.c.bf16 %v1254_v8, %v1253_v41  ;;  %1481 = vst [vmem:[%s2772_s3 + $0x70] sm:$0xff] %v1549_v56  ;;  %v977_v13 = vmul.f32 %v1863_v51, %v2853_v57  ;;  %v978_v32 = vmul.f32 %v1863_v51, %v2854_v60  ;;  %v1878_v55 = vunpack.i.l.bf16 %v1877_v2  ;;  %v2870_v8 = vld [vmem:[#allocation9_spill] sm:$0xff]  ;;  %v2871_v56 = vld [vmem:[#allocation10_spill] sm:$0xff] }
  0xfc   :  { %v1555_v14 = vpack.c.bf16 %v1252_v37, %v1251_v44  ;;  %v1043_v24 = vadd.f32 %v979_v1, %v2864_v39  ;;  %v1044_v34 = vadd.f32 %v980_v54, %v2865_v50  ;;  %v991_v46 = vmul.f32 %v1879_v25, %v2853_v57  ;;  %v2874_v39 = vld [vmem:[#allocation16_spill] sm:$0xff]  ;;  %v1892_v50 = vpop.permute.xlu1 %1891 }
  0xfd   :  { %1488 = vst [vmem:[%s2772_s3 + $0xa8] sm:$0xff] %v1556_v31  ;;  %v992_v6 = vmul.f32 %v1879_v25, %v2854_v60  ;;  %v1041_v48 = vadd.f32 %v977_v13, %v2866_v58  ;;  %v1042_v30 = vadd.f32 %v978_v32, %v2867_v43  ;;  %v989_v27 = vmul.f32 %v1878_v55, %v2853_v57  ;;  %v2872_v25 = vld [vmem:[#allocation17_spill] sm:$0xff] }
  0xfe   :  { %1487 = vst [vmem:[%s2772_s3 + $0xa0] sm:$0xff] %v1555_v14  ;;  %v990_v49 = vmul.f32 %v1878_v55, %v2854_v60  ;;  %v1249_v23 = vadd.f32 %v2855_v15, %v1043_v24  ;;  %v1250_v21 = vadd.f32 %v2856_v36, %v1044_v34  ;;  %v1055_v29 = vadd.f32 %v991_v46, %v2432_v62  ;;  %v2873_v55 = vld [vmem:[#allocation15_spill] sm:$0xff] }
  0xff   :  { %v1056_v40 = vadd.f32 %v992_v6, %v2435_v10  ;;  %v1247_v3 = vadd.f32 %v2855_v15, %v1041_v48  ;;  %v1248_v4 = vadd.f32 %v2856_v36, %v1042_v30  ;;  %v1053_v33 = vadd.f32 %v989_v27, %v2426_v35 }
 0x100   :  { %v1054_v28 = vadd.f32 %v990_v49, %v2429_v12  ;;  %v1554_v47 = vpack.c.bf16 %v1250_v21, %v1249_v23  ;;  %v1261_v45 = vadd.f32 %v2855_v15, %v1055_v29  ;;  %v1874_v9 = vunpack.i.h.bf16 %v1872_v53 }
 0x101   :  { %v1262_v63 = vadd.f32 %v2856_v36, %v1056_v40  ;;  %v1553_v19 = vpack.c.bf16 %v1248_v4, %v1247_v3  ;;  %v1259_v62 = vadd.f32 %v2855_v15, %v1053_v33  ;;  %v1873_v7 = vunpack.i.l.bf16 %v1872_v53  ;;  %v2875_v33 = vld [vmem:[#allocation21_spill] sm:$0xff] }
 0x102   :  { %v1260_v10 = vadd.f32 %v2856_v36, %v1054_v28  ;;  %1486 = vst [vmem:[%s2772_s3 + $0x98] sm:$0xff] %v1554_v47  ;;  %v987_v12 = vmul.f32 %v1874_v9, %v2853_v57  ;;  %v988_v11 = vmul.f32 %v1874_v9, %v2854_v60  ;;  %v1889_v17 = vunpack.i.h.bf16 %v1887_v20  ;;  %v2877_v9 = vld [vmem:[#allocation19_spill] sm:$0xff] }
 0x103   :  { %v1560_v35 = vpack.c.bf16 %v1262_v63, %v1261_v45  ;;  %1485 = vst [vmem:[%s2772_s3 + $0x90] sm:$0xff] %v1553_v19  ;;  %v985_v18 = vmul.f32 %v1873_v7, %v2853_v57  ;;  %v986_v22 = vmul.f32 %v1873_v7, %v2854_v60  ;;  %v1888_v26 = vunpack.i.l.bf16 %v1887_v20  ;;  %v2876_v20 = vld [vmem:[#allocation22_spill] sm:$0xff] }
 0x104   :  { %v1559_v52 = vpack.c.bf16 %v1260_v10, %v1259_v62  ;;  %v1051_v5 = vadd.f32 %v987_v12, %v2868_v0  ;;  %v1052_v2 = vadd.f32 %v988_v11, %v2869_v42  ;;  %v999_v61 = vmul.f32 %v1889_v17, %v2853_v57  ;;  %v2878_v62 = vld [vmem:[#allocation20_spill] sm:$0xff]  ;;  %v2879_v11 = vld [vmem:[#allocation18_spill] sm:$0xff]  ;;  %v2881_v0 = vld [vmem:[#allocation27_spill] sm:$0xff] }
 0x105   :  { %1492 = vst [vmem:[%s2772_s3 + $0xc8] sm:$0xff] %v1560_v35  ;;  %v1000_v41 = vmul.f32 %v1889_v17, %v2854_v60  ;;  %v1049_v38 = vadd.f32 %v985_v18, %v2870_v8  ;;  %v1050_v44 = vadd.f32 %v986_v22, %v2871_v56  ;;  %v997_v37 = vmul.f32 %v1888_v26, %v2853_v57  ;;  %v2882_v42 = vld [vmem:[#allocation28_spill] sm:$0xff] }
 0x106   :  { %1491 = vst [vmem:[%s2772_s3 + $0xc0] sm:$0xff] %v1559_v52  ;;  %v998_v51 = vmul.f32 %v1888_v26, %v2854_v60  ;;  %v1257_v31 = vadd.f32 %v2855_v15, %v1051_v5  ;;  %v1258_v1 = vadd.f32 %v2856_v36, %v1052_v2  ;;  %v1063_v54 = vadd.f32 %v999_v61, %v2464_v16  ;;  %v2880_v52 = vld [vmem:[#allocation29_spill] sm:$0xff] }
 0x107   :  { %v1064_v14 = vadd.f32 %v1000_v41, %v2872_v25  ;;  %v1255_v13 = vadd.f32 %v2855_v15, %v1049_v38  ;;  %v1256_v32 = vadd.f32 %v2856_v36, %v1050_v44  ;;  %v1061_v53 = vadd.f32 %v997_v37, %v2873_v55 }
 0x108   :  { %v1062_v24 = vadd.f32 %v998_v51, %v2874_v39  ;;  %v1558_v34 = vpack.c.bf16 %v1258_v1, %v1257_v31  ;;  %v1269_v46 = vadd.f32 %v2855_v15, %v1063_v54  ;;  %v1884_v58 = vunpack.i.h.bf16 %v1882_v59 }
 0x109   :  { %v1270_v6 = vadd.f32 %v2856_v36, %v1064_v14  ;;  %v1557_v48 = vpack.c.bf16 %v1256_v32, %v1255_v13  ;;  %v1267_v16 = vadd.f32 %v2855_v15, %v1061_v53  ;;  %v1883_v30 = vunpack.i.l.bf16 %v1882_v59 }
 0x10a   :  { %v1268_v43 = vadd.f32 %v2856_v36, %v1062_v24  ;;  %1490 = vst [vmem:[%s2772_s3 + $0xb8] sm:$0xff] %v1558_v34  ;;  %v995_v49 = vmul.f32 %v1884_v58, %v2853_v57  ;;  %v996_v23 = vmul.f32 %v1884_v58, %v2854_v60  ;;  %v1894_v21 = vunpack.i.h.bf16 %v1892_v50 }
 0x10b   :  { %v1564_v27 = vpack.c.bf16 %v1270_v6, %v1269_v46  ;;  %1489 = vst [vmem:[%s2772_s3 + $0xb0] sm:$0xff] %v1557_v48  ;;  %v993_v40 = vmul.f32 %v1883_v30, %v2853_v57  ;;  %v994_v3 = vmul.f32 %v1883_v30, %v2854_v60  ;;  %v1893_v4 = vunpack.i.l.bf16 %v1892_v50 }
 0x10c   :  { %v1563_v29 = vpack.c.bf16 %v1268_v43, %v1267_v16  ;;  %v1059_v28 = vadd.f32 %v995_v49, %v2875_v33  ;;  %v1060_v47 = vadd.f32 %v996_v23, %v2876_v20  ;;  %v1003_v45 = vmul.f32 %v1894_v21, %v2853_v57 }
 0x10d   :  { %1496 = vst [vmem:[%s2772_s3 + $0xe8] sm:$0xff] %v1564_v27  ;;  %v1004_v63 = vmul.f32 %v1894_v21, %v2854_v60  ;;  %v1057_v19 = vadd.f32 %v993_v40, %v2877_v9  ;;  %v1058_v10 = vadd.f32 %v994_v3, %v2878_v62  ;;  %v1001_v7 = vmul.f32 %v1893_v4, %v2853_v57 }
 0x10e   :  { %1495 = vst [vmem:[%s2772_s3 + $0xe0] sm:$0xff] %v1563_v29  ;;  %v1002_v59 = vmul.f32 %v1893_v4, %v2854_v60  ;;  %v1265_v35 = vadd.f32 %v2855_v15, %v1059_v28  ;;  %v1266_v12 = vadd.f32 %v2856_v36, %v1060_v47  ;;  %v1067_v17 = vadd.f32 %v1003_v45, %v2879_v11 }
 0x10f   :  { %v1068_v18 = vadd.f32 %v1004_v63, %v2880_v52  ;;  %v1263_v22 = vadd.f32 %v2855_v15, %v1057_v19  ;;  %v1264_v26 = vadd.f32 %v2856_v36, %v1058_v10  ;;  %v1065_v5 = vadd.f32 %v1001_v7, %v2881_v0 }
 0x110   :  { %v1066_v2 = vadd.f32 %v1002_v59, %v2882_v42  ;;  %v1562_v61 = vpack.c.bf16 %v1266_v12, %v1265_v35  ;;  %v1273_v57 = vadd.f32 %v2855_v15, %v1067_v17 }
 0x111   :  { %v1274_v60 = vadd.f32 %v2856_v36, %v1068_v18  ;;  %v1561_v41 = vpack.c.bf16 %v1264_v26, %v1263_v22  ;;  %v1271_v8 = vadd.f32 %v2855_v15, %v1065_v5 }
 0x112   :  { %v1272_v38 = vadd.f32 %v2856_v36, %v1066_v2  ;;  %1494 = vst [vmem:[%s2772_s3 + $0xd8] sm:$0xff] %v1562_v61 }
 0x113   :  { %v1566_v56 = vpack.c.bf16 %v1274_v60, %v1273_v57  ;;  %1493 = vst [vmem:[%s2772_s3 + $0xd0] sm:$0xff] %v1561_v41 }
 0x114   :  { %v1565_v44 = vpack.c.bf16 %v1272_v38, %v1271_v8 }
 0x115   :  { %1498 = vst [vmem:[%s2772_s3 + $0xf8] sm:$0xff] %v1566_v56 }
 0x116   :  { %1497 = vst [vmem:[%s2772_s3 + $0xf0] sm:$0xff] %v1565_v44 }

// kernel: run.25
= control target key start
LH: loop header
LB: loop body
LE: loop exit
PB: predicated region body
PF: predicated region fallthrough
CT: control target
= control target key end

     0   :  { %s840_s15 = smov 0   ;;  %s842_s16 = smov 0   ;;  %s896_s0 = inlined_call_operand.vmem [shape: f32[8,4], index: 0, kind: input, shape index: {}, may-alias: {0,1}]   ;;  %s897_s1 = inlined_call_operand.vmem [shape: f32[8,4], index: 1, kind: input, shape index: {}, may-alias: {0,1}]   ;;  %s898_s2 = inlined_call_operand.vmem [shape: bf16[2,4,4,128], index: 2, kind: input, shape index: {}]   ;;  %s899_s3 = inlined_call_operand.vmem [shape: bf16[2,8,8,128], index: 3, kind: input, shape index: {}]   ;;  %s900_s4 = inlined_call_operand.vmem [shape: bf16[2,8,8,128], index: 4, kind: output, shape index: {}]  }
   0x1   :  { %s844_s17 = smov 0  }
   0x2 LB: > { %s26_s18 = sadd.s32 1, %s800_s16  ;;  %p711_p0 = scmp.ge.s32.totalorder %s804_s17, 1  ;;  %s804_s17 = sphi %s844_s17, %s14_s17   ;;  %s800_s16 = sphi %s842_s16, %s902_s16   ;;  %s796_s15 = sphi %s840_s15, %s901_s15  }
   0x3   : > { %p28_p1 = scmp.ge.s32.totalorder %s26_s18, 2  ;;  %p202_p2 = scmp.lt.s32.totalorder %s804_s17, 3 }
   0x5   : > { %s904_s18 = smov (%p28_p1, %s26_s18), 0  ;;  %p203_p3 = pnand %p711_p0, %p202_p2 }
   0x6   : > { %p249_p4 = scmp.lt.s32.totalorder (!%p203_p3), %s796_s15, 1  ;;  %v286_v0 = vlaneseq (!%p203_p3)  ;;  %v810_v1 = vmov (!%p203_p3), 1983009808   ;;  %v811_v3 = vmov (!%p203_p3), 0.0   ;;  %v812_v6 = vmov (!%p203_p3), 1934713408  }
   0x7   : > { %206 = sbr.rel (%p203_p3) target bundleno = 472 (0x1d8), region = 36  ;;  %v284_v2 = vunpack.c.l.s4 (!%p203_p3), %v810_v1  ;;  %398 = vmatprep.mubr.f32.mxu0 (!%p203_p3), %v811_v3  ;;  %469 = vmatprep.mubr.f32.mxu1 (!%p203_p3), %v811_v3  ;;  %v301_v7 = vunpack.c.l.s4 (!%p203_p3), %v812_v6  ;;  %vm321_vm0 = vcmask (!%p203_p3), 1043456   ;;  %v316_v29 = vld [vmem:[%s896_s0] sm:$0xff] (!%p203_p3)  ;;  %vm317_vm1 = vcmask (!%p203_p3), 31744   ;;  %s806_s8 = smov (!%p203_p3), 0  }
   0x8   : > { %v287_v5 = vshrl.u32 (!%p203_p3), %v286_v0, 7  ;;  %v487_v30 = vld [vmem:[%s897_s1] sm:$0xff] (!%p203_p3) }
   0x9   : > { %v285_v4 = vunpack.c.0.s8 (!%p203_p3), %v284_v2  ;;  %v302_v17 = vunpack.c.0.s8 (!%p203_p3), %v301_v7 }
   0xb   : > { %v288_v15 = vsub.s32 (!%p203_p3), %v285_v4, %v287_v5  ;;  %v305_v22 = vsub.s32 (!%p203_p3), %v302_v17, %v287_v5 }
   0xe   : > { %s906_s15 = smov (!%p249_p4, %s796_s15), 1 }
   0xf   : > { %s731_s19 = sshll.u32 %s906_s15, 3  ;;  %s732_s20 = sshll.u32 %s906_s15, 5 }
  0x10   : > { %s253_s23 = scalar_lea.vmem %s898_s2, %s731_s19  ;;  %s864_s26 = scalar_lea.vmem %s899_s3, %s732_s20 }
  0x11   : > { %s869_s29 = scalar_lea.vmem %s900_s4, %s732_s20  ;;  %v274_v8 = vld [vmem:[%s253_s23] sm:$0x3]  ;;  %v275_v9 = vld [vmem:[%s253_s23 + $0x2] sm:$0x3]  ;;  %v276_v10 = vld [vmem:[%s253_s23 + $0x4] sm:$0x3] }
  0x12   : > { %v277_v11 = vld [vmem:[%s253_s23 + $0x6] sm:$0x3]  ;;  %v278_v12 = vunpack.c.l.bf16 %v274_v8  ;;  %v279_v13 = vunpack.c.l.bf16 %v275_v9  ;;  %v280_v14 = vunpack.c.l.bf16 %v276_v10 }
  0x13   : > { %v281_v16 = vunpack.c.l.bf16 %v277_v11 }
  0x14   : > { %v282_v18 = vcombine.low %v278_v12, %v280_v14 }
  0x15   : > { %v290_v19 = vcombine.low %v279_v13, %v281_v16 }
  0x16   : > { %v289_v20 = vrot.slane %v282_v18, %v288_v15 }
  0x17   : > { %v297_v21 = vrot.slane %v290_v19, %v288_v15 }
  0x19   : > { %v298_v23 = vcombine.low %v289_v20, %v297_v21  ;;  %v299_v24 = vcombine.high %v289_v20, %v297_v21 }
  0x1b   : > { %v306_v25 = vrot.slane %v298_v23, %v305_v22  ;;  %v313_v26 = vrot.slane %v299_v24, %v305_v22 }
  0x1d   : > { %v314_v27 = vcombine.high %v306_v25, %v811_v3  ;;  %v315_v28 = vcombine.high %v313_v26, %v811_v3 }
  0x1f   : > { %718 = vmatprep.subr.msk.mxu0 %vm321_vm0, %v314_v27  ;;  %721 = vmatprep.subr.msk.mxu1 %vm321_vm0, %v315_v28 }
  0x20   : > { %719 = vmatpush1.msk.msra.mxu0 %vm321_vm0, %v306_v25  ;;  %722 = vmatpush1.msk.msra.mxu1 %vm321_vm0, %v313_v26 }
  0x21   : > { %720 = vmatmul.mubr.msk.f32.vlgmr.msra.gmra.mrb[0].mxu0 %vm317_vm1, %v316_v29  ;;  %723 = vmatmul.mubr.msk.f32.vlgmr.msra.gmra.mrb[0].mxu1 %vm317_vm1, %v316_v29 }
  0xf4   : > { %v400_v31 = vpop.f32.mrb[0].mxu0  ;;  %v471_v32 = vpop.f32.mrb[0].mxu1 }
  0xf5   : > { %477 = vst [vmem:[#allocation2] ss:$4 sm:$0xff] %v400_v31  ;;  %483 = vst [vmem:[#allocation2 + $0x2] ss:$4 sm:$0xff] %v471_v32  ;;  %v402_v33 = vpop.f32.mrb[1].mxu0  ;;  %v473_v34 = vpop.f32.mrb[1].mxu1 }
  0xf6   : > { %480 = vst [vmem:[#allocation2 + $0x1] ss:$4 sm:$0xff] %v402_v33  ;;  %486 = vst [vmem:[#allocation2 + $0x3] ss:$4 sm:$0xff] %v473_v34 }
  0xf7 LB: >> { %v813_v35 = vmov 0.0   ;;  %vm814_vm2 = vmmov 0   ;;  %s724_s9 = sshll.u32 %s808_s8, 2  ;;  %s493_s8 = sadd.s32 1, %s808_s8   ;;  %s808_s8 = sphi %s806_s8, %s493_s8  }
  0xf8   : >> { %736 = vmatprep.subr.mxu0 %v813_v35  ;;  %738 = vmatprep.mubr.msk.f32.mxu0 %vm814_vm2, %v813_v35  ;;  %s495_s10 = scalar_lea.vmem [#allocation2], %s724_s9  ;;  %s498_s11 = scalar_lea.vmem %s864_s26, %s724_s9 }
  0xf9   : >> { %v499_v37 = vld [vmem:[%s498_s11] sm:$0xf]  ;;  %s579_s12 = scalar_lea.vmem %s869_s29, %s724_s9  ;;  %p490_p5 = scmp.ge.s32.totalorder %s493_s8, 8  }
  0xfa   : >> { %v500_v38 = vunpack.c.l.bf16 %v499_v37 }
  0xfd   : >> { %v496_v36 = vld [vmem:[%s495_s10] sm:$0xf] }
  0xfe   : >> { %737 = vmatpush3.msk.msra.mxu0 %vm321_vm0, %v496_v36 }
  0xff   : >> { %739 = vmatmul.mubr.msk.f32.vlgmr.msra.gmra.mrb[0].mxu0 %vm317_vm1, %v487_v30 }
 0x1d1   : > { %492 = sbr.rel (!%p490_p5) target bundleno = 247 (0xf7), region = 85 }
 0x1d2   : >> { %v573_v39 = vpop.f32.mrb[0].mxu0 }
 0x1d3   : >> { %v574_v40 = vadd.f32 %v573_v39, %v500_v38  ;;  %v740_v41 = vpop.f32.mrb[1].mxu0 }
 0x1d5   : >> { %v577_v42 = vpack.c.bf16 %v574_v40, %v574_v40 }
 0x1d7   : >> { %580 = vst [vmem:[%s579_s12] sm:$0xf] %v577_v42 }
 0x1d8 PF: > { %s14_s17 = sadd.s32 1, %s804_s17   ;;  %s901_s15 = smov %s800_s16 }
 0x1d9   : > { %p11_p6 = scmp.ge.s32.totalorder %s14_s17, 4   ;;  %s902_s16 = smov %s904_s18 }
 0x1db   :  { %13 = sbr.rel (!%p11_p6) target bundleno = 2 (0x2), region = 96 }

// kernel: run.24
= control target key start
LH: loop header
LB: loop body
LE: loop exit
PB: predicated region body
PF: predicated region fallthrough
CT: control target
= control target key end

     0   :  { %s1262_s12 = smov 0   ;;  %s1264_s13 = smov 0   ;;  %s1366_s0 = inlined_call_operand.vmem [shape: bf16[2,128,256], index: 0, kind: input, shape index: {}]   ;;  %s1367_s1 = inlined_call_operand.vmem [shape: bf16[2,256,128], index: 1, kind: input, shape index: {}]   ;;  %s1368_s2 = inlined_call_operand.vmem [shape: f32[1,128], index: 2, kind: input, shape index: {}]   ;;  %s1369_s3 = inlined_call_operand.vmem [shape: bf16[128,128], index: 3, kind: output, shape index: {}]  }
   0x1   :  { %s1266_s14 = smov 0  }
   0x2 LB: > { %s31_s15 = sadd.s32 1, %s1235_s13  ;;  %p945_p0 = scmp.ge.s32.totalorder %s1239_s14, 1  ;;  %s1239_s14 = sphi %s1266_s14, %s13_s14   ;;  %s1235_s13 = sphi %s1264_s13, %s1371_s13   ;;  %s1231_s12 = sphi %s1262_s12, %s1370_s12  }
   0x3   : > { %p33_p1 = scmp.ge.s32.totalorder %s31_s15, 2  ;;  %p210_p2 = scmp.lt.s32.totalorder %s1239_s14, 3 }
   0x5   : > { %s1373_s15 = smov (%p33_p1, %s31_s15), 0  ;;  %p211_p3 = pnand %p945_p0, %p210_p2 }
   0x6   : > { %p263_p4 = scmp.lt.s32.totalorder (!%p211_p3), %s1231_s12, 1  ;;  %p303_p5 = scmp.eq.s32.totalorder (!%p211_p3), %s1231_s12, 0 }
   0x7   : > { %214 = sbr.rel (%p211_p3) target bundleno = 314 (0x13a), region = 32 }
   0xe   : > { %s264_s16 = scalar_select %p263_p4, %s1231_s12, 1 }
   0xf   : > { %308 = sbr.rel (!%p303_p5) target bundleno = 24 (0x18), region = 36  ;;  %v1241_v0 = vmov (%p303_p5), 0.0  }
  0x10   : > { %s1005_s17 = sshll.u32 %s264_s16, 7  ;;  %309 = vst [vmem:[#allocation2] sm:$0xff] (%p303_p5), %v1241_v0  ;;  %310 = vst [vmem:[#allocation2 + $0x8] sm:$0xff] (%p303_p5), %v1241_v0 }
  0x11   : > { %s1288_s20 = scalar_lea.vmem %s1366_s0, %s1005_s17  ;;  %s1293_s23 = scalar_lea.vmem %s1367_s1, %s1005_s17  ;;  %311 = vst [vmem:[#allocation2 + $0x10] sm:$0xff] (%p303_p5), %v1241_v0  ;;  %312 = vst [vmem:[#allocation2 + $0x18] sm:$0xff] (%p303_p5), %v1241_v0 }
  0x12   : > { %313 = vst [vmem:[#allocation2 + $0x20] sm:$0xff] (%p303_p5), %v1241_v0  ;;  %314 = vst [vmem:[#allocation2 + $0x28] sm:$0xff] (%p303_p5), %v1241_v0 }
  0x13   : > { %315 = vst [vmem:[#allocation2 + $0x30] sm:$0xff] (%p303_p5), %v1241_v0  ;;  %316 = vst [vmem:[#allocation2 + $0x38] sm:$0xff] (%p303_p5), %v1241_v0 }
  0x14   : > { %317 = vst [vmem:[#allocation2 + $0x40] sm:$0xff] (%p303_p5), %v1241_v0  ;;  %318 = vst [vmem:[#allocation2 + $0x48] sm:$0xff] (%p303_p5), %v1241_v0 }
  0x15   : > { %319 = vst [vmem:[#allocation2 + $0x50] sm:$0xff] (%p303_p5), %v1241_v0  ;;  %320 = vst [vmem:[#allocation2 + $0x58] sm:$0xff] (%p303_p5), %v1241_v0 }
  0x16   : > { %321 = vst [vmem:[#allocation2 + $0x60] sm:$0xff] %v1241_v0  ;;  %322 = vst [vmem:[#allocation2 + $0x68] sm:$0xff] %v1241_v0 }
  0x17   : > { %323 = vst [vmem:[#allocation2 + $0x70] sm:$0xff] %v1241_v0  ;;  %324 = vst [vmem:[#allocation2 + $0x78] sm:$0xff] %v1241_v0 }
  0x18 PF: > { %v1177_v1 = vld [vmem:[%s1293_s23 + $0x40] sm:$0xff]   ;;  %v1179_v3 = vld [vmem:[%s1293_s23 + $0x48] sm:$0xff]   ;;  %v1181_v5 = vld [vmem:[%s1293_s23 + $0x50] sm:$0xff]   ;;  %p694_p6 = scmp.eq.s32.totalorder %s1231_s12, 1 }
  0x19   : > { %v1178_v2 = vld [vmem:[%s1293_s23] sm:$0xff]   ;;  %1072 = vmatprep.subr.bf16.mxu0 %v1177_v1  ;;  %1136 = vmatprep.subr.bf16.mxu1 %v1177_v1  ;;  %v1180_v4 = vld [vmem:[%s1293_s23 + $0x8] sm:$0xff]   ;;  %v1182_v6 = vld [vmem:[%s1293_s23 + $0x10] sm:$0xff]  }
  0x1a   : > { %1073 = vmatpush3.bf16.msra.mxu0 %v1178_v2  ;;  %1144 = vmatpush3.bf16.msra.mxu1 %v1178_v2  ;;  %v1183_v7 = vld [vmem:[%s1293_s23 + $0x58] sm:$0xff]   ;;  %v1185_v9 = vld [vmem:[%s1293_s23 + $0x60] sm:$0xff]   ;;  %v1187_v11 = vld [vmem:[%s1293_s23 + $0x68] sm:$0xff]  }
  0x1b   : > { %1074 = vmatprep.subr.bf16.mxu0 %v1179_v3  ;;  %1137 = vmatprep.subr.bf16.mxu1 %v1179_v3  ;;  %v1184_v8 = vld [vmem:[%s1293_s23 + $0x18] sm:$0xff]   ;;  %v1186_v10 = vld [vmem:[%s1293_s23 + $0x20] sm:$0xff]   ;;  %v1188_v14 = vld [vmem:[%s1293_s23 + $0x28] sm:$0xff]  }
  0x1c   : > { %v1195_v12 = vld [vmem:[%s1288_s20 + $0x4] ss:$8 sps:$4 sm:$0xff]   ;;  %v1189_v15 = vld [vmem:[%s1293_s23 + $0x70] sm:$0xff]   ;;  %v1191_v17 = vld [vmem:[%s1293_s23 + $0x78] sm:$0xff]  }
  0x1d   : > { %v1198_v13 = vld [vmem:[%s1288_s20 + $0x44] ss:$8 sps:$4 sm:$0xff]   ;;  %597 = vmatprep.mubr.bf16.mxu0 %v1195_v12  ;;  %v1190_v16 = vld [vmem:[%s1293_s23 + $0x30] sm:$0xff]   ;;  %v1192_v18 = vld [vmem:[%s1293_s23 + $0x38] sm:$0xff]  }
  0x1e   : > { %1075 = vmatpush3.bf16.msra.mxu0 %v1180_v4  ;;  %1145 = vmatpush3.bf16.msra.mxu1 %v1180_v4  ;;  %v1193_v19 = vld [vmem:[%s1288_s20] ss:$8 sps:$4 sm:$0xff]   ;;  %v1199_v21 = vld [vmem:[%s1288_s20 + $0x14] ss:$8 sps:$4 sm:$0xff]   ;;  %v1203_v23 = vld [vmem:[%s1288_s20 + $0x10] ss:$8 sps:$4 sm:$0xff]  }
  0x1f   : > { %1076 = vmatprep.subr.bf16.mxu0 %v1181_v5  ;;  %1138 = vmatprep.subr.bf16.mxu1 %v1181_v5  ;;  %v1196_v20 = vld [vmem:[%s1288_s20 + $0x40] ss:$8 sps:$4 sm:$0xff]   ;;  %v1201_v22 = vld [vmem:[%s1288_s20 + $0x54] ss:$8 sps:$4 sm:$0xff]   ;;  %v1204_v24 = vld [vmem:[%s1288_s20 + $0x50] ss:$8 sps:$4 sm:$0xff]  }
  0x20   : > { %629 = vmatprep.mubr.bf16.mxu1 %v1198_v13  ;;  %v1205_v25 = vld [vmem:[%s1288_s20 + $0x24] ss:$8 sps:$4 sm:$0xff]   ;;  %v1209_v27 = vld [vmem:[%s1288_s20 + $0x20] ss:$8 sps:$4 sm:$0xff]   ;;  %v1211_v29 = vld [vmem:[%s1288_s20 + $0x34] ss:$8 sps:$4 sm:$0xff]  }
  0x21   : > { %v1207_v26 = vld [vmem:[%s1288_s20 + $0x64] ss:$8 sps:$4 sm:$0xff]   ;;  %v1210_v28 = vld [vmem:[%s1288_s20 + $0x60] ss:$8 sps:$4 sm:$0xff]   ;;  %v1213_v30 = vld [vmem:[%s1288_s20 + $0x74] ss:$8 sps:$4 sm:$0xff]  }
  0x22   : > { %1077 = vmatpush3.bf16.msra.mxu0 %v1182_v6  ;;  %1146 = vmatpush3.bf16.msra.mxu1 %v1182_v6  ;;  %v1215_v31 = vld [vmem:[%s1288_s20 + $0x30] ss:$8 sps:$4 sm:$0xff]   ;;  %v325_v35 = vld [vmem:[#allocation2] sm:$0xff]  ;;  %v326_v43 = vld [vmem:[#allocation2 + $0x8] sm:$0xff] }
  0x23   : > { %1078 = vmatprep.subr.bf16.mxu0 %v1183_v7  ;;  %1139 = vmatprep.subr.bf16.mxu1 %v1183_v7  ;;  %v1216_v32 = vld [vmem:[%s1288_s20 + $0x70] ss:$8 sps:$4 sm:$0xff]   ;;  %v333_v37 = vld [vmem:[#allocation2 + $0x40] sm:$0xff]  ;;  %v334_v45 = vld [vmem:[#allocation2 + $0x48] sm:$0xff] }
  0x24   : > { %v327_v55 = vld [vmem:[#allocation2 + $0x10] sm:$0xff]  ;;  %v328_v63 = vld [vmem:[#allocation2 + $0x18] sm:$0xff]  ;;  %v337_v13 = vld [vmem:[#allocation2 + $0x60] sm:$0xff] }
  0x25   : > { %v335_v57 = vld [vmem:[#allocation2 + $0x50] sm:$0xff]  ;;  %v336_v1 = vld [vmem:[#allocation2 + $0x58] sm:$0xff] }
  0x26   : > { %1079 = vmatpush3.bf16.msra.mxu0 %v1184_v8  ;;  %1147 = vmatpush3.bf16.msra.mxu1 %v1184_v8 }
  0x27   : > { %1080 = vmatprep.subr.bf16.mxu0 %v1185_v9  ;;  %1140 = vmatprep.subr.bf16.mxu1 %v1185_v9 }
  0x2a   : > { %1081 = vmatpush3.bf16.msra.mxu0 %v1186_v10  ;;  %1148 = vmatpush3.bf16.msra.mxu1 %v1186_v10 }
  0x2b   : > { %1082 = vmatprep.subr.bf16.mxu0 %v1187_v11  ;;  %1141 = vmatprep.subr.bf16.mxu1 %v1187_v11  ;;  %v329_v11 = vld [vmem:[#allocation2 + $0x20] sm:$0xff] }
  0x2e   : > { %1083 = vmatpush3.bf16.msra.mxu0 %v1188_v14  ;;  %1149 = vmatpush3.bf16.msra.mxu1 %v1188_v14 }
  0x2f   : > { %1084 = vmatprep.subr.bf16.mxu0 %v1189_v15  ;;  %1142 = vmatprep.subr.bf16.mxu1 %v1189_v15 }
  0x32   : > { %1085 = vmatpush3.bf16.msra.mxu0 %v1190_v16  ;;  %1150 = vmatpush3.bf16.msra.mxu1 %v1190_v16 }
  0x33   : > { %1086 = vmatprep.subr.bf16.mxu0 %v1191_v17  ;;  %1143 = vmatprep.subr.bf16.mxu1 %v1191_v17 }
  0x36   : > { %1087 = vmatpush3.bf16.msra.mxu0 %v1192_v18  ;;  %1151 = vmatpush3.bf16.msra.mxu1 %v1192_v18 }
  0x39   : > { %598 = vmatmul.mubr.bf16.vlgmr.msra.gmra.mrb[0].mxu0 %v1193_v19  ;;  %630 = vmatmul.mubr.bf16.vlgmr.msra.gmra.mrb[0].mxu1 %v1196_v20  ;;  %v330_v19 = vld [vmem:[#allocation2 + $0x28] sm:$0xff] }
  0x3a   : > { %605 = vmatprep.mubr.bf16.mxu0 %v1199_v21  ;;  %637 = vmatprep.mubr.bf16.mxu1 %v1201_v22  ;;  %v338_v21 = vld [vmem:[#allocation2 + $0x68] sm:$0xff] }
  0x41   : > { %606 = vmatmul.mubr.bf16.gmra.mrb[4].mxu0 %v1203_v23  ;;  %638 = vmatmul.mubr.bf16.gmra.mrb[4].mxu1 %v1204_v24 }
  0x42   : > { %613 = vmatprep.mubr.bf16.mxu0 %v1205_v25  ;;  %645 = vmatprep.mubr.bf16.mxu1 %v1207_v26 }
  0x49   : > { %614 = vmatmul.mubr.bf16.gmra.mrb[8].mxu0 %v1209_v27  ;;  %646 = vmatmul.mubr.bf16.gmra.mrb[8].mxu1 %v1210_v28 }
  0x4a   : > { %621 = vmatprep.mubr.bf16.mxu0 %v1211_v29  ;;  %653 = vmatprep.mubr.bf16.mxu1 %v1213_v30 }
  0x51   : > { %622 = vmatmul.mubr.bf16.gmra.mrb[12].mxu0 %v1215_v31  ;;  %654 = vmatmul.mubr.bf16.gmra.mrb[12].mxu1 %v1216_v32  ;;  %v331_v31 = vld [vmem:[#allocation2 + $0x30] sm:$0xff] }
 0x10c   : > { %v1088_v33 = vpop.f32.mrb[0].mxu0  ;;  %v1112_v34 = vpop.f32.mrb[0].mxu1 }
 0x10d   : > { %v1089_v36 = vpop.f32.mrb[1].mxu0  ;;  %v1113_v38 = vpop.f32.mrb[1].mxu1 }
 0x10e   : > { %v1090_v39 = vadd.f32 %v1089_v36, %v1088_v33  ;;  %v1114_v40 = vadd.f32 %v1113_v38, %v1112_v34  ;;  %v1091_v41 = vpop.f32.mrb[2].mxu0  ;;  %v1115_v42 = vpop.f32.mrb[2].mxu1  ;;  %v339_v33 = vld [vmem:[#allocation2 + $0x70] sm:$0xff] }
 0x10f   : > { %v1092_v44 = vpop.f32.mrb[3].mxu0  ;;  %v1116_v46 = vpop.f32.mrb[3].mxu1 }
 0x110   : > { %v662_v47 = vadd.f32 %v1090_v39, %v325_v35  ;;  %v670_v48 = vadd.f32 %v1114_v40, %v333_v37  ;;  %v1093_v49 = vadd.f32 %v1092_v44, %v1091_v41  ;;  %v1117_v50 = vadd.f32 %v1116_v46, %v1115_v42  ;;  %v332_v39 = vld [vmem:[#allocation2 + $0x38] sm:$0xff] }
 0x111   : > { %v340_v41 = vld [vmem:[#allocation2 + $0x78] sm:$0xff] }
 0x112   : > { %678 = vst [vmem:[#allocation2] sm:$0xff] %v662_v47  ;;  %686 = vst [vmem:[#allocation2 + $0x40] sm:$0xff] %v670_v48  ;;  %v663_v51 = vadd.f32 %v1093_v49, %v326_v43  ;;  %v671_v52 = vadd.f32 %v1117_v50, %v334_v45 }
 0x114   : > { %679 = vst [vmem:[#allocation2 + $0x8] sm:$0xff] %v663_v51  ;;  %687 = vst [vmem:[#allocation2 + $0x48] sm:$0xff] %v671_v52  ;;  %v1094_v53 = vpop.f32.mrb[4].mxu0  ;;  %v1118_v54 = vpop.f32.mrb[4].mxu1  ;;  %v984_v51 = vld [vmem:[%s1368_s2] ss:$0 sm:$0xff] (%p694_p6) }
 0x115   : > { %v1095_v56 = vpop.f32.mrb[5].mxu0  ;;  %v1119_v58 = vpop.f32.mrb[5].mxu1 }
 0x116   : > { %v1096_v59 = vadd.f32 %v1095_v56, %v1094_v53  ;;  %v1120_v60 = vadd.f32 %v1119_v58, %v1118_v54  ;;  %v1097_v61 = vpop.f32.mrb[6].mxu0  ;;  %v1121_v62 = vpop.f32.mrb[6].mxu1 }
 0x117   : > { %v1098_v0 = vpop.f32.mrb[7].mxu0  ;;  %v1122_v2 = vpop.f32.mrb[7].mxu1 }
 0x118   : > { %v664_v3 = vadd.f32 %v1096_v59, %v327_v55  ;;  %v672_v4 = vadd.f32 %v1120_v60, %v335_v57  ;;  %v1099_v5 = vadd.f32 %v1098_v0, %v1097_v61  ;;  %v1123_v6 = vadd.f32 %v1122_v2, %v1121_v62 }
 0x119   : > { %v699_v49 = vld [vmem:[#allocation2] sm:$0xff] (%p694_p6) }
 0x11a   : > { %680 = vst [vmem:[#allocation2 + $0x10] sm:$0xff] %v664_v3  ;;  %688 = vst [vmem:[#allocation2 + $0x50] sm:$0xff] %v672_v4  ;;  %v665_v7 = vadd.f32 %v1099_v5, %v328_v63  ;;  %v673_v8 = vadd.f32 %v1123_v6, %v336_v1  ;;  %v722_v52 = vadd.f32 (%p694_p6), %v984_v51, %v699_v49  ;;  %v707_v3 = vld [vmem:[#allocation2 + $0x40] sm:$0xff] (%p694_p6) }
 0x11b   : > { %v700_v50 = vld [vmem:[#allocation2 + $0x8] sm:$0xff] (%p694_p6) }
 0x11c   : > { %681 = vst [vmem:[#allocation2 + $0x18] sm:$0xff] %v665_v7  ;;  %689 = vst [vmem:[#allocation2 + $0x58] sm:$0xff] %v673_v8  ;;  %v1100_v9 = vpop.f32.mrb[8].mxu0  ;;  %v1124_v10 = vpop.f32.mrb[8].mxu1  ;;  %v723_v53 = vadd.f32 (%p694_p6), %v984_v51, %v700_v50  ;;  %v708_v4 = vld [vmem:[#allocation2 + $0x48] sm:$0xff] (%p694_p6)  ;;  %v730_v7 = vadd.f32 (%p694_p6), %v984_v51, %v707_v3 }
 0x11d   : > { %v1101_v12 = vpop.f32.mrb[9].mxu0  ;;  %v1125_v14 = vpop.f32.mrb[9].mxu1  ;;  %v731_v8 = vadd.f32 (%p694_p6), %v984_v51, %v708_v4 }
 0x11e   : > { %v1102_v15 = vadd.f32 %v1101_v12, %v1100_v9  ;;  %v1126_v16 = vadd.f32 %v1125_v14, %v1124_v10  ;;  %v1103_v17 = vpop.f32.mrb[10].mxu0  ;;  %v1127_v18 = vpop.f32.mrb[10].mxu1  ;;  %v1028_v63 = vpack.c.bf16 (%p694_p6), %v723_v53, %v722_v52 }
 0x11f   : > { %v1104_v20 = vpop.f32.mrb[11].mxu0  ;;  %v1128_v22 = vpop.f32.mrb[11].mxu1 }
 0x120   : > { %v666_v23 = vadd.f32 %v1102_v15, %v329_v11  ;;  %v674_v24 = vadd.f32 %v1126_v16, %v337_v13  ;;  %v1105_v25 = vadd.f32 %v1104_v20, %v1103_v17  ;;  %v1129_v26 = vadd.f32 %v1128_v22, %v1127_v18  ;;  %1029 = vst [vmem:[%s1369_s3] sm:$0xff] (%p694_p6), %v1028_v63  }
 0x121   : > { %v701_v54 = vld [vmem:[#allocation2 + $0x10] sm:$0xff] (%p694_p6) }
 0x122   : > { %682 = vst [vmem:[#allocation2 + $0x20] sm:$0xff] %v666_v23  ;;  %690 = vst [vmem:[#allocation2 + $0x60] sm:$0xff] %v674_v24  ;;  %v667_v27 = vadd.f32 %v1105_v25, %v330_v19  ;;  %v675_v28 = vadd.f32 %v1129_v26, %v338_v21  ;;  %v724_v57 = vadd.f32 (%p694_p6), %v984_v51, %v701_v54  ;;  %v709_v5 = vld [vmem:[#allocation2 + $0x50] sm:$0xff] (%p694_p6) }
 0x123   : > { %v702_v55 = vld [vmem:[#allocation2 + $0x18] sm:$0xff] (%p694_p6)  ;;  %v732_v10 = vadd.f32 (%p694_p6), %v984_v51, %v709_v5  ;;  %v1048_v19 = vpack.c.bf16 (%p694_p6), %v731_v8, %v730_v7 }
 0x124   : > { %683 = vst [vmem:[#allocation2 + $0x28] sm:$0xff] %v667_v27  ;;  %691 = vst [vmem:[#allocation2 + $0x68] sm:$0xff] %v675_v28  ;;  %v1106_v29 = vpop.f32.mrb[12].mxu0  ;;  %v1130_v30 = vpop.f32.mrb[12].mxu1  ;;  %v725_v58 = vadd.f32 (%p694_p6), %v984_v51, %v702_v55  ;;  %v710_v9 = vld [vmem:[#allocation2 + $0x58] sm:$0xff] (%p694_p6) }
 0x125   : > { %v1107_v32 = vpop.f32.mrb[13].mxu0  ;;  %v1131_v34 = vpop.f32.mrb[13].mxu1  ;;  %v733_v15 = vadd.f32 (%p694_p6), %v984_v51, %v710_v9  ;;  %1068 = vst [vmem:[%s1369_s3 + $0x20] sm:$0xff] (%p694_p6), %v1048_v19  }
 0x126   : > { %v1108_v35 = vadd.f32 %v1107_v32, %v1106_v29  ;;  %v1132_v36 = vadd.f32 %v1131_v34, %v1130_v30  ;;  %v1109_v37 = vpop.f32.mrb[14].mxu0  ;;  %v1133_v38 = vpop.f32.mrb[14].mxu1  ;;  %698 = sbr.rel (!%p694_p6) target bundleno = 314 (0x13a), region = 40  ;;  %v1033_v6 = vpack.c.bf16 (%p694_p6), %v725_v58, %v724_v57 }
 0x127   : > { %v1110_v40 = vpop.f32.mrb[15].mxu0  ;;  %v1134_v42 = vpop.f32.mrb[15].mxu1  ;;  %v1053_v23 = vpack.c.bf16 (%p694_p6), %v733_v15, %v732_v10 }
 0x128   : > { %v668_v43 = vadd.f32 %v1108_v35, %v331_v31  ;;  %v676_v44 = vadd.f32 %v1132_v36, %v339_v33  ;;  %v1111_v45 = vadd.f32 %v1110_v40, %v1109_v37  ;;  %v1135_v46 = vadd.f32 %v1134_v42, %v1133_v38  ;;  %1065 = vst [vmem:[%s1369_s3 + $0x8] sm:$0xff] (%p694_p6), %v1033_v6  }
 0x129   : > { %v703_v56 = vld [vmem:[#allocation2 + $0x20] sm:$0xff] (%p694_p6)  ;;  %1069 = vst [vmem:[%s1369_s3 + $0x28] sm:$0xff] (%p694_p6), %v1053_v23  }
 0x12a   : > { %684 = vst [vmem:[#allocation2 + $0x30] sm:$0xff] %v668_v43  ;;  %692 = vst [vmem:[#allocation2 + $0x70] sm:$0xff] %v676_v44  ;;  %v669_v47 = vadd.f32 %v1111_v45, %v332_v39  ;;  %v677_v48 = vadd.f32 %v1135_v46, %v340_v41  ;;  %v726_v60 = vadd.f32 (%p694_p6), %v984_v51, %v703_v56  ;;  %v711_v11 = vld [vmem:[#allocation2 + $0x60] sm:$0xff] (%p694_p6) }
 0x12b   : > { %v704_v59 = vld [vmem:[#allocation2 + $0x28] sm:$0xff] (%p694_p6)  ;;  %v734_v16 = vadd.f32 (%p694_p6), %v984_v51, %v711_v11 }
 0x12c   : > { %685 = vst [vmem:[#allocation2 + $0x38] sm:$0xff] %v669_v47  ;;  %693 = vst [vmem:[#allocation2 + $0x78] sm:$0xff] %v677_v48  ;;  %v727_v0 = vadd.f32 (%p694_p6), %v984_v51, %v704_v59  ;;  %v712_v12 = vld [vmem:[#allocation2 + $0x68] sm:$0xff] (%p694_p6) }
 0x12d   : > { %v735_v20 = vadd.f32 %v984_v51, %v712_v12 }
 0x12e   : > { %v1038_v13 = vpack.c.bf16 %v727_v0, %v726_v60 }
 0x12f   : > { %v1058_v24 = vpack.c.bf16 %v735_v20, %v734_v16 }
 0x130   : > { %1066 = vst [vmem:[%s1369_s3 + $0x10] sm:$0xff] %v1038_v13  }
 0x131   : > { %v705_v61 = vld [vmem:[#allocation2 + $0x30] sm:$0xff]  ;;  %1070 = vst [vmem:[%s1369_s3 + $0x30] sm:$0xff] %v1058_v24  }
 0x132   : > { %v728_v1 = vadd.f32 %v984_v51, %v705_v61  ;;  %v713_v17 = vld [vmem:[#allocation2 + $0x70] sm:$0xff] }
 0x133   : > { %v706_v62 = vld [vmem:[#allocation2 + $0x38] sm:$0xff]  ;;  %v736_v21 = vadd.f32 %v984_v51, %v713_v17 }
 0x134   : > { %v729_v2 = vadd.f32 %v984_v51, %v706_v62  ;;  %v714_v18 = vld [vmem:[#allocation2 + $0x78] sm:$0xff] }
 0x135   : > { %v737_v22 = vadd.f32 %v984_v51, %v714_v18 }
 0x136   : > { %v1043_v14 = vpack.c.bf16 %v729_v2, %v728_v1 }
 0x137   : > { %v1063_v25 = vpack.c.bf16 %v737_v22, %v736_v21 }
 0x138   : > { %1067 = vst [vmem:[%s1369_s3 + $0x18] sm:$0xff] %v1043_v14  }
 0x139   : > { %1071 = vst [vmem:[%s1369_s3 + $0x38] sm:$0xff] %v1063_v25  }
 0x13a PF: > { %s13_s14 = sadd.s32 1, %s1239_s14   ;;  %s1370_s12 = smov %s1235_s13 }
 0x13b   : > { %p10_p7 = scmp.ge.s32.totalorder %s13_s14, 4   ;;  %s1371_s13 = smov %s1373_s15 }
 0x13d   :  { %12 = sbr.rel (!%p10_p7) target bundleno = 2 (0x2), region = 76 }

// kernel: run.27
= control target key start
LH: loop header
LB: loop body
LE: loop exit
PB: predicated region body
PF: predicated region fallthrough
CT: control target
= control target key end

     0   :  { %s3602_s12 = smov 0   ;;  %s3604_s13 = smov 0   ;;  %s4681_s0 = inlined_call_operand.vmem [shape: f32[32,8], index: 0, kind: input, shape index: {}]   ;;  %s4682_s1 = inlined_call_operand.vmem [shape: f32[16,64], index: 1, kind: input, shape index: {}]   ;;  %s4683_s2 = inlined_call_operand.vmem [shape: f32[2,8,8,2], index: 2, kind: input, shape index: {}]   ;;  %s4684_s3 = inlined_call_operand.vmem [shape: f32[2,32,32,2], index: 3, kind: output, shape index: {}]  }
   0x1   :  { %s3606_s14 = smov 0  }
   0x2 LB: > { %s25_s15 = sadd.s32 1, %s3536_s13  ;;  %p3392_p0 = scmp.ge.s32.totalorder %s3540_s14, 1  ;;  %s3540_s14 = sphi %s3606_s14, %s13_s14   ;;  %s3536_s13 = sphi %s3604_s13, %s4710_s13   ;;  %s3532_s12 = sphi %s3602_s12, %s4709_s12  }
   0x3   : > { %p27_p1 = scmp.ge.s32.totalorder %s25_s15, 2  ;;  %p162_p2 = scmp.lt.s32.totalorder %s3540_s14, 3 }
   0x5   : > { %s4712_s15 = smov (%p27_p1, %s25_s15), 0  ;;  %p163_p3 = pnand %p3392_p0, %p162_p2 }
   0x6   : > { %p202_p4 = scmp.lt.s32.totalorder (!%p163_p3), %s3532_s12, 1  ;;  %v231_v0 = vlaneseq (!%p163_p3)  ;;  %v3542_v1 = vmov (!%p163_p3), 1983009808   ;;  %v3543_v5 = vmov (!%p163_p3), 1934713408   ;;  %s3544_s20 = smov (!%p163_p3), 2  }
   0x7   : > { %166 = sbr.rel (%p163_p3) target bundleno = 961 (0x3c1), region = 32  ;;  %v229_v2 = vunpack.c.l.s4 (!%p163_p3), %v3542_v1  ;;  %v293_v6 = vunpack.c.l.s4 (!%p163_p3), %v3543_v5  ;;  %s3545_s21 = smov (!%p163_p3), 6   ;;  %vm396_vm0 = vcmask (!%p163_p3), 64512   ;;  %v404_v47 = vld [vmem:[%s4681_s0] sm:$0xff] (!%p163_p3)  ;;  %v506_v51 = vld [vmem:[%s4682_s1 + $0x8] sm:$0xff] (!%p163_p3)  ;;  %vm390_vm1 = vcmask (!%p163_p3), 15360  }
   0x8   : > { %v232_v3 = vshrl.u32 (!%p163_p3), %v231_v0, 7  ;;  %3422 = vmatprep.mubr.msk.f32.mxu0 (!%p163_p3), %vm396_vm0, %v404_v47  ;;  %s3546_s24 = smov (!%p163_p3), 4   ;;  %s3547_s25 = smov (!%p163_p3), 8   ;;  %v505_v50 = vld [vmem:[%s4682_s1] sm:$0xff] (!%p163_p3)  ;;  %vm392_vm2 = vcmask (!%p163_p3), 31744   ;;  %vm394_vm3 = vcmask (!%p163_p3), 48128  }
   0x9   : > { %v230_v4 = vunpack.c.0.s8 (!%p163_p3), %v229_v2  ;;  %v294_v8 = vunpack.c.0.s8 (!%p163_p3), %v293_v6  ;;  %v3438_v52 = vpack.c.bf16 (!%p163_p3), %v506_v51, %v505_v50  ;;  %s3548_s30 = smov (!%p163_p3), 10   ;;  %s3549_s4 = smov (!%p163_p3), 12   ;;  %vm398_vm4 = vcmask (!%p163_p3), 80896   ;;  %v406_v5 = vld [vmem:[%s4681_s0 + $0x10] sm:$0xff] (!%p163_p3)  ;;  %v407_v6 = vld [vmem:[%s4681_s0 + $0x18] sm:$0xff] (!%p163_p3) }
   0xa   : > { %s3550_s5 = smov (!%p163_p3), 14   ;;  %vm400_vm5 = vcmask (!%p163_p3), 97280   ;;  %vm402_vm6 = vcmask (!%p163_p3), 113664   ;;  %vm507_vm7 = vcmask (!%p163_p3), 130048   ;;  %s3552_s17 = smov (!%p163_p3), 124  }
   0xb   : > { %v3626_v7 = vsub.s32 (!%p163_p3), %v230_v4, %v232_v3  ;;  %v3630_v19 = vsub.s32 (!%p163_p3), %v294_v8, %v232_v3  ;;  %3439 = vmatprep.subr.bf16.mxu1 (!%p163_p3), %v3438_v52  ;;  %v405_v4 = vld [vmem:[%s4681_s0 + $0x8] sm:$0xff] (!%p163_p3)  ;;  %s3553_s18 = smov (!%p163_p3), 122   ;;  %s3557_s22 = smov (!%p163_p3), 114  }
   0xc   : > { %3441 = vmatpush3.bf16.msra.mxu1 (!%p163_p3), %v3438_v52  ;;  %s3558_s23 = smov (!%p163_p3), 112   ;;  %s3561_s26 = smov (!%p163_p3), 106  }
   0xd   : > { %s3562_s27 = smov (!%p163_p3), 104   ;;  %s3563_s28 = smov (!%p163_p3), 102  }
   0xe   : > { %s4714_s12 = smov (!%p202_p4, %s3532_s12), 1  ;;  %s3564_s29 = smov 100  }
   0xf   : > { %s3407_s16 = sshll.u32 %s4714_s12, 6  ;;  %s3568_s6 = smov 92  }
  0x10   : > { %s206_s19 = scalar_lea.vmem %s4683_s2, %s3407_s16  ;;  %s3551_s16 = smov 126  }
  0x11   : > { %v3506_v9 = vld [vmem:[%s206_s19] ss:$16 sps:$4 sm:$0xff]   ;;  %v3508_v10 = vld [vmem:[%s206_s19 + $0x4] ss:$16 sps:$4 sm:$0xff]   ;;  %v3509_v11 = vld [vmem:[%s206_s19 + $0x8] ss:$16 sps:$4 sm:$0xff]  }
  0x12   : > { %v3511_v12 = vld [vmem:[%s206_s19 + $0xc] ss:$16 sps:$4 sm:$0xff]   ;;  %v234_v13 = vrot.slane %v3506_v9, %v3626_v7  ;;  %v3512_v14 = vld [vmem:[%s206_s19 + $0x20] ss:$16 sps:$4 sm:$0xff]   ;;  %v3514_v15 = vld [vmem:[%s206_s19 + $0x24] ss:$16 sps:$4 sm:$0xff]   ;;  %v250_v17 = vrot.slane %v3509_v11, %v3626_v7  ;;  %v241_v20 = vrot.slane %v3508_v10, %v3626_v7 }
  0x13   : > { %v3515_v16 = vld [vmem:[%s206_s19 + $0x28] ss:$16 sps:$4 sm:$0xff]   ;;  %v3517_v18 = vld [vmem:[%s206_s19 + $0x2c] ss:$16 sps:$4 sm:$0xff]   ;;  %v257_v21 = vrot.slane %v3511_v12, %v3626_v7  ;;  %v266_v22 = vrot.slane %v3512_v14, %v3626_v7  ;;  %v273_v24 = vrot.slane %v3514_v15, %v3626_v7  ;;  %s3554_s19 = smov 120   ;;  %s3569_s7 = smov 90  }
  0x14   : > { %v282_v23 = vrot.slane %v3515_v16, %v3626_v7  ;;  %v290_v25 = vcombine.low %v234_v13, %v250_v17  ;;  %v291_v26 = vcombine.high %v234_v13, %v250_v17  ;;  %v289_v27 = vrot.slane %v3517_v18, %v3626_v7  ;;  %s4685_s8 = smov 88   ;;  %s4687_s9 = smov 86  }
  0x15   : > { %v306_v28 = vcombine.low %v241_v20, %v257_v21  ;;  %v307_v34 = vcombine.high %v241_v20, %v257_v21  ;;  %s4689_s10 = smov 84   ;;  %s4691_s11 = smov 82  }
  0x16   : > { %v322_v29 = vcombine.low %v266_v22, %v282_v23  ;;  %v323_v30 = vcombine.high %v266_v22, %v282_v23  ;;  %v298_v31 = vrot.slane %v290_v25, %v3630_v19  ;;  %v305_v32 = vrot.slane %v291_v26, %v3630_v19 }
  0x17   : > { %v338_v33 = vcombine.low %v273_v24, %v289_v27  ;;  %v314_v37 = vrot.slane %v306_v28, %v3630_v19  ;;  %v339_v38 = vcombine.high %v273_v24, %v289_v27  ;;  %v321_v43 = vrot.slane %v307_v34, %v3630_v19 }
  0x18   : > { %v330_v35 = vrot.slane %v322_v29, %v3630_v19  ;;  %v337_v36 = vrot.slane %v323_v30, %v3630_v19 }
  0x19   : > { %v346_v39 = vrot.slane %v338_v33, %v3630_v19  ;;  %v353_v46 = vrot.slane %v339_v38, %v3630_v19 }
  0x1a   : > { %v355_v40 = vcombine.high %v298_v31, %v330_v35  ;;  %v354_v41 = vcombine.low %v298_v31, %v330_v35  ;;  %v357_v42 = vcombine.high %v305_v32, %v337_v36  ;;  %v356_v44 = vcombine.low %v305_v32, %v337_v36 }
  0x1b   : > { %v358_v45 = vcombine.low %v314_v37, %v346_v39  ;;  %v359_v48 = vcombine.high %v314_v37, %v346_v39  ;;  %v360_v49 = vcombine.low %v321_v43, %v353_v46  ;;  %v361_v53 = vcombine.high %v321_v43, %v353_v46 }
  0x1c   : > { %363 = vrot.lane.b32.xlu0 %v355_v40, %s3544_s20  ;;  %371 = vrot.lane.b32.xlu1 %v357_v42, %s3545_s21  ;;  %s3555_s20 = smov 118   ;;  %s3556_s21 = smov 116  }
  0x20   : > { %367 = vrot.lane.b32.xlu0 %v356_v44, %s3546_s24  ;;  %375 = vrot.lane.b32.xlu1 %v358_v45, %s3547_s25  ;;  %s3559_s24 = smov 110   ;;  %s3560_s25 = smov 108  }
  0x24   : > { %379 = vrot.lane.b32.xlu0 %v359_v48, %s3548_s30  ;;  %383 = vrot.lane.b32.xlu1 %v360_v49, %s3549_s4  ;;  %s3565_s30 = smov 98   ;;  %s3566_s4 = smov 96  }
  0x28   : > { %387 = vrot.lane.b32.xlu0 %v361_v53, %s3550_s5  ;;  %s3567_s5 = smov 94  }
  0x8e   : > { %v364_v54 = vpop.permute.xlu0 %363  ;;  %v372_v55 = vpop.permute.xlu1 %371 }
  0x8f   : > { %v391_v56 = vsel %vm390_vm1, %v354_v41, %v364_v54 }
  0x92   : > { %v368_v57 = vpop.permute.xlu0 %367  ;;  %v376_v58 = vpop.permute.xlu1 %375 }
  0x93   : > { %v393_v59 = vsel %vm392_vm2, %v391_v56, %v368_v57 }
  0x94   : > { %v395_v60 = vsel %vm394_vm3, %v393_v59, %v372_v55 }
  0x95   : > { %v397_v61 = vsel %vm396_vm0, %v395_v60, %v376_v58 }
  0x96   : > { %v380_v62 = vpop.permute.xlu0 %379  ;;  %v384_v0 = vpop.permute.xlu1 %383 }
  0x97   : > { %v399_v63 = vsel %vm398_vm4, %v397_v61, %v380_v62 }
  0x98   : > { %v401_v1 = vsel %vm400_vm5, %v399_v63, %v384_v0 }
  0x9a   : > { %v388_v2 = vpop.permute.xlu0 %387 }
  0x9b   : > { %v403_v3 = vsel %vm402_vm6, %v401_v1, %v388_v2 }
  0x9c   : > { %3420 = vmatprep.subr.mxu0 %v403_v3 }
  0x9d   : > { %3421 = vmatpush3.msra.mxu0 %v403_v3 }
  0x9e   : > { %3423 = vmatmul.mubr.msk.f32.vlgmr.msra.gmra.mrb[0].mxu0 %vm396_vm0, %v405_v4 }
  0x9f   : > { %3425 = vmatprep.mubr.msk.f32.mxu0 %vm396_vm0, %v406_v5 }
  0xa2   : > { %3426 = vmatmul.mubr.msk.f32.gmra.mrb[2].mxu0 %vm396_vm0, %v407_v6 }
 0x171   : > { %v3424_v8 = vpop.f32.mrb[0].mxu0 }
 0x172   : > { %v486_v9 = vpop.f32.mrb[1].mxu0 }
 0x173   : > { %3432 = vmatprep.mubr.msk.f32.mxu1 %vm507_vm7, %v486_v9 }
 0x174   : > { %3433 = vmatmul.mubr.msk.f32.vlgmr.msra.gmra.mrb[0].mxu1 %vm507_vm7, %v3424_v8 }
 0x175   : > { %v3427_v10 = vpop.f32.mrb[2].mxu0 }
 0x176   : > { %v496_v11 = vpop.f32.mrb[3].mxu0 }
 0x177   : > { %3435 = vmatprep.mubr.msk.f32.mxu1 %vm507_vm7, %v496_v11 }
 0x178   : > { %3436 = vmatmul.mubr.msk.f32.gmra.mrb[2].mxu1 %vm507_vm7, %v3427_v10 }
 0x247   : > { %v3670_v12 = vpop.f32.mrb[0].mxu1 }
 0x248   : > { %611 = vrot.lane.b32.xlu0 %v3670_v12, %s3551_s16  ;;  %v3674_v13 = vpop.f32.mrb[1].mxu1 }
 0x249   : > { %609 = vrot.lane.b32.xlu1 %v3674_v13, %s3551_s16 }
 0x24b   : > { %v3678_v14 = vpop.f32.mrb[2].mxu1 }
 0x24c   : > { %623 = vrot.lane.b32.xlu0 %v3670_v12, %s3552_s17  ;;  %v3682_v15 = vpop.f32.mrb[3].mxu1 }
 0x24d   : > { %621 = vrot.lane.b32.xlu1 %v3674_v13, %s3552_s17 }
 0x250   : > { %635 = vrot.lane.b32.xlu0 %v3670_v12, %s3553_s18 }
 0x251   : > { %633 = vrot.lane.b32.xlu1 %v3674_v13, %s3553_s18 }
 0x254   : > { %647 = vrot.lane.b32.xlu0 %v3670_v12, %s3554_s19 }
 0x255   : > { %645 = vrot.lane.b32.xlu1 %v3674_v13, %s3554_s19 }
 0x258   : > { %659 = vrot.lane.b32.xlu0 %v3670_v12, %s3555_s20 }
 0x259   : > { %657 = vrot.lane.b32.xlu1 %v3674_v13, %s3555_s20 }
 0x25c   : > { %671 = vrot.lane.b32.xlu0 %v3670_v12, %s3556_s21 }
 0x25d   : > { %669 = vrot.lane.b32.xlu1 %v3674_v13, %s3556_s21 }
 0x260   : > { %683 = vrot.lane.b32.xlu0 %v3670_v12, %s3557_s22 }
 0x261   : > { %681 = vrot.lane.b32.xlu1 %v3674_v13, %s3557_s22 }
 0x264   : > { %695 = vrot.lane.b32.xlu0 %v3670_v12, %s3558_s23 }
 0x265   : > { %693 = vrot.lane.b32.xlu1 %v3674_v13, %s3558_s23 }
 0x268   : > { %707 = vrot.lane.b32.xlu0 %v3670_v12, %s3559_s24 }
 0x269   : > { %705 = vrot.lane.b32.xlu1 %v3674_v13, %s3559_s24 }
 0x26c   : > { %719 = vrot.lane.b32.xlu0 %v3670_v12, %s3560_s25 }
 0x26d   : > { %717 = vrot.lane.b32.xlu1 %v3674_v13, %s3560_s25 }
 0x270   : > { %731 = vrot.lane.b32.xlu0 %v3670_v12, %s3561_s26 }
 0x271   : > { %729 = vrot.lane.b32.xlu1 %v3674_v13, %s3561_s26 }
 0x274   : > { %743 = vrot.lane.b32.xlu0 %v3670_v12, %s3562_s27 }
 0x275   : > { %741 = vrot.lane.b32.xlu1 %v3674_v13, %s3562_s27 }
 0x278   : > { %755 = vrot.lane.b32.xlu0 %v3670_v12, %s3563_s28 }
 0x279   : > { %753 = vrot.lane.b32.xlu1 %v3674_v13, %s3563_s28 }
 0x27c   : > { %767 = vrot.lane.b32.xlu0 %v3670_v12, %s3564_s29 }
 0x27d   : > { %765 = vrot.lane.b32.xlu1 %v3674_v13, %s3564_s29 }
 0x280   : > { %779 = vrot.lane.b32.xlu0 %v3670_v12, %s3565_s30 }
 0x281   : > { %777 = vrot.lane.b32.xlu1 %v3674_v13, %s3565_s30 }
 0x284   : > { %791 = vrot.lane.b32.xlu0 %v3670_v12, %s3566_s4 }
 0x285   : > { %789 = vrot.lane.b32.xlu1 %v3674_v13, %s3566_s4 }
 0x288   : > { %803 = vrot.lane.b32.xlu0 %v3670_v12, %s3567_s5 }
 0x289   : > { %801 = vrot.lane.b32.xlu1 %v3674_v13, %s3567_s5 }
 0x28c   : > { %815 = vrot.lane.b32.xlu0 %v3670_v12, %s3568_s6 }
 0x28d   : > { %813 = vrot.lane.b32.xlu1 %v3674_v13, %s3568_s6 }
 0x290   : > { %827 = vrot.lane.b32.xlu0 %v3670_v12, %s3569_s7 }
 0x291   : > { %825 = vrot.lane.b32.xlu1 %v3674_v13, %s3569_s7 }
 0x294   : > { %839 = vrot.lane.b32.xlu0 %v3670_v12, %s4685_s8 }
 0x295   : > { %837 = vrot.lane.b32.xlu1 %v3674_v13, %s4685_s8  ;;  %s4693_s8 = smov 80  }
 0x298   : > { %851 = vrot.lane.b32.xlu0 %v3670_v12, %s4687_s9 }
 0x299   : > { %849 = vrot.lane.b32.xlu1 %v3674_v13, %s4687_s9  ;;  %s4695_s9 = smov 78  }
 0x29c   : > { %863 = vrot.lane.b32.xlu0 %v3670_v12, %s4689_s10 }
 0x29d   : > { %861 = vrot.lane.b32.xlu1 %v3674_v13, %s4689_s10  ;;  %s4697_s10 = smov 76  }
 0x2a0   : > { %875 = vrot.lane.b32.xlu0 %v3670_v12, %s4691_s11 }
 0x2a1   : > { %873 = vrot.lane.b32.xlu1 %v3674_v13, %s4691_s11  ;;  %s4699_s11 = smov 74  }
 0x2a4   : > { %887 = vrot.lane.b32.xlu0 %v3670_v12, %s4693_s8 }
 0x2a5   : > { %885 = vrot.lane.b32.xlu1 %v3674_v13, %s4693_s8  ;;  %s3578_s8 = smov 72  }
 0x2a8   : > { %899 = vrot.lane.b32.xlu0 %v3670_v12, %s4695_s9 }
 0x2a9   : > { %897 = vrot.lane.b32.xlu1 %v3674_v13, %s4695_s9  ;;  %s3579_s9 = smov 70  }
 0x2ac   : > { %911 = vrot.lane.b32.xlu0 %v3670_v12, %s4697_s10 }
 0x2ad   : > { %909 = vrot.lane.b32.xlu1 %v3674_v13, %s4697_s10  ;;  %s3580_s10 = smov 68  }
 0x2b0   : > { %923 = vrot.lane.b32.xlu0 %v3670_v12, %s4699_s11 }
 0x2b1   : > { %921 = vrot.lane.b32.xlu1 %v3674_v13, %s4699_s11  ;;  %s3581_s11 = smov 66  }
 0x2b4   : > { %935 = vrot.lane.b32.xlu0 %v3670_v12, %s3578_s8 }
 0x2b5   : > { %933 = vrot.lane.b32.xlu1 %v3674_v13, %s3578_s8 }
 0x2b8   : > { %947 = vrot.lane.b32.xlu0 %v3670_v12, %s3579_s9 }
 0x2b9   : > { %945 = vrot.lane.b32.xlu1 %v3674_v13, %s3579_s9 }
 0x2ba   : > { %v612_v16 = vpop.permute.xlu0 %611 }
 0x2bb   : > { %v610_v17 = vpop.permute.xlu1 %609 }
 0x2bc   : > { %959 = vrot.lane.b32.xlu0 %v3670_v12, %s3580_s10 }
 0x2bd   : > { %957 = vrot.lane.b32.xlu1 %v3674_v13, %s3580_s10 }
 0x2be   : > { %v624_v18 = vpop.permute.xlu0 %623 }
 0x2bf   : > { %v622_v20 = vpop.permute.xlu1 %621  ;;  %v1525_v26 = vcombine.low %v3670_v12, %v624_v18  ;;  %v1526_v29 = vcombine.high %v3670_v12, %v624_v18 }
 0x2c0   : > { %971 = vrot.lane.b32.xlu0 %v3670_v12, %s3581_s11  ;;  %v981_v31 = vcombine.low %v3674_v13, %v622_v20  ;;  %v982_v33 = vcombine.high %v3674_v13, %v622_v20 }
 0x2c1   : > { %969 = vrot.lane.b32.xlu1 %v3674_v13, %s3581_s11  ;;  %v1533_v36 = vrot.slane %v1525_v26, %v3626_v7  ;;  %v1540_v39 = vrot.slane %v1526_v29, %v3626_v7 }
 0x2c2   : > { %v636_v21 = vpop.permute.xlu0 %635  ;;  %v989_v41 = vrot.slane %v981_v31, %v3626_v7  ;;  %v996_v44 = vrot.slane %v982_v33, %v3626_v7 }
 0x2c3   : > { %v634_v22 = vpop.permute.xlu1 %633  ;;  %v1541_v23 = vcombine.low %v612_v16, %v636_v21  ;;  %v1542_v24 = vcombine.high %v612_v16, %v636_v21 }
 0x2c4   : > { %615 = vrot.lane.b32.xlu0 %v3678_v14, %s3551_s16  ;;  %v997_v27 = vcombine.low %v610_v17, %v634_v22  ;;  %v998_v30 = vcombine.high %v610_v17, %v634_v22 }
 0x2c5   : > { %613 = vrot.lane.b32.xlu1 %v3682_v15, %s3551_s16  ;;  %v1549_v32 = vrot.slane %v1541_v23, %v3626_v7  ;;  %v1556_v34 = vrot.slane %v1542_v24, %v3626_v7  ;;  %s3408_s16 = sshll.u32 %s4714_s12, 10 }
 0x2c6   : > { %v648_v25 = vpop.permute.xlu0 %647  ;;  %v1005_v37 = vrot.slane %v997_v27, %v3626_v7  ;;  %v1012_v40 = vrot.slane %v998_v30, %v3626_v7 }
 0x2c7   : > { %v646_v28 = vpop.permute.xlu1 %645  ;;  %v1589_v42 = vcombine.low %v1533_v36, %v1549_v32  ;;  %v1590_v43 = vcombine.high %v1533_v36, %v1549_v32  ;;  %v1605_v45 = vcombine.low %v1540_v39, %v1556_v34  ;;  %v1606_v46 = vcombine.high %v1540_v39, %v1556_v34 }
 0x2c8   : > { %627 = vrot.lane.b32.xlu0 %v3678_v14, %s3552_s17  ;;  %v1045_v48 = vcombine.low %v989_v41, %v1005_v37  ;;  %v1046_v49 = vcombine.high %v989_v41, %v1005_v37  ;;  %v1061_v51 = vcombine.low %v996_v44, %v1012_v40  ;;  %v1062_v52 = vcombine.high %v996_v44, %v1012_v40 }
 0x2c9   : > { %625 = vrot.lane.b32.xlu1 %v3682_v15, %s3552_s17  ;;  %v3829_v53 = vrot.slane %v1589_v42, %v3630_v19  ;;  %v3832_v54 = vrot.slane %v1590_v43, %v3630_v19  ;;  %v3837_v57 = vrot.slane %v1605_v45, %v3630_v19  ;;  %v3840_v58 = vrot.slane %v1606_v46, %v3630_v19 }
 0x2ca   : > { %v660_v35 = vpop.permute.xlu0 %659  ;;  %v3843_v62 = vrot.slane %v1045_v48, %v3630_v19  ;;  %v3846_v63 = vrot.slane %v1046_v49, %v3630_v19  ;;  %v3849_v3 = vrot.slane %v1061_v51, %v3630_v19  ;;  %v3852_v4 = vrot.slane %v1062_v52, %v3630_v19 }
 0x2cb   : > { %v658_v38 = vpop.permute.xlu1 %657 }
 0x2cc   : > { %639 = vrot.lane.b32.xlu0 %v3678_v14, %s3553_s18 }
 0x2cd   : > { %637 = vrot.lane.b32.xlu1 %v3682_v15, %s3553_s18  ;;  %s3882_s18 = scalar_lea.vmem %s4684_s3, %s3408_s16 }
 0x2ce   : > { %v672_v47 = vpop.permute.xlu0 %671 }
 0x2cf   : > { %v670_v50 = vpop.permute.xlu1 %669  ;;  %v1557_v55 = vcombine.low %v648_v25, %v672_v47  ;;  %v1558_v56 = vcombine.high %v648_v25, %v672_v47 }
 0x2d0   : > { %651 = vrot.lane.b32.xlu0 %v3678_v14, %s3554_s19  ;;  %v1013_v59 = vcombine.low %v646_v28, %v670_v50  ;;  %v1014_v60 = vcombine.high %v646_v28, %v670_v50 }
 0x2d1   : > { %649 = vrot.lane.b32.xlu1 %v3682_v15, %s3554_s19  ;;  %v1565_v8 = vrot.slane %v1557_v55, %v3626_v7  ;;  %v1572_v9 = vrot.slane %v1558_v56, %v3626_v7  ;;  %s4701_s19 = smov 88  }
 0x2d2   : > { %v684_v61 = vpop.permute.xlu0 %683  ;;  %v1021_v12 = vrot.slane %v1013_v59, %v3626_v7  ;;  %v1028_v13 = vrot.slane %v1014_v60, %v3626_v7 }
 0x2d3   : > { %v1573_v0 = vcombine.low %v660_v35, %v684_v61  ;;  %v1574_v1 = vcombine.high %v660_v35, %v684_v61  ;;  %v682_v2 = vpop.permute.xlu1 %681 }
 0x2d4   : > { %v1029_v5 = vcombine.low %v658_v38, %v682_v2  ;;  %v1030_v6 = vcombine.high %v658_v38, %v682_v2  ;;  %663 = vrot.lane.b32.xlu0 %v3678_v14, %s3555_s20 }
 0x2d5   : > { %v1581_v10 = vrot.slane %v1573_v0, %v3626_v7  ;;  %v1588_v11 = vrot.slane %v1574_v1, %v3626_v7  ;;  %661 = vrot.lane.b32.xlu1 %v3682_v15, %s3555_s20  ;;  %s4702_s20 = smov 86  }
 0x2d6   : > { %v1037_v16 = vrot.slane %v1029_v5, %v3626_v7  ;;  %v1044_v17 = vrot.slane %v1030_v6, %v3626_v7  ;;  %v3866_v18 = vpop.permute.xlu0 %695 }
 0x2d7   : > { %v1621_v20 = vcombine.low %v1565_v8, %v1581_v10  ;;  %v1622_v21 = vcombine.high %v1565_v8, %v1581_v10  ;;  %v1637_v22 = vcombine.low %v1572_v9, %v1588_v11  ;;  %v1638_v23 = vcombine.high %v1572_v9, %v1588_v11  ;;  %v3869_v24 = vpop.permute.xlu1 %693 }
 0x2d8   : > { %v1077_v25 = vcombine.low %v1021_v12, %v1037_v16  ;;  %v1078_v26 = vcombine.high %v1021_v12, %v1037_v16  ;;  %v1093_v27 = vcombine.low %v1028_v13, %v1044_v17  ;;  %v1094_v28 = vcombine.high %v1028_v13, %v1044_v17  ;;  %675 = vrot.lane.b32.xlu0 %v3678_v14, %s3556_s21 }
 0x2d9   : > { %v1629_v29 = vrot.slane %v1621_v20, %v3630_v19  ;;  %v1636_v30 = vrot.slane %v1622_v21, %v3630_v19  ;;  %v1645_v31 = vrot.slane %v1637_v22, %v3630_v19  ;;  %v1652_v32 = vrot.slane %v1638_v23, %v3630_v19  ;;  %673 = vrot.lane.b32.xlu1 %v3682_v15, %s3556_s21  ;;  %s4703_s21 = smov 84  }
 0x2da   : > { %v1085_v33 = vrot.slane %v1077_v25, %v3630_v19  ;;  %v1092_v34 = vrot.slane %v1078_v26, %v3630_v19  ;;  %v1101_v35 = vrot.slane %v1093_v27, %v3630_v19  ;;  %v1108_v36 = vrot.slane %v1094_v28, %v3630_v19  ;;  %v708_v37 = vpop.permute.xlu0 %707 }
 0x2db   : > { %v1653_v38 = vcombine.low %v3829_v53, %v1629_v29  ;;  %v1654_v39 = vcombine.high %v3829_v53, %v1629_v29  ;;  %v1655_v40 = vcombine.low %v3832_v54, %v1636_v30  ;;  %v1656_v41 = vcombine.high %v3832_v54, %v1636_v30  ;;  %v706_v42 = vpop.permute.xlu1 %705 }
 0x2dc   : > { %v1657_v43 = vcombine.low %v3837_v57, %v1645_v31  ;;  %v1658_v44 = vcombine.high %v3837_v57, %v1645_v31  ;;  %v1659_v45 = vcombine.low %v3840_v58, %v1652_v32  ;;  %v1660_v46 = vcombine.high %v3840_v58, %v1652_v32  ;;  %687 = vrot.lane.b32.xlu0 %v3678_v14, %s3557_s22 }
 0x2dd   : > { %3189 = vst.msk [vmem:[%s3882_s18 + $0x100] sm:$0xff] %vm390_vm1, %v1653_v38  ;;  %3193 = vst.msk [vmem:[%s3882_s18 + $0x120] sm:$0xff] %vm390_vm1, %v1654_v39  ;;  %v1109_v47 = vcombine.low %v3843_v62, %v1085_v33  ;;  %v1110_v48 = vcombine.high %v3843_v62, %v1085_v33  ;;  %v1111_v49 = vcombine.low %v3846_v63, %v1092_v34  ;;  %685 = vrot.lane.b32.xlu1 %v3682_v15, %s3557_s22  ;;  %s4704_s22 = smov 82  }
 0x2de   : > { %3197 = vst.msk [vmem:[%s3882_s18 + $0x140] sm:$0xff] %vm390_vm1, %v1655_v40  ;;  %3201 = vst.msk [vmem:[%s3882_s18 + $0x160] sm:$0xff] %vm390_vm1, %v1656_v41  ;;  %v1112_v50 = vcombine.high %v3846_v63, %v1092_v34  ;;  %v1113_v51 = vcombine.low %v3849_v3, %v1101_v35  ;;  %v1114_v52 = vcombine.high %v3849_v3, %v1101_v35  ;;  %v720_v55 = vpop.permute.xlu0 %719 }
 0x2df   : > { %3205 = vst.msk [vmem:[%s3882_s18 + $0x180] sm:$0xff] %vm390_vm1, %v1657_v43  ;;  %3209 = vst.msk [vmem:[%s3882_s18 + $0x1a0] sm:$0xff] %vm390_vm1, %v1658_v44  ;;  %v1115_v53 = vcombine.low %v3852_v4, %v1108_v36  ;;  %v1116_v54 = vcombine.high %v3852_v4, %v1108_v36  ;;  %v718_v56 = vpop.permute.xlu1 %717  ;;  %v1661_v62 = vcombine.low %v3866_v18, %v720_v55 }
 0x2e0   : > { %3213 = vst.msk [vmem:[%s3882_s18 + $0x1c0] sm:$0xff] %vm390_vm1, %v1659_v45  ;;  %3217 = vst.msk [vmem:[%s3882_s18 + $0x1e0] sm:$0xff] %vm390_vm1, %v1660_v46  ;;  %699 = vrot.lane.b32.xlu0 %v3678_v14, %s3558_s23  ;;  %v1662_v1 = vcombine.high %v3866_v18, %v720_v55  ;;  %v1117_v3 = vcombine.low %v3869_v24, %v718_v56  ;;  %v1118_v5 = vcombine.high %v3869_v24, %v718_v56 }
 0x2e1   : > { %3157 = vst.msk [vmem:[%s3882_s18] sm:$0xff] %vm390_vm1, %v1109_v47  ;;  %3161 = vst.msk [vmem:[%s3882_s18 + $0x20] sm:$0xff] %vm390_vm1, %v1110_v48  ;;  %697 = vrot.lane.b32.xlu1 %v3682_v15, %s3558_s23  ;;  %v1669_v9 = vrot.slane %v1661_v62, %v3626_v7  ;;  %s4705_s23 = smov 80  }
 0x2e2   : > { %3165 = vst.msk [vmem:[%s3882_s18 + $0x40] sm:$0xff] %vm390_vm1, %v1111_v49  ;;  %3169 = vst.msk [vmem:[%s3882_s18 + $0x60] sm:$0xff] %vm390_vm1, %v1112_v50  ;;  %v732_v57 = vpop.permute.xlu0 %731  ;;  %v1676_v12 = vrot.slane %v1662_v1, %v3626_v7  ;;  %v1125_v16 = vrot.slane %v1117_v3, %v3626_v7  ;;  %v1132_v20 = vrot.slane %v1118_v5, %v3626_v7 }
 0x2e3   : > { %3173 = vst.msk [vmem:[%s3882_s18 + $0x80] sm:$0xff] %vm390_vm1, %v1113_v51  ;;  %3177 = vst.msk [vmem:[%s3882_s18 + $0xa0] sm:$0xff] %vm390_vm1, %v1114_v52  ;;  %v730_v58 = vpop.permute.xlu1 %729  ;;  %v1677_v59 = vcombine.low %v708_v37, %v732_v57  ;;  %v1678_v60 = vcombine.high %v708_v37, %v732_v57 }
 0x2e4   : > { %3181 = vst.msk [vmem:[%s3882_s18 + $0xc0] sm:$0xff] %vm390_vm1, %v1115_v53  ;;  %3185 = vst.msk [vmem:[%s3882_s18 + $0xe0] sm:$0xff] %vm390_vm1, %v1116_v54  ;;  %711 = vrot.lane.b32.xlu0 %v3678_v14, %s3559_s24  ;;  %v1133_v63 = vcombine.low %v706_v42, %v730_v58  ;;  %v1134_v2 = vcombine.high %v706_v42, %v730_v58 }
 0x2e5   : > { %709 = vrot.lane.b32.xlu1 %v3682_v15, %s3559_s24  ;;  %v1685_v4 = vrot.slane %v1677_v59, %v3626_v7  ;;  %v1692_v6 = vrot.slane %v1678_v60, %v3626_v7  ;;  %s4706_s24 = smov 78  }
 0x2e6   : > { %v744_v61 = vpop.permute.xlu0 %743  ;;  %v1141_v10 = vrot.slane %v1133_v63, %v3626_v7  ;;  %v1148_v13 = vrot.slane %v1134_v2, %v3626_v7 }
 0x2e7   : > { %v742_v0 = vpop.permute.xlu1 %741  ;;  %v1725_v17 = vcombine.low %v1669_v9, %v1685_v4  ;;  %v1726_v18 = vcombine.high %v1669_v9, %v1685_v4  ;;  %v1741_v21 = vcombine.low %v1676_v12, %v1692_v6  ;;  %v1742_v22 = vcombine.high %v1676_v12, %v1692_v6 }
 0x2e8   : > { %723 = vrot.lane.b32.xlu0 %v3678_v14, %s3560_s25  ;;  %v1181_v24 = vcombine.low %v1125_v16, %v1141_v10  ;;  %v1182_v25 = vcombine.high %v1125_v16, %v1141_v10  ;;  %v1197_v27 = vcombine.low %v1132_v20, %v1148_v13  ;;  %v1198_v28 = vcombine.high %v1132_v20, %v1148_v13 }
 0x2e9   : > { %721 = vrot.lane.b32.xlu1 %v3682_v15, %s3560_s25  ;;  %v1733_v29 = vrot.slane %v1725_v17, %v3630_v19  ;;  %v3972_v30 = vrot.slane %v1726_v18, %v3630_v19  ;;  %v3977_v33 = vrot.slane %v1741_v21, %v3630_v19  ;;  %v3980_v34 = vrot.slane %v1742_v22, %v3630_v19  ;;  %s4707_s25 = smov 76  }
 0x2ea   : > { %v756_v8 = vpop.permute.xlu0 %755  ;;  %v3983_v38 = vrot.slane %v1181_v24, %v3630_v19  ;;  %v3986_v39 = vrot.slane %v1182_v25, %v3630_v19  ;;  %v3989_v43 = vrot.slane %v1197_v27, %v3630_v19  ;;  %v3992_v44 = vrot.slane %v1198_v28, %v3630_v19 }
 0x2eb   : > { %v754_v11 = vpop.permute.xlu1 %753 }
 0x2ec   : > { %735 = vrot.lane.b32.xlu0 %v3678_v14, %s3561_s26 }
 0x2ed   : > { %733 = vrot.lane.b32.xlu1 %v3682_v15, %s3561_s26  ;;  %s4708_s26 = smov 74  }
 0x2ee   : > { %v768_v23 = vpop.permute.xlu0 %767 }
 0x2ef   : > { %v766_v26 = vpop.permute.xlu1 %765  ;;  %v1693_v31 = vcombine.low %v744_v61, %v768_v23  ;;  %v1694_v32 = vcombine.high %v744_v61, %v768_v23 }
 0x2f0   : > { %747 = vrot.lane.b32.xlu0 %v3678_v14, %s3562_s27  ;;  %v1149_v35 = vcombine.low %v742_v0, %v766_v26  ;;  %v1150_v36 = vcombine.high %v742_v0, %v766_v26 }
 0x2f1   : > { %745 = vrot.lane.b32.xlu1 %v3682_v15, %s3562_s27  ;;  %v1701_v47 = vrot.slane %v1693_v31, %v3626_v7  ;;  %v1708_v48 = vrot.slane %v1694_v32, %v3626_v7 }
 0x2f2   : > { %v780_v37 = vpop.permute.xlu0 %779  ;;  %v1157_v51 = vrot.slane %v1149_v35, %v3626_v7  ;;  %v1164_v52 = vrot.slane %v1150_v36, %v3626_v7 }
 0x2f3   : > { %v1709_v40 = vcombine.low %v756_v8, %v780_v37  ;;  %v1710_v41 = vcombine.high %v756_v8, %v780_v37  ;;  %v778_v42 = vpop.permute.xlu1 %777 }
 0x2f4   : > { %v1165_v45 = vcombine.low %v754_v11, %v778_v42  ;;  %v1166_v46 = vcombine.high %v754_v11, %v778_v42  ;;  %759 = vrot.lane.b32.xlu0 %v3678_v14, %s3563_s28 }
 0x2f5   : > { %v1717_v49 = vrot.slane %v1709_v40, %v3626_v7  ;;  %v1724_v50 = vrot.slane %v1710_v41, %v3626_v7  ;;  %757 = vrot.lane.b32.xlu1 %v3682_v15, %s3563_s28 }
 0x2f6   : > { %v1173_v53 = vrot.slane %v1165_v45, %v3626_v7  ;;  %v1180_v54 = vrot.slane %v1166_v46, %v3626_v7  ;;  %v4006_v55 = vpop.permute.xlu0 %791 }
 0x2f7   : > { %v1757_v56 = vcombine.low %v1701_v47, %v1717_v49  ;;  %v1758_v57 = vcombine.high %v1701_v47, %v1717_v49  ;;  %v1773_v58 = vcombine.low %v1708_v48, %v1724_v50  ;;  %v1774_v59 = vcombine.high %v1708_v48, %v1724_v50  ;;  %v4008_v60 = vpop.permute.xlu1 %789 }
 0x2f8   : > { %v1213_v61 = vcombine.low %v1157_v51, %v1173_v53  ;;  %v1214_v62 = vcombine.high %v1157_v51, %v1173_v53  ;;  %v1229_v63 = vcombine.low %v1164_v52, %v1180_v54  ;;  %v1230_v0 = vcombine.high %v1164_v52, %v1180_v54  ;;  %771 = vrot.lane.b32.xlu0 %v3678_v14, %s3564_s29 }
 0x2f9   : > { %v1765_v1 = vrot.slane %v1757_v56, %v3630_v19  ;;  %v1772_v2 = vrot.slane %v1758_v57, %v3630_v19  ;;  %v1781_v3 = vrot.slane %v1773_v58, %v3630_v19  ;;  %v1788_v4 = vrot.slane %v1774_v59, %v3630_v19  ;;  %769 = vrot.lane.b32.xlu1 %v3682_v15, %s3564_s29 }
 0x2fa   : > { %v1221_v5 = vrot.slane %v1213_v61, %v3630_v19  ;;  %v1228_v6 = vrot.slane %v1214_v62, %v3630_v19  ;;  %v1237_v8 = vrot.slane %v1229_v63, %v3630_v19  ;;  %v1244_v9 = vrot.slane %v1230_v0, %v3630_v19  ;;  %v804_v10 = vpop.permute.xlu0 %803 }
 0x2fb   : > { %v1789_v11 = vcombine.low %v1733_v29, %v1765_v1  ;;  %v1790_v12 = vcombine.high %v1733_v29, %v1765_v1  ;;  %v1791_v13 = vcombine.low %v3972_v30, %v1772_v2  ;;  %v1792_v16 = vcombine.high %v3972_v30, %v1772_v2  ;;  %v802_v17 = vpop.permute.xlu1 %801 }
 0x2fc   : > { %v1793_v18 = vcombine.low %v3977_v33, %v1781_v3  ;;  %v1794_v20 = vcombine.high %v3977_v33, %v1781_v3  ;;  %v1795_v21 = vcombine.low %v3980_v34, %v1788_v4  ;;  %v1796_v22 = vcombine.high %v3980_v34, %v1788_v4  ;;  %783 = vrot.lane.b32.xlu0 %v3678_v14, %s3565_s30 }
 0x2fd   : > { %3190 = vst.msk [vmem:[%s3882_s18 + $0x108] sm:$0xff] %vm390_vm1, %v1789_v11  ;;  %3194 = vst.msk [vmem:[%s3882_s18 + $0x128] sm:$0xff] %vm390_vm1, %v1790_v12  ;;  %v1245_v23 = vcombine.low %v3983_v38, %v1221_v5  ;;  %v1246_v24 = vcombine.high %v3983_v38, %v1221_v5  ;;  %v1247_v25 = vcombine.low %v3986_v39, %v1228_v6  ;;  %781 = vrot.lane.b32.xlu1 %v3682_v15, %s3565_s30 }
 0x2fe   : > { %3198 = vst.msk [vmem:[%s3882_s18 + $0x148] sm:$0xff] %vm390_vm1, %v1791_v13  ;;  %3202 = vst.msk [vmem:[%s3882_s18 + $0x168] sm:$0xff] %vm390_vm1, %v1792_v16  ;;  %v1248_v26 = vcombine.high %v3986_v39, %v1228_v6  ;;  %v1249_v27 = vcombine.low %v3989_v43, %v1237_v8  ;;  %v1250_v28 = vcombine.high %v3989_v43, %v1237_v8  ;;  %v816_v31 = vpop.permute.xlu0 %815 }
 0x2ff   : > { %3206 = vst.msk [vmem:[%s3882_s18 + $0x188] sm:$0xff] %vm390_vm1, %v1793_v18  ;;  %3210 = vst.msk [vmem:[%s3882_s18 + $0x1a8] sm:$0xff] %vm390_vm1, %v1794_v20  ;;  %v1251_v29 = vcombine.low %v3992_v44, %v1244_v9  ;;  %v1252_v30 = vcombine.high %v3992_v44, %v1244_v9  ;;  %v814_v32 = vpop.permute.xlu1 %813  ;;  %v1797_v38 = vcombine.low %v4006_v55, %v816_v31 }
 0x300   : > { %3214 = vst.msk [vmem:[%s3882_s18 + $0x1c8] sm:$0xff] %vm390_vm1, %v1795_v21  ;;  %3218 = vst.msk [vmem:[%s3882_s18 + $0x1e8] sm:$0xff] %vm390_vm1, %v1796_v22  ;;  %795 = vrot.lane.b32.xlu0 %v3678_v14, %s3566_s4  ;;  %v1798_v41 = vcombine.high %v4006_v55, %v816_v31  ;;  %v1253_v43 = vcombine.low %v4008_v60, %v814_v32  ;;  %v1254_v45 = vcombine.high %v4008_v60, %v814_v32 }
 0x301   : > { %3158 = vst.msk [vmem:[%s3882_s18 + $0x8] sm:$0xff] %vm390_vm1, %v1245_v23  ;;  %3162 = vst.msk [vmem:[%s3882_s18 + $0x28] sm:$0xff] %vm390_vm1, %v1246_v24  ;;  %793 = vrot.lane.b32.xlu1 %v3682_v15, %s3566_s4  ;;  %v1805_v48 = vrot.slane %v1797_v38, %v3626_v7 }
 0x302   : > { %3166 = vst.msk [vmem:[%s3882_s18 + $0x48] sm:$0xff] %vm390_vm1, %v1247_v25  ;;  %3170 = vst.msk [vmem:[%s3882_s18 + $0x68] sm:$0xff] %vm390_vm1, %v1248_v26  ;;  %v828_v33 = vpop.permute.xlu0 %827  ;;  %v1812_v51 = vrot.slane %v1798_v41, %v3626_v7  ;;  %v1261_v53 = vrot.slane %v1253_v43, %v3626_v7  ;;  %v1268_v56 = vrot.slane %v1254_v45, %v3626_v7 }
 0x303   : > { %3174 = vst.msk [vmem:[%s3882_s18 + $0x88] sm:$0xff] %vm390_vm1, %v1249_v27  ;;  %3178 = vst.msk [vmem:[%s3882_s18 + $0xa8] sm:$0xff] %vm390_vm1, %v1250_v28  ;;  %v826_v34 = vpop.permute.xlu1 %825  ;;  %v1813_v35 = vcombine.low %v804_v10, %v828_v33  ;;  %v1814_v36 = vcombine.high %v804_v10, %v828_v33 }
 0x304   : > { %3182 = vst.msk [vmem:[%s3882_s18 + $0xc8] sm:$0xff] %vm390_vm1, %v1251_v29  ;;  %3186 = vst.msk [vmem:[%s3882_s18 + $0xe8] sm:$0xff] %vm390_vm1, %v1252_v30  ;;  %807 = vrot.lane.b32.xlu0 %v3678_v14, %s3567_s5  ;;  %v1269_v39 = vcombine.low %v802_v17, %v826_v34  ;;  %v1270_v42 = vcombine.high %v802_v17, %v826_v34 }
 0x305   : > { %805 = vrot.lane.b32.xlu1 %v3682_v15, %s3567_s5  ;;  %v1821_v44 = vrot.slane %v1813_v35, %v3626_v7  ;;  %v1828_v46 = vrot.slane %v1814_v36, %v3626_v7 }
 0x306   : > { %v840_v37 = vpop.permute.xlu0 %839  ;;  %v1277_v49 = vrot.slane %v1269_v39, %v3626_v7  ;;  %v1284_v52 = vrot.slane %v1270_v42, %v3626_v7 }
 0x307   : > { %v838_v40 = vpop.permute.xlu1 %837  ;;  %v1861_v54 = vcombine.low %v1805_v48, %v1821_v44  ;;  %v1862_v55 = vcombine.high %v1805_v48, %v1821_v44  ;;  %v1877_v57 = vcombine.low %v1812_v51, %v1828_v46  ;;  %v1878_v58 = vcombine.high %v1812_v51, %v1828_v46 }
 0x308   : > { %819 = vrot.lane.b32.xlu0 %v3678_v14, %s3568_s6  ;;  %v1317_v60 = vcombine.low %v1261_v53, %v1277_v49  ;;  %v1318_v61 = vcombine.high %v1261_v53, %v1277_v49  ;;  %v1333_v63 = vcombine.low %v1268_v56, %v1284_v52  ;;  %v1334_v0 = vcombine.high %v1268_v56, %v1284_v52 }
 0x309   : > { %817 = vrot.lane.b32.xlu1 %v3682_v15, %s3568_s6  ;;  %v1869_v1 = vrot.slane %v1861_v54, %v3630_v19  ;;  %v4104_v2 = vrot.slane %v1862_v55, %v3630_v19  ;;  %v4109_v5 = vrot.slane %v1877_v57, %v3630_v19  ;;  %v4112_v6 = vrot.slane %v1878_v58, %v3630_v19 }
 0x30a   : > { %v852_v47 = vpop.permute.xlu0 %851  ;;  %v4115_v11 = vrot.slane %v1317_v60, %v3630_v19  ;;  %v4118_v12 = vrot.slane %v1318_v61, %v3630_v19  ;;  %v4121_v18 = vrot.slane %v1333_v63, %v3630_v19  ;;  %v4124_v20 = vrot.slane %v1334_v0, %v3630_v19 }
 0x30b   : > { %v850_v50 = vpop.permute.xlu1 %849 }
 0x30c   : > { %831 = vrot.lane.b32.xlu0 %v3678_v14, %s3569_s7 }
 0x30d   : > { %829 = vrot.lane.b32.xlu1 %v3682_v15, %s3569_s7 }
 0x30e   : > { %v864_v59 = vpop.permute.xlu0 %863 }
 0x30f   : > { %v862_v62 = vpop.permute.xlu1 %861  ;;  %v1829_v3 = vcombine.low %v840_v37, %v864_v59  ;;  %v1830_v4 = vcombine.high %v840_v37, %v864_v59 }
 0x310   : > { %843 = vrot.lane.b32.xlu0 %v3678_v14, %s4701_s19  ;;  %v1285_v8 = vcombine.low %v838_v40, %v862_v62  ;;  %v1286_v9 = vcombine.high %v838_v40, %v862_v62 }
 0x311   : > { %841 = vrot.lane.b32.xlu1 %v3682_v15, %s4701_s19  ;;  %v1837_v23 = vrot.slane %v1829_v3, %v3626_v7  ;;  %v1844_v24 = vrot.slane %v1830_v4, %v3626_v7 }
 0x312   : > { %v876_v10 = vpop.permute.xlu0 %875  ;;  %v1293_v27 = vrot.slane %v1285_v8, %v3626_v7  ;;  %v1300_v28 = vrot.slane %v1286_v9, %v3626_v7 }
 0x313   : > { %v1845_v13 = vcombine.low %v852_v47, %v876_v10  ;;  %v1846_v16 = vcombine.high %v852_v47, %v876_v10  ;;  %v874_v17 = vpop.permute.xlu1 %873 }
 0x314   : > { %v1301_v21 = vcombine.low %v850_v50, %v874_v17  ;;  %v1302_v22 = vcombine.high %v850_v50, %v874_v17  ;;  %855 = vrot.lane.b32.xlu0 %v3678_v14, %s4702_s20 }
 0x315   : > { %v1853_v25 = vrot.slane %v1845_v13, %v3626_v7  ;;  %v1860_v26 = vrot.slane %v1846_v16, %v3626_v7  ;;  %853 = vrot.lane.b32.xlu1 %v3682_v15, %s4702_s20 }
 0x316   : > { %v1309_v29 = vrot.slane %v1301_v21, %v3626_v7  ;;  %v1316_v30 = vrot.slane %v1302_v22, %v3626_v7  ;;  %v4138_v31 = vpop.permute.xlu0 %887 }
 0x317   : > { %v1893_v32 = vcombine.low %v1837_v23, %v1853_v25  ;;  %v1894_v33 = vcombine.high %v1837_v23, %v1853_v25  ;;  %v1909_v34 = vcombine.low %v1844_v24, %v1860_v26  ;;  %v1910_v35 = vcombine.high %v1844_v24, %v1860_v26  ;;  %v4140_v36 = vpop.permute.xlu1 %885 }
 0x318   : > { %v1349_v37 = vcombine.low %v1293_v27, %v1309_v29  ;;  %v1350_v38 = vcombine.high %v1293_v27, %v1309_v29  ;;  %v1365_v39 = vcombine.low %v1300_v28, %v1316_v30  ;;  %v1366_v40 = vcombine.high %v1300_v28, %v1316_v30  ;;  %867 = vrot.lane.b32.xlu0 %v3678_v14, %s4703_s21 }
 0x319   : > { %v1901_v41 = vrot.slane %v1893_v32, %v3630_v19  ;;  %v1908_v42 = vrot.slane %v1894_v33, %v3630_v19  ;;  %v1917_v43 = vrot.slane %v1909_v34, %v3630_v19  ;;  %v1924_v44 = vrot.slane %v1910_v35, %v3630_v19  ;;  %865 = vrot.lane.b32.xlu1 %v3682_v15, %s4703_s21 }
 0x31a   : > { %v1357_v45 = vrot.slane %v1349_v37, %v3630_v19  ;;  %v1364_v46 = vrot.slane %v1350_v38, %v3630_v19  ;;  %v1373_v47 = vrot.slane %v1365_v39, %v3630_v19  ;;  %v1380_v48 = vrot.slane %v1366_v40, %v3630_v19  ;;  %v900_v49 = vpop.permute.xlu0 %899 }
 0x31b   : > { %v1925_v50 = vcombine.low %v1869_v1, %v1901_v41  ;;  %v1926_v51 = vcombine.high %v1869_v1, %v1901_v41  ;;  %v1927_v52 = vcombine.low %v4104_v2, %v1908_v42  ;;  %v1928_v53 = vcombine.high %v4104_v2, %v1908_v42  ;;  %v898_v54 = vpop.permute.xlu1 %897 }
 0x31c   : > { %v1929_v55 = vcombine.low %v4109_v5, %v1917_v43  ;;  %v1930_v56 = vcombine.high %v4109_v5, %v1917_v43  ;;  %v1931_v57 = vcombine.low %v4112_v6, %v1924_v44  ;;  %v1932_v58 = vcombine.high %v4112_v6, %v1924_v44  ;;  %879 = vrot.lane.b32.xlu0 %v3678_v14, %s4704_s22 }
 0x31d   : > { %3191 = vst.msk [vmem:[%s3882_s18 + $0x110] sm:$0xff] %vm390_vm1, %v1925_v50  ;;  %3195 = vst.msk [vmem:[%s3882_s18 + $0x130] sm:$0xff] %vm390_vm1, %v1926_v51  ;;  %v1381_v59 = vcombine.low %v4115_v11, %v1357_v45  ;;  %v1382_v60 = vcombine.high %v4115_v11, %v1357_v45  ;;  %v1383_v61 = vcombine.low %v4118_v12, %v1364_v46  ;;  %877 = vrot.lane.b32.xlu1 %v3682_v15, %s4704_s22 }
 0x31e   : > { %3199 = vst.msk [vmem:[%s3882_s18 + $0x150] sm:$0xff] %vm390_vm1, %v1927_v52  ;;  %3203 = vst.msk [vmem:[%s3882_s18 + $0x170] sm:$0xff] %vm390_vm1, %v1928_v53  ;;  %v1384_v62 = vcombine.high %v4118_v12, %v1364_v46  ;;  %v1385_v63 = vcombine.low %v4121_v18, %v1373_v47  ;;  %v1386_v0 = vcombine.high %v4121_v18, %v1373_v47  ;;  %v912_v3 = vpop.permute.xlu0 %911 }
 0x31f   : > { %3207 = vst.msk [vmem:[%s3882_s18 + $0x190] sm:$0xff] %vm390_vm1, %v1929_v55  ;;  %3211 = vst.msk [vmem:[%s3882_s18 + $0x1b0] sm:$0xff] %vm390_vm1, %v1930_v56  ;;  %v1387_v1 = vcombine.low %v4124_v20, %v1380_v48  ;;  %v1388_v2 = vcombine.high %v4124_v20, %v1380_v48  ;;  %v910_v4 = vpop.permute.xlu1 %909  ;;  %v1933_v11 = vcombine.low %v4138_v31, %v912_v3 }
 0x320   : > { %3215 = vst.msk [vmem:[%s3882_s18 + $0x1d0] sm:$0xff] %vm390_vm1, %v1931_v57  ;;  %3219 = vst.msk [vmem:[%s3882_s18 + $0x1f0] sm:$0xff] %vm390_vm1, %v1932_v58  ;;  %891 = vrot.lane.b32.xlu0 %v3678_v14, %s4705_s23  ;;  %v1934_v16 = vcombine.high %v4138_v31, %v912_v3  ;;  %v1389_v18 = vcombine.low %v4140_v36, %v910_v4  ;;  %v1390_v21 = vcombine.high %v4140_v36, %v910_v4 }
 0x321   : > { %3159 = vst.msk [vmem:[%s3882_s18 + $0x10] sm:$0xff] %vm390_vm1, %v1381_v59  ;;  %3163 = vst.msk [vmem:[%s3882_s18 + $0x30] sm:$0xff] %vm390_vm1, %v1382_v60  ;;  %889 = vrot.lane.b32.xlu1 %v3682_v15, %s4705_s23  ;;  %v1941_v24 = vrot.slane %v1933_v11, %v3626_v7 }
 0x322   : > { %3167 = vst.msk [vmem:[%s3882_s18 + $0x50] sm:$0xff] %vm390_vm1, %v1383_v61  ;;  %3171 = vst.msk [vmem:[%s3882_s18 + $0x70] sm:$0xff] %vm390_vm1, %v1384_v62  ;;  %v924_v5 = vpop.permute.xlu0 %923  ;;  %v1948_v27 = vrot.slane %v1934_v16, %v3626_v7  ;;  %v1397_v29 = vrot.slane %v1389_v18, %v3626_v7  ;;  %v1404_v32 = vrot.slane %v1390_v21, %v3626_v7 }
 0x323   : > { %3175 = vst.msk [vmem:[%s3882_s18 + $0x90] sm:$0xff] %vm390_vm1, %v1385_v63  ;;  %3179 = vst.msk [vmem:[%s3882_s18 + $0xb0] sm:$0xff] %vm390_vm1, %v1386_v0  ;;  %v922_v6 = vpop.permute.xlu1 %921  ;;  %v1949_v8 = vcombine.low %v900_v49, %v924_v5  ;;  %v1950_v9 = vcombine.high %v900_v49, %v924_v5 }
 0x324   : > { %3183 = vst.msk [vmem:[%s3882_s18 + $0xd0] sm:$0xff] %vm390_vm1, %v1387_v1  ;;  %3187 = vst.msk [vmem:[%s3882_s18 + $0xf0] sm:$0xff] %vm390_vm1, %v1388_v2  ;;  %903 = vrot.lane.b32.xlu0 %v3678_v14, %s4706_s24  ;;  %v1405_v12 = vcombine.low %v898_v54, %v922_v6  ;;  %v1406_v17 = vcombine.high %v898_v54, %v922_v6 }
 0x325   : > { %901 = vrot.lane.b32.xlu1 %v3682_v15, %s4706_s24  ;;  %v1957_v20 = vrot.slane %v1949_v8, %v3626_v7  ;;  %v1964_v22 = vrot.slane %v1950_v9, %v3626_v7 }
 0x326   : > { %v936_v10 = vpop.permute.xlu0 %935  ;;  %v1413_v25 = vrot.slane %v1405_v12, %v3626_v7  ;;  %v1420_v28 = vrot.slane %v1406_v17, %v3626_v7 }
 0x327   : > { %v934_v13 = vpop.permute.xlu1 %933  ;;  %v1997_v30 = vcombine.low %v1941_v24, %v1957_v20  ;;  %v1998_v31 = vcombine.high %v1941_v24, %v1957_v20  ;;  %v2013_v33 = vcombine.low %v1948_v27, %v1964_v22  ;;  %v2014_v34 = vcombine.high %v1948_v27, %v1964_v22 }
 0x328   : > { %915 = vrot.lane.b32.xlu0 %v3678_v14, %s4707_s25  ;;  %v1453_v36 = vcombine.low %v1397_v29, %v1413_v25  ;;  %v1454_v37 = vcombine.high %v1397_v29, %v1413_v25  ;;  %v1469_v39 = vcombine.low %v1404_v32, %v1420_v28  ;;  %v1470_v40 = vcombine.high %v1404_v32, %v1420_v28 }
 0x329   : > { %913 = vrot.lane.b32.xlu1 %v3682_v15, %s4707_s25  ;;  %v2005_v41 = vrot.slane %v1997_v30, %v3630_v19  ;;  %v4236_v42 = vrot.slane %v1998_v31, %v3630_v19  ;;  %v4241_v45 = vrot.slane %v2013_v33, %v3630_v19  ;;  %v4244_v46 = vrot.slane %v2014_v34, %v3630_v19 }
 0x32a   : > { %v948_v23 = vpop.permute.xlu0 %947  ;;  %v4247_v50 = vrot.slane %v1453_v36, %v3630_v19  ;;  %v4250_v51 = vrot.slane %v1454_v37, %v3630_v19  ;;  %v4253_v55 = vrot.slane %v1469_v39, %v3630_v19  ;;  %v4256_v56 = vrot.slane %v1470_v40, %v3630_v19 }
 0x32b   : > { %v946_v26 = vpop.permute.xlu1 %945 }
 0x32c   : > { %927 = vrot.lane.b32.xlu0 %v3678_v14, %s4708_s26 }
 0x32d   : > { %925 = vrot.lane.b32.xlu1 %v3682_v15, %s4708_s26 }
 0x32e   : > { %v960_v35 = vpop.permute.xlu0 %959 }
 0x32f   : > { %v958_v38 = vpop.permute.xlu1 %957  ;;  %v1965_v43 = vcombine.low %v936_v10, %v960_v35  ;;  %v1966_v44 = vcombine.high %v936_v10, %v960_v35 }
 0x330   : > { %939 = vrot.lane.b32.xlu0 %v3678_v14, %s3578_s8  ;;  %v1421_v47 = vcombine.low %v934_v13, %v958_v38  ;;  %v1422_v48 = vcombine.high %v934_v13, %v958_v38 }
 0x331   : > { %937 = vrot.lane.b32.xlu1 %v3682_v15, %s3578_s8  ;;  %v1973_v59 = vrot.slane %v1965_v43, %v3626_v7  ;;  %v1980_v60 = vrot.slane %v1966_v44, %v3626_v7 }
 0x332   : > { %v972_v49 = vpop.permute.xlu0 %971  ;;  %v1429_v63 = vrot.slane %v1421_v47, %v3626_v7  ;;  %v1436_v0 = vrot.slane %v1422_v48, %v3626_v7 }
 0x333   : > { %v1981_v52 = vcombine.low %v948_v23, %v972_v49  ;;  %v1982_v53 = vcombine.high %v948_v23, %v972_v49  ;;  %v970_v54 = vpop.permute.xlu1 %969 }
 0x334   : > { %v1437_v57 = vcombine.low %v946_v26, %v970_v54  ;;  %v1438_v58 = vcombine.high %v946_v26, %v970_v54  ;;  %951 = vrot.lane.b32.xlu0 %v3678_v14, %s3579_s9 }
 0x335   : > { %v1989_v61 = vrot.slane %v1981_v52, %v3626_v7  ;;  %v1996_v62 = vrot.slane %v1982_v53, %v3626_v7  ;;  %949 = vrot.lane.b32.xlu1 %v3682_v15, %s3579_s9 }
 0x336   : > { %v1445_v1 = vrot.slane %v1437_v57, %v3626_v7  ;;  %v1452_v2 = vrot.slane %v1438_v58, %v3626_v7  ;;  %v4270_v3 = vpop.permute.xlu0 %615 }
 0x337   : > { %v2029_v4 = vcombine.low %v1973_v59, %v1989_v61  ;;  %v2030_v5 = vcombine.high %v1973_v59, %v1989_v61  ;;  %v2045_v6 = vcombine.low %v1980_v60, %v1996_v62  ;;  %v2046_v8 = vcombine.high %v1980_v60, %v1996_v62  ;;  %v4272_v9 = vpop.permute.xlu1 %613 }
 0x338   : > { %v1485_v10 = vcombine.low %v1429_v63, %v1445_v1  ;;  %v1486_v11 = vcombine.high %v1429_v63, %v1445_v1  ;;  %v1501_v12 = vcombine.low %v1436_v0, %v1452_v2  ;;  %v1502_v13 = vcombine.high %v1436_v0, %v1452_v2  ;;  %963 = vrot.lane.b32.xlu0 %v3678_v14, %s3580_s10 }
 0x339   : > { %v2037_v16 = vrot.slane %v2029_v4, %v3630_v19  ;;  %v2044_v17 = vrot.slane %v2030_v5, %v3630_v19  ;;  %v2053_v18 = vrot.slane %v2045_v6, %v3630_v19  ;;  %v2060_v20 = vrot.slane %v2046_v8, %v3630_v19  ;;  %961 = vrot.lane.b32.xlu1 %v3682_v15, %s3580_s10 }
 0x33a   : > { %v1493_v21 = vrot.slane %v1485_v10, %v3630_v19  ;;  %v1500_v22 = vrot.slane %v1486_v11, %v3630_v19  ;;  %v1509_v23 = vrot.slane %v1501_v12, %v3630_v19  ;;  %v1516_v24 = vrot.slane %v1502_v13, %v3630_v19  ;;  %v628_v25 = vpop.permute.xlu0 %627 }
 0x33b   : > { %v2061_v26 = vcombine.low %v2005_v41, %v2037_v16  ;;  %v2062_v27 = vcombine.high %v2005_v41, %v2037_v16  ;;  %v2063_v28 = vcombine.low %v4236_v42, %v2044_v17  ;;  %v2064_v29 = vcombine.high %v4236_v42, %v2044_v17  ;;  %v626_v30 = vpop.permute.xlu1 %625 }
 0x33c   : > { %v2065_v31 = vcombine.low %v4241_v45, %v2053_v18  ;;  %v2066_v32 = vcombine.high %v4241_v45, %v2053_v18  ;;  %v2067_v33 = vcombine.low %v4244_v46, %v2060_v20  ;;  %v2068_v34 = vcombine.high %v4244_v46, %v2060_v20  ;;  %975 = vrot.lane.b32.xlu0 %v3678_v14, %s3581_s11 }
 0x33d   : > { %3192 = vst.msk [vmem:[%s3882_s18 + $0x118] sm:$0xff] %vm390_vm1, %v2061_v26  ;;  %3196 = vst.msk [vmem:[%s3882_s18 + $0x138] sm:$0xff] %vm390_vm1, %v2062_v27  ;;  %v1517_v35 = vcombine.low %v4247_v50, %v1493_v21  ;;  %v1518_v36 = vcombine.high %v4247_v50, %v1493_v21  ;;  %v1519_v37 = vcombine.low %v4250_v51, %v1500_v22  ;;  %973 = vrot.lane.b32.xlu1 %v3682_v15, %s3581_s11 }
 0x33e   : > { %3200 = vst.msk [vmem:[%s3882_s18 + $0x158] sm:$0xff] %vm390_vm1, %v2063_v28  ;;  %3204 = vst.msk [vmem:[%s3882_s18 + $0x178] sm:$0xff] %vm390_vm1, %v2064_v29  ;;  %v1520_v38 = vcombine.high %v4250_v51, %v1500_v22  ;;  %v1521_v39 = vcombine.low %v4253_v55, %v1509_v23  ;;  %v1522_v40 = vcombine.high %v4253_v55, %v1509_v23  ;;  %v640_v43 = vpop.permute.xlu0 %639 }
 0x33f   : > { %3208 = vst.msk [vmem:[%s3882_s18 + $0x198] sm:$0xff] %vm390_vm1, %v2065_v31  ;;  %3212 = vst.msk [vmem:[%s3882_s18 + $0x1b8] sm:$0xff] %vm390_vm1, %v2066_v32  ;;  %v1523_v41 = vcombine.low %v4256_v56, %v1516_v24  ;;  %v1524_v42 = vcombine.high %v4256_v56, %v1516_v24  ;;  %v638_v44 = vpop.permute.xlu1 %637  ;;  %v2629_v45 = vcombine.low %v4270_v3, %v640_v43 }
 0x340   : > { %3216 = vst.msk [vmem:[%s3882_s18 + $0x1d8] sm:$0xff] %vm390_vm1, %v2067_v33  ;;  %3220 = vst.msk [vmem:[%s3882_s18 + $0x1f8] sm:$0xff] %vm390_vm1, %v2068_v34  ;;  %v2630_v46 = vcombine.high %v4270_v3, %v640_v43  ;;  %v2613_v48 = vcombine.low %v3678_v14, %v628_v25  ;;  %v2085_v49 = vcombine.low %v4272_v9, %v638_v44 }
 0x341   : > { %3160 = vst.msk [vmem:[%s3882_s18 + $0x18] sm:$0xff] %vm390_vm1, %v1517_v35  ;;  %3164 = vst.msk [vmem:[%s3882_s18 + $0x38] sm:$0xff] %vm390_vm1, %v1518_v36  ;;  %v2614_v51 = vcombine.high %v3678_v14, %v628_v25  ;;  %v2086_v52 = vcombine.high %v4272_v9, %v638_v44  ;;  %v2069_v53 = vcombine.low %v3682_v15, %v626_v30 }
 0x342   : > { %3168 = vst.msk [vmem:[%s3882_s18 + $0x58] sm:$0xff] %vm390_vm1, %v1519_v37  ;;  %3172 = vst.msk [vmem:[%s3882_s18 + $0x78] sm:$0xff] %vm390_vm1, %v1520_v38  ;;  %v652_v47 = vpop.permute.xlu0 %651  ;;  %v2637_v54 = vrot.slane %v2629_v45, %v3626_v7  ;;  %v2070_v55 = vcombine.high %v3682_v15, %v626_v30  ;;  %v2644_v56 = vrot.slane %v2630_v46, %v3626_v7 }
 0x343   : > { %3176 = vst.msk [vmem:[%s3882_s18 + $0x98] sm:$0xff] %vm390_vm1, %v1521_v39  ;;  %3180 = vst.msk [vmem:[%s3882_s18 + $0xb8] sm:$0xff] %vm390_vm1, %v1522_v40  ;;  %v650_v50 = vpop.permute.xlu1 %649  ;;  %v2621_v58 = vrot.slane %v2613_v48, %v3626_v7  ;;  %v2093_v59 = vrot.slane %v2085_v49, %v3626_v7  ;;  %v2628_v61 = vrot.slane %v2614_v51, %v3626_v7 }
 0x344   : > { %3184 = vst.msk [vmem:[%s3882_s18 + $0xd8] sm:$0xff] %vm390_vm1, %v1523_v41  ;;  %3188 = vst.msk [vmem:[%s3882_s18 + $0xf8] sm:$0xff] %vm390_vm1, %v1524_v42  ;;  %v2100_v14 = vrot.slane %v2086_v52, %v3626_v7  ;;  %v2077_v62 = vrot.slane %v2069_v53, %v3626_v7  ;;  %v2084_v1 = vrot.slane %v2070_v55, %v3626_v7 }
 0x345   : > { %v2677_v63 = vcombine.low %v2621_v58, %v2637_v54  ;;  %v2678_v0 = vcombine.high %v2621_v58, %v2637_v54  ;;  %v2693_v2 = vcombine.low %v2628_v61, %v2644_v56  ;;  %v2694_v15 = vcombine.high %v2628_v61, %v2644_v56 }
 0x346   : > { %v664_v57 = vpop.permute.xlu0 %663  ;;  %v2133_v4 = vcombine.low %v2077_v62, %v2093_v59  ;;  %v2134_v5 = vcombine.high %v2077_v62, %v2093_v59  ;;  %v2149_v8 = vcombine.low %v2084_v1, %v2100_v14  ;;  %v2150_v9 = vcombine.high %v2084_v1, %v2100_v14 }
 0x347   : > { %v662_v60 = vpop.permute.xlu1 %661  ;;  %v2685_v10 = vrot.slane %v2677_v63, %v3630_v19  ;;  %v2692_v11 = vrot.slane %v2678_v0, %v3630_v19  ;;  %v2701_v16 = vrot.slane %v2693_v2, %v3630_v19  ;;  %v2708_v17 = vrot.slane %v2694_v15, %v3630_v19 }
 0x348   : > { %v4357_v22 = vrot.slane %v2133_v4, %v3630_v19  ;;  %v4360_v23 = vrot.slane %v2134_v5, %v3630_v19  ;;  %v4363_v27 = vrot.slane %v2149_v8, %v3630_v19  ;;  %v4366_v28 = vrot.slane %v2150_v9, %v3630_v19 }
 0x34a   : > { %v676_v3 = vpop.permute.xlu0 %675 }
 0x34b   : > { %v674_v6 = vpop.permute.xlu1 %673  ;;  %v2645_v12 = vcombine.low %v652_v47, %v676_v3  ;;  %v2646_v13 = vcombine.high %v652_v47, %v676_v3 }
 0x34c   : > { %v2101_v18 = vcombine.low %v650_v50, %v674_v6  ;;  %v2102_v20 = vcombine.high %v650_v50, %v674_v6 }
 0x34d   : > { %v2653_v31 = vrot.slane %v2645_v12, %v3626_v7  ;;  %v2660_v32 = vrot.slane %v2646_v13, %v3626_v7 }
 0x34e   : > { %v688_v21 = vpop.permute.xlu0 %687  ;;  %v2109_v35 = vrot.slane %v2101_v18, %v3626_v7  ;;  %v2116_v36 = vrot.slane %v2102_v20, %v3626_v7 }
 0x34f   : > { %v2661_v24 = vcombine.low %v664_v57, %v688_v21  ;;  %v2662_v25 = vcombine.high %v664_v57, %v688_v21  ;;  %v686_v26 = vpop.permute.xlu1 %685 }
 0x350   : > { %v2117_v29 = vcombine.low %v662_v60, %v686_v26  ;;  %v2118_v30 = vcombine.high %v662_v60, %v686_v26 }
 0x351   : > { %v2669_v33 = vrot.slane %v2661_v24, %v3626_v7  ;;  %v2676_v34 = vrot.slane %v2662_v25, %v3626_v7 }
 0x352   : > { %v2125_v37 = vrot.slane %v2117_v29, %v3626_v7  ;;  %v2132_v38 = vrot.slane %v2118_v30, %v3626_v7  ;;  %v4376_v39 = vpop.permute.xlu0 %699 }
 0x353   : > { %v2709_v40 = vcombine.low %v2653_v31, %v2669_v33  ;;  %v2710_v41 = vcombine.high %v2653_v31, %v2669_v33  ;;  %v2725_v42 = vcombine.low %v2660_v32, %v2676_v34  ;;  %v2726_v43 = vcombine.high %v2660_v32, %v2676_v34  ;;  %v4378_v44 = vpop.permute.xlu1 %697 }
 0x354   : > { %v2165_v45 = vcombine.low %v2109_v35, %v2125_v37  ;;  %v2166_v46 = vcombine.high %v2109_v35, %v2125_v37  ;;  %v2181_v47 = vcombine.low %v2116_v36, %v2132_v38  ;;  %v2182_v48 = vcombine.high %v2116_v36, %v2132_v38 }
 0x355   : > { %v2717_v49 = vrot.slane %v2709_v40, %v3630_v19  ;;  %v2724_v50 = vrot.slane %v2710_v41, %v3630_v19  ;;  %v2733_v51 = vrot.slane %v2725_v42, %v3630_v19  ;;  %v2740_v52 = vrot.slane %v2726_v43, %v3630_v19 }
 0x356   : > { %v2173_v53 = vrot.slane %v2165_v45, %v3630_v19  ;;  %v2180_v54 = vrot.slane %v2166_v46, %v3630_v19  ;;  %v2189_v55 = vrot.slane %v2181_v47, %v3630_v19  ;;  %v2196_v56 = vrot.slane %v2182_v48, %v3630_v19  ;;  %v712_v57 = vpop.permute.xlu0 %711 }
 0x357   : > { %v2741_v58 = vcombine.low %v2685_v10, %v2717_v49  ;;  %v2742_v59 = vcombine.high %v2685_v10, %v2717_v49  ;;  %v2743_v60 = vcombine.low %v2692_v11, %v2724_v50  ;;  %v2744_v61 = vcombine.high %v2692_v11, %v2724_v50  ;;  %v710_v14 = vpop.permute.xlu1 %709 }
 0x358   : > { %v2745_v62 = vcombine.low %v2701_v16, %v2733_v51  ;;  %v2746_v63 = vcombine.high %v2701_v16, %v2733_v51  ;;  %v2747_v0 = vcombine.low %v2708_v17, %v2740_v52  ;;  %v2748_v1 = vcombine.high %v2708_v17, %v2740_v52 }
 0x359   : > { %3253 = vst.msk [vmem:[%s3882_s18 + $0x300] sm:$0xff] %vm390_vm1, %v2741_v58  ;;  %3257 = vst.msk [vmem:[%s3882_s18 + $0x320] sm:$0xff] %vm390_vm1, %v2742_v59  ;;  %v2197_v2 = vcombine.low %v4357_v22, %v2173_v53  ;;  %v2198_v15 = vcombine.high %v4357_v22, %v2173_v53  ;;  %v2199_v3 = vcombine.low %v4360_v23, %v2180_v54 }
 0x35a   : > { %3261 = vst.msk [vmem:[%s3882_s18 + $0x340] sm:$0xff] %vm390_vm1, %v2743_v60  ;;  %3265 = vst.msk [vmem:[%s3882_s18 + $0x360] sm:$0xff] %vm390_vm1, %v2744_v61  ;;  %v2200_v4 = vcombine.high %v4360_v23, %v2180_v54  ;;  %v2201_v5 = vcombine.low %v4363_v27, %v2189_v55  ;;  %v2202_v6 = vcombine.high %v4363_v27, %v2189_v55  ;;  %v724_v10 = vpop.permute.xlu0 %723 }
 0x35b   : > { %3269 = vst.msk [vmem:[%s3882_s18 + $0x380] sm:$0xff] %vm390_vm1, %v2745_v62  ;;  %3273 = vst.msk [vmem:[%s3882_s18 + $0x3a0] sm:$0xff] %vm390_vm1, %v2746_v63  ;;  %v2203_v8 = vcombine.low %v4366_v28, %v2196_v56  ;;  %v2204_v9 = vcombine.high %v4366_v28, %v2196_v56  ;;  %v722_v11 = vpop.permute.xlu1 %721  ;;  %v2749_v20 = vcombine.low %v4376_v39, %v724_v10 }
 0x35c   : > { %3277 = vst.msk [vmem:[%s3882_s18 + $0x3c0] sm:$0xff] %vm390_vm1, %v2747_v0  ;;  %3281 = vst.msk [vmem:[%s3882_s18 + $0x3e0] sm:$0xff] %vm390_vm1, %v2748_v1  ;;  %v2750_v23 = vcombine.high %v4376_v39, %v724_v10  ;;  %v2205_v25 = vcombine.low %v4378_v44, %v722_v11  ;;  %v2206_v27 = vcombine.high %v4378_v44, %v722_v11 }
 0x35d   : > { %3221 = vst.msk [vmem:[%s3882_s18 + $0x200] sm:$0xff] %vm390_vm1, %v2197_v2  ;;  %3225 = vst.msk [vmem:[%s3882_s18 + $0x220] sm:$0xff] %vm390_vm1, %v2198_v15  ;;  %v2757_v30 = vrot.slane %v2749_v20, %v3626_v7 }
 0x35e   : > { %3229 = vst.msk [vmem:[%s3882_s18 + $0x240] sm:$0xff] %vm390_vm1, %v2199_v3  ;;  %3233 = vst.msk [vmem:[%s3882_s18 + $0x260] sm:$0xff] %vm390_vm1, %v2200_v4  ;;  %v736_v12 = vpop.permute.xlu0 %735  ;;  %v2764_v33 = vrot.slane %v2750_v23, %v3626_v7  ;;  %v2213_v35 = vrot.slane %v2205_v25, %v3626_v7  ;;  %v2220_v38 = vrot.slane %v2206_v27, %v3626_v7 }
 0x35f   : > { %3237 = vst.msk [vmem:[%s3882_s18 + $0x280] sm:$0xff] %vm390_vm1, %v2201_v5  ;;  %3241 = vst.msk [vmem:[%s3882_s18 + $0x2a0] sm:$0xff] %vm390_vm1, %v2202_v6  ;;  %v734_v13 = vpop.permute.xlu1 %733  ;;  %v2765_v16 = vcombine.low %v712_v57, %v736_v12  ;;  %v2766_v17 = vcombine.high %v712_v57, %v736_v12 }
 0x360   : > { %3245 = vst.msk [vmem:[%s3882_s18 + $0x2c0] sm:$0xff] %vm390_vm1, %v2203_v8  ;;  %3249 = vst.msk [vmem:[%s3882_s18 + $0x2e0] sm:$0xff] %vm390_vm1, %v2204_v9  ;;  %v2221_v21 = vcombine.low %v710_v14, %v734_v13  ;;  %v2222_v24 = vcombine.high %v710_v14, %v734_v13 }
 0x361   : > { %v2773_v26 = vrot.slane %v2765_v16, %v3626_v7  ;;  %v2780_v28 = vrot.slane %v2766_v17, %v3626_v7 }
 0x362   : > { %v748_v18 = vpop.permute.xlu0 %747  ;;  %v2229_v31 = vrot.slane %v2221_v21, %v3626_v7  ;;  %v2236_v34 = vrot.slane %v2222_v24, %v3626_v7 }
 0x363   : > { %v746_v22 = vpop.permute.xlu1 %745  ;;  %v2813_v36 = vcombine.low %v2757_v30, %v2773_v26  ;;  %v2814_v37 = vcombine.high %v2757_v30, %v2773_v26  ;;  %v2829_v39 = vcombine.low %v2764_v33, %v2780_v28  ;;  %v2830_v40 = vcombine.high %v2764_v33, %v2780_v28 }
 0x364   : > { %v2269_v42 = vcombine.low %v2213_v35, %v2229_v31  ;;  %v2270_v43 = vcombine.high %v2213_v35, %v2229_v31  ;;  %v2285_v45 = vcombine.low %v2220_v38, %v2236_v34  ;;  %v2286_v46 = vcombine.high %v2220_v38, %v2236_v34 }
 0x365   : > { %v2821_v47 = vrot.slane %v2813_v36, %v3630_v19  ;;  %v2828_v48 = vrot.slane %v2814_v37, %v3630_v19  ;;  %v2837_v51 = vrot.slane %v2829_v39, %v3630_v19  ;;  %v2844_v52 = vrot.slane %v2830_v40, %v3630_v19 }
 0x366   : > { %v760_v29 = vpop.permute.xlu0 %759  ;;  %v4445_v56 = vrot.slane %v2269_v42, %v3630_v19  ;;  %v4448_v57 = vrot.slane %v2270_v43, %v3630_v19  ;;  %v4451_v61 = vrot.slane %v2285_v45, %v3630_v19  ;;  %v4454_v14 = vrot.slane %v2286_v46, %v3630_v19 }
 0x367   : > { %v758_v32 = vpop.permute.xlu1 %757 }
 0x36a   : > { %v772_v41 = vpop.permute.xlu0 %771 }
 0x36b   : > { %v770_v44 = vpop.permute.xlu1 %769  ;;  %v2781_v49 = vcombine.low %v748_v18, %v772_v41  ;;  %v2782_v50 = vcombine.high %v748_v18, %v772_v41 }
 0x36c   : > { %v2237_v53 = vcombine.low %v746_v22, %v770_v44  ;;  %v2238_v54 = vcombine.high %v746_v22, %v770_v44 }
 0x36d   : > { %v2789_v0 = vrot.slane %v2781_v49, %v3626_v7  ;;  %v2796_v1 = vrot.slane %v2782_v50, %v3626_v7 }
 0x36e   : > { %v784_v55 = vpop.permute.xlu0 %783  ;;  %v2245_v3 = vrot.slane %v2237_v53, %v3626_v7  ;;  %v2252_v4 = vrot.slane %v2238_v54, %v3626_v7 }
 0x36f   : > { %v2797_v58 = vcombine.low %v760_v29, %v784_v55  ;;  %v2798_v59 = vcombine.high %v760_v29, %v784_v55  ;;  %v782_v60 = vpop.permute.xlu1 %781 }
 0x370   : > { %v2253_v62 = vcombine.low %v758_v32, %v782_v60  ;;  %v2254_v63 = vcombine.high %v758_v32, %v782_v60 }
 0x371   : > { %v2805_v2 = vrot.slane %v2797_v58, %v3626_v7  ;;  %v2812_v15 = vrot.slane %v2798_v59, %v3626_v7 }
 0x372   : > { %v2261_v5 = vrot.slane %v2253_v62, %v3626_v7  ;;  %v2268_v6 = vrot.slane %v2254_v63, %v3626_v7  ;;  %v4464_v8 = vpop.permute.xlu0 %795 }
 0x373   : > { %v2845_v9 = vcombine.low %v2789_v0, %v2805_v2  ;;  %v2846_v10 = vcombine.high %v2789_v0, %v2805_v2  ;;  %v2861_v11 = vcombine.low %v2796_v1, %v2812_v15  ;;  %v2862_v12 = vcombine.high %v2796_v1, %v2812_v15  ;;  %v4466_v13 = vpop.permute.xlu1 %793 }
 0x374   : > { %v2301_v16 = vcombine.low %v2245_v3, %v2261_v5  ;;  %v2302_v17 = vcombine.high %v2245_v3, %v2261_v5  ;;  %v2317_v18 = vcombine.low %v2252_v4, %v2268_v6  ;;  %v2318_v20 = vcombine.high %v2252_v4, %v2268_v6 }
 0x375   : > { %v2853_v21 = vrot.slane %v2845_v9, %v3630_v19  ;;  %v2860_v22 = vrot.slane %v2846_v10, %v3630_v19  ;;  %v2869_v23 = vrot.slane %v2861_v11, %v3630_v19  ;;  %v2876_v24 = vrot.slane %v2862_v12, %v3630_v19 }
 0x376   : > { %v2309_v25 = vrot.slane %v2301_v16, %v3630_v19  ;;  %v2316_v26 = vrot.slane %v2302_v17, %v3630_v19  ;;  %v2325_v27 = vrot.slane %v2317_v18, %v3630_v19  ;;  %v2332_v28 = vrot.slane %v2318_v20, %v3630_v19  ;;  %v808_v29 = vpop.permute.xlu0 %807 }
 0x377   : > { %v2877_v30 = vcombine.low %v2821_v47, %v2853_v21  ;;  %v2878_v31 = vcombine.high %v2821_v47, %v2853_v21  ;;  %v2879_v32 = vcombine.low %v2828_v48, %v2860_v22  ;;  %v2880_v33 = vcombine.high %v2828_v48, %v2860_v22  ;;  %v806_v34 = vpop.permute.xlu1 %805 }
 0x378   : > { %v2881_v35 = vcombine.low %v2837_v51, %v2869_v23  ;;  %v2882_v36 = vcombine.high %v2837_v51, %v2869_v23  ;;  %v2883_v37 = vcombine.low %v2844_v52, %v2876_v24  ;;  %v2884_v38 = vcombine.high %v2844_v52, %v2876_v24 }
 0x379   : > { %3254 = vst.msk [vmem:[%s3882_s18 + $0x308] sm:$0xff] %vm390_vm1, %v2877_v30  ;;  %3258 = vst.msk [vmem:[%s3882_s18 + $0x328] sm:$0xff] %vm390_vm1, %v2878_v31  ;;  %v2333_v39 = vcombine.low %v4445_v56, %v2309_v25  ;;  %v2334_v40 = vcombine.high %v4445_v56, %v2309_v25  ;;  %v2335_v41 = vcombine.low %v4448_v57, %v2316_v26 }
 0x37a   : > { %3262 = vst.msk [vmem:[%s3882_s18 + $0x348] sm:$0xff] %vm390_vm1, %v2879_v32  ;;  %3266 = vst.msk [vmem:[%s3882_s18 + $0x368] sm:$0xff] %vm390_vm1, %v2880_v33  ;;  %v2336_v42 = vcombine.high %v4448_v57, %v2316_v26  ;;  %v2337_v43 = vcombine.low %v4451_v61, %v2325_v27  ;;  %v2338_v44 = vcombine.high %v4451_v61, %v2325_v27  ;;  %v820_v47 = vpop.permute.xlu0 %819 }
 0x37b   : > { %3270 = vst.msk [vmem:[%s3882_s18 + $0x388] sm:$0xff] %vm390_vm1, %v2881_v35  ;;  %3274 = vst.msk [vmem:[%s3882_s18 + $0x3a8] sm:$0xff] %vm390_vm1, %v2882_v36  ;;  %v2339_v45 = vcombine.low %v4454_v14, %v2332_v28  ;;  %v2340_v46 = vcombine.high %v4454_v14, %v2332_v28  ;;  %v818_v48 = vpop.permute.xlu1 %817  ;;  %v2885_v54 = vcombine.low %v4464_v8, %v820_v47 }
 0x37c   : > { %3278 = vst.msk [vmem:[%s3882_s18 + $0x3c8] sm:$0xff] %vm390_vm1, %v2883_v37  ;;  %3282 = vst.msk [vmem:[%s3882_s18 + $0x3e8] sm:$0xff] %vm390_vm1, %v2884_v38  ;;  %v2886_v57 = vcombine.high %v4464_v8, %v820_v47  ;;  %v2341_v59 = vcombine.low %v4466_v13, %v818_v48  ;;  %v2342_v61 = vcombine.high %v4466_v13, %v818_v48 }
 0x37d   : > { %3222 = vst.msk [vmem:[%s3882_s18 + $0x208] sm:$0xff] %vm390_vm1, %v2333_v39  ;;  %3226 = vst.msk [vmem:[%s3882_s18 + $0x228] sm:$0xff] %vm390_vm1, %v2334_v40  ;;  %v2893_v63 = vrot.slane %v2885_v54, %v3626_v7 }
 0x37e   : > { %3230 = vst.msk [vmem:[%s3882_s18 + $0x248] sm:$0xff] %vm390_vm1, %v2335_v41  ;;  %3234 = vst.msk [vmem:[%s3882_s18 + $0x268] sm:$0xff] %vm390_vm1, %v2336_v42  ;;  %v832_v49 = vpop.permute.xlu0 %831  ;;  %v2900_v2 = vrot.slane %v2886_v57, %v3626_v7  ;;  %v2349_v3 = vrot.slane %v2341_v59, %v3626_v7  ;;  %v2356_v6 = vrot.slane %v2342_v61, %v3626_v7 }
 0x37f   : > { %3238 = vst.msk [vmem:[%s3882_s18 + $0x288] sm:$0xff] %vm390_vm1, %v2337_v43  ;;  %3242 = vst.msk [vmem:[%s3882_s18 + $0x2a8] sm:$0xff] %vm390_vm1, %v2338_v44  ;;  %v830_v50 = vpop.permute.xlu1 %829  ;;  %v2901_v51 = vcombine.low %v808_v29, %v832_v49  ;;  %v2902_v52 = vcombine.high %v808_v29, %v832_v49 }
 0x380   : > { %3246 = vst.msk [vmem:[%s3882_s18 + $0x2c8] sm:$0xff] %vm390_vm1, %v2339_v45  ;;  %3250 = vst.msk [vmem:[%s3882_s18 + $0x2e8] sm:$0xff] %vm390_vm1, %v2340_v46  ;;  %v2357_v55 = vcombine.low %v806_v34, %v830_v50  ;;  %v2358_v58 = vcombine.high %v806_v34, %v830_v50 }
 0x381   : > { %v2909_v60 = vrot.slane %v2901_v51, %v3626_v7  ;;  %v2916_v14 = vrot.slane %v2902_v52, %v3626_v7 }
 0x382   : > { %v844_v53 = vpop.permute.xlu0 %843  ;;  %v2365_v0 = vrot.slane %v2357_v55, %v3626_v7  ;;  %v2372_v15 = vrot.slane %v2358_v58, %v3626_v7 }
 0x383   : > { %v842_v56 = vpop.permute.xlu1 %841  ;;  %v2949_v4 = vcombine.low %v2893_v63, %v2909_v60  ;;  %v2950_v5 = vcombine.high %v2893_v63, %v2909_v60  ;;  %v2965_v8 = vcombine.low %v2900_v2, %v2916_v14  ;;  %v2966_v9 = vcombine.high %v2900_v2, %v2916_v14 }
 0x384   : > { %v2405_v11 = vcombine.low %v2349_v3, %v2365_v0  ;;  %v2406_v12 = vcombine.high %v2349_v3, %v2365_v0  ;;  %v2421_v16 = vcombine.low %v2356_v6, %v2372_v15  ;;  %v2422_v17 = vcombine.high %v2356_v6, %v2372_v15 }
 0x385   : > { %v2957_v18 = vrot.slane %v2949_v4, %v3630_v19  ;;  %v2964_v20 = vrot.slane %v2950_v5, %v3630_v19  ;;  %v2973_v23 = vrot.slane %v2965_v8, %v3630_v19  ;;  %v2980_v24 = vrot.slane %v2966_v9, %v3630_v19 }
 0x386   : > { %v856_v62 = vpop.permute.xlu0 %855  ;;  %v4533_v28 = vrot.slane %v2405_v11, %v3630_v19  ;;  %v4536_v29 = vrot.slane %v2406_v12, %v3630_v19  ;;  %v4539_v33 = vrot.slane %v2421_v16, %v3630_v19  ;;  %v4542_v34 = vrot.slane %v2422_v17, %v3630_v19 }
 0x387   : > { %v854_v1 = vpop.permute.xlu1 %853 }
 0x38a   : > { %v868_v10 = vpop.permute.xlu0 %867 }
 0x38b   : > { %v866_v13 = vpop.permute.xlu1 %865  ;;  %v2917_v21 = vcombine.low %v844_v53, %v868_v10  ;;  %v2918_v22 = vcombine.high %v844_v53, %v868_v10 }
 0x38c   : > { %v2373_v25 = vcombine.low %v842_v56, %v866_v13  ;;  %v2374_v26 = vcombine.high %v842_v56, %v866_v13 }
 0x38d   : > { %v2925_v37 = vrot.slane %v2917_v21, %v3626_v7  ;;  %v2932_v38 = vrot.slane %v2918_v22, %v3626_v7 }
 0x38e   : > { %v880_v27 = vpop.permute.xlu0 %879  ;;  %v2381_v41 = vrot.slane %v2373_v25, %v3626_v7  ;;  %v2388_v42 = vrot.slane %v2374_v26, %v3626_v7 }
 0x38f   : > { %v2933_v30 = vcombine.low %v856_v62, %v880_v27  ;;  %v2934_v31 = vcombine.high %v856_v62, %v880_v27  ;;  %v878_v32 = vpop.permute.xlu1 %877 }
 0x390   : > { %v2389_v35 = vcombine.low %v854_v1, %v878_v32  ;;  %v2390_v36 = vcombine.high %v854_v1, %v878_v32 }
 0x391   : > { %v2941_v39 = vrot.slane %v2933_v30, %v3626_v7  ;;  %v2948_v40 = vrot.slane %v2934_v31, %v3626_v7 }
 0x392   : > { %v2397_v43 = vrot.slane %v2389_v35, %v3626_v7  ;;  %v2404_v44 = vrot.slane %v2390_v36, %v3626_v7  ;;  %v4552_v45 = vpop.permute.xlu0 %891 }
 0x393   : > { %v2981_v46 = vcombine.low %v2925_v37, %v2941_v39  ;;  %v2982_v47 = vcombine.high %v2925_v37, %v2941_v39  ;;  %v2997_v48 = vcombine.low %v2932_v38, %v2948_v40  ;;  %v2998_v49 = vcombine.high %v2932_v38, %v2948_v40  ;;  %v4554_v50 = vpop.permute.xlu1 %889 }
 0x394   : > { %v2437_v51 = vcombine.low %v2381_v41, %v2397_v43  ;;  %v2438_v52 = vcombine.high %v2381_v41, %v2397_v43  ;;  %v2453_v53 = vcombine.low %v2388_v42, %v2404_v44  ;;  %v2454_v54 = vcombine.high %v2388_v42, %v2404_v44 }
 0x395   : > { %v2989_v55 = vrot.slane %v2981_v46, %v3630_v19  ;;  %v2996_v56 = vrot.slane %v2982_v47, %v3630_v19  ;;  %v3005_v57 = vrot.slane %v2997_v48, %v3630_v19  ;;  %v3012_v58 = vrot.slane %v2998_v49, %v3630_v19 }
 0x396   : > { %v2445_v59 = vrot.slane %v2437_v51, %v3630_v19  ;;  %v2452_v60 = vrot.slane %v2438_v52, %v3630_v19  ;;  %v2461_v61 = vrot.slane %v2453_v53, %v3630_v19  ;;  %v2468_v14 = vrot.slane %v2454_v54, %v3630_v19  ;;  %v904_v62 = vpop.permute.xlu0 %903 }
 0x397   : > { %v3013_v63 = vcombine.low %v2957_v18, %v2989_v55  ;;  %v3014_v0 = vcombine.high %v2957_v18, %v2989_v55  ;;  %v3015_v1 = vcombine.low %v2964_v20, %v2996_v56  ;;  %v3016_v2 = vcombine.high %v2964_v20, %v2996_v56  ;;  %v902_v15 = vpop.permute.xlu1 %901 }
 0x398   : > { %v3017_v3 = vcombine.low %v2973_v23, %v3005_v57  ;;  %v3018_v4 = vcombine.high %v2973_v23, %v3005_v57  ;;  %v3019_v5 = vcombine.low %v2980_v24, %v3012_v58  ;;  %v3020_v6 = vcombine.high %v2980_v24, %v3012_v58 }
 0x399   : > { %3255 = vst.msk [vmem:[%s3882_s18 + $0x310] sm:$0xff] %vm390_vm1, %v3013_v63  ;;  %3259 = vst.msk [vmem:[%s3882_s18 + $0x330] sm:$0xff] %vm390_vm1, %v3014_v0  ;;  %v2469_v8 = vcombine.low %v4533_v28, %v2445_v59  ;;  %v2470_v9 = vcombine.high %v4533_v28, %v2445_v59  ;;  %v2471_v10 = vcombine.low %v4536_v29, %v2452_v60 }
 0x39a   : > { %3263 = vst.msk [vmem:[%s3882_s18 + $0x350] sm:$0xff] %vm390_vm1, %v3015_v1  ;;  %3267 = vst.msk [vmem:[%s3882_s18 + $0x370] sm:$0xff] %vm390_vm1, %v3016_v2  ;;  %v2472_v11 = vcombine.high %v4536_v29, %v2452_v60  ;;  %v2473_v12 = vcombine.low %v4539_v33, %v2461_v61  ;;  %v2474_v13 = vcombine.high %v4539_v33, %v2461_v61  ;;  %v916_v18 = vpop.permute.xlu0 %915 }
 0x39b   : > { %3271 = vst.msk [vmem:[%s3882_s18 + $0x390] sm:$0xff] %vm390_vm1, %v3017_v3  ;;  %3275 = vst.msk [vmem:[%s3882_s18 + $0x3b0] sm:$0xff] %vm390_vm1, %v3018_v4  ;;  %v2475_v16 = vcombine.low %v4542_v34, %v2468_v14  ;;  %v2476_v17 = vcombine.high %v4542_v34, %v2468_v14  ;;  %v914_v20 = vpop.permute.xlu1 %913  ;;  %v3021_v26 = vcombine.low %v4552_v45, %v916_v18 }
 0x39c   : > { %3279 = vst.msk [vmem:[%s3882_s18 + $0x3d0] sm:$0xff] %vm390_vm1, %v3019_v5  ;;  %3283 = vst.msk [vmem:[%s3882_s18 + $0x3f0] sm:$0xff] %vm390_vm1, %v3020_v6  ;;  %v3022_v29 = vcombine.high %v4552_v45, %v916_v18  ;;  %v2477_v31 = vcombine.low %v4554_v50, %v914_v20  ;;  %v2478_v33 = vcombine.high %v4554_v50, %v914_v20 }
 0x39d   : > { %3223 = vst.msk [vmem:[%s3882_s18 + $0x210] sm:$0xff] %vm390_vm1, %v2469_v8  ;;  %3227 = vst.msk [vmem:[%s3882_s18 + $0x230] sm:$0xff] %vm390_vm1, %v2470_v9  ;;  %v3029_v36 = vrot.slane %v3021_v26, %v3626_v7 }
 0x39e   : > { %3231 = vst.msk [vmem:[%s3882_s18 + $0x250] sm:$0xff] %vm390_vm1, %v2471_v10  ;;  %3235 = vst.msk [vmem:[%s3882_s18 + $0x270] sm:$0xff] %vm390_vm1, %v2472_v11  ;;  %v928_v21 = vpop.permute.xlu0 %927  ;;  %v3036_v39 = vrot.slane %v3022_v29, %v3626_v7  ;;  %v2485_v41 = vrot.slane %v2477_v31, %v3626_v7  ;;  %v2492_v44 = vrot.slane %v2478_v33, %v3626_v7 }
 0x39f   : > { %3239 = vst.msk [vmem:[%s3882_s18 + $0x290] sm:$0xff] %vm390_vm1, %v2473_v12  ;;  %3243 = vst.msk [vmem:[%s3882_s18 + $0x2b0] sm:$0xff] %vm390_vm1, %v2474_v13  ;;  %v926_v22 = vpop.permute.xlu1 %925  ;;  %v3037_v23 = vcombine.low %v904_v62, %v928_v21  ;;  %v3038_v24 = vcombine.high %v904_v62, %v928_v21 }
 0x3a0   : > { %3247 = vst.msk [vmem:[%s3882_s18 + $0x2d0] sm:$0xff] %vm390_vm1, %v2475_v16  ;;  %3251 = vst.msk [vmem:[%s3882_s18 + $0x2f0] sm:$0xff] %vm390_vm1, %v2476_v17  ;;  %v2493_v27 = vcombine.low %v902_v15, %v926_v22  ;;  %v2494_v30 = vcombine.high %v902_v15, %v926_v22 }
 0x3a1   : > { %v3045_v32 = vrot.slane %v3037_v23, %v3626_v7  ;;  %v3052_v34 = vrot.slane %v3038_v24, %v3626_v7 }
 0x3a2   : > { %v940_v25 = vpop.permute.xlu0 %939  ;;  %v2501_v37 = vrot.slane %v2493_v27, %v3626_v7  ;;  %v2508_v40 = vrot.slane %v2494_v30, %v3626_v7 }
 0x3a3   : > { %v938_v28 = vpop.permute.xlu1 %937  ;;  %v3085_v42 = vcombine.low %v3029_v36, %v3045_v32  ;;  %v3086_v43 = vcombine.high %v3029_v36, %v3045_v32  ;;  %v3101_v45 = vcombine.low %v3036_v39, %v3052_v34  ;;  %v3102_v46 = vcombine.high %v3036_v39, %v3052_v34 }
 0x3a4   : > { %v2541_v48 = vcombine.low %v2485_v41, %v2501_v37  ;;  %v2542_v49 = vcombine.high %v2485_v41, %v2501_v37  ;;  %v2557_v51 = vcombine.low %v2492_v44, %v2508_v40  ;;  %v2558_v52 = vcombine.high %v2492_v44, %v2508_v40 }
 0x3a5   : > { %v3093_v53 = vrot.slane %v3085_v42, %v3630_v19  ;;  %v3100_v54 = vrot.slane %v3086_v43, %v3630_v19  ;;  %v3109_v57 = vrot.slane %v3101_v45, %v3630_v19  ;;  %v3116_v58 = vrot.slane %v3102_v46, %v3630_v19 }
 0x3a6   : > { %v952_v35 = vpop.permute.xlu0 %951  ;;  %v2549_v14 = vrot.slane %v2541_v48, %v3630_v19  ;;  %v2556_v62 = vrot.slane %v2542_v49, %v3630_v19  ;;  %v2565_v2 = vrot.slane %v2557_v51, %v3630_v19  ;;  %v2572_v15 = vrot.slane %v2558_v52, %v3630_v19 }
 0x3a7   : > { %v950_v38 = vpop.permute.xlu1 %949 }
 0x3aa   : > { %v964_v47 = vpop.permute.xlu0 %963 }
 0x3ab   : > { %v962_v50 = vpop.permute.xlu1 %961  ;;  %v3053_v55 = vcombine.low %v940_v25, %v964_v47  ;;  %v3054_v56 = vcombine.high %v940_v25, %v964_v47 }
 0x3ac   : > { %v2509_v59 = vcombine.low %v938_v28, %v962_v50  ;;  %v2510_v60 = vcombine.high %v938_v28, %v962_v50 }
 0x3ad   : > { %v3061_v5 = vrot.slane %v3053_v55, %v3626_v7  ;;  %v3068_v6 = vrot.slane %v3054_v56, %v3626_v7 }
 0x3ae   : > { %v976_v61 = vpop.permute.xlu0 %975  ;;  %v2517_v10 = vrot.slane %v2509_v59, %v3626_v7  ;;  %v2524_v11 = vrot.slane %v2510_v60, %v3626_v7 }
 0x3af   : > { %v3069_v63 = vcombine.low %v952_v35, %v976_v61  ;;  %v3070_v0 = vcombine.high %v952_v35, %v976_v61  ;;  %v974_v1 = vpop.permute.xlu1 %973 }
 0x3b0   : > { %v2525_v3 = vcombine.low %v950_v38, %v974_v1  ;;  %v2526_v4 = vcombine.high %v950_v38, %v974_v1 }
 0x3b1   : > { %v3077_v8 = vrot.slane %v3069_v63, %v3626_v7  ;;  %v3084_v9 = vrot.slane %v3070_v0, %v3626_v7 }
 0x3b2   : > { %v2533_v12 = vrot.slane %v2525_v3, %v3626_v7  ;;  %v2540_v13 = vrot.slane %v2526_v4, %v3626_v7 }
 0x3b3   : > { %v3117_v16 = vcombine.low %v3061_v5, %v3077_v8  ;;  %v3118_v17 = vcombine.high %v3061_v5, %v3077_v8  ;;  %v3133_v18 = vcombine.low %v3068_v6, %v3084_v9  ;;  %v3134_v20 = vcombine.high %v3068_v6, %v3084_v9 }
 0x3b4   : > { %v2573_v21 = vcombine.low %v2517_v10, %v2533_v12  ;;  %v2574_v22 = vcombine.high %v2517_v10, %v2533_v12  ;;  %v2589_v23 = vcombine.low %v2524_v11, %v2540_v13  ;;  %v2590_v24 = vcombine.high %v2524_v11, %v2540_v13 }
 0x3b5   : > { %v3125_v25 = vrot.slane %v3117_v16, %v3630_v19  ;;  %v3132_v26 = vrot.slane %v3118_v17, %v3630_v19  ;;  %v3141_v27 = vrot.slane %v3133_v18, %v3630_v19  ;;  %v3148_v28 = vrot.slane %v3134_v20, %v3630_v19 }
 0x3b6   : > { %v2581_v7 = vrot.slane %v2573_v21, %v3630_v19  ;;  %v2588_v29 = vrot.slane %v2574_v22, %v3630_v19  ;;  %v2597_v30 = vrot.slane %v2589_v23, %v3630_v19  ;;  %v2604_v31 = vrot.slane %v2590_v24, %v3630_v19 }
 0x3b7   : > { %v3149_v32 = vcombine.low %v3093_v53, %v3125_v25  ;;  %v3150_v33 = vcombine.high %v3093_v53, %v3125_v25  ;;  %v3151_v34 = vcombine.low %v3100_v54, %v3132_v26  ;;  %v3152_v35 = vcombine.high %v3100_v54, %v3132_v26 }
 0x3b8   : > { %v3153_v36 = vcombine.low %v3109_v57, %v3141_v27  ;;  %v3154_v37 = vcombine.high %v3109_v57, %v3141_v27  ;;  %v3155_v38 = vcombine.low %v3116_v58, %v3148_v28  ;;  %v3156_v39 = vcombine.high %v3116_v58, %v3148_v28 }
 0x3b9   : > { %3256 = vst.msk [vmem:[%s3882_s18 + $0x318] sm:$0xff] %vm390_vm1, %v3149_v32  ;;  %3260 = vst.msk [vmem:[%s3882_s18 + $0x338] sm:$0xff] %vm390_vm1, %v3150_v33  ;;  %v2605_v19 = vcombine.low %v2549_v14, %v2581_v7  ;;  %v2606_v40 = vcombine.high %v2549_v14, %v2581_v7  ;;  %v2607_v41 = vcombine.low %v2556_v62, %v2588_v29 }
 0x3ba   : > { %3264 = vst.msk [vmem:[%s3882_s18 + $0x358] sm:$0xff] %vm390_vm1, %v3151_v34  ;;  %3268 = vst.msk [vmem:[%s3882_s18 + $0x378] sm:$0xff] %vm390_vm1, %v3152_v35  ;;  %v2608_v42 = vcombine.high %v2556_v62, %v2588_v29  ;;  %v2609_v43 = vcombine.low %v2565_v2, %v2597_v30  ;;  %v2610_v44 = vcombine.high %v2565_v2, %v2597_v30 }
 0x3bb   : > { %3272 = vst.msk [vmem:[%s3882_s18 + $0x398] sm:$0xff] %vm390_vm1, %v3153_v36  ;;  %3276 = vst.msk [vmem:[%s3882_s18 + $0x3b8] sm:$0xff] %vm390_vm1, %v3154_v37  ;;  %v2611_v45 = vcombine.low %v2572_v15, %v2604_v31  ;;  %v2612_v46 = vcombine.high %v2572_v15, %v2604_v31 }
 0x3bc   : > { %3280 = vst.msk [vmem:[%s3882_s18 + $0x3d8] sm:$0xff] %vm390_vm1, %v3155_v38  ;;  %3284 = vst.msk [vmem:[%s3882_s18 + $0x3f8] sm:$0xff] %vm390_vm1, %v3156_v39 }
 0x3bd   : > { %3224 = vst.msk [vmem:[%s3882_s18 + $0x218] sm:$0xff] %vm390_vm1, %v2605_v19  ;;  %3228 = vst.msk [vmem:[%s3882_s18 + $0x238] sm:$0xff] %vm390_vm1, %v2606_v40 }
 0x3be   : > { %3232 = vst.msk [vmem:[%s3882_s18 + $0x258] sm:$0xff] %vm390_vm1, %v2607_v41  ;;  %3236 = vst.msk [vmem:[%s3882_s18 + $0x278] sm:$0xff] %vm390_vm1, %v2608_v42 }
 0x3bf   : > { %3240 = vst.msk [vmem:[%s3882_s18 + $0x298] sm:$0xff] %vm390_vm1, %v2609_v43  ;;  %3244 = vst.msk [vmem:[%s3882_s18 + $0x2b8] sm:$0xff] %vm390_vm1, %v2610_v44 }
 0x3c0   : > { %3248 = vst.msk [vmem:[%s3882_s18 + $0x2d8] sm:$0xff] %vm390_vm1, %v2611_v45  ;;  %3252 = vst.msk [vmem:[%s3882_s18 + $0x2f8] sm:$0xff] %vm390_vm1, %v2612_v46 }
 0x3c1 PF: > { %s13_s14 = sadd.s32 1, %s3540_s14   ;;  %s4709_s12 = smov %s3536_s13 }
 0x3c2   : > { %p10_p5 = scmp.ge.s32.totalorder %s13_s14, 4   ;;  %s4710_s13 = smov %s4712_s15 }
 0x3c4   :  { %12 = sbr.rel (!%p10_p5) target bundleno = 2 (0x2), region = 65 }

// kernel: run.26
= control target key start
LH: loop header
LB: loop body
LE: loop exit
PB: predicated region body
PF: predicated region fallthrough
CT: control target
= control target key end

     0   :  { %s3906_s21 = smov 0   ;;  %s3908_s22 = smov 0   ;;  %s4308_s0 = inlined_call_operand.vmem [shape: bf16[2,256,128], index: 0, kind: input, shape index: {}, may-alias: {0,1}]   ;;  %s4309_s1 = inlined_call_operand.vmem [shape: bf16[2,256,128], index: 1, kind: input, shape index: {}, may-alias: {0,1}]   ;;  %s4310_s2 = inlined_call_operand.vmem [shape: bf16[3,384,128], index: 2, kind: input, shape index: {}]   ;;  %s4311_s3 = inlined_call_operand.vmem [shape: f32[1,128], index: 3, kind: input, shape index: {}]   ;;  %s4312_s4 = inlined_call_operand.vmem [shape: f32[128,2], index: 4, kind: input, shape index: {}]   ;;  %s4313_s5 = inlined_call_operand.vmem [shape: f32[1,2], index: 5, kind: input, shape index: {}]   ;;  %s4314_s6 = inlined_call_operand.vmem [shape: f32[2,8,8,2], index: 6, kind: output, shape index: {}]  }
   0x1   :  { %s3910_s23 = smov 0  }
   0x2 LB: > { %s28_s24 = sadd.s32 1, %s3864_s22  ;;  %p2917_p0 = scmp.ge.s32.totalorder %s3868_s23, 1  ;;  %s3868_s23 = sphi %s3910_s23, %s16_s23   ;;  %s3864_s22 = sphi %s3908_s22, %s4316_s22   ;;  %s3860_s21 = sphi %s3906_s21, %s4315_s21  }
   0x3   : > { %p30_p1 = scmp.ge.s32.totalorder %s28_s24, 2  ;;  %p258_p2 = scmp.lt.s32.totalorder %s3868_s23, 3 }
   0x5   : > { %s4318_s24 = smov (%p30_p1, %s28_s24), 0  ;;  %p259_p3 = pnand %p2917_p0, %p258_p2 }
   0x6   : > { %v3696_v0 = vld [vmem:[%s4310_s2 + $0x40] sm:$0xff] (!%p259_p3)   ;;  %v3699_v3 = vld [vmem:[%s4310_s2 + $0x48] sm:$0xff] (!%p259_p3)   ;;  %v3702_v6 = vld [vmem:[%s4310_s2 + $0x50] sm:$0xff] (!%p259_p3)   ;;  %p308_p4 = scmp.lt.s32.totalorder (!%p259_p3), %s3860_s21, 1  ;;  %v3870_v25 = vmov (!%p259_p3), 0   ;;  %vm660_vm0 = vcmask (!%p259_p3), 1046528  }
   0x7   : > { %262 = sbr.rel (%p259_p3) target bundleno = 624 (0x270), region = 44  ;;  %v3697_v1 = vld [vmem:[%s4310_s2 + $0x80] sm:$0xff] (!%p259_p3)   ;;  %3179 = vmatprep.subr.bf16.mxu0 (!%p259_p3), %v3696_v0  ;;  %v3700_v4 = vld [vmem:[%s4310_s2 + $0x88] sm:$0xff] (!%p259_p3)   ;;  %v3703_v7 = vld [vmem:[%s4310_s2 + $0x90] sm:$0xff] (!%p259_p3)   ;;  %382 = vst [vmem:[#allocation2 + $0x50] sm:$0xf] (!%p259_p3), %v3870_v25 }
   0x8   : > { %v3698_v2 = vld [vmem:[%s4310_s2] sm:$0xff] (!%p259_p3)   ;;  %3443 = vmatprep.subr.bf16.mxu1 (!%p259_p3), %v3697_v1  ;;  %v3701_v5 = vld [vmem:[%s4310_s2 + $0x8] sm:$0xff] (!%p259_p3)   ;;  %v3704_v8 = vld [vmem:[%s4310_s2 + $0x10] sm:$0xff] (!%p259_p3)   ;;  %vm515_vm1 = vsmask.f32 (!%p259_p3), 7424  ;;  %vm2799_vm2 = vcmask (!%p259_p3), 15360  }
   0x9   : > { %3180 = vmatpush3.bf16.msra.mxu0 (!%p259_p3), %v3698_v2  ;;  %3444 = vmatpush3.bf16.msra.mxu1 (!%p259_p3), %v3697_v1  ;;  %v3705_v9 = vld [vmem:[%s4310_s2 + $0x58] sm:$0xff] (!%p259_p3)   ;;  %v3708_v12 = vld [vmem:[%s4310_s2 + $0x60] sm:$0xff] (!%p259_p3)   ;;  %v3711_v15 = vld [vmem:[%s4310_s2 + $0x68] sm:$0xff] (!%p259_p3)  }
   0xa   : > { %3181 = vmatprep.subr.bf16.mxu0 (!%p259_p3), %v3699_v3  ;;  %3445 = vmatprep.subr.bf16.mxu1 (!%p259_p3), %v3700_v4  ;;  %v3706_v10 = vld [vmem:[%s4310_s2 + $0x98] sm:$0xff] (!%p259_p3)   ;;  %v3709_v13 = vld [vmem:[%s4310_s2 + $0xa0] sm:$0xff] (!%p259_p3)   ;;  %v3712_v16 = vld [vmem:[%s4310_s2 + $0xa8] sm:$0xff] (!%p259_p3)  }
   0xb   : > { %v3707_v11 = vld [vmem:[%s4310_s2 + $0x18] sm:$0xff] (!%p259_p3)   ;;  %v3710_v14 = vld [vmem:[%s4310_s2 + $0x20] sm:$0xff] (!%p259_p3)   ;;  %v3713_v17 = vld [vmem:[%s4310_s2 + $0x28] sm:$0xff] (!%p259_p3)  }
   0xc   : > { %v3714_v18 = vld [vmem:[%s4310_s2 + $0x70] sm:$0xff] (!%p259_p3)   ;;  %v3717_v21 = vld [vmem:[%s4310_s2 + $0x78] sm:$0xff] (!%p259_p3)   ;;  %v3726_v28 = vld [vmem:[%s4310_s2 + $0x100] sm:$0xff] (!%p259_p3)  }
   0xd   : > { %3182 = vmatpush3.bf16.msra.mxu0 (!%p259_p3), %v3701_v5  ;;  %3446 = vmatpush3.bf16.msra.mxu1 (!%p259_p3), %v3700_v4  ;;  %v3715_v19 = vld [vmem:[%s4310_s2 + $0xb0] sm:$0xff] (!%p259_p3)   ;;  %v3718_v26 = vld [vmem:[%s4310_s2 + $0xb8] sm:$0xff] (!%p259_p3)   ;;  %v3727_v44 = vld [vmem:[%s4310_s2 + $0xc0] sm:$0xff] (!%p259_p3)  }
   0xe   : > { %3183 = vmatprep.subr.bf16.mxu0 %v3702_v6  ;;  %3447 = vmatprep.subr.bf16.mxu1 %v3703_v7  ;;  %s4320_s21 = smov (!%p308_p4, %s3860_s21), 1  ;;  %v3716_v20 = vld [vmem:[%s4310_s2 + $0x30] sm:$0xff]   ;;  %v3719_v27 = vld [vmem:[%s4310_s2 + $0x38] sm:$0xff]   ;;  %v3728_v52 = vld [vmem:[%s4310_s2 + $0x108] sm:$0xff]  }
   0xf   : > { %s3174_s15 = sshll.u32 %s4320_s21, 7  ;;  %v3729_v58 = vld [vmem:[%s4310_s2 + $0xc8] sm:$0xff]   ;;  %v3734_v62 = vld [vmem:[%s4310_s2 + $0x110] sm:$0xff]   ;;  %s3177_s11 = sshll.u32 %s4320_s21, 6 }
  0x10   : > { %s3996_s28 = scalar_lea.vmem %s4308_s0, %s3174_s15  ;;  %v3735_v3 = vld [vmem:[%s4310_s2 + $0xd0] sm:$0xff]   ;;  %s3176_s9 = sadd.s32 64, %s3174_s15 }
  0x11   : > { %3184 = vmatpush3.bf16.msra.mxu0 %v3704_v8  ;;  %3448 = vmatpush3.bf16.msra.mxu1 %v3703_v7  ;;  %v342_v22 = vld [vmem:[%s3996_s28] sm:$0xff]   ;;  %v344_v23 = vld [vmem:[%s3996_s28 + $0x8] sm:$0xff]   ;;  %v346_v24 = vld [vmem:[%s3996_s28 + $0x10] sm:$0xff]   ;;  %s4057_s16 = scalar_lea.vmem %s4309_s1, %s3176_s9  ;;  %s339_s17 = scalar_lea.vmem %s4314_s6, %s3177_s11 }
  0x12   : > { %3185 = vmatprep.subr.bf16.mxu0 %v3705_v9  ;;  %3449 = vmatprep.subr.bf16.mxu1 %v3706_v10  ;;  %358 = vst [vmem:[#allocation2] sm:$0xff] %v342_v22   ;;  %360 = vst [vmem:[#allocation2 + $0x8] sm:$0xff] %v344_v23   ;;  %v348_v29 = vld [vmem:[%s3996_s28 + $0x18] sm:$0xff]   ;;  %v350_v30 = vld [vmem:[%s3996_s28 + $0x20] sm:$0xff]  }
  0x13   : > { %362 = vst [vmem:[#allocation2 + $0x10] sm:$0xff] %v346_v24   ;;  %364 = vst [vmem:[#allocation2 + $0x18] sm:$0xff] %v348_v29   ;;  %v352_v2 = vld [vmem:[%s3996_s28 + $0x28] sm:$0xff]   ;;  %v354_v4 = vld [vmem:[%s3996_s28 + $0x30] sm:$0xff]  }
  0x14   : > { %366 = vst [vmem:[#allocation2 + $0x20] sm:$0xff] %v350_v30   ;;  %368 = vst [vmem:[#allocation2 + $0x28] sm:$0xff] %v352_v2   ;;  %v3736_v9 = vld [vmem:[%s4310_s2 + $0x118] sm:$0xff]   ;;  %v3743_v23 = vld [vmem:[%s4310_s2 + $0xe0] sm:$0xff]  }
  0x15   : > { %3186 = vmatpush3.bf16.msra.mxu0 %v3707_v11  ;;  %3450 = vmatpush3.bf16.msra.mxu1 %v3706_v10  ;;  %370 = vst [vmem:[#allocation2 + $0x30] sm:$0xff] %v354_v4   ;;  %v374_v25 = vld [vmem:[%s4057_s16] sm:$0xf] }
  0x16   : > { %3187 = vmatprep.subr.bf16.mxu0 %v3708_v12  ;;  %3451 = vmatprep.subr.bf16.mxu1 %v3709_v13  ;;  %v3737_v12 = vld [vmem:[%s4310_s2 + $0xd8] sm:$0xff]   ;;  %378 = vst [vmem:[#allocation2 + $0x40] sm:$0xf] %v374_v25 }
  0x19   : > { %3188 = vmatpush3.bf16.msra.mxu0 %v3710_v14  ;;  %3452 = vmatpush3.bf16.msra.mxu1 %v3709_v13  ;;  %v3720_v31 = vld [vmem:[#allocation2] sm:$0xff]   ;;  %v3721_v32 = vld [vmem:[#allocation2 + $0x8] sm:$0xff]  }
  0x1a   : > { %3189 = vmatprep.subr.bf16.mxu0 %v3711_v15  ;;  %3453 = vmatprep.subr.bf16.mxu1 %v3712_v16  ;;  %v517_v33 = vshrl.u32 %v3720_v31, 16  ;;  %v519_v34 = vshll.u32 %v3720_v31, 16  ;;  %v524_v35 = vshll.u32 %v3721_v32, 16  ;;  %v3723_v36 = vld [vmem:[#allocation2 + $0x8] sm:$0xff]   ;;  %v3722_v37 = vld [vmem:[#allocation2] sm:$0xfe]  }
  0x1b   : > { %v662_v40 = vrot.slane %v3723_v36, 1  ;;  %v3724_v41 = vld [vmem:[#allocation2] sm:$0xff]   ;;  %v661_v42 = vrot.slane %v3722_v37, 1  ;;  %v3725_v43 = vld [vmem:[#allocation2 + $0x10] sm:$0xff]   ;;  %v528_v47 = vshrl.u32 %v3721_v32, 16  ;;  %v3731_v50 = vld [vmem:[#allocation2 + $0x18] sm:$0xff]  }
  0x1c   : > { %v521_v38 = vrot.slane %v519_v34, 1  ;;  %v526_v39 = vrot.slane %v524_v35, 1  ;;  %v3730_v46 = vld [vmem:[#allocation2 + $0x10] sm:$0xff]   ;;  %v664_v49 = vrot.slane %v3725_v43, 1  ;;  %v666_v56 = vrot.slane %v3731_v50, 1  ;;  %v3733_v57 = vld [vmem:[#allocation2 + $0x20] sm:$0xff]  }
  0x1d   : > { %3190 = vmatpush3.bf16.msra.mxu0 %v3713_v17  ;;  %3454 = vmatpush3.bf16.msra.mxu1 %v3712_v16  ;;  %v663_v48 = vsel %vm660_vm0, %v661_v42, %v662_v40  ;;  %v532_v54 = vshll.u32 %v3730_v46, 16  ;;  %v668_v61 = vrot.slane %v3733_v57, 1  ;;  %v3738_v0 = vld [vmem:[#allocation2 + $0x18] sm:$0xff]   ;;  %v536_v1 = vshrl.u32 %v3730_v46, 16  ;;  %v3732_v5 = vld [vmem:[#allocation2 + $0x8] sm:$0xff]   ;;  %v3742_v14 = vld [vmem:[%s4310_s2 + $0x120] sm:$0xff]  }
  0x1e   : > { %3191 = vmatprep.subr.bf16.mxu0 %v3714_v18  ;;  %3455 = vmatprep.subr.bf16.mxu1 %v3715_v19  ;;  %v522_v45 = vor.u32 %v521_v38, %v517_v33  ;;  %v530_v53 = vor.u32 %v528_v47, %v526_v39  ;;  %v665_v55 = vsel %vm660_vm0, %v662_v40, %v664_v49  ;;  %v540_v7 = vshll.u32 %v3738_v0, 16  ;;  %v3746_v15 = vld [vmem:[#allocation2 + $0x20] sm:$0xff]   ;;  %v356_v16 = vld [vmem:[%s3996_s28 + $0x38] sm:$0xff]   ;;  %v3739_v17 = vld [vmem:[#allocation2 + $0x28] sm:$0xff]  }
  0x1f   : > { %3459 = vmatprep.mubr.bf16.mxu1 %v663_v48  ;;  %v534_v59 = vrot.slane %v532_v54, 1  ;;  %v667_v60 = vsel %vm660_vm0, %v664_v49, %v666_v56  ;;  %v669_v8 = vsel %vm660_vm0, %v666_v56, %v668_v61  ;;  %v544_v11 = vshrl.u32 %v3738_v0, 16  ;;  %372 = vst [vmem:[#allocation2 + $0x38] sm:$0xff] %v356_v16   ;;  %v3740_v22 = vld [vmem:[#allocation2 + $0x10] sm:$0xff]   ;;  %v3745_v31 = vld [vmem:[%s4310_s2 + $0xe8] sm:$0xff]   ;;  %v3748_v34 = vld [vmem:[#allocation2 + $0x18] sm:$0xff]  }
  0x20   : > { %v527_v51 = vsel %vm515_vm1, %v522_v45, %v526_v39  ;;  %v542_v10 = vrot.slane %v540_v7, 1  ;;  %v3750_v32 = vld [vmem:[%s4310_s2 + $0x130] sm:$0xff]   ;;  %v3754_v35 = vld [vmem:[%s4310_s2 + $0x1c0] sm:$0xff]   ;;  %v552_v36 = vshrl.u32 %v3746_v15, 16  ;;  %v3752_v43 = vld [vmem:[%s4310_s2 + $0x138] sm:$0xff]  }
  0x21   : > { %3192 = vmatpush3.bf16.msra.mxu0 %v3716_v20  ;;  %3456 = vmatpush3.bf16.msra.mxu1 %v3715_v19  ;;  %v535_v63 = vsel %vm515_vm1, %v530_v53, %v534_v59  ;;  %v538_v6 = vor.u32 %v536_v1, %v534_v59  ;;  %v548_v19 = vshll.u32 %v3746_v15, 16  ;;  %v3741_v20 = vld [vmem:[#allocation2 + $0x30] sm:$0xff]   ;;  %v3755_v38 = vld [vmem:[%s4310_s2 + $0x180] sm:$0xff]   ;;  %v3757_v47 = vld [vmem:[#allocation2 + $0x8] sm:$0xff]  }
  0x22   : > { %3193 = vmatprep.subr.bf16.mxu0 %v3717_v21  ;;  %3457 = vmatprep.subr.bf16.mxu1 %v3718_v26  ;;  %v546_v18 = vor.u32 %v544_v11, %v542_v10  ;;  %v670_v21 = vrot.slane %v3739_v17, 1  ;;  %v3749_v39 = vld [vmem:[#allocation2 + $0x40] ss:$0 sps:$4 sm:$0x11]   ;;  %v3751_v40 = vld [vmem:[%s4310_s2 + $0xf0] sm:$0xff]   ;;  %v1262_v53 = vshll.u32 %v3757_v47, 16 }
  0x23   : > { %949 = vmatprep.mubr.bf16.mxu0 %v527_v51  ;;  %v543_v13 = vsel %vm515_vm1, %v538_v6, %v542_v10  ;;  %v550_v24 = vrot.slane %v548_v19, 1  ;;  %v3758_v48 = vld [vmem:[#allocation2 + $0x10] sm:$0xff]   ;;  %v3753_v51 = vld [vmem:[%s4310_s2 + $0xf8] sm:$0xff]   ;;  %v3759_v56 = vld [vmem:[#allocation2 + $0x20] sm:$0xff]  }
  0x24   : > { %v1267_v54 = vshll.u32 %v3758_v48, 16  ;;  %v3761_v57 = vld [vmem:[%s4310_s2 + $0x140] sm:$0xff]   ;;  %v3763_v0 = vld [vmem:[%s4310_s2 + $0x188] sm:$0xff]   ;;  %v1271_v1 = vshrl.u32 %v3758_v48, 16  ;;  %v3764_v2 = vld [vmem:[#allocation2 + $0x30] sm:$0xff]  }
  0x25   : > { %3194 = vmatpush3.bf16.msra.mxu0 %v3719_v27  ;;  %3458 = vmatpush3.bf16.msra.mxu1 %v3718_v26  ;;  %v672_v26 = vrot.slane %v3741_v20, 1  ;;  %v3744_v27 = vld [vmem:[%s4310_s2 + $0x128] sm:$0xff]   ;;  %v551_v29 = vsel %vm515_vm1, %v546_v18, %v550_v24  ;;  %v554_v45 = vor.u32 %v552_v36, %v550_v24  ;;  %v3765_v4 = vld [vmem:[#allocation2 + $0x18] sm:$0xff]   ;;  %v564_v6 = vshll.u32 %v3764_v2, 16  ;;  %v3770_v16 = vld [vmem:[%s4310_s2 + $0x190] sm:$0xff]  }
  0x26   : > { %3259 = vmatprep.subr.bf16.mxu1 %v3726_v28  ;;  %v671_v28 = vsel %vm660_vm0, %v668_v61, %v670_v21  ;;  %v3747_v33 = vld [vmem:[#allocation2 + $0x38] sm:$0xff]   ;;  %3339 = vmatprep.subr.bf16.mxu0 %v3754_v35  ;;  %v1269_v59 = vrot.slane %v1267_v54, 1  ;;  %v3762_v61 = vld [vmem:[%s4310_s2 + $0x1c8] sm:$0xff]   ;;  %v568_v19 = vshrl.u32 %v3764_v2, 16  ;;  %v3779_v35 = vld [vmem:[%s4310_s2 + $0x1a0] sm:$0xff]  }
  0x27   : > { %v673_v30 = vsel %vm660_vm0, %v670_v21, %v672_v26  ;;  %v674_v37 = vrot.slane %v3747_v33, 1  ;;  %v3766_v10 = vld [vmem:[#allocation2 + $0x28] sm:$0xff]   ;;  %v3771_v18 = vld [vmem:[%s4310_s2 + $0x1d8] sm:$0xff]   ;;  %v1279_v21 = vshrl.u32 %v3765_v4, 16  ;;  %v3778_v33 = vld [vmem:[%s4310_s2 + $0x1e0] sm:$0xff]  }
  0x28   : > { %950 = vmatmul.mubr.bf16.vlgmr.msra.gmra.mrb[0].mxu0 %v3724_v41  ;;  %3460 = vmatmul.mubr.bf16.vlgmr.msra.gmra.mrb[0].mxu1 %v665_v55  ;;  %v3756_v41 = vld [vmem:[#allocation2 + $0x28] sm:$0xff]   ;;  %v1273_v7 = vor.u32 %v1271_v1, %v1269_v59  ;;  %v3772_v20 = vld [vmem:[%s4310_s2 + $0x198] sm:$0xff]   ;;  %v3788_v54 = vld [vmem:[%s4310_s2 + $0x1b0] sm:$0xff]  }
  0x29   : > { %3260 = vmatpush3.bf16.msra.mxu1 %v3727_v44  ;;  %3463 = vmatprep.mubr.bf16.mxu1 %v667_v60  ;;  %v675_v42 = vsel %vm660_vm0, %v672_v26, %v674_v37  ;;  %v676_v44 = vrot.slane %v3749_v39, 1  ;;  %v556_v46 = vshll.u32 %v3756_v41, 16  ;;  %v3760_v60 = vld [vmem:[#allocation2 + $0x8] sm:$0xff]  }
  0x2a   : > { %3261 = vmatprep.subr.bf16.mxu1 %v3728_v52  ;;  %957 = vmatprep.mubr.bf16.mxu0 %v535_v63  ;;  %v1260_v52 = vshrl.u32 %v3757_v47, 16  ;;  %v3768_v11 = vld [vmem:[%s4310_s2 + $0x148] sm:$0xff]   ;;  %v3784_v47 = vld [vmem:[#allocation2 + $0x38] sm:$0xff]  }
  0x2b   : > { %3340 = vmatpush3.bf16.msra.mxu0 %v3755_v38  ;;  %v677_v49 = vsel %vm660_vm0, %v674_v37, %v676_v44  ;;  %v558_v50 = vrot.slane %v556_v46, 1  ;;  %v3780_v38 = vld [vmem:[%s4310_s2 + $0x1e8] sm:$0xff]  }
  0x2c   : > { %3341 = vmatprep.subr.bf16.mxu0 %v3762_v61 }
  0x2d   : > { %3262 = vmatpush3.bf16.msra.mxu1 %v3729_v58  ;;  %v559_v55 = vsel %vm515_vm1, %v554_v45, %v558_v50  ;;  %v1264_v58 = vrot.slane %v1262_v53, 1 }
  0x2e   : > { %3263 = vmatprep.subr.bf16.mxu1 %v3734_v62  ;;  %v560_v62 = vshrl.u32 %v3756_v41, 16  ;;  %v3783_v41 = vld [vmem:[#allocation2 + $0x28] sm:$0xff]  }
  0x2f   : > { %v1265_v63 = vor.u32 %v1264_v58, %v1260_v52  ;;  %3342 = vmatpush3.bf16.msra.mxu0 %v3763_v0  ;;  %v1291_v46 = vshll.u32 %v3783_v41, 16  ;;  %v3787_v52 = vld [vmem:[%s4310_s2 + $0x1f0] sm:$0xff]   ;;  %v3790_v58 = vld [vmem:[%s4310_s2 + $0x1b8] sm:$0xff]   ;;  %v3794_v0 = vld [vmem:[#allocation2 + $0x28] sm:$0xff]  }
  0x30   : > { %958 = vmatmul.mubr.bf16.gmra.mrb[4].mxu0 %v3732_v5  ;;  %3464 = vmatmul.mubr.bf16.gmra.mrb[4].mxu1 %v669_v8  ;;  %v562_v5 = vor.u32 %v560_v62, %v558_v50  ;;  %v1275_v8 = vshll.u32 %v3765_v4, 16  ;;  %v3786_v50 = vld [vmem:[%s4310_s2 + $0x158] sm:$0xff]   ;;  %v3792_v62 = vld [vmem:[#allocation2 + $0x10] sm:$0xff]  }
  0x31   : > { %3264 = vmatpush3.bf16.msra.mxu1 %v3735_v3  ;;  %965 = vmatprep.mubr.bf16.mxu0 %v543_v13  ;;  %v1270_v3 = vsel %vm515_vm1, %v1265_v63, %v1269_v59  ;;  %v3767_v13 = vld [vmem:[#allocation2 + $0x10] sm:$0xff]   ;;  %v3793_v63 = vld [vmem:[#allocation2 + $0x18] sm:$0xff]   ;;  %v2030_v4 = vshll.u32 %v3792_v62, 16 }
  0x32   : > { %3265 = vmatprep.subr.bf16.mxu1 %v3736_v9  ;;  %3467 = vmatprep.mubr.bf16.mxu1 %v671_v28  ;;  %v566_v9 = vrot.slane %v564_v6, 1  ;;  %v3775_v28 = vld [vmem:[#allocation2 + $0x30] sm:$0xff]   ;;  %v3795_v6 = vld [vmem:[%s4310_s2 + $0x160] sm:$0xff]  }
  0x33   : > { %v3791_v59 = vld [vmem:[#allocation2 + $0x30] sm:$0xff]  }
  0x34   : > { %v567_v15 = vsel %vm515_vm1, %v562_v5, %v566_v9  ;;  %v570_v24 = vor.u32 %v568_v19, %v566_v9  ;;  %v1299_v61 = vshll.u32 %v3791_v59, 16  ;;  %v1303_v1 = vshrl.u32 %v3791_v59, 16 }
  0x35   : > { %3266 = vmatpush3.bf16.msra.mxu1 %v3737_v12  ;;  %v1277_v12 = vrot.slane %v1275_v8, 1  ;;  %v2035_v5 = vshll.u32 %v3793_v63, 16  ;;  %v2032_v9 = vrot.slane %v2030_v4, 1 }
  0x36   : > { %3267 = vmatprep.subr.bf16.mxu1 %v3742_v14  ;;  %v3769_v14 = vld [vmem:[%s4310_s2 + $0x1d0] sm:$0xff]   ;;  %v1301_v2 = vrot.slane %v1299_v61, 1  ;;  %v3817_v61 = vld [vmem:[%s4310_s2 + $0x200] sm:$0xff]  }
  0x37   : > { %v1278_v17 = vsel %vm515_vm1, %v1273_v7, %v1277_v12  ;;  %3343 = vmatprep.subr.bf16.mxu0 %v3769_v14  ;;  %v1281_v26 = vor.u32 %v1279_v21, %v1277_v12  ;;  %v2039_v7 = vshrl.u32 %v3793_v63, 16  ;;  %v3797_v12 = vld [vmem:[#allocation2 + $0x38] sm:$0xff]   ;;  %v3800_v21 = vld [vmem:[%s4310_s2 + $0x168] sm:$0xff]  }
  0x38   : > { %966 = vmatmul.mubr.bf16.gmra.mrb[8].mxu0 %v3740_v22  ;;  %3468 = vmatmul.mubr.bf16.gmra.mrb[8].mxu1 %v673_v30  ;;  %v3773_v22 = vld [vmem:[#allocation2 + $0x38] sm:$0xff]   ;;  %v1305_v14 = vor.u32 %v1303_v1, %v1301_v2  ;;  %v3811_v1 = vld [vmem:[#allocation2 + $0x28] sm:$0xff]  }
  0x39   : > { %3268 = vmatpush3.bf16.msra.mxu1 %v3743_v23  ;;  %973 = vmatprep.mubr.bf16.mxu0 %v551_v29  ;;  %v3774_v23 = vld [vmem:[#allocation2 + $0x20] sm:$0xff]   ;;  %v572_v25 = vshll.u32 %v3773_v22, 16  ;;  %v3776_v30 = vld [vmem:[#allocation2 + $0x18] sm:$0xff]   ;;  %v576_v36 = vshrl.u32 %v3773_v22, 16  ;;  %v3799_v22 = vld [vmem:[#allocation2 + $0x30] sm:$0xff]  }
  0x3a   : > { %3269 = vmatprep.subr.bf16.mxu1 %v3744_v27  ;;  %3471 = vmatprep.mubr.bf16.mxu1 %v675_v42  ;;  %v1283_v27 = vshll.u32 %v3774_v23, 16  ;;  %v1287_v39 = vshrl.u32 %v3774_v23, 16  ;;  %v3781_v42 = vld [vmem:[%s4310_s2 + $0x1a8] sm:$0xff]  }
  0x3b   : > { %3344 = vmatpush3.bf16.msra.mxu0 %v3770_v16  ;;  %v574_v29 = vrot.slane %v572_v25, 1  ;;  %v3798_v16 = vld [vmem:[#allocation2 + $0x20] sm:$0xff]  }
  0x3c   : > { %3345 = vmatprep.subr.bf16.mxu0 %v3771_v18  ;;  %v375_v23 = vld [vmem:[%s4057_s16 + $0x4] sm:$0xff]  }
  0x3d   : > { %3270 = vmatpush3.bf16.msra.mxu1 %v3745_v31  ;;  %v3777_v31 = vld [vmem:[%s4310_s2 + $0x150] sm:$0xff]   ;;  %379 = vst [vmem:[#allocation2 + $0x44] sm:$0xff] %v375_v23  }
  0x3e   : > { %3271 = vmatprep.subr.bf16.mxu1 %v3750_v32  ;;  %v1285_v32 = vrot.slane %v1283_v27, 1  ;;  %v3803_v27 = vld [vmem:[#allocation2 + $0x28] sm:$0xff]  }
  0x3f   : > { %3346 = vmatpush3.bf16.msra.mxu0 %v3772_v20  ;;  %v2043_v20 = vshll.u32 %v3798_v16, 16 }
  0x40   : > { %974 = vmatmul.mubr.bf16.gmra.mrb[12].mxu0 %v3748_v34  ;;  %3472 = vmatmul.mubr.bf16.gmra.mrb[12].mxu1 %v677_v49  ;;  %v575_v34 = vsel %vm515_vm1, %v570_v24, %v574_v29  ;;  %v1286_v37 = vsel %vm515_vm1, %v1281_v26, %v1285_v32  ;;  %v1289_v45 = vor.u32 %v1287_v39, %v1285_v32  ;;  %v3785_v49 = vld [vmem:[#allocation2 + $0x20] sm:$0xff]   ;;  %v2047_v24 = vshrl.u32 %v3798_v16, 16  ;;  %v3801_v32 = vld [vmem:[#allocation2 + $0x18] sm:$0xff]  }
  0x41   : > { %3272 = vmatpush3.bf16.msra.mxu1 %v3751_v40  ;;  %981 = vmatprep.mubr.bf16.mxu0 %v559_v55  ;;  %v3782_v40 = vld [vmem:[#allocation2 + $0x40] ss:$0 sps:$4 sm:$0x11]   ;;  %v2045_v26 = vrot.slane %v2043_v20, 1  ;;  %v3825_v20 = vld [vmem:[#allocation2 + $0x30] sm:$0xff]  }
  0x42   : > { %3273 = vmatprep.subr.bf16.mxu1 %v3752_v43  ;;  %1685 = vmatprep.mubr.bf16.mxu1 %v1270_v3  ;;  %v578_v43 = vor.u32 %v576_v36, %v574_v29  ;;  %v580_v44 = vshll.u32 %v3782_v40, 16  ;;  %v2028_v3 = vshrl.u32 %v3792_v62, 16 }
  0x43   : > { %3347 = vmatprep.subr.bf16.mxu0 %v3778_v33  ;;  %v2049_v29 = vor.u32 %v2047_v24, %v2045_v26 }
  0x44   : > { %3348 = vmatpush3.bf16.msra.mxu0 %v3779_v35  ;;  %v582_v48 = vrot.slane %v580_v44, 1  ;;  %v3808_v35 = vld [vmem:[#allocation2 + $0x30] sm:$0xff]   ;;  %v3802_v39 = vld [vmem:[#allocation2 + $0x40] sm:$0xff]   ;;  %v3804_v44 = vld [vmem:[#allocation2 + $0x38] sm:$0xff]  }
  0x45   : > { %3274 = vmatpush3.bf16.msra.mxu1 %v3753_v51  ;;  %3349 = vmatprep.subr.bf16.mxu0 %v3780_v38  ;;  %v1293_v51 = vrot.slane %v1291_v46, 1  ;;  %v3810_v38 = vld [vmem:[%s4310_s2 + $0x178] sm:$0xff]   ;;  %v2059_v40 = vshll.u32 %v3808_v35, 16  ;;  %v3809_v62 = vld [vmem:[#allocation2 + $0x40] sm:$0xff]  }
  0x46   : > { %3475 = vmatprep.subr.bf16.mxu1 %v3761_v57  ;;  %v583_v53 = vsel %vm515_vm1, %v578_v43, %v582_v48  ;;  %v1315_v43 = vshll.u32 %v3802_v39, 16  ;;  %v3820_v4 = vld [vmem:[#allocation2 + $0x40] sm:$0xff]  }
  0x47   : > { %v1294_v55 = vsel %vm515_vm1, %v1289_v45, %v1293_v51  ;;  %v1319_v45 = vshrl.u32 %v3802_v39, 16  ;;  %v2061_v48 = vrot.slane %v2059_v40, 1  ;;  %v2079_v23 = vshrl.u32 %v3820_v4, 16 }
  0x48   : > { %982 = vmatmul.mubr.bf16.gmra.mrb[16].mxu0 %v3759_v56  ;;  %1686 = vmatmul.mubr.bf16.vlgmr.msra.gmra.mrb[16].mxu1 %v3760_v60  ;;  %v3789_v56 = vld [vmem:[%s4310_s2 + $0x1f8] sm:$0xff]  }
  0x49   : > { %3476 = vmatpush3.bf16.msra.mxu1 %v3761_v57  ;;  %989 = vmatprep.mubr.bf16.mxu0 %v567_v15  ;;  %v1295_v57 = vshrl.u32 %v3783_v41, 16  ;;  %v1307_v15 = vshll.u32 %v3797_v12, 16  ;;  %v3807_v41 = vld [vmem:[#allocation2 + $0x48] ss:$0 sps:$4 sm:$0x11]  }
  0x4a   : > { %3477 = vmatprep.subr.bf16.mxu1 %v3768_v11  ;;  %1693 = vmatprep.mubr.bf16.mxu1 %v1278_v17  ;;  %v1323_v46 = vshll.u32 %v3807_v41, 16 }
  0x4b   : > { %3350 = vmatpush3.bf16.msra.mxu0 %v3781_v42  ;;  %v1297_v60 = vor.u32 %v1295_v57, %v1293_v51  ;;  %v1309_v18 = vrot.slane %v1307_v15, 1  ;;  %v3806_v51 = vld [vmem:[#allocation2 + $0x20] sm:$0xff]   ;;  %v3818_v15 = vld [vmem:[%s4310_s2 + $0x208] sm:$0xff]  }
  0x4c   : > { %3351 = vmatprep.subr.bf16.mxu0 %v3787_v52  ;;  %v1325_v52 = vrot.slane %v1323_v46, 1 }
  0x4d   : > { %3478 = vmatpush3.bf16.msra.mxu1 %v3768_v11  ;;  %v1302_v8 = vsel %vm515_vm1, %v1297_v60, %v1301_v2  ;;  %v3796_v11 = vld [vmem:[#allocation2 + $0x10] sm:$0xff]   ;;  %v1310_v25 = vsel %vm515_vm1, %v1305_v14, %v1309_v18 }
  0x4e   : > { %3479 = vmatprep.subr.bf16.mxu1 %v3777_v31 }
  0x4f   : > { %3352 = vmatpush3.bf16.msra.mxu0 %v3788_v54 }
  0x50   : > { %990 = vmatmul.mubr.bf16.gmra.mrb[20].mxu0 %v3766_v10  ;;  %1694 = vmatmul.mubr.bf16.gmra.mrb[20].mxu1 %v3767_v13  ;;  %v2037_v10 = vrot.slane %v2035_v5, 1  ;;  %v2033_v13 = vor.u32 %v2032_v9, %v2028_v3  ;;  %v3815_v5 = vld [vmem:[#allocation2 + $0x18] sm:$0xff]  }
  0x51   : > { %997 = vmatprep.mubr.bf16.mxu0 %v575_v34  ;;  %1701 = vmatprep.mubr.bf16.mxu1 %v1286_v37  ;;  %v1311_v34 = vshrl.u32 %v3797_v12, 16  ;;  %v2055_v37 = vshrl.u32 %v3803_v27, 16  ;;  %v377_v12 = vld [vmem:[%s4057_s16 + $0xc] sm:$0xf] }
  0x52   : > { %3480 = vmatpush3.bf16.msra.mxu1 %v3777_v31  ;;  %3353 = vmatprep.subr.bf16.mxu0 %v3789_v56  ;;  %v2038_v17 = vsel %vm515_vm1, %v2033_v13, %v2037_v10  ;;  %v2041_v19 = vor.u32 %v2039_v7, %v2037_v10  ;;  %v3805_v31 = vld [vmem:[%s4310_s2 + $0x170] sm:$0xff]   ;;  %v3812_v56 = vld [vmem:[#allocation2 + $0x8] sm:$0xfe]   ;;  %v2075_v10 = vshll.u32 %v3820_v4, 16  ;;  %381 = vst [vmem:[#allocation2 + $0x4c] sm:$0xf] %v377_v12 }
  0x53   : > { %3481 = vmatprep.subr.bf16.mxu1 %v3786_v50  ;;  %3354 = vmatpush3.bf16.msra.mxu0 %v3790_v58  ;;  %v1313_v42 = vor.u32 %v1311_v34, %v1309_v18  ;;  %v2063_v58 = vshrl.u32 %v3808_v35, 16  ;;  %v1403_v63 = vrot.slane %v3812_v56, 1  ;;  %v3816_v13 = vld [vmem:[#allocation2 + $0x30] sm:$0xff]   ;;  %v3827_v34 = vld [vmem:[#allocation2 + $0x38] sm:$0xff]  }
  0x54   : > { %v3824_v35 = vld [vmem:[%s4310_s2 + $0x218] sm:$0xff]   ;;  %v1414_v41 = vrot.slane %v3827_v34, 1  ;;  %v2681_v34 = vld [vmem:[%s4312_s4 + $0x50] sm:$0xff] }
  0x55   : > { %v2065_v2 = vor.u32 %v2063_v58, %v2061_v48 }
  0x56   : > { %3482 = vmatpush3.bf16.msra.mxu1 %v3786_v50  ;;  %v3814_v50 = vld [vmem:[#allocation2 + $0x38] sm:$0xff]  }
  0x57   : > { %3483 = vmatprep.subr.bf16.mxu1 %v3795_v6  ;;  %v2067_v59 = vshll.u32 %v3814_v50, 16  ;;  %v2071_v9 = vshrl.u32 %v3814_v50, 16 }
  0x58   : > { %998 = vmatmul.mubr.bf16.gmra.mrb[24].mxu0 %v3775_v28  ;;  %1702 = vmatmul.mubr.bf16.gmra.mrb[24].mxu1 %v3776_v30  ;;  %v2046_v28 = vsel %vm515_vm1, %v2041_v19, %v2045_v26  ;;  %v2051_v30 = vshll.u32 %v3803_v27, 16  ;;  %v3821_v19 = vld [vmem:[#allocation2 + $0x28] sm:$0xff]   ;;  %v3823_v26 = vld [vmem:[%s4310_s2 + $0x210] sm:$0xff]   ;;  %v1412_v27 = vrot.slane %v3825_v20, 1 }
  0x59   : > { %1005 = vmatprep.mubr.bf16.mxu0 %v583_v53  ;;  %1709 = vmatprep.mubr.bf16.mxu1 %v1294_v55  ;;  %v3813_v53 = vld [vmem:[#allocation2 + $0x10] sm:$0xff]   ;;  %v2069_v3 = vrot.slane %v2067_v59, 1  ;;  %v1410_v24 = vrot.slane %v3821_v19, 1  ;;  %v3834_v59 = vld [vmem:[#allocation2 + $0x48] sm:$0xff]   ;;  %v2671_v19 = vld [vmem:[%s4312_s4] sm:$0xff] }
  0x5a   : > { %3484 = vmatpush3.bf16.msra.mxu1 %v3795_v6  ;;  %v2053_v33 = vrot.slane %v2051_v30, 1  ;;  %v3832_v30 = vld [vmem:[#allocation2 + $0x50] ss:$0 sps:$4 sm:$0x11]   ;;  %v1415_v46 = vsel %vm660_vm0, %v1412_v27, %v1414_v41  ;;  %v2672_v20 = vld [vmem:[%s4312_s4 + $0x8] sm:$0xff] }
  0x5b   : > { %3485 = vmatprep.subr.bf16.mxu1 %v3800_v21  ;;  %v2070_v7 = vsel %vm515_vm1, %v2065_v2, %v2069_v3  ;;  %v2073_v16 = vor.u32 %v2071_v9, %v2069_v3  ;;  %v2091_v40 = vshll.u32 %v3832_v30, 16  ;;  %v3841_v3 = vld [vmem:[#allocation2 + $0x30] sm:$0xff]   ;;  %v3843_v9 = vld [vmem:[#allocation2 + $0x40] sm:$0xff]  }
  0x5c   : > { %v2054_v36 = vsel %vm515_vm1, %v2049_v29, %v2053_v33  ;;  %v2182_v12 = vrot.slane %v3843_v9, 1 }
  0x5e   : > { %3486 = vmatpush3.bf16.msra.mxu1 %v3800_v21 }
  0x5f   : > { %3487 = vmatprep.subr.bf16.mxu1 %v3805_v31 }
  0x60   : > { %1006 = vmatmul.mubr.bf16.gmra.mrb[28].mxu0 %v3784_v47  ;;  %1710 = vmatmul.mubr.bf16.gmra.mrb[28].mxu1 %v3785_v49  ;;  %v2057_v47 = vor.u32 %v2055_v37, %v2053_v33  ;;  %v1317_v49 = vrot.slane %v1315_v43, 1  ;;  %v3831_v37 = vld [vmem:[#allocation2 + $0x40] sm:$0xff]  }
  0x61   : > { %1717 = vmatprep.mubr.bf16.mxu1 %v1302_v8  ;;  %2453 = vmatprep.mubr.bf16.mxu0 %v2038_v17  ;;  %v3819_v8 = vld [vmem:[#allocation2 + $0x20] sm:$0xff]   ;;  %v2077_v17 = vrot.slane %v2075_v10, 1  ;;  %v1416_v43 = vrot.slane %v3831_v37, 1 }
  0x62   : > { %3488 = vmatpush3.bf16.msra.mxu1 %v3805_v31  ;;  %v1318_v54 = vsel %vm515_vm1, %v1313_v42, %v1317_v49  ;;  %v1321_v55 = vor.u32 %v1319_v45, %v1317_v49  ;;  %v2062_v57 = vsel %vm515_vm1, %v2057_v47, %v2061_v48  ;;  %v1408_v14 = vrot.slane %v3819_v8, 1  ;;  %v3829_v42 = vld [vmem:[%s4310_s2 + $0x220] sm:$0xff]   ;;  %v3833_v48 = vld [vmem:[#allocation2 + $0x48] ss:$0 sps:$4 sm:$0x11]  }
  0x63   : > { %3489 = vmatprep.subr.bf16.mxu1 %v3810_v38  ;;  %v2081_v31 = vor.u32 %v2079_v23, %v2077_v17  ;;  %v2093_v45 = vrot.slane %v2091_v40, 1  ;;  %v3828_v47 = vld [vmem:[#allocation2 + $0x40] sm:$0xff]   ;;  %v3830_v49 = vld [vmem:[%s4310_s2 + $0x228] sm:$0xff]   ;;  %v1417_v50 = vsel %vm660_vm0, %v1414_v41, %v1416_v43  ;;  %v2674_v23 = vld [vmem:[%s4312_s4 + $0x18] sm:$0xff] }
  0x64   : > { %v1326_v60 = vsel %vm515_vm1, %v1321_v55, %v1325_v52  ;;  %v3838_v52 = vld [vmem:[#allocation2 + $0x18] sm:$0xff]   ;;  %v3835_v55 = vld [vmem:[%s4310_s2 + $0x230] sm:$0xff]   ;;  %v2683_v37 = vld [vmem:[%s4312_s4 + $0x60] sm:$0xff] }
  0x66   : > { %3490 = vmatpush3.bf16.msra.mxu1 %v3810_v38 }
  0x67   : > { %3507 = vmatprep.subr.bf16.mxu1 %v3817_v61 }
  0x68   : > { %1718 = vmatmul.mubr.bf16.gmra.mrb[32].mxu1 %v3794_v0  ;;  %2454 = vmatmul.mubr.bf16.vlgmr.msra.gmra.mrb[32].mxu0 %v3796_v11  ;;  %v1404_v0 = vrot.slane %v3813_v53, 1  ;;  %v1406_v11 = vrot.slane %v3815_v5, 1  ;;  %v3842_v5 = vld [vmem:[#allocation2 + $0x38] sm:$0xff]  }
  0x69   : > { %1725 = vmatprep.mubr.bf16.mxu1 %v1310_v25  ;;  %2461 = vmatprep.mubr.bf16.mxu0 %v2046_v28  ;;  %v3826_v25 = vld [vmem:[#allocation2 + $0x48] sm:$0xff]   ;;  %v3822_v28 = vld [vmem:[#allocation2 + $0x38] sm:$0xff]  }
  0x6a   : > { %v1405_v6 = vsel %vm660_vm0, %v1403_v63, %v1404_v0  ;;  %v1407_v18 = vsel %vm660_vm0, %v1404_v0, %v1406_v11  ;;  %v1409_v21 = vsel %vm660_vm0, %v1406_v11, %v1408_v14  ;;  %v2083_v29 = vshll.u32 %v3826_v25, 16  ;;  %v3844_v11 = vld [vmem:[#allocation2 + $0x48] sm:$0xff]  }
  0x6b   : > { %v2087_v39 = vshrl.u32 %v3826_v25, 16  ;;  %v2675_v25 = vld [vmem:[%s4312_s4 + $0x20] sm:$0xff] }
  0x6c   : > { %v2085_v33 = vrot.slane %v2083_v29, 1  ;;  %v2678_v29 = vld [vmem:[%s4312_s4 + $0x38] sm:$0xff] }
  0x6e   : > { %v2086_v38 = vsel %vm515_vm1, %v2081_v31, %v2085_v33  ;;  %v2679_v31 = vld [vmem:[%s4312_s4 + $0x40] sm:$0xff] }
  0x70   : > { %1726 = vmatmul.mubr.bf16.gmra.mrb[36].mxu1 %v3799_v22  ;;  %2462 = vmatmul.mubr.bf16.gmra.mrb[36].mxu0 %v3801_v32  ;;  %v2078_v22 = vsel %vm515_vm1, %v2073_v16, %v2077_v17  ;;  %v1411_v32 = vsel %vm660_vm0, %v1408_v14, %v1410_v24 }
  0x71   : > { %2469 = vmatprep.mubr.bf16.mxu0 %v2054_v36  ;;  %1733 = vmatprep.mubr.bf16.mxu1 %v1318_v54  ;;  %v1413_v36 = vsel %vm660_vm0, %v1410_v24, %v1412_v27  ;;  %v1418_v54 = vrot.slane %v3833_v48, 1 }
  0x73   : > { %v1419_v58 = vsel %vm660_vm0, %v1416_v43, %v1418_v54 }
  0x78   : > { %1734 = vmatmul.mubr.bf16.gmra.mrb[40].mxu1 %v3804_v44  ;;  %2470 = vmatmul.mubr.bf16.gmra.mrb[40].mxu0 %v3806_v51  ;;  %v2089_v44 = vor.u32 %v2087_v39, %v2085_v33  ;;  %v3837_v51 = vld [vmem:[#allocation2 + $0x10] sm:$0xfe]  }
  0x79   : > { %1741 = vmatprep.mubr.bf16.mxu1 %v1326_v60  ;;  %2477 = vmatprep.mubr.bf16.mxu0 %v2062_v57  ;;  %v2171_v56 = vrot.slane %v3837_v51, 1  ;;  %v2172_v57 = vrot.slane %v3838_v52, 1  ;;  %v3839_v60 = vld [vmem:[#allocation2 + $0x20] sm:$0xff]  }
  0x7a   : > { %v2094_v53 = vsel %vm515_vm1, %v2089_v44, %v2093_v45  ;;  %v2174_v0 = vrot.slane %v3839_v60, 1  ;;  %v2685_v44 = vld [vmem:[%s4312_s4 + $0x70] sm:$0xff]  ;;  %v2686_v45 = vld [vmem:[%s4312_s4 + $0x78] sm:$0xff] }
  0x7b   : > { %v2173_v63 = vsel %vm660_vm0, %v2171_v56, %v2172_v57 }
  0x7c   : > { %v2175_v2 = vsel %vm660_vm0, %v2172_v57, %v2174_v0 }
  0x80   : > { %1742 = vmatmul.mubr.bf16.gmra.mrb[44].mxu1 %v3809_v62  ;;  %2478 = vmatmul.mubr.bf16.gmra.mrb[44].mxu0 %v3811_v1  ;;  %v3840_v62 = vld [vmem:[#allocation2 + $0x28] sm:$0xff]  }
  0x81   : > { %3491 = vmatprep.mubr.bf16.mxu1 %v1405_v6  ;;  %2485 = vmatprep.mubr.bf16.mxu0 %v2070_v7  ;;  %v2176_v1 = vrot.slane %v3840_v62, 1  ;;  %v2178_v6 = vrot.slane %v3841_v3, 1  ;;  %v2180_v7 = vrot.slane %v3842_v5, 1 }
  0x83   : > { %v2177_v4 = vsel %vm660_vm0, %v2174_v0, %v2176_v1  ;;  %v2179_v8 = vsel %vm660_vm0, %v2176_v1, %v2178_v6  ;;  %v2181_v10 = vsel %vm660_vm0, %v2178_v6, %v2180_v7  ;;  %v2183_v14 = vsel %vm660_vm0, %v2180_v7, %v2182_v12 }
  0x88   : > { %3492 = vmatmul.mubr.bf16.vlgmr.msra.gmra.mrb[0].mxu1 %v1407_v18  ;;  %2486 = vmatmul.mubr.bf16.gmra.mrb[48].mxu0 %v3816_v13  ;;  %v2184_v13 = vrot.slane %v3844_v11, 1 }
  0x89   : > { %3508 = vmatpush3.bf16.msra.mxu1 %v3817_v61  ;;  %3495 = vmatprep.mubr.bf16.mxu1 %v1409_v21  ;;  %v3836_v61 = vld [vmem:[%s4310_s2 + $0x238] sm:$0xff]   ;;  %v3583_v21 = vpack.c.bf16 %v2672_v20, %v2671_v19 }
  0x8a   : > { %3509 = vmatprep.subr.bf16.mxu1 %v3818_v15  ;;  %2493 = vmatprep.mubr.bf16.mxu0 %v2078_v22  ;;  %v2185_v16 = vsel %vm660_vm0, %v2182_v12, %v2184_v13  ;;  %v2673_v22 = vld [vmem:[%s4312_s4 + $0x10] sm:$0xff] }
  0x8b   : > { %3584 = vmatprep.subr.bf16.mxu0 %v3583_v21  ;;  %v3587_v24 = vpack.c.bf16 %v2674_v23, %v2673_v22 }
  0x8c   : > { %3586 = vmatpush3.bf16.msra.mxu0 %v3583_v21 }
  0x8d   : > { %3510 = vmatpush3.bf16.msra.mxu1 %v3818_v15  ;;  %v3845_v15 = vld [vmem:[#allocation2 + $0x50] ss:$0 sps:$4 sm:$0x11]   ;;  %3588 = vmatprep.subr.bf16.mxu0 %v3587_v24 }
  0x8e   : > { %3511 = vmatprep.subr.bf16.mxu1 %v3823_v26  ;;  %v2186_v17 = vrot.slane %v3845_v15, 1 }
  0x90   : > { %3496 = vmatmul.mubr.bf16.gmra.mrb[4].mxu1 %v1411_v32  ;;  %2494 = vmatmul.mubr.bf16.gmra.mrb[52].mxu0 %v3822_v28  ;;  %v2187_v18 = vsel %vm660_vm0, %v2184_v13, %v2186_v17  ;;  %v2677_v28 = vld [vmem:[%s4312_s4 + $0x30] sm:$0xff]  ;;  %v2680_v32 = vld [vmem:[%s4312_s4 + $0x48] sm:$0xff] }
  0x91   : > { %3512 = vmatpush3.bf16.msra.mxu1 %v3823_v26  ;;  %3499 = vmatprep.mubr.bf16.mxu1 %v1413_v36  ;;  %v2676_v26 = vld [vmem:[%s4312_s4 + $0x28] sm:$0xff]  ;;  %v3595_v30 = vpack.c.bf16 %v2678_v29, %v2677_v28  ;;  %v3599_v33 = vpack.c.bf16 %v2680_v32, %v2679_v31 }
  0x92   : > { %3513 = vmatprep.subr.bf16.mxu1 %v3824_v35  ;;  %2501 = vmatprep.mubr.bf16.mxu0 %v2086_v38  ;;  %v3591_v27 = vpack.c.bf16 %v2676_v26, %v2675_v25  ;;  %v2684_v38 = vld [vmem:[%s4312_s4 + $0x68] sm:$0xff] }
  0x93   : > { %3590 = vmatpush3.bf16.msra.mxu0 %v3587_v24  ;;  %v3607_v39 = vpack.c.bf16 %v2684_v38, %v2683_v37 }
  0x94   : > { %3592 = vmatprep.subr.bf16.mxu0 %v3591_v27 }
  0x95   : > { %3514 = vmatpush3.bf16.msra.mxu1 %v3824_v35  ;;  %v2682_v35 = vld [vmem:[%s4312_s4 + $0x58] sm:$0xff] }
  0x96   : > { %3515 = vmatprep.subr.bf16.mxu1 %v3829_v42  ;;  %v3603_v36 = vpack.c.bf16 %v2682_v35, %v2681_v34 }
  0x97   : > { %3594 = vmatpush3.bf16.msra.mxu0 %v3591_v27 }
  0x98   : > { %3500 = vmatmul.mubr.bf16.gmra.mrb[8].mxu1 %v1415_v46  ;;  %2502 = vmatmul.mubr.bf16.gmra.mrb[56].mxu0 %v3828_v47  ;;  %v3611_v47 = vpack.c.bf16 %v2686_v45, %v2685_v44 }
  0x99   : > { %3516 = vmatpush3.bf16.msra.mxu1 %v3829_v42  ;;  %3503 = vmatprep.mubr.bf16.mxu1 %v1417_v50 }
  0x9a   : > { %3517 = vmatprep.subr.bf16.mxu1 %v3830_v49  ;;  %2509 = vmatprep.mubr.bf16.mxu0 %v2094_v53 }
  0x9b   : > { %3596 = vmatprep.subr.bf16.mxu0 %v3595_v30 }
  0x9c   : > { %3598 = vmatpush3.bf16.msra.mxu0 %v3595_v30 }
  0x9d   : > { %3518 = vmatpush3.bf16.msra.mxu1 %v3830_v49  ;;  %3600 = vmatprep.subr.bf16.mxu0 %v3599_v33 }
  0x9e   : > { %3519 = vmatprep.subr.bf16.mxu1 %v3835_v55 }
  0xa0   : > { %3504 = vmatmul.mubr.bf16.gmra.mrb[12].mxu1 %v1419_v58  ;;  %2510 = vmatmul.mubr.bf16.gmra.mrb[60].mxu0 %v3834_v59 }
  0xa1   : > { %3520 = vmatpush3.bf16.msra.mxu1 %v3835_v55  ;;  %3523 = vmatprep.mubr.bf16.mxu1 %v2173_v63  ;;  %v4271_v63 = vld [vmem:[%s4311_s3] ss:$0 sm:$0xff] }
  0xa2   : > { %3521 = vmatprep.subr.bf16.mxu1 %v3836_v61  ;;  %3602 = vmatpush3.bf16.msra.mxu0 %v3599_v33 }
  0xa3   : > { %3604 = vmatprep.subr.bf16.mxu0 %v3603_v36 }
  0xa5   : > { %3522 = vmatpush3.bf16.msra.mxu1 %v3836_v61 }
  0xa6   : > { %3606 = vmatpush3.bf16.msra.mxu0 %v3603_v36 }
  0xa7   : > { %3608 = vmatprep.subr.bf16.mxu0 %v3607_v39 }
  0xa8   : > { %3524 = vmatmul.mubr.bf16.vlgmr.msra.gmra.mrb[0].mxu1 %v2175_v2 }
  0xa9   : > { %3527 = vmatprep.mubr.bf16.mxu1 %v2177_v4 }
  0xaa   : > { %3610 = vmatpush3.bf16.msra.mxu0 %v3607_v39 }
  0xab   : > { %3612 = vmatprep.subr.bf16.mxu0 %v3611_v47 }
  0xae   : > { %3614 = vmatpush3.bf16.msra.mxu0 %v3611_v47 }
  0xb0   : > { %3528 = vmatmul.mubr.bf16.gmra.mrb[4].mxu1 %v2179_v8 }
  0xb1   : > { %3531 = vmatprep.mubr.bf16.mxu1 %v2181_v10 }
  0xb8   : > { %3532 = vmatmul.mubr.bf16.gmra.mrb[8].mxu1 %v2183_v14 }
  0xb9   : > { %3535 = vmatprep.mubr.bf16.mxu1 %v2185_v16 }
  0xc0   : > { %3536 = vmatmul.mubr.bf16.gmra.mrb[12].mxu1 %v2187_v18 }
  0xfb   : > { %v3195_v40 = vpop.f32.mrb[0].mxu0 }
  0xfc   : > { %v3196_v41 = vpop.f32.mrb[1].mxu0 }
  0xfd   : > { %v3197_v42 = vadd.f32 %v3196_v41, %v3195_v40  ;;  %v3198_v43 = vpop.f32.mrb[2].mxu0 }
  0xfe   : > { %v3199_v46 = vpop.f32.mrb[3].mxu0 }
  0xff   : > { %v952_v6 = vadd.f32 %v3197_v42, %v4271_v63 }
 0x103   : > { %v3201_v48 = vpop.f32.mrb[4].mxu0 }
 0x104   : > { %v3202_v49 = vpop.f32.mrb[5].mxu0 }
 0x105   : > { %v3203_v50 = vadd.f32 %v3202_v49, %v3201_v48  ;;  %v3204_v51 = vpop.f32.mrb[6].mxu0 }
 0x106   : > { %v3205_v52 = vpop.f32.mrb[7].mxu0 }
 0x107   : > { %v960_v18 = vadd.f32 %v3203_v50, %v4271_v63 }
 0x10b   : > { %v3207_v53 = vpop.f32.mrb[8].mxu0 }
 0x10c   : > { %v3208_v54 = vpop.f32.mrb[9].mxu0 }
 0x10d   : > { %v3209_v55 = vadd.f32 %v3208_v54, %v3207_v53  ;;  %v3210_v56 = vpop.f32.mrb[10].mxu0 }
 0x10e   : > { %v3211_v57 = vpop.f32.mrb[11].mxu0 }
 0x10f   : > { %v968_v30 = vadd.f32 %v3209_v55, %v4271_v63 }
 0x113   : > { %v3213_v58 = vpop.f32.mrb[12].mxu0 }
 0x114   : > { %v3214_v59 = vpop.f32.mrb[13].mxu0 }
 0x115   : > { %v3215_v60 = vadd.f32 %v3214_v59, %v3213_v58  ;;  %v3216_v61 = vpop.f32.mrb[14].mxu0 }
 0x116   : > { %v3217_v62 = vpop.f32.mrb[15].mxu0 }
 0x117   : > { %v976_v42 = vadd.f32 %v3215_v60, %v4271_v63 }
 0x11b   : > { %v3219_v0 = vpop.f32.mrb[16].mxu0  ;;  %v3275_v1 = vpop.f32.mrb[16].mxu1 }
 0x11c   : > { %v3220_v2 = vpop.f32.mrb[17].mxu0  ;;  %v3276_v3 = vpop.f32.mrb[17].mxu1 }
 0x11d   : > { %v3221_v4 = vadd.f32 %v3220_v2, %v3219_v0  ;;  %v3222_v5 = vpop.f32.mrb[18].mxu0  ;;  %v3277_v7 = vadd.f32 %v3276_v3, %v3275_v1  ;;  %v3278_v8 = vpop.f32.mrb[18].mxu1 }
 0x11e   : > { %v3223_v9 = vpop.f32.mrb[19].mxu0  ;;  %v3279_v10 = vpop.f32.mrb[19].mxu1 }
 0x11f   : > { %v3618_v11 = vadd.f32 %v3277_v7, %v952_v6  ;;  %v984_v50 = vadd.f32 %v3221_v4, %v4271_v63 }
 0x123   : > { %v3225_v12 = vpop.f32.mrb[20].mxu0  ;;  %v3281_v13 = vpop.f32.mrb[20].mxu1 }
 0x124   : > { %v3226_v14 = vpop.f32.mrb[21].mxu0  ;;  %v3282_v15 = vpop.f32.mrb[21].mxu1 }
 0x125   : > { %v3227_v16 = vadd.f32 %v3226_v14, %v3225_v12  ;;  %v3228_v17 = vpop.f32.mrb[22].mxu0  ;;  %v3283_v19 = vadd.f32 %v3282_v15, %v3281_v13  ;;  %v3284_v20 = vpop.f32.mrb[22].mxu1 }
 0x126   : > { %v3229_v21 = vpop.f32.mrb[23].mxu0  ;;  %v3285_v22 = vpop.f32.mrb[23].mxu1 }
 0x127   : > { %v3615_v23 = vadd.f32 %v3283_v19, %v960_v18  ;;  %v992_v0 = vadd.f32 %v3227_v16, %v4271_v63 }
 0x12b   : > { %v3231_v24 = vpop.f32.mrb[24].mxu0  ;;  %v3287_v25 = vpop.f32.mrb[24].mxu1 }
 0x12c   : > { %v3232_v26 = vpop.f32.mrb[25].mxu0  ;;  %v3288_v27 = vpop.f32.mrb[25].mxu1 }
 0x12d   : > { %v3233_v28 = vadd.f32 %v3232_v26, %v3231_v24  ;;  %v3234_v29 = vpop.f32.mrb[26].mxu0  ;;  %v3289_v31 = vadd.f32 %v3288_v27, %v3287_v25  ;;  %v3290_v32 = vpop.f32.mrb[26].mxu1 }
 0x12e   : > { %v3235_v33 = vpop.f32.mrb[27].mxu0  ;;  %v3291_v34 = vpop.f32.mrb[27].mxu1 }
 0x12f   : > { %v3624_v35 = vadd.f32 %v3289_v31, %v968_v30 }
 0x133   : > { %v3237_v36 = vpop.f32.mrb[28].mxu0  ;;  %v3293_v37 = vpop.f32.mrb[28].mxu1 }
 0x134   : > { %v3238_v38 = vpop.f32.mrb[29].mxu0  ;;  %v3294_v39 = vpop.f32.mrb[29].mxu1 }
 0x135   : > { %v3239_v40 = vadd.f32 %v3238_v38, %v3237_v36  ;;  %v3240_v41 = vpop.f32.mrb[30].mxu0  ;;  %v3295_v43 = vadd.f32 %v3294_v39, %v3293_v37  ;;  %v3296_v44 = vpop.f32.mrb[30].mxu1 }
 0x136   : > { %v3241_v45 = vpop.f32.mrb[31].mxu0  ;;  %v3297_v46 = vpop.f32.mrb[31].mxu1 }
 0x137   : > { %v3621_v47 = vadd.f32 %v3295_v43, %v976_v42  ;;  %v1008_v29 = vadd.f32 %v3239_v40, %v4271_v63 }
 0x13b   : > { %v3299_v48 = vpop.f32.mrb[32].mxu1  ;;  %v3355_v53 = vpop.f32.mrb[32].mxu0 }
 0x13c   : > { %v3300_v49 = vpop.f32.mrb[33].mxu1  ;;  %v3356_v56 = vpop.f32.mrb[33].mxu0 }
 0x13d   : > { %v3301_v51 = vadd.f32 %v3300_v49, %v3299_v48  ;;  %v3302_v52 = vpop.f32.mrb[34].mxu1  ;;  %v3357_v57 = vadd.f32 %v3356_v56, %v3355_v53  ;;  %v3358_v58 = vpop.f32.mrb[34].mxu0 }
 0x13e   : > { %v3303_v54 = vpop.f32.mrb[35].mxu1  ;;  %v3359_v59 = vpop.f32.mrb[35].mxu0 }
 0x13f   : > { %v3630_v55 = vadd.f32 %v3301_v51, %v984_v50  ;;  %v4278_v61 = vadd.f32 %v3618_v11, %v3357_v57  ;;  %v1000_v11 = vadd.f32 %v3233_v28, %v4271_v63 }
 0x143   : > { %v3305_v60 = vpop.f32.mrb[36].mxu1  ;;  %v3361_v3 = vpop.f32.mrb[36].mxu0 }
 0x144   : > { %v3306_v62 = vpop.f32.mrb[37].mxu1  ;;  %v3362_v6 = vpop.f32.mrb[37].mxu0 }
 0x145   : > { %v3307_v1 = vadd.f32 %v3306_v62, %v3305_v60  ;;  %v3308_v2 = vpop.f32.mrb[38].mxu1  ;;  %v3363_v7 = vadd.f32 %v3362_v6, %v3361_v3  ;;  %v3364_v8 = vpop.f32.mrb[38].mxu0 }
 0x146   : > { %v3309_v5 = vpop.f32.mrb[39].mxu1  ;;  %v3365_v9 = vpop.f32.mrb[39].mxu0 }
 0x147   : > { %v3627_v4 = vadd.f32 %v3307_v1, %v992_v0  ;;  %v3616_v10 = vadd.f32 %v3615_v23, %v3363_v7 }
 0x14b   : > { %v3311_v12 = vpop.f32.mrb[40].mxu1  ;;  %v3367_v13 = vpop.f32.mrb[40].mxu0 }
 0x14c   : > { %v3312_v14 = vpop.f32.mrb[41].mxu1  ;;  %v3368_v17 = vpop.f32.mrb[41].mxu0 }
 0x14d   : > { %v3313_v15 = vadd.f32 %v3312_v14, %v3311_v12  ;;  %v3314_v18 = vpop.f32.mrb[42].mxu1  ;;  %v3369_v19 = vadd.f32 %v3368_v17, %v3367_v13  ;;  %v3370_v20 = vpop.f32.mrb[42].mxu0 }
 0x14e   : > { %v3315_v16 = vpop.f32.mrb[43].mxu1  ;;  %v3371_v22 = vpop.f32.mrb[43].mxu0 }
 0x14f   : > { %v3636_v21 = vadd.f32 %v3313_v15, %v1000_v11  ;;  %v3625_v24 = vadd.f32 %v3624_v35, %v3369_v19 }
 0x153   : > { %v3317_v25 = vpop.f32.mrb[44].mxu1  ;;  %v3373_v26 = vpop.f32.mrb[44].mxu0 }
 0x154   : > { %v3318_v27 = vpop.f32.mrb[45].mxu1  ;;  %v3374_v30 = vpop.f32.mrb[45].mxu0 }
 0x155   : > { %v3319_v23 = vadd.f32 %v3318_v27, %v3317_v25  ;;  %v3320_v31 = vpop.f32.mrb[46].mxu1  ;;  %v3375_v32 = vadd.f32 %v3374_v30, %v3373_v26  ;;  %v3376_v28 = vpop.f32.mrb[46].mxu0 }
 0x156   : > { %v3321_v33 = vpop.f32.mrb[47].mxu1  ;;  %v3377_v36 = vpop.f32.mrb[47].mxu0 }
 0x157   : > { %v3633_v34 = vadd.f32 %v3319_v23, %v1008_v29  ;;  %v3622_v37 = vadd.f32 %v3621_v47, %v3375_v32 }
 0x15b   : > { %v3379_v38 = vpop.f32.mrb[48].mxu0 }
 0x15c   : > { %v3380_v39 = vpop.f32.mrb[49].mxu0 }
 0x15d   : > { %v3381_v41 = vadd.f32 %v3380_v39, %v3379_v38  ;;  %v3382_v42 = vpop.f32.mrb[50].mxu0 }
 0x15e   : > { %v3383_v43 = vpop.f32.mrb[51].mxu0 }
 0x15f   : > { %v3631_v35 = vadd.f32 %v3630_v55, %v3381_v41 }
 0x163   : > { %v3385_v44 = vpop.f32.mrb[52].mxu0 }
 0x164   : > { %v3386_v45 = vpop.f32.mrb[53].mxu0 }
 0x165   : > { %v3387_v46 = vadd.f32 %v3386_v45, %v3385_v44  ;;  %v3388_v48 = vpop.f32.mrb[54].mxu0 }
 0x166   : > { %v3389_v63 = vpop.f32.mrb[55].mxu0 }
 0x167   : > { %v3628_v40 = vadd.f32 %v3627_v4, %v3387_v46 }
 0x16b   : > { %v3391_v49 = vpop.f32.mrb[56].mxu0 }
 0x16c   : > { %v3392_v50 = vpop.f32.mrb[57].mxu0 }
 0x16d   : > { %v3393_v51 = vadd.f32 %v3392_v50, %v3391_v49  ;;  %v3394_v52 = vpop.f32.mrb[58].mxu0 }
 0x16e   : > { %v3395_v53 = vpop.f32.mrb[59].mxu0 }
 0x16f   : > { %v3637_v54 = vadd.f32 %v3636_v21, %v3393_v51  ;;  %v3171_v21 = vld [vmem:[%s4313_s5] ss:$0 sm:$0xff] }
 0x173   : > { %v3397_v56 = vpop.f32.mrb[60].mxu0 }
 0x174   : > { %v3398_v47 = vpop.f32.mrb[61].mxu0 }
 0x175   : > { %v3399_v57 = vadd.f32 %v3398_v47, %v3397_v56  ;;  %v3400_v58 = vpop.f32.mrb[62].mxu0 }
 0x176   : > { %v3401_v59 = vpop.f32.mrb[63].mxu0 }
 0x177   : > { %v3634_v60 = vadd.f32 %v3633_v34, %v3399_v57 }
 0x17b   : > { %v3525_v62 = vpop.f32.mrb[0].mxu1 }
 0x17c   : > { %v3617_v55 = vadd.f32 %v3616_v10, %v3525_v62  ;;  %v2552_v0 = vpop.f32.mrb[1].mxu1 }
 0x17d   : > { %v3620_v1 = vadd.f32 %v4278_v61, %v2552_v0  ;;  %v3526_v2 = vpop.f32.mrb[2].mxu1 }
 0x17e   : > { %v2555_v3 = vpop.f32.mrb[3].mxu1 }
 0x17f   : > { %3571 = vmatprep.mubr.f32.mxu0 %v3620_v1 }
 0x180   : > { %3572 = vmatmul.mubr.f32.vlgmr.msra.gmra.mrb[64].mxu0 %v3617_v55 }
 0x183   : > { %v3529_v5 = vpop.f32.mrb[4].mxu1 }
 0x184   : > { %v3623_v4 = vadd.f32 %v3622_v37, %v3529_v5  ;;  %v2568_v6 = vpop.f32.mrb[5].mxu1 }
 0x185   : > { %v3626_v7 = vadd.f32 %v3625_v24, %v2568_v6  ;;  %v3530_v8 = vpop.f32.mrb[6].mxu1 }
 0x186   : > { %v2571_v9 = vpop.f32.mrb[7].mxu1 }
 0x187   : > { %3574 = vmatprep.mubr.f32.mxu0 %v3626_v7 }
 0x188   : > { %3575 = vmatmul.mubr.f32.gmra.mrb[66].mxu0 %v3623_v4 }
 0x18b   : > { %v3533_v12 = vpop.f32.mrb[8].mxu1 }
 0x18c   : > { %v3629_v13 = vadd.f32 %v3628_v40, %v3533_v12  ;;  %v2584_v14 = vpop.f32.mrb[9].mxu1 }
 0x18d   : > { %v3632_v10 = vadd.f32 %v3631_v35, %v2584_v14  ;;  %v3534_v11 = vpop.f32.mrb[10].mxu1 }
 0x18e   : > { %v2587_v15 = vpop.f32.mrb[11].mxu1 }
 0x18f   : > { %3577 = vmatprep.mubr.f32.mxu0 %v3632_v10 }
 0x190   : > { %3578 = vmatmul.mubr.f32.gmra.mrb[68].mxu0 %v3629_v13 }
 0x193   : > { %v3537_v61 = vpop.f32.mrb[12].mxu1 }
 0x194   : > { %v3635_v17 = vadd.f32 %v3634_v60, %v3537_v61  ;;  %v2600_v18 = vpop.f32.mrb[13].mxu1 }
 0x195   : > { %v3638_v19 = vadd.f32 %v3637_v54, %v2600_v18  ;;  %v3538_v16 = vpop.f32.mrb[14].mxu1 }
 0x196   : > { %v2603_v20 = vpop.f32.mrb[15].mxu1 }
 0x197   : > { %3580 = vmatprep.mubr.f32.mxu0 %v3638_v19 }
 0x198   : > { %3581 = vmatmul.mubr.f32.gmra.mrb[70].mxu0 %v3635_v17 }
 0x253   : > { %v3573_v22 = vpop.f32.mrb[64].mxu0 }
 0x254   : > { %v2766_v24 = vadd.f32 %v3573_v22, %v3171_v21  ;;  %v2760_v25 = vpop.f32.mrb[65].mxu0 }
 0x255   : > { %v2761_v26 = vadd.f32 %v3171_v21, %v2760_v25 }
 0x256   : > { %2801 = vst.msk [vmem:[%s339_s17 + $0x8] sm:$0xff] %vm2799_vm2, %v2766_v24 }
 0x257   : > { %2800 = vst.msk [vmem:[%s339_s17] sm:$0xff] %vm2799_vm2, %v2761_v26 }
 0x25b   : > { %v3576_v27 = vpop.f32.mrb[66].mxu0 }
 0x25c   : > { %v2776_v29 = vadd.f32 %v3576_v27, %v3171_v21  ;;  %v2770_v23 = vpop.f32.mrb[67].mxu0 }
 0x25d   : > { %v2771_v30 = vadd.f32 %v3171_v21, %v2770_v23 }
 0x25e   : > { %2803 = vst.msk [vmem:[%s339_s17 + $0x18] sm:$0xff] %vm2799_vm2, %v2776_v29 }
 0x25f   : > { %2802 = vst.msk [vmem:[%s339_s17 + $0x10] sm:$0xff] %vm2799_vm2, %v2771_v30 }
 0x263   : > { %v3579_v31 = vpop.f32.mrb[68].mxu0 }
 0x264   : > { %v2786_v32 = vadd.f32 %v3579_v31, %v3171_v21  ;;  %v2780_v33 = vpop.f32.mrb[69].mxu0 }
 0x265   : > { %v2781_v28 = vadd.f32 %v3171_v21, %v2780_v33 }
 0x266   : > { %2805 = vst.msk [vmem:[%s339_s17 + $0x28] sm:$0xff] %vm2799_vm2, %v2786_v32 }
 0x267   : > { %2804 = vst.msk [vmem:[%s339_s17 + $0x20] sm:$0xff] %vm2799_vm2, %v2781_v28 }
 0x26b   : > { %v3582_v34 = vpop.f32.mrb[70].mxu0 }
 0x26c   : > { %v2796_v36 = vadd.f32 %v3582_v34, %v3171_v21  ;;  %v2790_v37 = vpop.f32.mrb[71].mxu0 }
 0x26d   : > { %v2791_v38 = vadd.f32 %v3171_v21, %v2790_v37 }
 0x26e   : > { %2807 = vst.msk [vmem:[%s339_s17 + $0x38] sm:$0xff] %vm2799_vm2, %v2796_v36 }
 0x26f   : > { %2806 = vst.msk [vmem:[%s339_s17 + $0x30] sm:$0xff] %vm2799_vm2, %v2791_v38 }
 0x270 PF: > { %s16_s23 = sadd.s32 1, %s3868_s23   ;;  %s4315_s21 = smov %s3864_s22 }
 0x271   : > { %p13_p5 = scmp.ge.s32.totalorder %s16_s23, 4   ;;  %s4316_s22 = smov %s4318_s24 }
 0x273   :  { %15 = sbr.rel (!%p13_p5) target bundleno = 2 (0x2), region = 79 }

</bundles_post_ra>
